<compile_context>
chip_gen: v5e
topology: v5e:2x2
jax: 0.10.0
libtpu: 0.0.40
codegen_flags: <defaults>
</compile_context>

<pallas_src>
import jax
import jax.numpy as jnp
from jax import lax
from jax.experimental import pallas as pl
from jax.experimental.pallas import tpu as pltpu


def _leaky(x):
    return jnp.where(x > 0, x, 0.1 * x)


# ----------------------------------------------------------------------------
# Call A: degree + logits + exact per-node online softmax statistics
# ----------------------------------------------------------------------------
def _edge_stats_kernel(irow_ref, jrow_ref, av_ref,
                       fT_ref, w1a_ref, w1b_ref, b1_ref,
                       w2h_ref, w2v_ref, b2_ref, wc_ref, bc_ref,
                       e_ref, m_ref, l_ref,
                       ga_ref, gb_ref, iota_ref, eye_ref):
    p = pl.program_id(0)            # 0: weighted degree, 1: logits + node stats
    t = pl.program_id(1)            # edge tile
    f32 = jnp.float32
    N = m_ref.shape[1]              # number of graph nodes
    TE = av_ref.shape[1]            # edges per tile
    D1 = gb_ref.shape[0]            # layer-1 output dim
    NEG = jnp.float32(-1e30)        # finite "-inf" (avoids inf-inf NaNs)

    i_row = irow_ref[...]           # (1, TE) int32, edges on lanes
    av = av_ref[...]                # (1, TE) f32,  |Jt_val|

    # ---- one-time init: cached iota / identity + hoisted layer-1 tables ----
    @pl.when((p == 0) & (t == 0))
    def _init():
        iota_ref[...] = lax.broadcasted_iota(jnp.int32, (N, TE), 0)
        eye_ref[...] = (lax.broadcasted_iota(jnp.int32, (N, N), 0)
                        == lax.broadcasted_iota(jnp.int32, (N, N), 1)).astype(f32)
        # rows 0..D1-1: W1_a f^T + b1 ; row D1: weighted degree (accumulated pass 0)
        ga_ref[pl.ds(0, D1), :] = (jnp.dot(w1a_ref[...], fT_ref[...],
                                           preferred_element_type=f32)
                                   + b1_ref[...])
        ga_ref[pl.ds(D1, 1), :] = jnp.zeros((1, N), f32)
        gb_ref[...] = jnp.dot(w1b_ref[...], fT_ref[...], preferred_element_type=f32)
        m_ref[...] = jnp.full((1, N), NEG, f32)
        l_ref[...] = jnp.zeros((1, N), f32)

    # source-node membership one-hot (cached iota; no (TE, N) variant anywhere)
    eq_i = iota_ref[...] == i_row                    # (N, TE) bool
    m_i = eq_i.astype(f32)                           # (N, TE) f32

    # ---- pass 0: weighted degree scatter-add, folded into ga row D1 --------
    @pl.when(p == 0)
    def _degree():
        deg_tile = lax.dot_general(av, m_i, (((1,), (1,)), ((), ())),
                                   preferred_element_type=f32)          # (1, N)
        ga_ref[pl.ds(D1, 1), :] += deg_tile

    # ---- pass 1: edge logits + exact per-node (segment) online softmax -----
    @pl.when(p == 1)
    def _logits():
        m_j = (iota_ref[...] == jrow_ref[...]).astype(f32)              # (N, TE)

        # single i-gather gives both h_i (rows 0..D1-1) and deg_e (row D1)
        gi = jnp.dot(ga_ref[...], m_i, preferred_element_type=f32)      # (D1+1, TE)
        gj = jnp.dot(gb_ref[...], m_j, preferred_element_type=f32)      # (D1, TE)

        deg_e = gi[D1:D1 + 1, :]                                        # (1, TE)
        deg_e = jnp.where(deg_e > 0, deg_e, 1.0)    # guards padded edges
        val_norm = av / deg_e                                           # (1, TE)

        h = _leaky(gi[:D1, :] + gj)                                     # (D1, TE)
        z = _leaky(jnp.dot(w2h_ref[...], h, preferred_element_type=f32)
                   + w2v_ref[...] * val_norm + b2_ref[...])             # (D2, TE)
        e = jnp.sum(z * wc_ref[...], axis=0, keepdims=True) + bc_ref[...]  # (1, TE)
        e_ref[...] = e                              # lane-dense HBM output tile

        # exact per-node running max (fixes the global-max underflow risk)
        masked = jnp.where(eq_i, e, NEG)                                # (N, TE)
        tmax_col = jnp.max(masked, axis=1, keepdims=True)               # (N, 1)
        # sublane->lane relayout via identity mul + sublane reduce (cheap, robust)
        tmax_row = jnp.sum(tmax_col * eye_ref[...], axis=0, keepdims=True)  # (1, N)
        m_old = m_ref[...]
        m_new = jnp.maximum(m_old, tmax_row)

        m_e = jnp.dot(m_new, m_i, preferred_element_type=f32)           # (1, TE)
        ex = jnp.exp(e - m_e)                                           # (1, TE)
        l_tile = lax.dot_general(ex, m_i, (((1,), (1,)), ((), ())),
                                 preferred_element_type=f32)            # (1, N)
        l_ref[...] = l_ref[...] * jnp.exp(m_old - m_new) + l_tile
        m_ref[...] = m_new


# ----------------------------------------------------------------------------
# Call B: per-edge normalization  a = exp(e - m[i]) / l[i]   (parallel tiles)
# ----------------------------------------------------------------------------
def _finalize_kernel(irow_ref, e_ref, m_ref, l_ref, out_ref):
    f32 = jnp.float32
    N = m_ref.shape[1]
    TE = e_ref.shape[1]
    # tiles are independent ("parallel"), so the iota is regenerated per tile
    m_i = (lax.broadcasted_iota(jnp.int32, (N, TE), 0)
           == irow_ref[...]).astype(f32)                                # (N, TE)
    m_e = jnp.dot(m_ref[...], m_i, preferred_element_type=f32)          # (1, TE)
    l_e = jnp.dot(l_ref[...], m_i, preferred_element_type=f32)          # (1, TE)
    l_e = jnp.where(l_e > 0, l_e, 1.0)              # padded edges only
    out_ref[...] = jnp.exp(e_ref[...] - m_e) / l_e  # exact divide (no approx recip)


# ----------------------------------------------------------------------------
# Wrapper: lane-dense edge layout, padding, BlockSpecs / grids.
# ----------------------------------------------------------------------------
def attention_prediction_asym_forward(Jt_ind, Jt_val, f, N, params, *,
                                      tile_edges=1024):
    w1a, w1b, b1c, w2h, w2v, b2c, wcc, bcc = params
    f32 = jnp.float32
    N = int(N)

    i_idx = Jt_ind[0].astype(jnp.int32)
    j_idx = Jt_ind[1].astype(jnp.int32)
    E = int(Jt_val.shape[0])
    TE = int(tile_edges)
    T = -(-E // TE)
    Ep = T * TE
    pad = Ep - E

    # padded edges point at dummy node index N -> excluded by every one-hot
    i_row = jnp.pad(i_idx, (0, pad), constant_values=N).reshape(1, Ep)
    j_row = jnp.pad(j_idx, (0, pad), constant_values=N).reshape(1, Ep)
    av_row = jnp.pad(jnp.abs(Jt_val).astype(f32), (0, pad)).reshape(1, Ep)
    fT = f.astype(f32).T                  # (F, N)

    D1 = int(w1a.shape[0])

    edge_spec = pl.BlockSpec((1, TE), lambda p, t: (0, t))

    def resident(x):                      # full array, VMEM-resident across the grid
        nd = x.ndim
        return pl.BlockSpec(x.shape, lambda p, t, _nd=nd: (0,) * _nd)

    # ---- call A: (2 passes, T edge tiles), both sequential ------------------
    e_row, m_nodes, l_nodes = pl.pallas_call(
        _edge_stats_kernel,
        out_shape=(jax.ShapeDtypeStruct((1, Ep), f32),    # per-edge logits
                   jax.ShapeDtypeStruct((1, N), f32),     # per-node max
                   jax.ShapeDtypeStruct((1, N), f32)),    # per-node sum exp
        grid_spec=pltpu.PrefetchScalarGridSpec(
            num_scalar_prefetch=0,
            grid=(2, T),
            in_specs=[edge_spec, edge_spec, edge_spec,
                      resident(fT), resident(w1a), resident(w1b), resident(b1c),
                      resident(w2h), resident(w2v), resident(b2c),
                      resident(wcc), resident(bcc)],
            out_specs=(
                # parks on block 0 during pass 0 (never written -> no stale
                # write-backs), advances with t only in pass 1 when written.
                pl.BlockSpec((1, TE), lambda p, t: (0, t * p)),
                pl.BlockSpec((1, N), lambda p, t: (0, 0)),
                pl.BlockSpec((1, N), lambda p, t: (0, 0)),
            ),
            scratch_shapes=[
                pltpu.VMEM((D1 + 1, N), f32),     # [W1_a f^T + b1 ; weighted degree]
                pltpu.VMEM((D1, N), f32),         # W1_b f^T
                pltpu.VMEM((N, TE), jnp.int32),   # cached node-index iota
                pltpu.VMEM((N, N), f32),          # cached identity (relayout helper)
            ]),
        compiler_params=pltpu.CompilerParams(
            dimension_semantics=("arbitrary", "arbitrary"),
            vmem_limit_bytes=32 * 1024 * 1024),
    )(i_row, j_row, av_row, fT, w1a, w1b, b1c, w2h, w2v, b2c, wcc, bcc)

    # ---- call B: embarrassingly-parallel finalize over edge tiles -----------
    out = pl.pallas_call(
        _finalize_kernel,
        out_shape=jax.ShapeDtypeStruct((1, Ep), f32),
        grid_spec=pltpu.PrefetchScalarGridSpec(
            num_scalar_prefetch=0,
            grid=(T,),
            in_specs=[pl.BlockSpec((1, TE), lambda t: (0, t)),
                      pl.BlockSpec((1, TE), lambda t: (0, t)),
                      pl.BlockSpec((1, N), lambda t: (0, 0)),
                      pl.BlockSpec((1, N), lambda t: (0, 0))],
            out_specs=pl.BlockSpec((1, TE), lambda t: (0, t))),
        compiler_params=pltpu.CompilerParams(
            dimension_semantics=("parallel",),
            vmem_limit_bytes=32 * 1024 * 1024),
    )(i_row, e_row, m_nodes, l_nodes)

    return out[0, :E]                     # (E,) like .squeeze(1)


# ----------------------------------------------------------------------------
# Deterministic parameter init (mirrors nn.Linear default init, collapse_bias=1)
# ----------------------------------------------------------------------------
def init_params(key, feature_dim):
    d_in1 = feature_dim * 2
    d1 = int(d_in1 ** 0.5)
    d_in2 = d1 + 1
    d2 = d_in2
    k1, k2, k3, k4, k5 = jax.random.split(key, 5)

    def uni(k, shape, fan_in):
        bound = 1.0 / (fan_in ** 0.5)
        return jax.random.uniform(k, shape, jnp.float32, -bound, bound)

    W1 = uni(k1, (d1, d_in1), d_in1)          # torch layout (out, in)
    b1 = uni(k2, (d1,), d_in1)
    W2 = uni(k3, (d2, d_in2), d_in2)
    b2 = uni(k4, (d2,), d_in2)
    Wc = uni(k5, (1, d2), d2)
    bc = jnp.ones((1,), jnp.float32)          # collapse.bias.data.fill_(1)

    kernel_params = (
        W1[:, :feature_dim],                  # w1a (D1, F)
        W1[:, feature_dim:],                  # w1b (D1, F)
        b1.reshape(d1, 1),                    # b1  (D1, 1)
        W2[:, :d1],                           # w2h (D2, D1)
        W2[:, d1:d1 + 1],                     # w2v (D2, 1)
        b2.reshape(d2, 1),                    # b2  (D2, 1)
        Wc.T,                                 # wc  (D2, 1)
        bc.reshape(1, 1),                     # bc  (1, 1)
    )
    torch_params = (W1, b1, W2, b2, Wc, bc)
    return kernel_params, torch_params


# ----------------------------------------------------------------------------
# Pure-JAX reference (mirrors the PyTorch forward) for a correctness check.
# ----------------------------------------------------------------------------
def reference_forward(Jt_ind, Jt_val, f, N, torch_params):
    W1, b1, W2, b2, Wc, bc = torch_params
    hp = jax.lax.Precision.HIGHEST
    i_idx, j_idx = Jt_ind[0], Jt_ind[1]
    absval = jnp.abs(Jt_val)
    deg = jax.ops.segment_sum(absval, i_idx, num_segments=N)
    val_norm = absval / deg[i_idx]
    inp = jnp.concatenate([f[i_idx], f[j_idx]], axis=1)
    leaky = lambda x: jnp.where(x > 0, x, 0.1 * x)
    x = leaky(jnp.dot(inp, W1.T, precision=hp) + b1)
    x = jnp.concatenate([x, val_norm[:, None]], axis=1)
    x = leaky(jnp.dot(x, W2.T, precision=hp) + b2)
    e = (jnp.dot(x, Wc.T, precision=hp) + bc)[:, 0]
    seg_max = jax.ops.segment_max(e, i_idx, num_segments=N)
    ex = jnp.exp(e - seg_max[i_idx])
    seg_sum = jax.ops.segment_sum(ex, i_idx, num_segments=N)
    return ex / seg_sum[i_idx]


if __name__ == "__main__":
    feature_dim = 32      # layer1: 64 -> 8, layer2: 9 -> 9, collapse: 9 -> 1
    N = 128               # number of nodes
    E = 2500              # number of edges (3 tiles at TE=1024 -> exercises
                          # padding, multi-tile accumulation and online rescale)

    key = jax.random.PRNGKey(0)
    kp, ki, kj, kv, kf = jax.random.split(key, 5)

    params, torch_params = init_params(kp, feature_dim)

    i_idx = jax.random.randint(ki, (E,), 0, N, dtype=jnp.int32)
    j_idx = jax.random.randint(kj, (E,), 0, N, dtype=jnp.int32)
    Jt_ind = jnp.stack([i_idx, j_idx], axis=0)                 # (2, E)
    Jt_val = jax.random.normal(kv, (E,), jnp.float32)          # (E,)
    f = jax.random.normal(kf, (N, feature_dim), jnp.float32)   # (N, F)

    a_values = attention_prediction_asym_forward(Jt_ind, Jt_val, f, N, params,
                                                 tile_edges=1024)
    a_values = jax.block_until_ready(a_values)

    a_ref = reference_forward(Jt_ind, Jt_val, f, N, torch_params)
    assert a_values.shape == (E,)
    assert bool(jnp.all(jnp.isfinite(a_values)))
    assert jnp.allclose(a_values, a_ref, rtol=1e-2, atol=1e-6), (
        "mismatch vs reference")

    print("KERNEL_OK")
</pallas_src>

<mosaic_0001>
module attributes {stable_mosaic.version = 11 : i64} {
  func.func @_edge_stats_kernel(%arg0: i32, %arg1: i32, %arg2: memref<1x1024xi32, #tpu.memory_space<vmem>>, %arg3: memref<1x1024xi32, #tpu.memory_space<vmem>>, %arg4: memref<1x1024xf32, #tpu.memory_space<vmem>>, %arg5: memref<32x128xf32, #tpu.memory_space<vmem>>, %arg6: memref<8x32xf32, #tpu.memory_space<vmem>>, %arg7: memref<8x32xf32, #tpu.memory_space<vmem>>, %arg8: memref<8x1xf32, #tpu.memory_space<vmem>>, %arg9: memref<9x8xf32, #tpu.memory_space<vmem>>, %arg10: memref<9x1xf32, #tpu.memory_space<vmem>>, %arg11: memref<9x1xf32, #tpu.memory_space<vmem>>, %arg12: memref<9x1xf32, #tpu.memory_space<vmem>>, %arg13: memref<1x1xf32, #tpu.memory_space<vmem>>, %arg14: memref<1x1024xf32, #tpu.memory_space<vmem>>, %arg15: memref<1x128xf32, #tpu.memory_space<vmem>>, %arg16: memref<1x128xf32, #tpu.memory_space<vmem>>, %arg17: memref<9x128xf32, #tpu.memory_space<vmem>>, %arg18: memref<8x128xf32, #tpu.memory_space<vmem>>, %arg19: memref<128x1024xi32, #tpu.memory_space<vmem>>, %arg20: memref<128x128xf32, #tpu.memory_space<vmem>>) attributes {dimension_semantics = [#tpu.dimension_semantics<arbitrary>, #tpu.dimension_semantics<arbitrary>], iteration_bounds = array<i64: 2, 3>, scalar_prefetch = 0 : i64, scratch_operands = 4 : i64, tpu.core_type = #tpu.core_type<tc>, window_params = [{transform_indices = @transform_0, window_bounds = array<i64: 1, 1024>}, {transform_indices = @transform_1, window_bounds = array<i64: 1, 1024>}, {transform_indices = @transform_2, window_bounds = array<i64: 1, 1024>}, {pipeline_mode = #tpu.pipeline_mode<synchronous>, transform_indices = @transform_3, window_bounds = array<i64: 32, 128>}, {pipeline_mode = #tpu.pipeline_mode<synchronous>, transform_indices = @transform_4, window_bounds = array<i64: 8, 32>}, {pipeline_mode = #tpu.pipeline_mode<synchronous>, transform_indices = @transform_5, window_bounds = array<i64: 8, 32>}, {pipeline_mode = #tpu.pipeline_mode<synchronous>, transform_indices = @transform_6, window_bounds = array<i64: 8, 1>}, {pipeline_mode = #tpu.pipeline_mode<synchronous>, transform_indices = @transform_7, window_bounds = array<i64: 9, 8>}, {pipeline_mode = #tpu.pipeline_mode<synchronous>, transform_indices = @transform_8, window_bounds = array<i64: 9, 1>}, {pipeline_mode = #tpu.pipeline_mode<synchronous>, transform_indices = @transform_9, window_bounds = array<i64: 9, 1>}, {pipeline_mode = #tpu.pipeline_mode<synchronous>, transform_indices = @transform_10, window_bounds = array<i64: 9, 1>}, {pipeline_mode = #tpu.pipeline_mode<synchronous>, transform_indices = @transform_11, window_bounds = array<i64: 1, 1>}, {transform_indices = @transform_12, window_bounds = array<i64: 1, 1024>}, {pipeline_mode = #tpu.pipeline_mode<synchronous>, transform_indices = @transform_13, window_bounds = array<i64: 1, 128>}, {pipeline_mode = #tpu.pipeline_mode<synchronous>, transform_indices = @transform_14, window_bounds = array<i64: 1, 128>}]} {
    %c0 = arith.constant 0 : index
    %c0_0 = arith.constant 0 : index
    %0 = vector.load %arg2[%c0, %c0_0] : memref<1x1024xi32, #tpu.memory_space<vmem>>, vector<1x1024xi32>
    %c0_1 = arith.constant 0 : index
    %c0_2 = arith.constant 0 : index
    %1 = vector.load %arg4[%c0_1, %c0_2] : memref<1x1024xf32, #tpu.memory_space<vmem>>, vector<1x1024xf32>
    %c0_i32 = arith.constant 0 : i32
    %2 = arith.cmpi eq, %arg0, %c0_i32 : i32
    %c0_i32_3 = arith.constant 0 : i32
    %3 = arith.cmpi eq, %arg1, %c0_i32_3 : i32
    %4 = arith.andi %2, %3 : i1
    %5 = arith.extui %4 : i1 to i32
    %cst = arith.constant -1.000000e+30 : f32
    %c0_i32_4 = arith.constant 0 : i32
    %6 = arith.cmpi ne, %5, %c0_i32_4 : i32
    scf.if %6 {
      %18 = tpu.iota {dimensions = array<i32: 0>} : vector<128x1024xi32>
      %c0_11 = arith.constant 0 : index
      %c0_12 = arith.constant 0 : index
      %19 = vector.load %arg19[%c0_11, %c0_12] : memref<128x1024xi32, #tpu.memory_space<vmem>>, vector<128x1024xi32>
      tpu.vector_store %arg19[%c0_11, %c0_12], %18 {strides = array<i32>} : memref<128x1024xi32, #tpu.memory_space<vmem>>, vector<128x1024xi32>,
      %20 = tpu.iota {dimensions = array<i32: 0>} : vector<128x128xi32>
      %21 = tpu.iota {dimensions = array<i32: 1>} : vector<128x128xi32>
      %22 = arith.cmpi eq, %20, %21 : vector<128x128xi32>
      %23 = arith.extui %22 : vector<128x128xi1> to vector<128x128xi32>
      %24 = arith.sitofp %23 : vector<128x128xi32> to vector<128x128xf32>
      %c0_13 = arith.constant 0 : index
      %c0_14 = arith.constant 0 : index
      %25 = vector.load %arg20[%c0_13, %c0_14] : memref<128x128xf32, #tpu.memory_space<vmem>>, vector<128x128xf32>
      tpu.vector_store %arg20[%c0_13, %c0_14], %24 {strides = array<i32>} : memref<128x128xf32, #tpu.memory_space<vmem>>, vector<128x128xf32>,
      %c0_15 = arith.constant 0 : index
      %c0_16 = arith.constant 0 : index
      %26 = vector.load %arg6[%c0_15, %c0_16] : memref<8x32xf32, #tpu.memory_space<vmem>>, vector<8x32xf32>
      %c0_17 = arith.constant 0 : index
      %c0_18 = arith.constant 0 : index
      %27 = vector.load %arg5[%c0_17, %c0_18] : memref<32x128xf32, #tpu.memory_space<vmem>>, vector<32x128xf32>
      %cst_19 = arith.constant dense<0.000000e+00> : vector<8x128xf32>
      %28 = tpu.matmul %26, %27, %cst_19 {dimension_numbers = #tpu.dot_dimension_numbers<[1], [0], [0], [1], [0, 0, 1, 1], [], []>} : vector<8x32xf32>, vector<32x128xf32>, vector<8x128xf32> -> vector<8x128xf32>
      %c0_20 = arith.constant 0 : index
      %c0_21 = arith.constant 0 : index
      %29 = vector.load %arg8[%c0_20, %c0_21] : memref<8x1xf32, #tpu.memory_space<vmem>>, vector<8x1xf32>
      %30 = vector.broadcast %29 : vector<8x1xf32> to vector<8x128xf32>
      %31 = arith.addf %28, %30 : vector<8x128xf32>
      %c0_22 = arith.constant 0 : index
      %c0_23 = arith.constant 0 : index
      %32 = vector.load %arg17[%c0_22, %c0_23] : memref<9x128xf32, #tpu.memory_space<vmem>>, vector<8x128xf32>
      tpu.vector_store %arg17[%c0_22, %c0_23], %31 {strides = array<i32>} : memref<9x128xf32, #tpu.memory_space<vmem>>, vector<8x128xf32>,
      %cst_24 = arith.constant 0.000000e+00 : f32
      %33 = vector.broadcast %cst_24 : f32 to vector<1x128xf32>
      %c8 = arith.constant 8 : index
      %c0_25 = arith.constant 0 : index
      %34 = vector.load %arg17[%c8, %c0_25] : memref<9x128xf32, #tpu.memory_space<vmem>>, vector<1x128xf32>
      tpu.vector_store %arg17[%c8, %c0_25], %33 {strides = array<i32>} : memref<9x128xf32, #tpu.memory_space<vmem>>, vector<1x128xf32>,
      %c0_26 = arith.constant 0 : index
      %c0_27 = arith.constant 0 : index
      %35 = vector.load %arg7[%c0_26, %c0_27] : memref<8x32xf32, #tpu.memory_space<vmem>>, vector<8x32xf32>
      %c0_28 = arith.constant 0 : index
      %c0_29 = arith.constant 0 : index
      %36 = vector.load %arg5[%c0_28, %c0_29] : memref<32x128xf32, #tpu.memory_space<vmem>>, vector<32x128xf32>
      %cst_30 = arith.constant dense<0.000000e+00> : vector<8x128xf32>
      %37 = tpu.matmul %35, %36, %cst_30 {dimension_numbers = #tpu.dot_dimension_numbers<[1], [0], [0], [1], [0, 0, 1, 1], [], []>} : vector<8x32xf32>, vector<32x128xf32>, vector<8x128xf32> -> vector<8x128xf32>
      %c0_31 = arith.constant 0 : index
      %c0_32 = arith.constant 0 : index
      %38 = vector.load %arg18[%c0_31, %c0_32] : memref<8x128xf32, #tpu.memory_space<vmem>>, vector<8x128xf32>
      tpu.vector_store %arg18[%c0_31, %c0_32], %37 {strides = array<i32>} : memref<8x128xf32, #tpu.memory_space<vmem>>, vector<8x128xf32>,
      %39 = vector.broadcast %cst : f32 to vector<1x128xf32>
      %c0_33 = arith.constant 0 : index
      %c0_34 = arith.constant 0 : index
      %40 = vector.load %arg15[%c0_33, %c0_34] : memref<1x128xf32, #tpu.memory_space<vmem>>, vector<1x128xf32>
      tpu.vector_store %arg15[%c0_33, %c0_34], %39 {strides = array<i32>} : memref<1x128xf32, #tpu.memory_space<vmem>>, vector<1x128xf32>,
      %cst_35 = arith.constant 0.000000e+00 : f32
      %41 = vector.broadcast %cst_35 : f32 to vector<1x128xf32>
      %c0_36 = arith.constant 0 : index
      %c0_37 = arith.constant 0 : index
      %42 = vector.load %arg16[%c0_36, %c0_37] : memref<1x128xf32, #tpu.memory_space<vmem>>, vector<1x128xf32>
      tpu.vector_store %arg16[%c0_36, %c0_37], %41 {strides = array<i32>} : memref<1x128xf32, #tpu.memory_space<vmem>>, vector<1x128xf32>,
    } else {
    }
    %c0_5 = arith.constant 0 : index
    %c0_6 = arith.constant 0 : index
    %7 = vector.load %arg19[%c0_5, %c0_6] : memref<128x1024xi32, #tpu.memory_space<vmem>>, vector<128x1024xi32>
    %8 = vector.broadcast %0 : vector<1x1024xi32> to vector<128x1024xi32>
    %9 = arith.cmpi eq, %7, %8 : vector<128x1024xi32>
    %10 = arith.extui %9 : vector<128x1024xi1> to vector<128x1024xi32>
    %11 = arith.sitofp %10 : vector<128x1024xi32> to vector<128x1024xf32>
    %c0_i32_7 = arith.constant 0 : i32
    %12 = arith.cmpi eq, %arg0, %c0_i32_7 : i32
    %13 = arith.extui %12 : i1 to i32
    %c0_i32_8 = arith.constant 0 : i32
    %14 = arith.cmpi ne, %13, %c0_i32_8 : i32
    scf.if %14 {
      %cst_11 = arith.constant dense<0.000000e+00> : vector<1x128xf32>
      %18 = tpu.matmul %1, %11, %cst_11 {dimension_numbers = #tpu.dot_dimension_numbers<[1], [1], [0], [0], [0, 0, 1, 0], [], []>} : vector<1x1024xf32>, vector<128x1024xf32>, vector<1x128xf32> -> vector<1x128xf32>
      %c8 = arith.constant 8 : index
      %c0_12 = arith.constant 0 : index
      %19 = vector.load %arg17[%c8, %c0_12] : memref<9x128xf32, #tpu.memory_space<vmem>>, vector<1x128xf32>
      %20 = arith.addf %19, %18 : vector<1x128xf32>
      %c8_13 = arith.constant 8 : index
      %c0_14 = arith.constant 0 : index
      %21 = vector.load %arg17[%c8_13, %c0_14] : memref<9x128xf32, #tpu.memory_space<vmem>>, vector<1x128xf32>
      tpu.vector_store %arg17[%c8_13, %c0_14], %20 {strides = array<i32>} : memref<9x128xf32, #tpu.memory_space<vmem>>, vector<1x128xf32>,
    } else {
    }
    %c1_i32 = arith.constant 1 : i32
    %15 = arith.cmpi eq, %arg0, %c1_i32 : i32
    %16 = arith.extui %15 : i1 to i32
    %cst_9 = arith.constant -1.000000e+30 : f32
    %c0_i32_10 = arith.constant 0 : i32
    %17 = arith.cmpi ne, %16, %c0_i32_10 : i32
    scf.if %17 {
      %c0_11 = arith.constant 0 : index
      %c0_12 = arith.constant 0 : index
      %18 = vector.load %arg19[%c0_11, %c0_12] : memref<128x1024xi32, #tpu.memory_space<vmem>>, vector<128x1024xi32>
      %c0_13 = arith.constant 0 : index
      %c0_14 = arith.constant 0 : index
      %19 = vector.load %arg3[%c0_13, %c0_14] : memref<1x1024xi32, #tpu.memory_space<vmem>>, vector<1x1024xi32>
      %20 = vector.broadcast %19 : vector<1x1024xi32> to vector<128x1024xi32>
      %21 = arith.cmpi eq, %18, %20 : vector<128x1024xi32>
      %22 = arith.extui %21 : vector<128x1024xi1> to vector<128x1024xi32>
      %23 = arith.sitofp %22 : vector<128x1024xi32> to vector<128x1024xf32>
      %c0_15 = arith.constant 0 : index
      %c0_16 = arith.constant 0 : index
      %24 = vector.load %arg17[%c0_15, %c0_16] : memref<9x128xf32, #tpu.memory_space<vmem>>, vector<9x128xf32>
      %cst_17 = arith.constant dense<0.000000e+00> : vector<9x1024xf32>
      %25 = tpu.matmul %24, %11, %cst_17 {dimension_numbers = #tpu.dot_dimension_numbers<[1], [0], [0], [1], [0, 0, 1, 1], [], []>} : vector<9x128xf32>, vector<128x1024xf32>, vector<9x1024xf32> -> vector<9x1024xf32>
      %c0_18 = arith.constant 0 : index
      %c0_19 = arith.constant 0 : index
      %26 = vector.load %arg18[%c0_18, %c0_19] : memref<8x128xf32, #tpu.memory_space<vmem>>, vector<8x128xf32>
      %cst_20 = arith.constant dense<0.000000e+00> : vector<8x1024xf32>
      %27 = tpu.matmul %26, %23, %cst_20 {dimension_numbers = #tpu.dot_dimension_numbers<[1], [0], [0], [1], [0, 0, 1, 1], [], []>} : vector<8x128xf32>, vector<128x1024xf32>, vector<8x1024xf32> -> vector<8x1024xf32>
      %28 = vector.extract_strided_slice %25 {offsets = [8, 0], sizes = [1, 1024], strides = [1, 1]} : vector<9x1024xf32> to vector<1x1024xf32>
      %cst_21 = arith.constant 0.000000e+00 : f32
      %29 = vector.broadcast %cst_21 : f32 to vector<1x1024xf32>
      %30 = arith.cmpf ogt, %28, %29 : vector<1x1024xf32>
      %cst_22 = arith.constant 1.000000e+00 : f32
      %31 = vector.broadcast %cst_22 : f32 to vector<1x1024xf32>
      %32 = arith.select %30, %28, %31 : vector<1x1024xi1>, vector<1x1024xf32>
      %33 = arith.divf %1, %32 : vector<1x1024xf32>
      %34 = vector.extract_strided_slice %25 {offsets = [0, 0], sizes = [8, 1024], strides = [1, 1]} : vector<9x1024xf32> to vector<8x1024xf32>
      %35 = arith.addf %34, %27 : vector<8x1024xf32>
      %cst_23 = arith.constant 0.000000e+00 : f32
      %36 = vector.broadcast %cst_23 : f32 to vector<8x1024xf32>
      %37 = arith.cmpf ogt, %35, %36 : vector<8x1024xf32>
      %cst_24 = arith.constant 1.000000e-01 : f32
      %38 = vector.broadcast %cst_24 : f32 to vector<8x1024xf32>
      %39 = arith.mulf %38, %35 : vector<8x1024xf32>
      %40 = arith.select %37, %35, %39 : vector<8x1024xi1>, vector<8x1024xf32>
      %c0_25 = arith.constant 0 : index
      %c0_26 = arith.constant 0 : index
      %41 = vector.load %arg9[%c0_25, %c0_26] : memref<9x8xf32, #tpu.memory_space<vmem>>, vector<9x8xf32>
      %cst_27 = arith.constant dense<0.000000e+00> : vector<9x1024xf32>
      %42 = tpu.matmul %41, %40, %cst_27 {dimension_numbers = #tpu.dot_dimension_numbers<[1], [0], [0], [1], [0, 0, 1, 1], [], []>} : vector<9x8xf32>, vector<8x1024xf32>, vector<9x1024xf32> -> vector<9x1024xf32>
      %c0_28 = arith.constant 0 : index
      %c0_29 = arith.constant 0 : index
      %43 = vector.load %arg10[%c0_28, %c0_29] : memref<9x1xf32, #tpu.memory_space<vmem>>, vector<9x1xf32>
      %44 = vector.broadcast %43 : vector<9x1xf32> to vector<9x1024xf32>
      %45 = vector.broadcast %33 : vector<1x1024xf32> to vector<9x1024xf32>
      %46 = arith.mulf %44, %45 : vector<9x1024xf32>
      %47 = arith.addf %42, %46 : vector<9x1024xf32>
      %c0_30 = arith.constant 0 : index
      %c0_31 = arith.constant 0 : index
      %48 = vector.load %arg11[%c0_30, %c0_31] : memref<9x1xf32, #tpu.memory_space<vmem>>, vector<9x1xf32>
      %49 = vector.broadcast %48 : vector<9x1xf32> to vector<9x1024xf32>
      %50 = arith.addf %47, %49 : vector<9x1024xf32>
      %cst_32 = arith.constant 0.000000e+00 : f32
      %51 = vector.broadcast %cst_32 : f32 to vector<9x1024xf32>
      %52 = arith.cmpf ogt, %50, %51 : vector<9x1024xf32>
      %cst_33 = arith.constant 1.000000e-01 : f32
      %53 = vector.broadcast %cst_33 : f32 to vector<9x1024xf32>
      %54 = arith.mulf %53, %50 : vector<9x1024xf32>
      %55 = arith.select %52, %50, %54 : vector<9x1024xi1>, vector<9x1024xf32>
      %c0_34 = arith.constant 0 : index
      %c0_35 = arith.constant 0 : index
      %56 = vector.load %arg12[%c0_34, %c0_35] : memref<9x1xf32, #tpu.memory_space<vmem>>, vector<9x1xf32>
      %57 = vector.broadcast %56 : vector<9x1xf32> to vector<9x1024xf32>
      %58 = arith.mulf %55, %57 : vector<9x1024xf32>
      %cst_36 = arith.constant dense<0.000000e+00> : vector<1024xf32>
      %59 = vector.multi_reduction <add>, %58, %cst_36 [0] : vector<9x1024xf32> to vector<1024xf32>
      %60 = vector.shape_cast %59 : vector<1024xf32> to vector<1x1024xf32>
      %c0_37 = arith.constant 0 : index
      %c0_38 = arith.constant 0 : index
      %61 = vector.load %arg13[%c0_37, %c0_38] : memref<1x1xf32, #tpu.memory_space<vmem>>, vector<1x1xf32>
      %62 = vector.broadcast %61 : vector<1x1xf32> to vector<1x1024xf32>
      %63 = arith.addf %60, %62 : vector<1x1024xf32>
      %c0_39 = arith.constant 0 : index
      %c0_40 = arith.constant 0 : index
      %64 = vector.load %arg14[%c0_39, %c0_40] : memref<1x1024xf32, #tpu.memory_space<vmem>>, vector<1x1024xf32>
      tpu.vector_store %arg14[%c0_39, %c0_40], %63 {strides = array<i32>} : memref<1x1024xf32, #tpu.memory_space<vmem>>, vector<1x1024xf32>,
      %65 = vector.shape_cast %63 : vector<1x1024xf32> to vector<1x1024xf32>
      %66 = vector.broadcast %65 : vector<1x1024xf32> to vector<128x1024xf32>
      %67 = vector.broadcast %cst_9 : f32 to vector<128x1024xf32>
      %68 = arith.select %9, %66, %67 : vector<128x1024xi1>, vector<128x1024xf32>
      %cst_41 = arith.constant dense<0xFF800000> : vector<128xf32>
      %69 = vector.multi_reduction <maximumf>, %68, %cst_41 [1] : vector<128x1024xf32> to vector<128xf32>
      %70 = vector.shape_cast %69 : vector<128xf32> to vector<128x1xf32>
      %c0_42 = arith.constant 0 : index
      %c0_43 = arith.constant 0 : index
      %71 = vector.load %arg20[%c0_42, %c0_43] : memref<128x128xf32, #tpu.memory_space<vmem>>, vector<128x128xf32>
      %72 = vector.broadcast %70 : vector<128x1xf32> to vector<128x128xf32>
      %73 = arith.mulf %72, %71 : vector<128x128xf32>
      %cst_44 = arith.constant dense<0.000000e+00> : vector<128xf32>
      %74 = vector.multi_reduction <add>, %73, %cst_44 [0] : vector<128x128xf32> to vector<128xf32>
      %75 = vector.shape_cast %74 : vector<128xf32> to vector<1x128xf32>
      %c0_45 = arith.constant 0 : index
      %c0_46 = arith.constant 0 : index
      %76 = vector.load %arg15[%c0_45, %c0_46] : memref<1x128xf32, #tpu.memory_space<vmem>>, vector<1x128xf32>
      %77 = arith.maximumf %76, %75 : vector<1x128xf32>
      %cst_47 = arith.constant dense<0.000000e+00> : vector<1x1024xf32>
      %78 = tpu.matmul %77, %11, %cst_47 {dimension_numbers = #tpu.dot_dimension_numbers<[1], [0], [0], [1], [0, 0, 1, 1], [], []>} : vector<1x128xf32>, vector<128x1024xf32>, vector<1x1024xf32> -> vector<1x1024xf32>
      %79 = arith.subf %63, %78 : vector<1x1024xf32>
      %80 = math.exp %79 : vector<1x1024xf32>
      %cst_48 = arith.constant dense<0.000000e+00> : vector<1x128xf32>
      %81 = tpu.matmul %80, %11, %cst_48 {dimension_numbers = #tpu.dot_dimension_numbers<[1], [1], [0], [0], [0, 0, 1, 0], [], []>} : vector<1x1024xf32>, vector<128x1024xf32>, vector<1x128xf32> -> vector<1x128xf32>
      %c0_49 = arith.constant 0 : index
      %c0_50 = arith.constant 0 : index
      %82 = vector.load %arg16[%c0_49, %c0_50] : memref<1x128xf32, #tpu.memory_space<vmem>>, vector<1x128xf32>
      %83 = arith.subf %76, %77 : vector<1x128xf32>
      %84 = math.exp %83 : vector<1x128xf32>
      %85 = arith.mulf %82, %84 : vector<1x128xf32>
      %86 = arith.addf %85, %81 : vector<1x128xf32>
      %c0_51 = arith.constant 0 : index
      %c0_52 = arith.constant 0 : index
      %87 = vector.load %arg16[%c0_51, %c0_52] : memref<1x128xf32, #tpu.memory_space<vmem>>, vector<1x128xf32>
      tpu.vector_store %arg16[%c0_51, %c0_52], %86 {strides = array<i32>} : memref<1x128xf32, #tpu.memory_space<vmem>>, vector<1x128xf32>,
      %c0_53 = arith.constant 0 : index
      %c0_54 = arith.constant 0 : index
      %88 = vector.load %arg15[%c0_53, %c0_54] : memref<1x128xf32, #tpu.memory_space<vmem>>, vector<1x128xf32>
      tpu.vector_store %arg15[%c0_53, %c0_54], %77 {strides = array<i32>} : memref<1x128xf32, #tpu.memory_space<vmem>>, vector<1x128xf32>,
    } else {
    }
    return
  }
  func.func @transform_0(%arg0: i32, %arg1: i32) -> (i32, i32) {
    %c0_i32 = arith.constant 0 : i32
    %c0_i32_0 = arith.constant 0 : i32
    return %c0_i32, %arg1 : i32, i32
  }
  func.func @transform_1(%arg0: i32, %arg1: i32) -> (i32, i32) {
    %c0_i32 = arith.constant 0 : i32
    %c0_i32_0 = arith.constant 0 : i32
    return %c0_i32, %arg1 : i32, i32
  }
  func.func @transform_2(%arg0: i32, %arg1: i32) -> (i32, i32) {
    %c0_i32 = arith.constant 0 : i32
    %c0_i32_0 = arith.constant 0 : i32
    return %c0_i32, %arg1 : i32, i32
  }
  func.func @transform_3(%arg0: i32, %arg1: i32) -> (i32, i32) {
    %c0_i32 = arith.constant 0 : i32
    %c0_i32_0 = arith.constant 0 : i32
    %c0_i32_1 = arith.constant 0 : i32
    return %c0_i32, %c0_i32_0 : i32, i32
  }
  func.func @transform_4(%arg0: i32, %arg1: i32) -> (i32, i32) {
    %c0_i32 = arith.constant 0 : i32
    %c0_i32_0 = arith.constant 0 : i32
    %c0_i32_1 = arith.constant 0 : i32
    return %c0_i32, %c0_i32_0 : i32, i32
  }
  func.func @transform_5(%arg0: i32, %arg1: i32) -> (i32, i32) {
    %c0_i32 = arith.constant 0 : i32
    %c0_i32_0 = arith.constant 0 : i32
    %c0_i32_1 = arith.constant 0 : i32
    return %c0_i32, %c0_i32_0 : i32, i32
  }
  func.func @transform_6(%arg0: i32, %arg1: i32) -> (i32, i32) {
    %c0_i32 = arith.constant 0 : i32
    %c0_i32_0 = arith.constant 0 : i32
    %c0_i32_1 = arith.constant 0 : i32
    return %c0_i32, %c0_i32_0 : i32, i32
  }
  func.func @transform_7(%arg0: i32, %arg1: i32) -> (i32, i32) {
    %c0_i32 = arith.constant 0 : i32
    %c0_i32_0 = arith.constant 0 : i32
    %c0_i32_1 = arith.constant 0 : i32
    return %c0_i32, %c0_i32_0 : i32, i32
  }
  func.func @transform_8(%arg0: i32, %arg1: i32) -> (i32, i32) {
    %c0_i32 = arith.constant 0 : i32
    %c0_i32_0 = arith.constant 0 : i32
    %c0_i32_1 = arith.constant 0 : i32
    return %c0_i32, %c0_i32_0 : i32, i32
  }
  func.func @transform_9(%arg0: i32, %arg1: i32) -> (i32, i32) {
    %c0_i32 = arith.constant 0 : i32
    %c0_i32_0 = arith.constant 0 : i32
    %c0_i32_1 = arith.constant 0 : i32
    return %c0_i32, %c0_i32_0 : i32, i32
  }
  func.func @transform_10(%arg0: i32, %arg1: i32) -> (i32, i32) {
    %c0_i32 = arith.constant 0 : i32
    %c0_i32_0 = arith.constant 0 : i32
    %c0_i32_1 = arith.constant 0 : i32
    return %c0_i32, %c0_i32_0 : i32, i32
  }
  func.func @transform_11(%arg0: i32, %arg1: i32) -> (i32, i32) {
    %c0_i32 = arith.constant 0 : i32
    %c0_i32_0 = arith.constant 0 : i32
    %c0_i32_1 = arith.constant 0 : i32
    return %c0_i32, %c0_i32_0 : i32, i32
  }
  func.func @transform_12(%arg0: i32, %arg1: i32) -> (i32, i32) {
    %0 = arith.muli %arg1, %arg0 : i32
    %c0_i32 = arith.constant 0 : i32
    %c0_i32_0 = arith.constant 0 : i32
    return %c0_i32, %0 : i32, i32
  }
  func.func @transform_13(%arg0: i32, %arg1: i32) -> (i32, i32) {
    %c0_i32 = arith.constant 0 : i32
    %c0_i32_0 = arith.constant 0 : i32
    %c0_i32_1 = arith.constant 0 : i32
    return %c0_i32, %c0_i32_0 : i32, i32
  }
  func.func @transform_14(%arg0: i32, %arg1: i32) -> (i32, i32) {
    %c0_i32 = arith.constant 0 : i32
    %c0_i32_0 = arith.constant 0 : i32
    %c0_i32_1 = arith.constant 0 : i32
    return %c0_i32, %c0_i32_0 : i32, i32
  }
}

</mosaic_0001>

<bundles_post_ra>
// kernel: tpu_custom_call.1
= control target key start
LH: loop header
LB: loop body
LE: loop exit
PB: predicated region body
PF: predicated region fallthrough
CT: control target
= control target key end

     0   :  { %s8992_s0 = inlined_call_operand.vmem [shape: s32[1,3072], index: 0, kind: input, shape index: {}]   ;;  %s8993_s1 = inlined_call_operand.hbm [shape: s32[1,3072], index: 1, kind: input, shape index: {}]   ;;  %s8994_s2 = inlined_call_operand.hbm [shape: f32[1,3072], index: 2, kind: input, shape index: {}]   ;;  %s8995_s3 = inlined_call_operand.vmem [shape: f32[32,128], index: 3, kind: input, shape index: {}]   ;;  %s8996_s4 = inlined_call_operand.vmem [shape: f32[8,32], index: 4, kind: input, shape index: {}]   ;;  %s8997_s5 = inlined_call_operand.vmem [shape: f32[8,32], index: 5, kind: input, shape index: {}]   ;;  %s8998_s6 = inlined_call_operand.vmem [shape: f32[8,1], index: 6, kind: input, shape index: {}]   ;;  %s8999_s7 = inlined_call_operand.vmem [shape: f32[9,8], index: 7, kind: input, shape index: {}]   ;;  %s9000_s8 = inlined_call_operand.vmem [shape: f32[9,1], index: 8, kind: input, shape index: {}]   ;;  %s9001_s9 = inlined_call_operand.vmem [shape: f32[9,1], index: 9, kind: input, shape index: {}]   ;;  %s9002_s10 = inlined_call_operand.vmem [shape: f32[9,1], index: 10, kind: input, shape index: {}]   ;;  %s9003_s11 = inlined_call_operand.<no memory space> [shape: f32[1,1], index: 11, kind: input, shape index: {}]   ;;  %s9004_s12 = inlined_call_operand.hbm [shape: f32[1,3072], index: 12, kind: output, shape index: {0}]   ;;  %s9005_s13 = inlined_call_operand.hbm [shape: f32[1,128], index: 13, kind: output, shape index: {1}]   ;;  %s9006_s14 = inlined_call_operand.hbm [shape: f32[1,128], index: 14, kind: output, shape index: {2}]  }
   0x1   :  { %9477 = sst [smem:[#allocation163_spill]] %s8992_s0  ;;  %v20_v0 = vstv %s9003_s11 }
   0x2   :  { %9478 = sst [smem:[#allocation164_spill]] %s8993_s1  ;;  %21 = vst [vmem:[#allocation6] sm:$0x1] %v20_v0 }
   0x3   :  { %9479 = sst [smem:[#allocation165_spill]] %s8994_s2 }
   0x4   :  { %9480 = sst [smem:[#allocation166_spill]] %s8995_s3 }
   0x5   :  { %9481 = sst [smem:[#allocation167_spill]] %s8996_s4 }
   0x6   :  { %9482 = sst [smem:[#allocation168_spill]] %s8997_s5 }
   0x7   :  { %9483 = sst [smem:[#allocation169_spill]] %s8999_s7 }
   0x8   :  { %9484 = sst [smem:[#allocation170_spill]] %s9000_s8 }
   0x9   :  { %9485 = sst [smem:[#allocation171_spill]] %s9001_s9 }
   0xa   :  { %9486 = sst [smem:[#allocation172_spill]] %s9002_s10 }
   0xb   :  { %9487 = sst [smem:[#allocation173_spill]] %s9004_s12 }
   0xc   :  { %9488 = sst [smem:[#allocation174_spill]] %s9005_s13 }
   0xd   :  { %9489 = sst [smem:[#allocation175_spill]] %s9006_s14 }
   0xe   :  { %22 = vsyncpa [#allocation8], 0 }
   0xf   :  { %24 = vsyncpa [#allocation8 + $0x1], 0 }
  0x10   :  { %25 = vsyncpa [#allocation11], 0 }
  0x11   :  { %27 = vsyncpa [#allocation11 + $0x1], 0 }
  0x12   :  { %28 = vsyncpa [#allocation9], 0 }
  0x13   :  { %30 = vsyncpa [#allocation9 + $0x1], 0 }
  0x14   :  { %31 = vsyncpa [#allocation14], 0  ;;  %s5253_s15 = smov 0   ;;  %s5255_s16 = smov 0  }
  0x15   :  { %s5257_s17 = smov 0   ;;  %s5259_s18 = smov 0  }
  0x16   :  { %s5261_s19 = smov 0   ;;  %s5263_s20 = smov 0  }
  0x17   :  { %s5265_s11 = smov 0   ;;  %s5267_s21 = smov 0  }
  0x18   :  { %s5269_s22 = smov 0   ;;  %s5271_s23 = smov 0  }
  0x19   :  { %s5273_s24 = smov 0  }
  0x1a LB: > { %9490 = sst [smem:[#allocation20_spill]] %s5125_s15  ;;  %s3815_s25 = sadd.s32 4294967295, %s5165_s24   ;;  %s5165_s24 = sphi %s5273_s24, %s37_s24   ;;  %s5161_s23 = sphi %s5271_s23, %s10967_s23   ;;  %s5157_s22 = sphi %s5269_s22, %s10966_s22   ;;  %s5153_s21 = sphi %s5267_s21, %s10965_s21   ;;  %s5149_s11 = sphi %s5265_s11, %s10964_s11   ;;  %s5145_s20 = sphi %s5263_s20, %s10963_s20   ;;  %s5141_s19 = sphi %s5261_s19, %s10971_s19   ;;  %s5137_s18 = sphi %s5259_s18, %s10970_s18   ;;  %s5133_s17 = sphi %s5257_s17, %s10961_s17   ;;  %s5129_s16 = sphi %s5255_s16, %s10969_s16   ;;  %s5125_s15 = sphi %s5253_s15, %s10968_s15  }
  0x1b   : > { %9491 = sst [smem:[#allocation21_spill]] %s5133_s17  ;;  %s3816_s26 = sadd.s32 4294967294, %s5165_s24  }
  0x1c   : > { %9492 = sst [smem:[#allocation22_spill]] %s5145_s20  ;;  %s46_s27 = sadd.s32 1, %s5157_s22 }
  0x1d   : > { %9493 = sst [smem:[#allocation23_spill]] %s5157_s22  ;;  %s49_s28 = sadd.s32 1, %s5161_s23 }
  0x1e   : > { %9494 = sst [smem:[#allocation24_spill]] %s5161_s23  ;;  %p47_p0 = scmp.ge.s32.totalorder %s46_s27, 3 }
  0x1f   : > { %s82_s29 = sadd.s32 1, %s5145_s20  ;;  %p89_p1 = scmp.ne.s32.totalorder %s5145_s20, %s5141_s19 }
  0x20   : > { %p90_p2 = scmp.eq.s32.totalorder %s5165_s24, 0  ;;  %s10973_s27 = smov (%p47_p0, %s46_s27), 0 }
  0x21   : > { %9495 = sst [smem:[#allocation25_spill]] %s10973_s27  ;;  %s10975_s28 = smov (!%p47_p0, %s49_s28), %s5161_s23 }
  0x22   : > { %s79_s30 = ssub.s32 %s5157_s22, %s10973_s27  ;;  %p5319_p3 = por %p90_p2, %p89_p1 }
  0x23   : > { %p51_p4 = scmp.ge.s32.totalorder %s10975_s28, 2  ;;  %p80_p5 = scmp.eq.s32.totalorder %s79_s30, 0 }
  0x24   : > { %p95_p6 = scmp.ne.s32.totalorder %s5141_s19, %s5137_s18  ;;  %p96_p7 = scmp.eq.s32.totalorder %s3815_s25, 0 }
  0x25   : > { %s10977_s28 = smov (%p51_p4, %s10975_s28), 0  ;;  %s320_s10 = smul.u32 %s5157_s22, %s5161_s23 }
  0x26   : > { %9497 = sst [smem:[#allocation26_spill]] %s10977_s28  ;;  %p5329_p8 = por %p96_p7, %p95_p6 }
  0x27   : > { %s5327_s12 = scalar_select %p80_p5, %s5145_s20, %s82_s29  }
  0x28   : > { %s321_s7 = smul.u32 %s10977_s28, %s10973_s27  ;;  %s325_s9 = sadd.s32 1, %s5133_s17 }
  0x29   : > { %9498 = sst [smem:[#allocation27_spill]] %s5327_s12  ;;  %p335_p9 = scmp.ne.s32.totalorder %s5133_s17, %s5129_s16 }
  0x2a   : > { %p5340_p10 = scmp.eq.s32.totalorder %s3815_s25, 5  ;;  %s322_s18 = ssub.s32 %s320_s10, %s321_s7 }
  0x2b   : > { %p341_p11 = scmp.ne.s32.totalorder %s5129_s16, %s5125_s15  ;;  %p323_p12 = scmp.eq.s32.totalorder %s322_s18, 0 }
  0x2c   : > { %s9500_s30 = scalar_select %p5340_p10, 1, 0 }
  0x2d   : > { %p5348_p13 = por %p5340_p10, %p335_p9  ;;  %p342_p0 = scmp.eq.s32.totalorder %s3816_s26, 5 }
  0x2e   : > { %9501 = sst [smem:[#allocation28_spill]] %s9500_s30  ;;  %p4793_p2 = scmp.lt.s32.totalorder %s5165_s24, 6 }
  0x2f   : > { %s5353_s28 = scalar_select %p323_p12, %s5133_s17, %s325_s9  }
  0x30   : > { %p5355_p1 = por %p342_p0, %p341_p11  ;;  %s439_s27 = sand.u32 1, %s5145_s20  }
  0x31   : > { %9503 = sst [smem:[#allocation29_spill]] %s5353_s28  ;;  %s3820_s7 = sshll.u32 %s5157_s22, 3 }
  0x32   : > { %s3819_s10 = sshll.u32 %s439_s27, 3  ;;  %s9505_s1 = sld [smem:[#allocation164_spill]] }
  0x33   : > { %s443_s30 = scalar_lea.vmem [#allocation7], %s3819_s10  ;;  %p4783_p4 = pnand %p4793_p2, %p5319_p3 }
  0x34   : > { %s451_s8 = sshll.u32 %s443_s30, 4  ;;  %p3823_p5 = scmp.ge.s32.totalorder %s5165_s24, 1  ;;  %s452_s8 = int_to_ptr.vmem [resolvable:$true] %s451_s8 }
  0x35   : > { %p475_p6 = scmp.lt.s32.totalorder %s5165_s24, 7  ;;  %s440_s9 = scalar_lea.sflag [#allocation8], %s439_s27 }
  0x36   : > { %s9506_s2 = sld [smem:[#allocation165_spill]]  ;;  %s462_s17 = scalar_lea.vmem [#allocation10], %s3819_s10 }
  0x37   : > { %p476_p7 = pnand %p3823_p5, %p475_p6  ;;  %s470_s23 = sshll.u32 %s462_s17, 4  ;;  %s471_s23 = int_to_ptr.vmem [resolvable:$true] %s470_s23 }
  0x38   : > { %s447_s12 = scalar_lea.hbm %s9505_s1, %s3820_s7 }
  0x39   : > { %s449_s15 = sshll.u32 %s447_s12, 4  ;;  %s459_s12 = scalar_lea.sflag [#allocation11], %s439_s27  ;;  %s450_s15 = int_to_ptr.hbm [resolvable:$true] %s449_s15 }
  0x3a   : > { %4785 = dma.hbm_to_vmem [thread:$0]  (!%p4783_p4), %s450_s15, 128, %s452_s8, %s440_s9  }
  0x3b   : > { %479 = sbr.rel (%p476_p7) target bundleno = 1607 (0x647), region = 68 }
  0x3c   : > { %s466_s22 = scalar_lea.hbm %s9506_s2, %s3820_s7 }
  0x3d   : > { %s468_s28 = sshll.u32 %s466_s22, 4  ;;  %s469_s28 = int_to_ptr.hbm [resolvable:$true] %s468_s28 }
  0x3e   : > { %4788 = dma.hbm_to_vmem [thread:$0]  (!%p4783_p4), %s469_s28, 128, %s471_s23, %s459_s12  }
  0x40   : > { %s481_s14 = sand.u32 1, %s5141_s19  }
  0x41   : > { %s3824_s30 = sshll.u32 %s481_s14, 3  ;;  %s482_s18 = scalar_lea.sflag [#allocation8], %s481_s14 }
  0x42   : > { %s5373_s1 = scalar_lea.vmem [#allocation7], %s3824_s30 }
  0x43   : > { %5108 = dma.done.wait (%p5329_p8), %s482_s18, 128  }
  0x44   : > { %5110 = vsyncadd (%p5329_p8), %s482_s18, 4294967168  ;;  %s492_s8 = scalar_lea.sflag [#allocation11], %s481_s14  ;;  %s495_s15 = scalar_lea.vmem [#allocation10], %s3824_s30 }
  0x45   : > { %5112 = dma.done.wait (%p5329_p8), %s492_s8, 128  }
  0x46   : > { %5114 = vsyncadd (%p5329_p8), %s492_s8, 4294967168  ;;  %s3827_s17 = sshll.u32 %s5149_s11, 3  ;;  %s9476_s20 = sand.u32 1, %s5129_s16   ;;  %v5396_v2 = vld [vmem:[%s495_s15] sm:$0xff] }
  0x47   : > { %p551_p3 = scmp.lt.s32.totalorder %s3827_s17, 23  ;;  %s5387_s22 = sshll.u32 %s9476_s20, 3  ;;  %9508 = vst [vmem:[#allocation30_spill] sm:$0xff] %v5396_v2 }
  0x48   : > { %p561_p9 = scmp.eq.s32.totalorder %s5153_s21, 0  ;;  %p562_p11 = scmp.eq.s32.totalorder %s5149_s11, 0 }
  0x49   : > { %s10979_s17 = smov (!%p551_p3, %s3827_s17), 23  ;;  %s9507_s0 = sld [smem:[#allocation163_spill]] }
  0x4a   : > { %p563_p8 = pnand %p562_p11, %p561_p9  ;;  %s545_s7 = scalar_lea.vmem [#allocation12], %s5387_s22 }
  0x4b   : > { %s9509_s3 = sld [smem:[#allocation166_spill]] (!%p563_p8) }
  0x4c   : > { %566 = sbr.rel (%p563_p8) target bundleno = 231 (0xe7), region = 80  ;;  %s9510_s4 = sld [smem:[#allocation167_spill]] (!%p563_p8) }
  0x4d   : > { %s9511_s5 = sld [smem:[#allocation168_spill]] (!%p563_p8) }
  0x4f   : > { %s553_s13 = scalar_lea.vmem %s9507_s0, %s10979_s17 }
  0x50   : > { %v5394_v1 = vld [vmem:[%s553_s13] sm:$0xff] }
  0x51   : > { %v567_v3 = vlaneseq  ;;  %v782_v4 = vld [vmem:[%s9509_s3 + $0x18] sm:$0xff]  ;;  %v781_v5 = vld [vmem:[%s9509_s3 + $0x10] sm:$0xff]  ;;  %v780_v7 = vld [vmem:[%s9509_s3 + $0x8] sm:$0xff]  ;;  %v5167_v8 = vmov 0   ;;  %vm789_vm0 = vcmask 261120   ;;  %v5168_v29 = vmov 0.0  }
  0x52   : > { %805 = vmatpush.msra.mxu0 %v782_v4  ;;  %835 = vmatpush.msra.mxu1 %v782_v4  ;;  %v783_v9 = vld [vmem:[%s8998_s6] sm:$0xff]  ;;  %814 = vst [vmem:[#allocation2 + $0x8] sm:$0x1] %v5168_v29  ;;  %v5169_v50 = vmov -1e+30  }
  0x53   : > { %v5406_v6 = vshrl.u32 %v567_v3, 7  ;;  %4895 = vset.pattern.permute.xlu0 %v5167_v8  ;;  %v779_v10 = vld [vmem:[%s9509_s3] sm:$0xff]  ;;  %v713_v28 = vand.u32 127, %v567_v3  ;;  %845 = vst [vmem:[#allocation15] sm:$0x1] %v5168_v29 }
  0x54   : > { %806 = vmatpush.msra.mxu0 %v781_v5  ;;  %836 = vmatpush.msra.mxu1 %v781_v5  ;;  %v778_v11 = vld [vmem:[%s9510_s4] sm:$0xff]  ;;  %844 = vst [vmem:[#allocation13] sm:$0x1] %v5169_v50 }
  0x55   : > { %584 = vst [vmem:[#allocation4 + $0x3a8] sm:$0xff] %v5406_v6  ;;  %786 = vperm.xlu0 %4895, %v783_v9   ;;  %v815_v12 = vld [vmem:[%s9511_s5] sm:$0xff]  ;;  %v5430_v13 = vadd.s32 8, %v5406_v6  ;;  %v5441_v14 = vadd.s32 16, %v5406_v6  ;;  %v5452_v15 = vadd.s32 24, %v5406_v6  ;;  %v5463_v16 = vadd.s32 32, %v5406_v6 }
  0x56   : > { %585 = vst [vmem:[#allocation4 + $0xd0] sm:$0xff] %v5406_v6  ;;  %807 = vmatpush.msra.mxu0 %v780_v7  ;;  %837 = vmatpush.msra.mxu1 %v780_v7  ;;  %v5474_v17 = vadd.s32 40, %v5406_v6  ;;  %v5485_v18 = vadd.s32 48, %v5406_v6  ;;  %v5496_v19 = vadd.s32 56, %v5406_v6  ;;  %v5507_v20 = vadd.s32 64, %v5406_v6 }
  0x57   : > { %586 = vst [vmem:[#allocation4 + $0x10] sm:$0xff] %v5406_v6  ;;  %v5518_v21 = vadd.s32 72, %v5406_v6  ;;  %v5529_v22 = vadd.s32 80, %v5406_v6  ;;  %v5540_v23 = vadd.s32 88, %v5406_v6  ;;  %v5551_v24 = vadd.s32 96, %v5406_v6 }
  0x58   : > { %587 = vst [vmem:[#allocation4 + $0x48] sm:$0xff] %v5406_v6  ;;  %808 = vmatpush.msra.mxu0 %v779_v10  ;;  %838 = vmatpush.msra.mxu1 %v779_v10  ;;  %v5562_v25 = vadd.s32 104, %v5406_v6  ;;  %v5573_v26 = vadd.s32 112, %v5406_v6  ;;  %v583_v27 = vadd.s32 120, %v5406_v6  ;;  %vm714_vm1 = vcmp.eq.s32.totalorder %v5406_v6, %v713_v28 }
  0x59   : > { %588 = vst [vmem:[#allocation4 + $0x360] sm:$0xff] %v5406_v6  ;;  %3844 = vmatmul.msk.f32.vlgmr.msra.gmra.mxu0 %vm789_vm0, %v778_v11  ;;  %3845 = vmatmul.msk.f32.vlgmr.msra.gmra.mxu1 %vm789_vm0, %v815_v12  ;;  %vm715_vm2 = vcmp.eq.s32.totalorder %v5430_v13, %v713_v28  ;;  %vm716_vm3 = vcmp.eq.s32.totalorder %v5441_v14, %v713_v28  ;;  %v3828_v30 = vsel %vm714_vm1, 1.0, %v5168_v29 }
  0x5a   : > { %589 = vst [vmem:[#allocation4 + $0x328] sm:$0xff] %v5406_v6  ;;  %vm717_vm4 = vcmp.eq.s32.totalorder %v5452_v15, %v713_v28  ;;  %vm718_vm5 = vcmp.eq.s32.totalorder %v5463_v16, %v713_v28  ;;  %v3829_v31 = vsel %vm715_vm2, 1.0, %v5168_v29  ;;  %vm719_vm6 = vcmp.eq.s32.totalorder %v5474_v17, %v713_v28 }
  0x5b   : > { %590 = vst [vmem:[#allocation4 + $0x40] sm:$0xff] %v5406_v6  ;;  %v3830_v32 = vsel %vm716_vm3, 1.0, %v5168_v29  ;;  %vm720_vm7 = vcmp.eq.s32.totalorder %v5485_v18, %v713_v28  ;;  %v3831_v33 = vsel %vm717_vm4, 1.0, %v5168_v29  ;;  %vm721_vm8 = vcmp.eq.s32.totalorder %v5496_v19, %v713_v28 }
  0x5c   : > { %591 = vst [vmem:[#allocation4 + $0x378] sm:$0xff] %v5406_v6  ;;  %v3832_v34 = vsel %vm718_vm5, 1.0, %v5168_v29  ;;  %vm722_vm9 = vcmp.eq.s32.totalorder %v5507_v20, %v713_v28  ;;  %v3833_v35 = vsel %vm719_vm6, 1.0, %v5168_v29  ;;  %vm723_vm10 = vcmp.eq.s32.totalorder %v5518_v21, %v713_v28 }
  0x5d   : > { %592 = vst [vmem:[#allocation4 + $0x108] sm:$0xff] %v5430_v13  ;;  %v3834_v36 = vsel %vm720_vm7, 1.0, %v5168_v29  ;;  %vm724_vm11 = vcmp.eq.s32.totalorder %v5529_v22, %v713_v28  ;;  %v3835_v37 = vsel %vm721_vm8, 1.0, %v5168_v29  ;;  %vm725_vm12 = vcmp.eq.s32.totalorder %v5540_v23, %v713_v28 }
  0x5e   : > { %593 = vst [vmem:[#allocation4 + $0x110] sm:$0xff] %v5430_v13  ;;  %v3836_v38 = vsel %vm722_vm9, 1.0, %v5168_v29  ;;  %vm726_vm13 = vcmp.eq.s32.totalorder %v5551_v24, %v713_v28  ;;  %v3837_v39 = vsel %vm723_vm10, 1.0, %v5168_v29  ;;  %vm727_vm14 = vcmp.eq.s32.totalorder %v5562_v25, %v713_v28 }
  0x5f   : > { %594 = vst [vmem:[#allocation4 + $0x90] sm:$0xff] %v5430_v13  ;;  %v3838_v40 = vsel %vm724_vm11, 1.0, %v5168_v29  ;;  %vm728_vm15 = vcmp.eq.s32.totalorder %v5573_v26, %v713_v28  ;;  %v3839_v41 = vsel %vm725_vm12, 1.0, %v5168_v29  ;;  %vm729_vm0 = vcmp.eq.s32.totalorder %v583_v27, %v713_v28 }
  0x60   : > { %595 = vst [vmem:[#allocation4 + $0x318] sm:$0xff] %v5430_v13  ;;  %v3840_v42 = vsel %vm726_vm13, 1.0, %v5168_v29  ;;  %v3841_v43 = vsel %vm727_vm14, 1.0, %v5168_v29  ;;  %v3842_v44 = vsel %vm728_vm15, 1.0, %v5168_v29  ;;  %v3843_v47 = vsel %vm729_vm0, 1.0, %v5168_v29 }
  0x61   : > { %596 = vst [vmem:[#allocation4 + $0x148] sm:$0xff] %v5430_v13 }
  0x62   : > { %597 = vst [vmem:[#allocation4 + $0x100] sm:$0xff] %v5430_v13 }
  0x63   : > { %598 = vst [vmem:[#allocation4 + $0x58] sm:$0xff] %v5430_v13 }
  0x64   : > { %599 = vst [vmem:[#allocation4 + $0x2d8] sm:$0xff] %v5430_v13 }
  0x65   : > { %600 = vst [vmem:[#allocation4 + $0x380] sm:$0xff] %v5441_v14 }
  0x66   : > { %601 = vst [vmem:[#allocation4 + $0x330] sm:$0xff] %v5441_v14 }
  0x67   : > { %602 = vst [vmem:[#allocation4 + $0x338] sm:$0xff] %v5441_v14 }
  0x68   : > { %603 = vst [vmem:[#allocation4 + $0x78] sm:$0xff] %v5441_v14 }
  0x69   : > { %604 = vst [vmem:[#allocation4 + $0x1a0] sm:$0xff] %v5441_v14 }
  0x6a   : > { %605 = vst [vmem:[#allocation4 + $0x1b0] sm:$0xff] %v5441_v14 }
  0x6b   : > { %606 = vst [vmem:[#allocation4 + $0x160] sm:$0xff] %v5441_v14 }
  0x6c   : > { %607 = vst [vmem:[#allocation4 + $0x3e0] sm:$0xff] %v5441_v14 }
  0x6d   : > { %608 = vst [vmem:[#allocation4 + $0x2f0] sm:$0xff] %v5452_v15 }
  0x6e   : > { %609 = vst [vmem:[#allocation4 + $0x288] sm:$0xff] %v5452_v15 }
  0x6f   : > { %610 = vst [vmem:[#allocation4 + $0x20] sm:$0xff] %v5452_v15 }
  0x70   : > { %611 = vst [vmem:[#allocation4 + $0x130] sm:$0xff] %v5452_v15 }
  0x71   : > { %612 = vst [vmem:[#allocation4 + $0xb8] sm:$0xff] %v5452_v15 }
  0x72   : > { %613 = vst [vmem:[#allocation4 + $0x1b8] sm:$0xff] %v5452_v15 }
  0x73   : > { %614 = vst [vmem:[#allocation4 + $0x278] sm:$0xff] %v5452_v15 }
  0x74   : > { %615 = vst [vmem:[#allocation4 + $0xf8] sm:$0xff] %v5452_v15 }
  0x75   : > { %616 = vst [vmem:[#allocation4 + $0x3b8] sm:$0xff] %v5463_v16 }
  0x76   : > { %617 = vst [vmem:[#allocation4 + $0x150] sm:$0xff] %v5463_v16 }
  0x77   : > { %618 = vst [vmem:[#allocation4 + $0x3d8] sm:$0xff] %v5463_v16 }
  0x78   : > { %619 = vst [vmem:[#allocation4 + $0x210] sm:$0xff] %v5463_v16 }
  0x79   : > { %620 = vst [vmem:[#allocation4 + $0x3f0] sm:$0xff] %v5463_v16 }
  0x7a   : > { %621 = vst [vmem:[#allocation4] sm:$0xff] %v5463_v16 }
  0x7b   : > { %622 = vst [vmem:[#allocation4 + $0x120] sm:$0xff] %v5463_v16 }
  0x7c   : > { %623 = vst [vmem:[#allocation4 + $0x298] sm:$0xff] %v5463_v16 }
  0x7d   : > { %624 = vst [vmem:[#allocation4 + $0x3e8] sm:$0xff] %v5474_v17 }
  0x7e   : > { %625 = vst [vmem:[#allocation4 + $0x98] sm:$0xff] %v5474_v17 }
  0x7f   : > { %626 = vst [vmem:[#allocation4 + $0x2b8] sm:$0xff] %v5474_v17 }
  0x80   : > { %627 = vst [vmem:[#allocation4 + $0xa8] sm:$0xff] %v5474_v17 }
  0x81   : > { %628 = vst [vmem:[#allocation4 + $0x1d8] sm:$0xff] %v5474_v17 }
  0x82   : > { %629 = vst [vmem:[#allocation4 + $0x1e8] sm:$0xff] %v5474_v17 }
  0x83   : > { %630 = vst [vmem:[#allocation4 + $0x8] sm:$0xff] %v5474_v17 }
  0x84   : > { %631 = vst [vmem:[#allocation4 + $0x228] sm:$0xff] %v5474_v17 }
  0x85   : > { %632 = vst [vmem:[#allocation4 + $0x238] sm:$0xff] %v5485_v18 }
  0x86   : > { %633 = vst [vmem:[#allocation4 + $0x88] sm:$0xff] %v5485_v18 }
  0x87   : > { %634 = vst [vmem:[#allocation4 + $0x398] sm:$0xff] %v5485_v18 }
  0x88   : > { %635 = vst [vmem:[#allocation4 + $0x200] sm:$0xff] %v5485_v18 }
  0x89   : > { %636 = vst [vmem:[#allocation4 + $0xc8] sm:$0xff] %v5485_v18 }
  0x8a   : > { %637 = vst [vmem:[#allocation4 + $0x80] sm:$0xff] %v5485_v18 }
  0x8b   : > { %638 = vst [vmem:[#allocation4 + $0x2e8] sm:$0xff] %v5485_v18 }
  0x8c   : > { %639 = vst [vmem:[#allocation4 + $0x350] sm:$0xff] %v5485_v18 }
  0x8d   : > { %640 = vst [vmem:[#allocation4 + $0x260] sm:$0xff] %v5496_v19 }
  0x8e   : > { %641 = vst [vmem:[#allocation4 + $0x348] sm:$0xff] %v5496_v19 }
  0x8f   : > { %642 = vst [vmem:[#allocation4 + $0x180] sm:$0xff] %v5496_v19 }
  0x90   : > { %643 = vst [vmem:[#allocation4 + $0x1d0] sm:$0xff] %v5496_v19 }
  0x91   : > { %644 = vst [vmem:[#allocation4 + $0x28] sm:$0xff] %v5496_v19 }
  0x92   : > { %645 = vst [vmem:[#allocation4 + $0x138] sm:$0xff] %v5496_v19 }
  0x93   : > { %646 = vst [vmem:[#allocation4 + $0x2a0] sm:$0xff] %v5496_v19 }
  0x94   : > { %647 = vst [vmem:[#allocation4 + $0x300] sm:$0xff] %v5496_v19 }
  0x95   : > { %648 = vst [vmem:[#allocation4 + $0x208] sm:$0xff] %v5507_v20 }
  0x96   : > { %649 = vst [vmem:[#allocation4 + $0x128] sm:$0xff] %v5507_v20 }
  0x97   : > { %650 = vst [vmem:[#allocation4 + $0x158] sm:$0xff] %v5507_v20 }
  0x98   : > { %651 = vst [vmem:[#allocation4 + $0xe0] sm:$0xff] %v5507_v20 }
  0x99   : > { %652 = vst [vmem:[#allocation4 + $0xe8] sm:$0xff] %v5507_v20 }
  0x9a   : > { %653 = vst [vmem:[#allocation4 + $0x310] sm:$0xff] %v5507_v20 }
  0x9b   : > { %654 = vst [vmem:[#allocation4 + $0x248] sm:$0xff] %v5507_v20 }
  0x9c   : > { %655 = vst [vmem:[#allocation4 + $0x3a0] sm:$0xff] %v5507_v20 }
  0x9d   : > { %656 = vst [vmem:[#allocation4 + $0x1f0] sm:$0xff] %v5518_v21 }
  0x9e   : > { %657 = vst [vmem:[#allocation4 + $0x230] sm:$0xff] %v5518_v21 }
  0x9f   : > { %658 = vst [vmem:[#allocation4 + $0x368] sm:$0xff] %v5518_v21 }
  0xa0   : > { %659 = vst [vmem:[#allocation4 + $0xd8] sm:$0xff] %v5518_v21 }
  0xa1   : > { %660 = vst [vmem:[#allocation4 + $0x3d0] sm:$0xff] %v5518_v21 }
  0xa2   : > { %661 = vst [vmem:[#allocation4 + $0x18] sm:$0xff] %v5518_v21 }
  0xa3   : > { %662 = vst [vmem:[#allocation4 + $0xf0] sm:$0xff] %v5518_v21 }
  0xa4   : > { %663 = vst [vmem:[#allocation4 + $0x190] sm:$0xff] %v5518_v21 }
  0xa5   : > { %664 = vst [vmem:[#allocation4 + $0x68] sm:$0xff] %v5529_v22 }
  0xa6   : > { %665 = vst [vmem:[#allocation4 + $0x258] sm:$0xff] %v5529_v22 }
  0xa7   : > { %666 = vst [vmem:[#allocation4 + $0x118] sm:$0xff] %v5529_v22 }
  0xa8   : > { %667 = vst [vmem:[#allocation4 + $0x2c0] sm:$0xff] %v5529_v22 }
  0xa9   : > { %668 = vst [vmem:[#allocation4 + $0x178] sm:$0xff] %v5529_v22 }
  0xaa   : > { %669 = vst [vmem:[#allocation4 + $0x1c0] sm:$0xff] %v5529_v22 }
  0xab   : > { %670 = vst [vmem:[#allocation4 + $0x1e0] sm:$0xff] %v5529_v22 }
  0xac   : > { %671 = vst [vmem:[#allocation4 + $0x1a8] sm:$0xff] %v5529_v22 }
  0xad   : > { %672 = vst [vmem:[#allocation4 + $0x38] sm:$0xff] %v5540_v23 }
  0xae   : > { %673 = vst [vmem:[#allocation4 + $0x2c8] sm:$0xff] %v5540_v23 }
  0xaf   : > { %674 = vst [vmem:[#allocation4 + $0x1c8] sm:$0xff] %v5540_v23 }
  0xb0   : > { %675 = vst [vmem:[#allocation4 + $0x50] sm:$0xff] %v5540_v23 }
  0xb1   : > { %676 = vst [vmem:[#allocation4 + $0x280] sm:$0xff] %v5540_v23 }
  0xb2   : > { %677 = vst [vmem:[#allocation4 + $0x270] sm:$0xff] %v5540_v23 }
  0xb3   : > { %678 = vst [vmem:[#allocation4 + $0x2e0] sm:$0xff] %v5540_v23 }
  0xb4   : > { %679 = vst [vmem:[#allocation4 + $0x30] sm:$0xff] %v5540_v23 }
  0xb5   : > { %680 = vst [vmem:[#allocation4 + $0x168] sm:$0xff] %v5551_v24 }
  0xb6   : > { %681 = vst [vmem:[#allocation4 + $0xa0] sm:$0xff] %v5551_v24 }
  0xb7   : > { %682 = vst [vmem:[#allocation4 + $0xb0] sm:$0xff] %v5551_v24 }
  0xb8   : > { %683 = vst [vmem:[#allocation4 + $0xc0] sm:$0xff] %v5551_v24 }
  0xb9   : > { %684 = vst [vmem:[#allocation4 + $0x320] sm:$0xff] %v5551_v24 }
  0xba   : > { %685 = vst [vmem:[#allocation4 + $0x340] sm:$0xff] %v5551_v24 }
  0xbb   : > { %686 = vst [vmem:[#allocation4 + $0x2d0] sm:$0xff] %v5551_v24 }
  0xbc   : > { %687 = vst [vmem:[#allocation4 + $0x140] sm:$0xff] %v5551_v24 }
  0xbd   : > { %688 = vst [vmem:[#allocation4 + $0x3f8] sm:$0xff] %v5562_v25 }
  0xbe   : > { %689 = vst [vmem:[#allocation4 + $0x1f8] sm:$0xff] %v5562_v25 }
  0xbf   : > { %690 = vst [vmem:[#allocation4 + $0x3c8] sm:$0xff] %v5562_v25 }
  0xc0   : > { %691 = vst [vmem:[#allocation4 + $0x3b0] sm:$0xff] %v5562_v25 }
  0xc1   : > { %692 = vst [vmem:[#allocation4 + $0x370] sm:$0xff] %v5562_v25 }
  0xc2   : > { %693 = vst [vmem:[#allocation4 + $0x3c0] sm:$0xff] %v5562_v25 }
  0xc3   : > { %694 = vst [vmem:[#allocation4 + $0x2f8] sm:$0xff] %v5562_v25 }
  0xc4   : > { %695 = vst [vmem:[#allocation4 + $0x188] sm:$0xff] %v5562_v25 }
  0xc5   : > { %696 = vst [vmem:[#allocation4 + $0x70] sm:$0xff] %v5573_v26 }
  0xc6   : > { %697 = vst [vmem:[#allocation4 + $0x358] sm:$0xff] %v5573_v26 }
  0xc7   : > { %698 = vst [vmem:[#allocation4 + $0x268] sm:$0xff] %v5573_v26  ;;  %v787_v45 = vpop.permute.xlu0 %786 }
  0xc8   : > { %699 = vst [vmem:[#allocation4 + $0x198] sm:$0xff] %v5573_v26 }
  0xc9   : > { %700 = vst [vmem:[#allocation4 + $0x308] sm:$0xff] %v5573_v26 }
  0xca   : > { %701 = vst [vmem:[#allocation4 + $0x250] sm:$0xff] %v5573_v26 }
  0xcb   : > { %702 = vst [vmem:[#allocation4 + $0x240] sm:$0xff] %v5573_v26 }
  0xcc   : > { %703 = vst [vmem:[#allocation4 + $0x60] sm:$0xff] %v5573_v26 }
  0xcd   : > { %704 = vst [vmem:[#allocation4 + $0x388] sm:$0xff] %v583_v27 }
  0xce   : > { %705 = vst [vmem:[#allocation4 + $0x2b0] sm:$0xff] %v583_v27 }
  0xcf   : > { %706 = vst [vmem:[#allocation4 + $0x2a8] sm:$0xff] %v583_v27 }
  0xd0   : > { %707 = vst [vmem:[#allocation4 + $0x390] sm:$0xff] %v583_v27 }
  0xd1   : > { %708 = vst [vmem:[#allocation4 + $0x170] sm:$0xff] %v583_v27 }
  0xd2   : > { %709 = vst [vmem:[#allocation4 + $0x218] sm:$0xff] %v583_v27 }
  0xd3   : > { %710 = vst [vmem:[#allocation4 + $0x290] sm:$0xff] %v583_v27 }
  0xd4   : > { %711 = vst [vmem:[#allocation4 + $0x220] sm:$0xff] %v583_v27 }
  0xd5   : > { %762 = vst [vmem:[#allocation5 + $0x78] sm:$0xff] %v3828_v30 }
  0xd6   : > { %763 = vst [vmem:[#allocation5 + $0x30] sm:$0xff] %v3829_v31  ;;  %v810_v46 = vpop.f32.mrf.mxu0  ;;  %v840_v49 = vpop.f32.mrf.mxu1 }
  0xd7   : > { %764 = vst [vmem:[#allocation5 + $0x28] sm:$0xff] %v3830_v32  ;;  %v811_v48 = vadd.f32 %v810_v46, %v787_v45 }
  0xd8   : > { %765 = vst [vmem:[#allocation5] sm:$0xff] %v3831_v33 }
  0xd9   : > { %766 = vst [vmem:[#allocation5 + $0x8] sm:$0xff] %v3832_v34 }
  0xda   : > { %767 = vst [vmem:[#allocation5 + $0x18] sm:$0xff] %v3833_v35 }
  0xdb   : > { %768 = vst [vmem:[#allocation5 + $0x10] sm:$0xff] %v3834_v36 }
  0xdc   : > { %769 = vst [vmem:[#allocation5 + $0x70] sm:$0xff] %v3835_v37 }
  0xdd   : > { %770 = vst [vmem:[#allocation5 + $0x48] sm:$0xff] %v3836_v38 }
  0xde   : > { %771 = vst [vmem:[#allocation5 + $0x60] sm:$0xff] %v3837_v39 }
  0xdf   : > { %772 = vst [vmem:[#allocation5 + $0x68] sm:$0xff] %v3838_v40 }
  0xe0   : > { %773 = vst [vmem:[#allocation5 + $0x40] sm:$0xff] %v3839_v41 }
  0xe1   : > { %774 = vst [vmem:[#allocation5 + $0x38] sm:$0xff] %v3840_v42 }
  0xe2   : > { %775 = vst [vmem:[#allocation5 + $0x58] sm:$0xff] %v3841_v43 }
  0xe3   : > { %776 = vst [vmem:[#allocation5 + $0x50] sm:$0xff] %v3842_v44 }
  0xe4   : > { %777 = vst [vmem:[#allocation5 + $0x20] sm:$0xff] %v3843_v47 }
  0xe5   : > { %813 = vst [vmem:[#allocation2] sm:$0xff] %v811_v48 }
  0xe6   : > { %843 = vst [vmem:[#allocation3] sm:$0xff] %v840_v49 }
  0xe7 PF: > { %v846_v51 = vld [vmem:[#allocation4 + $0x3a8] sm:$0xff]  ;;  %v847_v52 = vld [vmem:[#allocation4 + $0xd0] sm:$0xff]  ;;  %v850_v55 = vld [vmem:[#allocation4 + $0x360] sm:$0xff]  ;;  %v5603_v3 = vperm.slane %v5394_v1, 0  ;;  %v5606_v4 = vperm.slane %v5394_v1, 1  ;;  %v5609_v5 = vperm.slane %v5394_v1, 2 }
  0xe8   : > { %v848_v53 = vld [vmem:[#allocation4 + $0x10] sm:$0xff]  ;;  %v849_v54 = vld [vmem:[#allocation4 + $0x48] sm:$0xff]  ;;  %v852_v57 = vld [vmem:[#allocation4 + $0x40] sm:$0xff]  ;;  %v5612_v10 = vperm.slane %v5394_v1, 3  ;;  %v5615_v11 = vperm.slane %v5394_v1, 4  ;;  %v5618_v12 = vperm.slane %v5394_v1, 5 }
  0xe9   : > { %v851_v56 = vld [vmem:[#allocation4 + $0x328] sm:$0xff]  ;;  %v853_v58 = vld [vmem:[#allocation4 + $0x378] sm:$0xff]  ;;  %v855_v60 = vld [vmem:[#allocation4 + $0x110] sm:$0xff]  ;;  %v5621_v17 = vperm.slane %v5394_v1, 6  ;;  %v5624_v18 = vperm.slane %v5394_v1, 7  ;;  %vm5627_vm1 = vcmp.eq.s32.totalorder %v846_v51, %v5603_v3  ;;  %v9512_v19 = vmov 0 }
  0xea   : > { %v854_v59 = vld [vmem:[#allocation4 + $0x108] sm:$0xff]  ;;  %v856_v61 = vld [vmem:[#allocation4 + $0x90] sm:$0xff]  ;;  %v857_v62 = vld [vmem:[#allocation4 + $0x318] sm:$0xff]  ;;  %v9513_v19 = vsel %vm5627_vm1, 4294967295, %v9512_v19  ;;  %vm5632_vm2 = vcmp.eq.s32.totalorder %v847_v52, %v5606_v4  ;;  %v9515_v20 = vmov 0  ;;  %vm5637_vm3 = vcmp.eq.s32.totalorder %v848_v53, %v5609_v5  ;;  %p3974_p12 = scmp.ne.s32.totalorder %s5153_s21, 0 }
  0xeb   : > { %v858_v63 = vld [vmem:[#allocation4 + $0x148] sm:$0xff]  ;;  %v859_v0 = vld [vmem:[#allocation4 + $0x100] sm:$0xff]  ;;  %v860_v6 = vld [vmem:[#allocation4 + $0x58] sm:$0xff]  ;;  %9514 = vst [vmem:[#allocation31_spill] sm:$0xff] %v9513_v19  ;;  %v9516_v20 = vsel %vm5632_vm2, 4294967295, %v9515_v20  ;;  %v9518_v25 = vmov 0  ;;  %vm5642_vm4 = vcmp.eq.s32.totalorder %v849_v54, %v5612_v10  ;;  %vm5647_vm5 = vcmp.eq.s32.totalorder %v850_v55, %v5615_v11 }
  0xec   : > { %v861_v7 = vld [vmem:[#allocation4 + $0x2d8] sm:$0xff]  ;;  %v862_v8 = vld [vmem:[#allocation4 + $0x380] sm:$0xff]  ;;  %v863_v9 = vld [vmem:[#allocation4 + $0x330] sm:$0xff]  ;;  %9517 = vst [vmem:[#allocation32_spill] sm:$0xff] %v9516_v20  ;;  %v9519_v25 = vsel %vm5637_vm3, 4294967295, %v9518_v25  ;;  %v9521_v1 = vmov 0  ;;  %vm5652_vm6 = vcmp.eq.s32.totalorder %v851_v56, %v5618_v12  ;;  %vm5657_vm7 = vcmp.eq.s32.totalorder %v852_v57, %v5621_v17 }
  0xed   : > { %v864_v13 = vld [vmem:[#allocation4 + $0x338] sm:$0xff]  ;;  %v866_v15 = vld [vmem:[#allocation4 + $0x1a0] sm:$0xff]  ;;  %v867_v16 = vld [vmem:[#allocation4 + $0x1b0] sm:$0xff]  ;;  %9520 = vst [vmem:[#allocation33_spill] sm:$0xff] %v9519_v25  ;;  %v9522_v1 = vsel %vm5642_vm4, 4294967295, %v9521_v1  ;;  %v9524_v26 = vmov 0  ;;  %vm5662_vm8 = vcmp.eq.s32.totalorder %v853_v58, %v5624_v18  ;;  %vm5667_vm9 = vcmp.eq.s32.totalorder %v854_v59, %v5603_v3 }
  0xee   : > { %v865_v14 = vld [vmem:[#allocation4 + $0x78] sm:$0xff]  ;;  %v868_v21 = vld [vmem:[#allocation4 + $0x160] sm:$0xff]  ;;  %v870_v23 = vld [vmem:[#allocation4 + $0x2f0] sm:$0xff]  ;;  %9523 = vst [vmem:[#allocation34_spill] sm:$0xff] %v9522_v1  ;;  %v9525_v26 = vsel %vm5647_vm5, 4294967295, %v9524_v26  ;;  %v9527_v27 = vmov 0  ;;  %vm5672_vm10 = vcmp.eq.s32.totalorder %v855_v60, %v5606_v4  ;;  %vm5677_vm11 = vcmp.eq.s32.totalorder %v856_v61, %v5609_v5 }
  0xef   : > { %v869_v22 = vld [vmem:[#allocation4 + $0x3e0] sm:$0xff]  ;;  %v871_v24 = vld [vmem:[#allocation4 + $0x288] sm:$0xff]  ;;  %9526 = vst [vmem:[#allocation35_spill] sm:$0xff] %v9525_v26  ;;  %v9528_v27 = vsel %vm5652_vm6, 4294967295, %v9527_v27  ;;  %v873_v29 = vld [vmem:[#allocation4 + $0x130] sm:$0xff]  ;;  %v9530_v32 = vmov 0  ;;  %vm5682_vm12 = vcmp.eq.s32.totalorder %v857_v62, %v5612_v10  ;;  %vm5687_vm13 = vcmp.eq.s32.totalorder %v858_v63, %v5615_v11 }
  0xf0   : > { %9529 = vst [vmem:[#allocation36_spill] sm:$0xff] %v9528_v27  ;;  %v872_v28 = vld [vmem:[#allocation4 + $0x20] sm:$0xff]  ;;  %v874_v30 = vld [vmem:[#allocation4 + $0xb8] sm:$0xff]  ;;  %v9531_v32 = vsel %vm5657_vm7, 4294967295, %v9530_v32  ;;  %v9533_v33 = vmov 0  ;;  %v9536_v34 = vmov 0  ;;  %vm5692_vm14 = vcmp.eq.s32.totalorder %v859_v0, %v5618_v12 }
  0xf1   : > { %v875_v31 = vld [vmem:[#allocation4 + $0x1b8] sm:$0xff]  ;;  %9532 = vst [vmem:[#allocation37_spill] sm:$0xff] %v9531_v32  ;;  %v9534_v33 = vsel %vm5662_vm8, 4294967295, %v9533_v33  ;;  %v9537_v34 = vsel %vm5667_vm9, 4294967295, %v9536_v34  ;;  %v9539_v35 = vmov 0  ;;  %v879_v39 = vld [vmem:[#allocation4 + $0x150] sm:$0xff]  ;;  %vm5697_vm15 = vcmp.eq.s32.totalorder %v860_v6, %v5621_v17 }
  0xf2   : > { %9535 = vst [vmem:[#allocation38_spill] sm:$0xff] %v9534_v33  ;;  %v9540_v35 = vsel %vm5672_vm10, 4294967295, %v9539_v35  ;;  %v876_v36 = vld [vmem:[#allocation4 + $0x278] sm:$0xff]  ;;  %v9542_v40 = vmov 0  ;;  %v9545_v41 = vmov 0  ;;  %v9548_v42 = vmov 0 }
  0xf3   : > { %9538 = vst [vmem:[#allocation39_spill] sm:$0xff] %v9537_v34  ;;  %v877_v37 = vld [vmem:[#allocation4 + $0xf8] sm:$0xff]  ;;  %v9543_v40 = vsel %vm5677_vm11, 4294967295, %v9542_v40  ;;  %v9546_v41 = vsel %vm5682_vm12, 4294967295, %v9545_v41  ;;  %v9549_v42 = vsel %vm5687_vm13, 4294967295, %v9548_v42  ;;  %v9551_v43 = vmov 0 }
  0xf4   : > { %9541 = vst [vmem:[#allocation40_spill] sm:$0xff] %v9540_v35  ;;  %v878_v38 = vld [vmem:[#allocation4 + $0x3b8] sm:$0xff]  ;;  %v9552_v43 = vsel %vm5692_vm14, 4294967295, %v9551_v43  ;;  %v881_v45 = vld [vmem:[#allocation4 + $0x210] sm:$0xff]  ;;  %v883_v47 = vld [vmem:[#allocation4] sm:$0xff]  ;;  %v9554_v48 = vmov 0  ;;  %vm5702_vm0 = vcmp.eq.s32.totalorder %v861_v7, %v5624_v18  ;;  %vm5707_vm8 = vcmp.eq.s32.totalorder %v862_v8, %v5603_v3 }
  0xf5   : > { %9544 = vst [vmem:[#allocation41_spill] sm:$0xff] %v9543_v40  ;;  %v880_v44 = vld [vmem:[#allocation4 + $0x3d8] sm:$0xff]  ;;  %v882_v46 = vld [vmem:[#allocation4 + $0x3f0] sm:$0xff]  ;;  %v9555_v48 = vsel %vm5697_vm15, 4294967295, %v9554_v48  ;;  %v9557_v49 = vmov 0  ;;  %v9560_v50 = vmov 0  ;;  %vm5712_vm6 = vcmp.eq.s32.totalorder %v863_v9, %v5606_v4 }
  0xf6   : > { %9547 = vst [vmem:[#allocation42_spill] sm:$0xff] %v9546_v41  ;;  %v9558_v49 = vsel %vm5702_vm0, 4294967295, %v9557_v49  ;;  %v9561_v50 = vsel %vm5707_vm8, 4294967295, %v9560_v50  ;;  %v9563_v51 = vmov 0  ;;  %v884_v52 = vld [vmem:[#allocation4 + $0x120] sm:$0xff]  ;;  %v885_v53 = vld [vmem:[#allocation4 + $0x298] sm:$0xff]  ;;  %vm5717_vm7 = vcmp.eq.s32.totalorder %v864_v13, %v5609_v5 }
  0xf7   : > { %9550 = vst [vmem:[#allocation43_spill] sm:$0xff] %v9549_v42  ;;  %v9564_v51 = vsel %vm5712_vm6, 4294967295, %v9563_v51  ;;  %v886_v54 = vld [vmem:[#allocation4 + $0x3e8] sm:$0xff]  ;;  %v887_v55 = vld [vmem:[#allocation4 + $0x98] sm:$0xff]  ;;  %v9566_v56 = vmov 0  ;;  %vm5722_vm5 = vcmp.eq.s32.totalorder %v865_v14, %v5612_v10  ;;  %v9569_v57 = vmov 0 }
  0xf8   : > { %9553 = vst [vmem:[#allocation44_spill] sm:$0xff] %v9552_v43  ;;  %v9567_v56 = vsel %vm5717_vm7, 4294967295, %v9566_v56  ;;  %v9570_v57 = vsel %vm5722_vm5, 4294967295, %v9569_v57  ;;  %vm5727_vm0 = vcmp.eq.s32.totalorder %v866_v15, %v5615_v11  ;;  %v9572_v58 = vmov 0  ;;  %v888_v60 = vld [vmem:[#allocation4 + $0x2b8] sm:$0xff]  ;;  %v889_v61 = vld [vmem:[#allocation4 + $0xa8] sm:$0xff] }
  0xf9   : > { %9556 = vst [vmem:[#allocation45_spill] sm:$0xff] %v9555_v48  ;;  %v9573_v58 = vsel %vm5727_vm0, 4294967295, %v9572_v58  ;;  %vm5732_vm14 = vcmp.eq.s32.totalorder %v867_v16, %v5618_v12  ;;  %v9575_v59 = vmov 0  ;;  %v890_v62 = vld [vmem:[#allocation4 + $0x1d8] sm:$0xff]  ;;  %v891_v63 = vld [vmem:[#allocation4 + $0x1e8] sm:$0xff]  ;;  %vm5737_vm15 = vcmp.eq.s32.totalorder %v868_v21, %v5621_v17  ;;  %v899_v27 = vld [vmem:[#allocation4 + $0x80] sm:$0xff] }
  0xfa   : > { %9559 = vst [vmem:[#allocation46_spill] sm:$0xff] %v9558_v49  ;;  %v9576_v59 = vsel %vm5732_vm14, 4294967295, %v9575_v59  ;;  %v9578_v0 = vmov 0  ;;  %vm5742_vm13 = vcmp.eq.s32.totalorder %v869_v22, %v5624_v18  ;;  %v9581_v6 = vmov 0  ;;  %v892_v9 = vld [vmem:[#allocation4 + $0x8] sm:$0xff]  ;;  %v894_v14 = vld [vmem:[#allocation4 + $0x238] sm:$0xff] }
  0xfb   : > { %9562 = vst [vmem:[#allocation47_spill] sm:$0xff] %v9561_v50  ;;  %v9579_v0 = vsel %vm5737_vm15, 4294967295, %v9578_v0  ;;  %v9582_v6 = vsel %vm5742_vm13, 4294967295, %v9581_v6  ;;  %vm5747_vm0 = vcmp.eq.s32.totalorder %v870_v23, %v5603_v3  ;;  %v9584_v7 = vmov 0  ;;  %v893_v13 = vld [vmem:[#allocation4 + $0x228] sm:$0xff]  ;;  %v902_v49 = vld [vmem:[#allocation4 + $0x260] sm:$0xff] }
  0xfc   : > { %9565 = vst [vmem:[#allocation48_spill] sm:$0xff] %v9564_v51  ;;  %v9585_v7 = vsel %vm5747_vm0, 4294967295, %v9584_v7  ;;  %vm5752_vm14 = vcmp.eq.s32.totalorder %v871_v24, %v5606_v4  ;;  %v9587_v8 = vmov 0  ;;  %v895_v15 = vld [vmem:[#allocation4 + $0x88] sm:$0xff]  ;;  %vm5757_vm15 = vcmp.eq.s32.totalorder %v872_v28, %v5609_v5  ;;  %v896_v24 = vld [vmem:[#allocation4 + $0x398] sm:$0xff]  ;;  %v897_v28 = vld [vmem:[#allocation4 + $0x200] sm:$0xff] }
  0xfd   : > { %9568 = vst [vmem:[#allocation49_spill] sm:$0xff] %v9567_v56  ;;  %v9588_v8 = vsel %vm5752_vm14, 4294967295, %v9587_v8  ;;  %v9590_v16 = vmov 0  ;;  %vm5762_vm13 = vcmp.eq.s32.totalorder %v873_v29, %v5612_v10  ;;  %v9593_v21 = vmov 0  ;;  %v898_v33 = vld [vmem:[#allocation4 + $0xc8] sm:$0xff]  ;;  %v904_v42 = vld [vmem:[#allocation4 + $0x180] sm:$0xff] }
  0xfe   : > { %9571 = vst [vmem:[#allocation50_spill] sm:$0xff] %v9570_v57  ;;  %v9591_v16 = vsel %vm5757_vm15, 4294967295, %v9590_v16  ;;  %v9594_v21 = vsel %vm5762_vm13, 4294967295, %v9593_v21  ;;  %vm5767_vm4 = vcmp.eq.s32.totalorder %v874_v30, %v5615_v11  ;;  %v9596_v22 = vmov 0  ;;  %v900_v26 = vld [vmem:[#allocation4 + $0x2e8] sm:$0xff]  ;;  %v922_v2 = vld [vmem:[#allocation4 + $0x3d0] sm:$0xff] }
  0xff   : > { %9574 = vst [vmem:[#allocation51_spill] sm:$0xff] %v9573_v58  ;;  %v9597_v22 = vsel %vm5767_vm4, 4294967295, %v9596_v22  ;;  %vm5772_vm2 = vcmp.eq.s32.totalorder %v875_v31, %v5618_v12  ;;  %v9599_v23 = vmov 0  ;;  %vm5777_vm3 = vcmp.eq.s32.totalorder %v876_v36, %v5621_v17  ;;  %v901_v36 = vld [vmem:[#allocation4 + $0x350] sm:$0xff]  ;;  %v903_v43 = vld [vmem:[#allocation4 + $0x348] sm:$0xff]  ;;  %v908_v58 = vld [vmem:[#allocation4 + $0x2a0] sm:$0xff] }
 0x100   : > { %9577 = vst [vmem:[#allocation52_spill] sm:$0xff] %v9576_v59  ;;  %v9600_v23 = vsel %vm5772_vm2, 4294967295, %v9599_v23  ;;  %v9602_v29 = vmov 0  ;;  %vm5782_vm1 = vcmp.eq.s32.totalorder %v877_v37, %v5624_v18  ;;  %v9605_v30 = vmov 0  ;;  %v907_v59 = vld [vmem:[#allocation4 + $0x138] sm:$0xff]  ;;  %v926_v20 = vld [vmem:[#allocation4 + $0x68] sm:$0xff] }
 0x101   : > { %9580 = vst [vmem:[#allocation53_spill] sm:$0xff] %v9579_v0  ;;  %v9603_v29 = vsel %vm5777_vm3, 4294967295, %v9602_v29  ;;  %v9606_v30 = vsel %vm5782_vm1, 4294967295, %v9605_v30  ;;  %vm5787_vm4 = vcmp.eq.s32.totalorder %v878_v38, %v5603_v3  ;;  %v9608_v31 = vmov 0  ;;  %v923_v1 = vld [vmem:[#allocation4 + $0x18] sm:$0xff]  ;;  %v929_v25 = vld [vmem:[#allocation4 + $0x2c0] sm:$0xff] }
 0x102   : > { %9583 = vst [vmem:[#allocation54_spill] sm:$0xff] %v9582_v6  ;;  %v9609_v31 = vsel %vm5787_vm4, 4294967295, %v9608_v31  ;;  %vm5792_vm2 = vcmp.eq.s32.totalorder %v879_v39, %v5606_v4  ;;  %v9611_v32 = vmov 0  ;;  %vm5797_vm3 = vcmp.eq.s32.totalorder %v880_v44, %v5609_v5  ;;  %v905_v44 = vld [vmem:[#allocation4 + $0x1d0] sm:$0xff]  ;;  %v906_v6 = vld [vmem:[#allocation4 + $0x28] sm:$0xff]  ;;  %v947_v57 = vld [vmem:[#allocation4 + $0x340] sm:$0xff] }
 0x103   : > { %9586 = vst [vmem:[#allocation55_spill] sm:$0xff] %v9585_v7  ;;  %v9612_v32 = vsel %vm5792_vm2, 4294967295, %v9611_v32  ;;  %v9614_v37 = vmov 0  ;;  %vm5802_vm1 = vcmp.eq.s32.totalorder %v881_v45, %v5612_v10  ;;  %v9617_v38 = vmov 0  ;;  %v935_v41 = vld [vmem:[#allocation4 + $0x2c8] sm:$0xff]  ;;  %v941_v40 = vld [vmem:[#allocation4 + $0x30] sm:$0xff] }
 0x104   : > { %9589 = vst [vmem:[#allocation56_spill] sm:$0xff] %v9588_v8  ;;  %v9615_v37 = vsel %vm5797_vm3, 4294967295, %v9614_v37  ;;  %v9618_v38 = vsel %vm5802_vm1, 4294967295, %v9617_v38  ;;  %vm5807_vm12 = vcmp.eq.s32.totalorder %v882_v46, %v5615_v11  ;;  %v9620_v39 = vmov 0  ;;  %v953_v56 = vld [vmem:[#allocation4 + $0x3b0] sm:$0xff] }
 0x105   : > { %9592 = vst [vmem:[#allocation57_spill] sm:$0xff] %v9591_v16  ;;  %v9621_v39 = vsel %vm5807_vm12, 4294967295, %v9620_v39  ;;  %vm5812_vm10 = vcmp.eq.s32.totalorder %v883_v47, %v5618_v12  ;;  %v9623_v48 = vmov 0  ;;  %vm5817_vm11 = vcmp.eq.s32.totalorder %v884_v52, %v5621_v17  ;;  %v909_v52 = vld [vmem:[#allocation4 + $0x300] sm:$0xff] }
 0x106   : > { %9595 = vst [vmem:[#allocation58_spill] sm:$0xff] %v9594_v21  ;;  %v9624_v48 = vsel %vm5812_vm10, 4294967295, %v9623_v48  ;;  %v9626_v45 = vmov 0  ;;  %vm5822_vm9 = vcmp.eq.s32.totalorder %v885_v53, %v5624_v18  ;;  %v9629_v46 = vmov 0  ;;  %v959_v21 = vld [vmem:[#allocation4 + $0x358] sm:$0xff]  ;;  %v965_v16 = vld [vmem:[#allocation4 + $0x60] sm:$0xff] }
 0x107   : > { %9598 = vst [vmem:[#allocation59_spill] sm:$0xff] %v9597_v22  ;;  %v9627_v45 = vsel %vm5817_vm11, 4294967295, %v9626_v45  ;;  %v9630_v46 = vsel %vm5822_vm9, 4294967295, %v9629_v46  ;;  %vm5827_vm12 = vcmp.eq.s32.totalorder %v886_v54, %v5603_v3  ;;  %v9632_v47 = vmov 0  ;;  %v912_v22 = vld [vmem:[#allocation4 + $0x158] sm:$0xff] }
 0x108   : > { %9601 = vst [vmem:[#allocation60_spill] sm:$0xff] %v9600_v23  ;;  %v9633_v47 = vsel %vm5827_vm12, 4294967295, %v9632_v47  ;;  %vm5832_vm10 = vcmp.eq.s32.totalorder %v887_v55, %v5606_v4  ;;  %v9635_v0 = vmov 0  ;;  %v911_v23 = vld [vmem:[#allocation4 + $0x128] sm:$0xff]  ;;  %vm5837_vm11 = vcmp.eq.s32.totalorder %v888_v60, %v5609_v5  ;;  %v913_v60 = vld [vmem:[#allocation4 + $0xe0] sm:$0xff] }
 0x109   : > { %9604 = vst [vmem:[#allocation61_spill] sm:$0xff] %v9603_v29  ;;  %v9636_v0 = vsel %vm5832_vm10, 4294967295, %v9635_v0  ;;  %v9638_v53 = vmov 0  ;;  %vm5842_vm9 = vcmp.eq.s32.totalorder %v889_v61, %v5612_v10  ;;  %v9641_v54 = vmov 0 }
 0x10a   : > { %9607 = vst [vmem:[#allocation62_spill] sm:$0xff] %v9606_v30  ;;  %v910_v30 = vld [vmem:[#allocation4 + $0x208] sm:$0xff]  ;;  %v9639_v53 = vsel %vm5837_vm11, 4294967295, %v9638_v53  ;;  %v9642_v54 = vsel %vm5842_vm9, 4294967295, %v9641_v54  ;;  %vm5847_vm5 = vcmp.eq.s32.totalorder %v890_v62, %v5615_v11  ;;  %v9644_v55 = vmov 0 }
 0x10b   : > { %9610 = vst [vmem:[#allocation63_spill] sm:$0xff] %v9609_v31  ;;  %v9645_v55 = vsel %vm5847_vm5, 4294967295, %v9644_v55  ;;  %vm5852_vm6 = vcmp.eq.s32.totalorder %v891_v63, %v5618_v12  ;;  %v9647_v29 = vmov 0  ;;  %vm5857_vm7 = vcmp.eq.s32.totalorder %v892_v9, %v5621_v17  ;;  %v917_v9 = vld [vmem:[#allocation4 + $0x3a0] sm:$0xff] }
 0x10c   : > { %9613 = vst [vmem:[#allocation64_spill] sm:$0xff] %v9612_v32  ;;  %v9648_v29 = vsel %vm5852_vm6, 4294967295, %v9647_v29  ;;  %v9650_v61 = vmov 0  ;;  %vm5862_vm8 = vcmp.eq.s32.totalorder %v893_v13, %v5624_v18  ;;  %v9653_v62 = vmov 0 }
 0x10d   : > { %9616 = vst [vmem:[#allocation65_spill] sm:$0xff] %v9615_v37  ;;  %v9651_v61 = vsel %vm5857_vm7, 4294967295, %v9650_v61  ;;  %v9654_v62 = vsel %vm5862_vm8, 4294967295, %v9653_v62  ;;  %vm5867_vm5 = vcmp.eq.s32.totalorder %v894_v14, %v5603_v3  ;;  %v9656_v63 = vmov 0 }
 0x10e   : > { %9619 = vst [vmem:[#allocation66_spill] sm:$0xff] %v9618_v38  ;;  %v9657_v63 = vsel %vm5867_vm5, 4294967295, %v9656_v63  ;;  %vm5872_vm6 = vcmp.eq.s32.totalorder %v895_v15, %v5606_v4  ;;  %vm5877_vm7 = vcmp.eq.s32.totalorder %v896_v24, %v5609_v5  ;;  %v9662_v13 = vmov 0  ;;  %v921_v24 = vld [vmem:[#allocation4 + $0xd8] sm:$0xff] }
 0x10f   : > { %9622 = vst [vmem:[#allocation67_spill] sm:$0xff] %v9621_v39  ;;  %v916_v39 = vld [vmem:[#allocation4 + $0x248] sm:$0xff]  ;;  %v9663_v13 = vsel %vm5877_vm7, 4294967295, %v9662_v13  ;;  %vm5882_vm8 = vcmp.eq.s32.totalorder %v897_v28, %v5612_v10  ;;  %v9665_v14 = vmov 0  ;;  %vm5887_vm13 = vcmp.eq.s32.totalorder %v898_v33, %v5615_v11  ;;  %v971_v38 = vld [vmem:[#allocation4 + $0x218] sm:$0xff] }
 0x110   : > { %9625 = vst [vmem:[#allocation68_spill] sm:$0xff] %v9624_v48  ;;  %v915_v48 = vld [vmem:[#allocation4 + $0x310] sm:$0xff]  ;;  %v9666_v14 = vsel %vm5882_vm8, 4294967295, %v9665_v14  ;;  %v9668_v15 = vmov 0  ;;  %vm5892_vm14 = vcmp.eq.s32.totalorder %v899_v27, %v5618_v12  ;;  %vm5897_vm15 = vcmp.eq.s32.totalorder %v900_v26, %v5621_v17 }
 0x111   : > { %9628 = vst [vmem:[#allocation69_spill] sm:$0xff] %v9627_v45  ;;  %v9659_v45 = vmov 0  ;;  %v9669_v15 = vsel %vm5887_vm13, 4294967295, %v9668_v15  ;;  %v9674_v28 = vmov 0  ;;  %vm5902_vm0 = vcmp.eq.s32.totalorder %v901_v36, %v5624_v18  ;;  %v925_v26 = vld [vmem:[#allocation4 + $0x190] sm:$0xff] }
 0x112   : > { %9631 = vst [vmem:[#allocation70_spill] sm:$0xff] %v9630_v46  ;;  %v914_v46 = vld [vmem:[#allocation4 + $0xe8] sm:$0xff]  ;;  %v9660_v45 = vsel %vm5872_vm6, 4294967295, %v9659_v45  ;;  %v9675_v28 = vsel %vm5897_vm15, 4294967295, %v9674_v28  ;;  %v9677_v33 = vmov 0  ;;  %vm5907_vm13 = vcmp.eq.s32.totalorder %v902_v49, %v5603_v3 }
 0x113   : > { %9634 = vst [vmem:[#allocation71_spill] sm:$0xff] %v9633_v47  ;;  %v9678_v33 = vsel %vm5902_vm0, 4294967295, %v9677_v33  ;;  %v9680_v27 = vmov 0  ;;  %vm5917_vm15 = vcmp.eq.s32.totalorder %v904_v42, %v5609_v5  ;;  %vm5922_vm0 = vcmp.eq.s32.totalorder %v905_v44, %v5612_v10  ;;  %v928_v42 = vld [vmem:[#allocation4 + $0x118] sm:$0xff] }
 0x114   : > { %9637 = vst [vmem:[#allocation72_spill] sm:$0xff] %v9636_v0  ;;  %v9681_v27 = vsel %vm5907_vm13, 4294967295, %v9680_v27  ;;  %v9689_v36 = vmov 0  ;;  %vm5927_vm1 = vcmp.eq.s32.totalorder %v906_v6, %v5615_v11  ;;  %v9692_v49 = vmov 0 }
 0x115   : > { %9640 = vst [vmem:[#allocation73_spill] sm:$0xff] %v9639_v53  ;;  %v9690_v36 = vsel %vm5922_vm0, 4294967295, %v9689_v36  ;;  %v9693_v49 = vsel %vm5927_vm1, 4294967295, %v9692_v49  ;;  %vm5932_vm2 = vcmp.eq.s32.totalorder %v907_v59, %v5618_v12  ;;  %vm5937_vm3 = vcmp.eq.s32.totalorder %v908_v58, %v5621_v17  ;;  %v931_v58 = vld [vmem:[#allocation4 + $0x1c0] sm:$0xff] }
 0x116   : > { %9643 = vst [vmem:[#allocation74_spill] sm:$0xff] %v9642_v54  ;;  %v9698_v19 = vmov 0  ;;  %vm5942_vm4 = vcmp.eq.s32.totalorder %v909_v52, %v5624_v18  ;;  %v9701_v44 = vmov 0  ;;  %vm5947_vm1 = vcmp.eq.s32.totalorder %v910_v30, %v5603_v3 }
 0x117   : > { %9646 = vst [vmem:[#allocation75_spill] sm:$0xff] %v9645_v55  ;;  %v919_v55 = vld [vmem:[#allocation4 + $0x230] sm:$0xff]  ;;  %v9699_v19 = vsel %vm5937_vm3, 4294967295, %v9698_v19  ;;  %v9702_v44 = vsel %vm5942_vm4, 4294967295, %v9701_v44  ;;  %v9704_v6 = vmov 0  ;;  %v9707_v59 = vmov 0 }
 0x118   : > { %9649 = vst [vmem:[#allocation76_spill] sm:$0xff] %v9648_v29  ;;  %v918_v29 = vld [vmem:[#allocation4 + $0x1f0] sm:$0xff]  ;;  %v9705_v6 = vsel %vm5947_vm1, 4294967295, %v9704_v6  ;;  %vm5957_vm3 = vcmp.eq.s32.totalorder %v912_v22, %v5609_v5  ;;  %vm5962_vm4 = vcmp.eq.s32.totalorder %v913_v60, %v5612_v10  ;;  %v9713_v52 = vmov 0  ;;  %v934_v22 = vld [vmem:[#allocation4 + $0x38] sm:$0xff] }
 0x119   : > { %9652 = vst [vmem:[#allocation77_spill] sm:$0xff] %v9651_v61  ;;  %v920_v61 = vld [vmem:[#allocation4 + $0x368] sm:$0xff]  ;;  %v9714_v52 = vsel %vm5962_vm4, 4294967295, %v9713_v52  ;;  %vm5967_vm9 = vcmp.eq.s32.totalorder %v914_v46, %v5615_v11  ;;  %v9716_v30 = vmov 0  ;;  %vm5972_vm10 = vcmp.eq.s32.totalorder %v915_v48, %v5618_v12 }
 0x11a   : > { %9655 = vst [vmem:[#allocation78_spill] sm:$0xff] %v9654_v62  ;;  %v9671_v62 = vmov 0  ;;  %v9717_v30 = vsel %vm5967_vm9, 4294967295, %v9716_v30  ;;  %vm5977_vm11 = vcmp.eq.s32.totalorder %v916_v39, %v5621_v17  ;;  %v9722_v35 = vmov 0  ;;  %v937_v39 = vld [vmem:[#allocation4 + $0x50] sm:$0xff] }
 0x11b   : > { %9658 = vst [vmem:[#allocation79_spill] sm:$0xff] %v9657_v63  ;;  %v9672_v62 = vsel %vm5892_vm14, 4294967295, %v9671_v62  ;;  %vm5912_vm14 = vcmp.eq.s32.totalorder %v903_v43, %v5606_v4  ;;  %v9695_v43 = vmov 0  ;;  %v9723_v35 = vsel %vm5977_vm11, 4294967295, %v9722_v35 }
 0x11c   : > { %9661 = vst [vmem:[#allocation80_spill] sm:$0xff] %v9660_v45  ;;  %v9696_v43 = vsel %vm5932_vm2, 4294967295, %v9695_v43  ;;  %vm5952_vm2 = vcmp.eq.s32.totalorder %v911_v23, %v5606_v4  ;;  %v9719_v23 = vmov 0  ;;  %vm5982_vm12 = vcmp.eq.s32.totalorder %v917_v9, %v5624_v18 }
 0x11d   : > { %9664 = vst [vmem:[#allocation81_spill] sm:$0xff] %v9663_v13  ;;  %v9708_v59 = vsel %vm5952_vm2, 4294967295, %v9707_v59  ;;  %v9720_v23 = vsel %vm5972_vm10, 4294967295, %v9719_v23  ;;  %v9725_v60 = vmov 0  ;;  %vm5987_vm9 = vcmp.eq.s32.totalorder %v918_v29, %v5603_v3 }
 0x11e   : > { %9667 = vst [vmem:[#allocation82_spill] sm:$0xff] %v9666_v14  ;;  %v9726_v60 = vsel %vm5982_vm12, 4294967295, %v9725_v60  ;;  %v9728_v46 = vmov 0  ;;  %vm5992_vm10 = vcmp.eq.s32.totalorder %v919_v55, %v5606_v4  ;;  %v9730_v48 = vmov 0 }
 0x11f   : > { %9670 = vst [vmem:[#allocation83_spill] sm:$0xff] %v9669_v15  ;;  %v924_v15 = vld [vmem:[#allocation4 + $0xf0] sm:$0xff]  ;;  %v9729_v46 = vsel %vm5987_vm9, 4294967295, %v9728_v46  ;;  %v9731_v48 = vsel %vm5992_vm10, 4294967295, %v9730_v48  ;;  %vm5997_vm11 = vcmp.eq.s32.totalorder %v920_v61, %v5609_v5  ;;  %vm6002_vm12 = vcmp.eq.s32.totalorder %v921_v24, %v5612_v10  ;;  %v940_v61 = vld [vmem:[#allocation4 + $0x2e0] sm:$0xff] }
 0x120   : > { %9673 = vst [vmem:[#allocation84_spill] sm:$0xff] %v9672_v62  ;;  %v9683_v62 = vmov 0  ;;  %v9734_v9 = vmov 0  ;;  %vm6007_vm8 = vcmp.eq.s32.totalorder %v922_v2, %v5615_v11  ;;  %v9736_v29 = vmov 0 }
 0x121   : > { %9676 = vst [vmem:[#allocation85_spill] sm:$0xff] %v9675_v28  ;;  %v9684_v62 = vsel %vm5912_vm14, 4294967295, %v9683_v62  ;;  %v9686_v28 = vmov 0  ;;  %v9735_v9 = vsel %vm6002_vm12, 4294967295, %v9734_v9  ;;  %v9737_v29 = vsel %vm6007_vm8, 4294967295, %v9736_v29 }
 0x122   : > { %9679 = vst [vmem:[#allocation86_spill] sm:$0xff] %v9678_v33  ;;  %v9687_v28 = vsel %vm5917_vm15, 4294967295, %v9686_v28  ;;  %v927_v33 = vld [vmem:[#allocation4 + $0x258] sm:$0xff]  ;;  %vm6012_vm6 = vcmp.eq.s32.totalorder %v923_v1, %v5618_v12  ;;  %v9739_v55 = vmov 0  ;;  %vm6017_vm7 = vcmp.eq.s32.totalorder %v924_v15, %v5621_v17  ;;  %v943_v15 = vld [vmem:[#allocation4 + $0xa0] sm:$0xff] }
 0x123   : > { %9682 = vst [vmem:[#allocation87_spill] sm:$0xff] %v9681_v27  ;;  %v9740_v55 = vsel %vm6012_vm6, 4294967295, %v9739_v55  ;;  %v9742_v34 = vmov 0  ;;  %vm6022_vm5 = vcmp.eq.s32.totalorder %v925_v26, %v5624_v18  ;;  %v9745_v24 = vmov 0 }
 0x124   : > { %9685 = vst [vmem:[#allocation88_spill] sm:$0xff] %v9684_v62  ;;  %v9743_v34 = vsel %vm6017_vm7, 4294967295, %v9742_v34  ;;  %v9746_v24 = vsel %vm6022_vm5, 4294967295, %v9745_v24  ;;  %vm6027_vm8 = vcmp.eq.s32.totalorder %v926_v20, %v5603_v3  ;;  %v9748_v2 = vmov 0 }
 0x125   : > { %9688 = vst [vmem:[#allocation89_spill] sm:$0xff] %v9687_v28  ;;  %v9749_v2 = vsel %vm6027_vm8, 4294967295, %v9748_v2  ;;  %vm6032_vm6 = vcmp.eq.s32.totalorder %v927_v33, %v5606_v4  ;;  %v9751_v1 = vmov 0  ;;  %vm6037_vm7 = vcmp.eq.s32.totalorder %v928_v42, %v5609_v5  ;;  %v946_v42 = vld [vmem:[#allocation4 + $0x320] sm:$0xff] }
 0x126   : > { %9691 = vst [vmem:[#allocation90_spill] sm:$0xff] %v9690_v36  ;;  %v9752_v1 = vsel %vm6032_vm6, 4294967295, %v9751_v1  ;;  %vm6042_vm5 = vcmp.eq.s32.totalorder %v929_v25, %v5612_v10  ;;  %v9757_v26 = vmov 0  ;;  %v9760_v20 = vmov 0 }
 0x127   : > { %9694 = vst [vmem:[#allocation91_spill] sm:$0xff] %v9693_v49  ;;  %v932_v49 = vld [vmem:[#allocation4 + $0x1e0] sm:$0xff]  ;;  %v9758_v26 = vsel %vm6042_vm5, 4294967295, %v9757_v26  ;;  %vm6052_vm14 = vcmp.eq.s32.totalorder %v931_v58, %v5618_v12  ;;  %v9763_v33 = vmov 0  ;;  %v9766_v51 = vmov 0 }
 0x128   : > { %9697 = vst [vmem:[#allocation92_spill] sm:$0xff] %v9696_v43  ;;  %v930_v43 = vld [vmem:[#allocation4 + $0x178] sm:$0xff]  ;;  %v9764_v33 = vsel %vm6052_vm14, 4294967295, %v9763_v33  ;;  %vm6057_vm15 = vcmp.eq.s32.totalorder %v932_v49, %v5621_v17  ;;  %v9769_v25 = vmov 0  ;;  %vm6072_vm14 = vcmp.eq.s32.totalorder %v935_v41, %v5606_v4  ;;  %v949_v49 = vld [vmem:[#allocation4 + $0x140] sm:$0xff] }
 0x129   : > { %9700 = vst [vmem:[#allocation93_spill] sm:$0xff] %v9699_v19  ;;  %v9710_v19 = vmov 0  ;;  %vm6047_vm0 = vcmp.eq.s32.totalorder %v930_v43, %v5615_v11  ;;  %v9767_v51 = vsel %vm6057_vm15, 4294967295, %v9766_v51  ;;  %v9772_v43 = vmov 0 }
 0x12a   : > { %9703 = vst [vmem:[#allocation94_spill] sm:$0xff] %v9702_v44  ;;  %v9711_v19 = vsel %vm5957_vm3, 4294967295, %v9710_v19  ;;  %v933_v44 = vld [vmem:[#allocation4 + $0x1a8] sm:$0xff]  ;;  %v9761_v20 = vsel %vm6047_vm0, 4294967295, %v9760_v20  ;;  %vm6067_vm0 = vcmp.eq.s32.totalorder %v934_v22, %v5603_v3  ;;  %v9775_v58 = vmov 0 }
 0x12b   : > { %9706 = vst [vmem:[#allocation95_spill] sm:$0xff] %v9705_v6  ;;  %vm6062_vm13 = vcmp.eq.s32.totalorder %v933_v44, %v5624_v18  ;;  %v9773_v43 = vsel %vm6067_vm0, 4294967295, %v9772_v43  ;;  %v9776_v58 = vsel %vm6072_vm14, 4294967295, %v9775_v58  ;;  %v9781_v44 = vmov 0 }
 0x12c   : > { %9709 = vst [vmem:[#allocation96_spill] sm:$0xff] %v9708_v59  ;;  %v9770_v25 = vsel %vm6062_vm13, 4294967295, %v9769_v25  ;;  %vm6082_vm13 = vcmp.eq.s32.totalorder %v937_v39, %v5612_v10  ;;  %v9784_v22 = vmov 0  ;;  %v9787_v41 = vmov 0 }
 0x12d   : > { %9712 = vst [vmem:[#allocation97_spill] sm:$0xff] %v9711_v19  ;;  %v9782_v44 = vsel %vm6082_vm13, 4294967295, %v9781_v44  ;;  %vm6097_vm3 = vcmp.eq.s32.totalorder %v940_v61, %v5621_v17  ;;  %v9790_v50 = vmov 0  ;;  %vm6102_vm1 = vcmp.eq.s32.totalorder %v941_v40, %v5624_v18  ;;  %v955_v61 = vld [vmem:[#allocation4 + $0x3c0] sm:$0xff] }
 0x12e   : > { %9715 = vst [vmem:[#allocation98_spill] sm:$0xff] %v9714_v52  ;;  %v9791_v50 = vsel %vm6097_vm3, 4294967295, %v9790_v50  ;;  %v9793_v39 = vmov 0  ;;  %v9805_v40 = vmov 0  ;;  %vm6127_vm12 = vcmp.eq.s32.totalorder %v946_v42, %v5615_v11 }
 0x12f   : > { %9718 = vst [vmem:[#allocation99_spill] sm:$0xff] %v9717_v30  ;;  %v938_v30 = vld [vmem:[#allocation4 + $0x280] sm:$0xff]  ;;  %v9794_v39 = vsel %vm6102_vm1, 4294967295, %v9793_v39  ;;  %vm6132_vm10 = vcmp.eq.s32.totalorder %v947_v57, %v5618_v12  ;;  %v9814_v8 = vmov 0  ;;  %vm6142_vm9 = vcmp.eq.s32.totalorder %v949_v49, %v5624_v18 }
 0x130   : > { %9721 = vst [vmem:[#allocation100_spill] sm:$0xff] %v9720_v23  ;;  %v936_v23 = vld [vmem:[#allocation4 + $0x1c8] sm:$0xff]  ;;  %vm6087_vm4 = vcmp.eq.s32.totalorder %v938_v30, %v5615_v11  ;;  %v9796_v30 = vmov 0  ;;  %v9820_v42 = vmov 0  ;;  %v9823_v57 = vmov 0 }
 0x131   : > { %9724 = vst [vmem:[#allocation101_spill] sm:$0xff] %v9723_v35  ;;  %v9732_v35 = vmov 0  ;;  %vm6077_vm15 = vcmp.eq.s32.totalorder %v936_v23, %v5609_v5  ;;  %v9785_v22 = vsel %vm6087_vm4, 4294967295, %v9784_v22  ;;  %v952_v23 = vld [vmem:[#allocation4 + $0x3c8] sm:$0xff]  ;;  %v9829_v49 = vmov 0 }
 0x132   : > { %9727 = vst [vmem:[#allocation102_spill] sm:$0xff] %v9726_v60  ;;  %v9733_v35 = vsel %vm5997_vm11, 4294967295, %v9732_v35  ;;  %v939_v60 = vld [vmem:[#allocation4 + $0x270] sm:$0xff]  ;;  %vm6172_vm6 = vcmp.eq.s32.totalorder %v955_v61, %v5618_v12  ;;  %v9838_v7 = vmov 0  ;;  %v9847_v61 = vmov 0 }
 0x133   : > { %9738 = vst [vmem:[#allocation103_spill] sm:$0xff] %v9737_v29  ;;  %v944_v29 = vld [vmem:[#allocation4 + $0xb0] sm:$0xff]  ;;  %vm6092_vm2 = vcmp.eq.s32.totalorder %v939_v60, %v5618_v12  ;;  %v9799_v60 = vmov 0  ;;  %v9862_v32 = vmov 0  ;;  %vm6222_vm0 = vcmp.eq.s32.totalorder %v965_v16, %v5624_v18 }
 0x134   : > { %9741 = vst [vmem:[#allocation104_spill] sm:$0xff] %v9740_v55  ;;  %v942_v55 = vld [vmem:[#allocation4 + $0x168] sm:$0xff]  ;;  %v9788_v41 = vsel %vm6092_vm2, 4294967295, %v9787_v41  ;;  %vm6112_vm2 = vcmp.eq.s32.totalorder %v943_v15, %v5606_v4  ;;  %vm6117_vm3 = vcmp.eq.s32.totalorder %v944_v29, %v5609_v5  ;;  %v9811_v15 = vmov 0  ;;  %v958_v29 = vld [vmem:[#allocation4 + $0x70] sm:$0xff] }
 0x135   : > { %9744 = vst [vmem:[#allocation105_spill] sm:$0xff] %v9743_v34  ;;  %v9754_v34 = vmov 0  ;;  %vm6107_vm4 = vcmp.eq.s32.totalorder %v942_v55, %v5603_v3  ;;  %v9800_v60 = vsel %vm6112_vm2, 4294967295, %v9799_v60  ;;  %v9808_v55 = vmov 0 }
 0x136   : > { %9747 = vst [vmem:[#allocation106_spill] sm:$0xff] %v9746_v24  ;;  %v9755_v34 = vsel %vm6037_vm7, 4294967295, %v9754_v34  ;;  %v945_v24 = vld [vmem:[#allocation4 + $0xc0] sm:$0xff]  ;;  %v9797_v30 = vsel %vm6107_vm4, 4294967295, %v9796_v30  ;;  %v9809_v55 = vsel %vm6127_vm12, 4294967295, %v9808_v55  ;;  %v9812_v15 = vsel %vm6132_vm10, 4294967295, %v9811_v15 }
 0x137   : > { %9750 = vst [vmem:[#allocation107_spill] sm:$0xff] %v9749_v2  ;;  %vm6122_vm1 = vcmp.eq.s32.totalorder %v945_v24, %v5612_v10  ;;  %v9817_v24 = vmov 0  ;;  %v9877_v16 = vmov 0  ;;  %vm6252_vm2 = vcmp.eq.s32.totalorder %v971_v38, %v5618_v12 }
 0x138   : > { %9753 = vst [vmem:[#allocation108_spill] sm:$0xff] %v9752_v1  ;;  %v9806_v40 = vsel %vm6122_vm1, 4294967295, %v9805_v40  ;;  %v9818_v24 = vsel %vm6142_vm9, 4294967295, %v9817_v24  ;;  %vm6162_vm9 = vcmp.eq.s32.totalorder %v953_v56, %v5612_v10  ;;  %v9841_v56 = vmov 0 }
 0x139   : > { %9756 = vst [vmem:[#allocation109_spill] sm:$0xff] %v9755_v34  ;;  %v9830_v49 = vsel %vm6162_vm9, 4294967295, %v9829_v49 }
 0x13a   : > { %9759 = vst [vmem:[#allocation110_spill] sm:$0xff] %v9758_v26 }
 0x13b   : > { %9762 = vst [vmem:[#allocation111_spill] sm:$0xff] %v9761_v20  ;;  %v950_v20 = vld [vmem:[#allocation4 + $0x3f8] sm:$0xff] }
 0x13c   : > { %9765 = vst [vmem:[#allocation112_spill] sm:$0xff] %v9764_v33  ;;  %v948_v33 = vld [vmem:[#allocation4 + $0x2d0] sm:$0xff]  ;;  %vm6147_vm12 = vcmp.eq.s32.totalorder %v950_v20, %v5603_v3  ;;  %v9832_v20 = vmov 0 }
 0x13d   : > { %9768 = vst [vmem:[#allocation113_spill] sm:$0xff] %v9767_v51  ;;  %v9778_v51 = vmov 0  ;;  %vm6137_vm11 = vcmp.eq.s32.totalorder %v948_v33, %v5621_v17  ;;  %v9821_v42 = vsel %vm6147_vm12, 4294967295, %v9820_v42  ;;  %v961_v33 = vld [vmem:[#allocation4 + $0x198] sm:$0xff] }
 0x13e   : > { %9771 = vst [vmem:[#allocation114_spill] sm:$0xff] %v9770_v25  ;;  %v9779_v51 = vsel %vm6077_vm15, 4294967295, %v9778_v51  ;;  %v951_v25 = vld [vmem:[#allocation4 + $0x1f8] sm:$0xff]  ;;  %v9815_v8 = vsel %vm6137_vm11, 4294967295, %v9814_v8  ;;  %vm6157_vm11 = vcmp.eq.s32.totalorder %v952_v23, %v5609_v5  ;;  %v964_v23 = vld [vmem:[#allocation4 + $0x240] sm:$0xff] }
 0x13f   : > { %9774 = vst [vmem:[#allocation115_spill] sm:$0xff] %v9773_v43  ;;  %vm6152_vm10 = vcmp.eq.s32.totalorder %v951_v25, %v5606_v4  ;;  %v9835_v25 = vmov 0  ;;  %vm6217_vm15 = vcmp.eq.s32.totalorder %v964_v23, %v5621_v17  ;;  %v973_v23 = vld [vmem:[#allocation4 + $0x220] sm:$0xff] }
 0x140   : > { %9777 = vst [vmem:[#allocation116_spill] sm:$0xff] %v9776_v58  ;;  %v9824_v57 = vsel %vm6152_vm10, 4294967295, %v9823_v57  ;;  %v9836_v25 = vsel %vm6172_vm6, 4294967295, %v9835_v25  ;;  %vm6192_vm6 = vcmp.eq.s32.totalorder %v959_v21, %v5606_v4  ;;  %v9859_v21 = vmov 0 }
 0x141   : > { %9780 = vst [vmem:[#allocation117_spill] sm:$0xff] %v9779_v51  ;;  %v9848_v61 = vsel %vm6192_vm6, 4294967295, %v9847_v61  ;;  %v9863_v32 = vsel %vm6217_vm15, 4294967295, %v9862_v32  ;;  %vm6262_vm4 = vcmp.eq.s32.totalorder %v973_v23, %v5624_v18 }
 0x142   : > { %9783 = vst [vmem:[#allocation118_spill] sm:$0xff] %v9782_v44 }
 0x143   : > { %9786 = vst [vmem:[#allocation119_spill] sm:$0xff] %v9785_v22  ;;  %v956_v22 = vld [vmem:[#allocation4 + $0x2f8] sm:$0xff] }
 0x144   : > { %9789 = vst [vmem:[#allocation120_spill] sm:$0xff] %v9788_v41  ;;  %v954_v41 = vld [vmem:[#allocation4 + $0x370] sm:$0xff]  ;;  %vm6177_vm7 = vcmp.eq.s32.totalorder %v956_v22, %v5621_v17 }
 0x145   : > { %9792 = vst [vmem:[#allocation121_spill] sm:$0xff] %v9791_v50  ;;  %v9802_v50 = vmov 0  ;;  %vm6167_vm5 = vcmp.eq.s32.totalorder %v954_v41, %v5615_v11  ;;  %v9839_v7 = vsel %vm6177_vm7, 4294967295, %v9838_v7  ;;  %v9844_v41 = vmov 0  ;;  %v967_v22 = vld [vmem:[#allocation4 + $0x2b0] sm:$0xff] }
 0x146   : > { %9795 = vst [vmem:[#allocation122_spill] sm:$0xff] %v9794_v39  ;;  %v9803_v50 = vsel %vm6117_vm3, 4294967295, %v9802_v50  ;;  %v957_v39 = vld [vmem:[#allocation4 + $0x188] sm:$0xff]  ;;  %v9833_v20 = vsel %vm6167_vm5, 4294967295, %v9832_v20  ;;  %vm6187_vm5 = vcmp.eq.s32.totalorder %v958_v29, %v5603_v3  ;;  %v9856_v29 = vmov 0 }
 0x147   : > { %9798 = vst [vmem:[#allocation123_spill] sm:$0xff] %v9797_v30  ;;  %vm6182_vm8 = vcmp.eq.s32.totalorder %v957_v39, %v5624_v18  ;;  %v9845_v41 = vsel %vm6187_vm5, 4294967295, %v9844_v41  ;;  %v9853_v39 = vmov 0 }
 0x148   : > { %9801 = vst [vmem:[#allocation124_spill] sm:$0xff] %v9800_v60  ;;  %v9842_v56 = vsel %vm6182_vm8, 4294967295, %v9841_v56  ;;  %vm6202_vm8 = vcmp.eq.s32.totalorder %v961_v33, %v5612_v10  ;;  %v9865_v33 = vmov 0 }
 0x149   : > { %9804 = vst [vmem:[#allocation125_spill] sm:$0xff] %v9803_v50  ;;  %v9854_v39 = vsel %vm6202_vm8, 4294967295, %v9853_v39  ;;  %v9866_v33 = vsel %vm6222_vm0, 4294967295, %v9865_v33 }
 0x14a   : > { %9807 = vst [vmem:[#allocation126_spill] sm:$0xff] %v9806_v40 }
 0x14b   : > { %9810 = vst [vmem:[#allocation127_spill] sm:$0xff] %v9809_v55  ;;  %v962_v55 = vld [vmem:[#allocation4 + $0x308] sm:$0xff] }
 0x14c   : > { %9813 = vst [vmem:[#allocation128_spill] sm:$0xff] %v9812_v15  ;;  %v960_v15 = vld [vmem:[#allocation4 + $0x268] sm:$0xff]  ;;  %vm6207_vm13 = vcmp.eq.s32.totalorder %v962_v55, %v5615_v11  ;;  %v9868_v55 = vmov 0 }
 0x14d   : > { %9816 = vst [vmem:[#allocation129_spill] sm:$0xff] %v9815_v8  ;;  %v9826_v8 = vmov 0  ;;  %vm6197_vm7 = vcmp.eq.s32.totalorder %v960_v15, %v5609_v5  ;;  %v9857_v29 = vsel %vm6207_vm13, 4294967295, %v9856_v29  ;;  %v970_v15 = vld [vmem:[#allocation4 + $0x170] sm:$0xff] }
 0x14e   : > { %9819 = vst [vmem:[#allocation130_spill] sm:$0xff] %v9818_v24  ;;  %v9827_v8 = vsel %vm6157_vm11, 4294967295, %v9826_v8  ;;  %v963_v24 = vld [vmem:[#allocation4 + $0x250] sm:$0xff]  ;;  %vm6247_vm0 = vcmp.eq.s32.totalorder %v970_v15, %v5615_v11 }
 0x14f   : > { %9822 = vst [vmem:[#allocation131_spill] sm:$0xff] %v9821_v42  ;;  %vm6212_vm14 = vcmp.eq.s32.totalorder %v963_v24, %v5618_v12  ;;  %v9871_v24 = vmov 0 }
 0x150   : > { %9825 = vst [vmem:[#allocation132_spill] sm:$0xff] %v9824_v57  ;;  %v9860_v21 = vsel %vm6212_vm14, 4294967295, %v9859_v21  ;;  %vm6232_vm14 = vcmp.eq.s32.totalorder %v967_v22, %v5606_v4  ;;  %v9883_v4 = vmov 0 }
 0x151   : > { %9828 = vst [vmem:[#allocation133_spill] sm:$0xff] %v9827_v8  ;;  %v9872_v24 = vsel %vm6232_vm14, 4294967295, %v9871_v24  ;;  %v9884_v4 = vsel %vm6252_vm2, 4294967295, %v9883_v4 }
 0x152   : > { %9831 = vst [vmem:[#allocation134_spill] sm:$0xff] %v9830_v49 }
 0x153   : > { %9834 = vst [vmem:[#allocation135_spill] sm:$0xff] %v9833_v20  ;;  %v968_v20 = vld [vmem:[#allocation4 + $0x2a8] sm:$0xff] }
 0x154   : > { %9837 = vst [vmem:[#allocation136_spill] sm:$0xff] %v9836_v25  ;;  %v966_v25 = vld [vmem:[#allocation4 + $0x388] sm:$0xff]  ;;  %vm6237_vm1 = vcmp.eq.s32.totalorder %v968_v20, %v5609_v5  ;;  %v9886_v5 = vmov 0 }
 0x155   : > { %9840 = vst [vmem:[#allocation137_spill] sm:$0xff] %v9839_v7  ;;  %v9850_v7 = vmov 0  ;;  %vm6227_vm13 = vcmp.eq.s32.totalorder %v966_v25, %v5603_v3  ;;  %v9880_v3 = vmov 0 }
 0x156   : > { %9843 = vst [vmem:[#allocation138_spill] sm:$0xff] %v9842_v56  ;;  %v9851_v7 = vsel %vm6197_vm7, 4294967295, %v9850_v7  ;;  %v969_v56 = vld [vmem:[#allocation4 + $0x390] sm:$0xff]  ;;  %v9869_v55 = vsel %vm6227_vm13, 4294967295, %v9868_v55  ;;  %v9881_v3 = vsel %vm6247_vm0, 4294967295, %v9880_v3 }
 0x157   : > { %9846 = vst [vmem:[#allocation139_spill] sm:$0xff] %v9845_v41  ;;  %vm6242_vm15 = vcmp.eq.s32.totalorder %v969_v56, %v5612_v10  ;;  %v9889_v10 = vmov 0 }
 0x158   : > { %9849 = vst [vmem:[#allocation140_spill] sm:$0xff] %v9848_v61  ;;  %v9878_v16 = vsel %vm6242_vm15, 4294967295, %v9877_v16  ;;  %v9890_v10 = vsel %vm6262_vm4, 4294967295, %v9889_v10 }
 0x159   : > { %9852 = vst [vmem:[#allocation141_spill] sm:$0xff] %v9851_v7 }
 0x15a   : > { %9855 = vst [vmem:[#allocation142_spill] sm:$0xff] %v9854_v39 }
 0x15b   : > { %9858 = vst [vmem:[#allocation143_spill] sm:$0xff] %v9857_v29 }
 0x15c   : > { %9861 = vst [vmem:[#allocation144_spill] sm:$0xff] %v9860_v21  ;;  %v972_v21 = vld [vmem:[#allocation4 + $0x290] sm:$0xff] }
 0x15d   : > { %9864 = vst [vmem:[#allocation145_spill] sm:$0xff] %v9863_v32  ;;  %v9874_v32 = vmov 0  ;;  %vm6257_vm3 = vcmp.eq.s32.totalorder %v972_v21, %v5621_v17 }
 0x15e   : > { %9867 = vst [vmem:[#allocation146_spill] sm:$0xff] %v9866_v33  ;;  %v9875_v32 = vsel %vm6237_vm1, 4294967295, %v9874_v32  ;;  %v9887_v5 = vsel %vm6257_vm3, 4294967295, %v9886_v5 }
 0x15f   : > { %9870 = vst [vmem:[#allocation147_spill] sm:$0xff] %v9869_v55 }
 0x160   : > { %9873 = vst [vmem:[#allocation148_spill] sm:$0xff] %v9872_v24 }
 0x161   : > { %9876 = vst [vmem:[#allocation149_spill] sm:$0xff] %v9875_v32 }
 0x162   : > { %9879 = vst [vmem:[#allocation150_spill] sm:$0xff] %v9878_v16  ;;  %1368 = sbr.rel (%p3974_p12) target bundleno = 626 (0x272), region = 84 }
 0x163   : > { %9882 = vst [vmem:[#allocation151_spill] sm:$0xff] %v9881_v3 }
 0x164   : > { %9885 = vst [vmem:[#allocation152_spill] sm:$0xff] %v9884_v4 }
 0x165   : > { %9888 = vst [vmem:[#allocation153_spill] sm:$0xff] %v9887_v5 }
 0x166   : > { %9891 = vst [vmem:[#allocation154_spill] sm:$0xff] %v9890_v10 }
 0x167   : > { %v5170_v11 = vmov 1.0   ;;  %v9926_v12 = vld [vmem:[#allocation64_spill] sm:$0xff]  ;;  %v9928_v17 = vld [vmem:[#allocation66_spill] sm:$0xff]  ;;  %v9930_v18 = vld [vmem:[#allocation55_spill] sm:$0xff] }
 0x168   : > { %3975 = vmatpush.xpose.msk.msra.mxu0 %vm6227_vm13, %v5170_v11  ;;  %4007 = vmatpush.xpose.msk.msra.mxu2 %vm6237_vm1, %v5170_v11  ;;  %v9932_v38 = vld [vmem:[#allocation57_spill] sm:$0xff]  ;;  %v9934_v20 = vld [vmem:[#allocation56_spill] sm:$0xff]  ;;  %v9936_v25 = vld [vmem:[#allocation58_spill] sm:$0xff] }
 0x169   : > { %3991 = vmatpush.xpose.msk.msra.mxu1 %vm6232_vm14, %v5170_v11  ;;  %4023 = vmatpush.xpose.msk.msra.mxu3 %vm6242_vm15, %v5170_v11  ;;  %v9938_v56 = vld [vmem:[#allocation47_spill] sm:$0xff]  ;;  %v9940_v22 = vld [vmem:[#allocation49_spill] sm:$0xff]  ;;  %v9942_v21 = vld [vmem:[#allocation48_spill] sm:$0xff] }
 0x16a   : > { %v9944_v15 = vld [vmem:[#allocation50_spill] sm:$0xff]  ;;  %v9946_v23 = vld [vmem:[#allocation39_spill] sm:$0xff] }
 0x16c   : > { %3976 = vmatpush.xpose.msk.msra.mxu0 %vm6187_vm5, %v5170_v11  ;;  %4008 = vmatpush.xpose.msk.msra.mxu2 %vm6197_vm7, %v5170_v11  ;;  %vm9892_vm7 = vnez %v9797_v30 }
 0x16d   : > { %3992 = vmatpush.xpose.msk.msra.mxu1 %vm6192_vm6, %v5170_v11  ;;  %4024 = vmatpush.xpose.msk.msra.mxu3 %vm6202_vm8, %v5170_v11  ;;  %vm9893_vm8 = vnez %v9803_v50 }
 0x170   : > { %3977 = vmatpush.xpose.msk.msra.mxu0 %vm6147_vm12, %v5170_v11  ;;  %4009 = vmatpush.xpose.msk.msra.mxu2 %vm6157_vm11, %v5170_v11  ;;  %vm9894_vm12 = vnez %v9800_v60  ;;  %vm9895_vm11 = vnez %v9806_v40 }
 0x171   : > { %3993 = vmatpush.xpose.msk.msra.mxu1 %vm6152_vm10, %v5170_v11  ;;  %4025 = vmatpush.xpose.msk.msra.mxu3 %vm6162_vm9, %v5170_v11  ;;  %vm9896_vm10 = vnez %v9773_v43  ;;  %vm9897_vm9 = vnez %v9779_v51 }
 0x174   : > { %3978 = vmatpush.xpose.msk.msra.mxu0 %vm9892_vm7, %v5170_v11  ;;  %4010 = vmatpush.xpose.msk.msra.mxu2 %vm9893_vm8, %v5170_v11  ;;  %vm9898_vm7 = vnez %v9776_v58  ;;  %vm9899_vm8 = vnez %v9782_v44 }
 0x175   : > { %3994 = vmatpush.xpose.msk.msra.mxu1 %vm9894_vm12, %v5170_v11  ;;  %4026 = vmatpush.xpose.msk.msra.mxu3 %vm9895_vm11, %v5170_v11  ;;  %vm9900_vm12 = vnez %v9749_v2  ;;  %vm9901_vm11 = vnez %v9755_v34 }
 0x178   : > { %3979 = vmatpush.xpose.msk.msra.mxu0 %vm9896_vm10, %v5170_v11  ;;  %4011 = vmatpush.xpose.msk.msra.mxu2 %vm9897_vm9, %v5170_v11  ;;  %vm9902_vm10 = vnez %v9752_v1  ;;  %vm9903_vm9 = vnez %v9758_v26 }
 0x179   : > { %3995 = vmatpush.xpose.msk.msra.mxu1 %vm9898_vm7, %v5170_v11  ;;  %4027 = vmatpush.xpose.msk.msra.mxu3 %vm9899_vm8, %v5170_v11  ;;  %vm9904_vm7 = vnez %v9729_v46  ;;  %vm9905_vm8 = vnez %v9733_v35 }
 0x17c   : > { %3980 = vmatpush.xpose.msk.msra.mxu0 %vm9900_vm12, %v5170_v11  ;;  %4012 = vmatpush.xpose.msk.msra.mxu2 %vm9901_vm11, %v5170_v11  ;;  %vm9906_vm12 = vnez %v9731_v48  ;;  %vm9907_vm11 = vnez %v9735_v9 }
 0x17d   : > { %3996 = vmatpush.xpose.msk.msra.mxu1 %vm9902_vm10, %v5170_v11  ;;  %4028 = vmatpush.xpose.msk.msra.mxu3 %vm9903_vm9, %v5170_v11  ;;  %vm9908_vm10 = vnez %v9705_v6  ;;  %vm9909_vm9 = vnez %v9711_v19 }
 0x180   : > { %3981 = vmatpush.xpose.msk.msra.mxu0 %vm9904_vm7, %v5170_v11  ;;  %4013 = vmatpush.xpose.msk.msra.mxu2 %vm9905_vm8, %v5170_v11  ;;  %vm9910_vm7 = vnez %v9708_v59  ;;  %vm9911_vm8 = vnez %v9714_v52 }
 0x181   : > { %3997 = vmatpush.xpose.msk.msra.mxu1 %vm9906_vm12, %v5170_v11  ;;  %4029 = vmatpush.xpose.msk.msra.mxu3 %vm9907_vm11, %v5170_v11  ;;  %vm9912_vm12 = vnez %v9681_v27  ;;  %vm9913_vm11 = vnez %v9687_v28 }
 0x184   : > { %3982 = vmatpush.xpose.msk.msra.mxu0 %vm9908_vm10, %v5170_v11  ;;  %4014 = vmatpush.xpose.msk.msra.mxu2 %vm9909_vm9, %v5170_v11  ;;  %vm9914_vm10 = vnez %v9684_v62  ;;  %vm9915_vm9 = vnez %v9690_v36 }
 0x185   : > { %3998 = vmatpush.xpose.msk.msra.mxu1 %vm9910_vm7, %v5170_v11  ;;  %4030 = vmatpush.xpose.msk.msra.mxu3 %vm9911_vm8, %v5170_v11  ;;  %vm9916_vm7 = vnez %v9657_v63  ;;  %vm9917_vm8 = vnez %v9663_v13 }
 0x188   : > { %3983 = vmatpush.xpose.msk.msra.mxu0 %vm9912_vm12, %v5170_v11  ;;  %4015 = vmatpush.xpose.msk.msra.mxu2 %vm9913_vm11, %v5170_v11  ;;  %vm9918_vm12 = vnez %v9660_v45  ;;  %vm9919_vm11 = vnez %v9666_v14 }
 0x189   : > { %3999 = vmatpush.xpose.msk.msra.mxu1 %vm9914_vm10, %v5170_v11  ;;  %4031 = vmatpush.xpose.msk.msra.mxu3 %vm9915_vm9, %v5170_v11  ;;  %vm9920_vm10 = vnez %v9633_v47  ;;  %vm9921_vm9 = vnez %v9639_v53 }
 0x18c   : > { %3984 = vmatpush.xpose.msk.msra.mxu0 %vm9916_vm7, %v5170_v11  ;;  %4016 = vmatpush.xpose.msk.msra.mxu2 %vm9917_vm8, %v5170_v11  ;;  %vm9922_vm7 = vnez %v9636_v0  ;;  %vm9923_vm8 = vnez %v9642_v54 }
 0x18d   : > { %4000 = vmatpush.xpose.msk.msra.mxu1 %vm9918_vm12, %v5170_v11  ;;  %4032 = vmatpush.xpose.msk.msra.mxu3 %vm9919_vm11, %v5170_v11  ;;  %vm9924_vm12 = vnez %v9609_v31  ;;  %vm9925_vm11 = vnez %v9615_v37 }
 0x190   : > { %3985 = vmatpush.xpose.msk.msra.mxu0 %vm9920_vm10, %v5170_v11  ;;  %4017 = vmatpush.xpose.msk.msra.mxu2 %vm9921_vm9, %v5170_v11  ;;  %vm9927_vm10 = vnez %v9926_v12  ;;  %vm9929_vm9 = vnez %v9928_v17  ;;  %v9948_v12 = vld [vmem:[#allocation41_spill] sm:$0xff]  ;;  %v9950_v17 = vld [vmem:[#allocation40_spill] sm:$0xff] }
 0x191   : > { %4001 = vmatpush.xpose.msk.msra.mxu1 %vm9922_vm7, %v5170_v11  ;;  %4033 = vmatpush.xpose.msk.msra.mxu3 %vm9923_vm8, %v5170_v11  ;;  %vm9931_vm7 = vnez %v9930_v18  ;;  %vm9933_vm8 = vnez %v9932_v38  ;;  %v9952_v18 = vld [vmem:[#allocation42_spill] sm:$0xff]  ;;  %v9954_v38 = vld [vmem:[#allocation31_spill] sm:$0xff] }
 0x194   : > { %3986 = vmatpush.xpose.msk.msra.mxu0 %vm9924_vm12, %v5170_v11  ;;  %4018 = vmatpush.xpose.msk.msra.mxu2 %vm9925_vm11, %v5170_v11  ;;  %vm9935_vm12 = vnez %v9934_v20  ;;  %vm9937_vm11 = vnez %v9936_v25  ;;  %v9956_v20 = vld [vmem:[#allocation33_spill] sm:$0xff]  ;;  %v9958_v25 = vld [vmem:[#allocation32_spill] sm:$0xff] }
 0x195   : > { %4002 = vmatpush.xpose.msk.msra.mxu1 %vm9927_vm10, %v5170_v11  ;;  %4034 = vmatpush.xpose.msk.msra.mxu3 %vm9929_vm9, %v5170_v11  ;;  %vm9939_vm10 = vnez %v9938_v56  ;;  %vm9941_vm9 = vnez %v9940_v22  ;;  %v9960_v56 = vld [vmem:[#allocation34_spill] sm:$0xff]  ;;  %v9963_v22 = vld [vmem:[#allocation145_spill] sm:$0xff] }
 0x198   : > { %3987 = vmatpush.xpose.msk.msra.mxu0 %vm9931_vm7, %v5170_v11  ;;  %4019 = vmatpush.xpose.msk.msra.mxu2 %vm9933_vm8, %v5170_v11  ;;  %vm9943_vm7 = vnez %v9942_v21  ;;  %vm9945_vm8 = vnez %v9944_v15  ;;  %v9965_v21 = vld [vmem:[#allocation144_spill] sm:$0xff]  ;;  %v9968_v15 = vld [vmem:[#allocation135_spill] sm:$0xff] }
 0x199   : > { %4003 = vmatpush.xpose.msk.msra.mxu1 %vm9935_vm12, %v5170_v11  ;;  %4035 = vmatpush.xpose.msk.msra.mxu3 %vm9937_vm11, %v5170_v11  ;;  %vm9947_vm12 = vnez %v9946_v23  ;;  %vm9949_vm11 = vnez %v9948_v12  ;;  %v9970_v23 = vld [vmem:[#allocation137_spill] sm:$0xff]  ;;  %v9972_v12 = vld [vmem:[#allocation136_spill] sm:$0xff] }
 0x19c   : > { %3988 = vmatpush.xpose.msk.msra.mxu0 %vm9939_vm10, %v5170_v11  ;;  %4020 = vmatpush.xpose.msk.msra.mxu2 %vm9941_vm9, %v5170_v11  ;;  %vm9951_vm10 = vnez %v9950_v17  ;;  %vm9953_vm9 = vnez %v9952_v18  ;;  %v9974_v17 = vld [vmem:[#allocation138_spill] sm:$0xff]  ;;  %v9976_v18 = vld [vmem:[#allocation127_spill] sm:$0xff] }
 0x19d   : > { %4004 = vmatpush.xpose.msk.msra.mxu1 %vm9943_vm7, %v5170_v11  ;;  %4036 = vmatpush.xpose.msk.msra.mxu3 %vm9945_vm8, %v5170_v11  ;;  %vm9955_vm7 = vnez %v9954_v38  ;;  %vm9957_vm8 = vnez %v9956_v20  ;;  %v9978_v38 = vld [vmem:[#allocation129_spill] sm:$0xff]  ;;  %v9980_v20 = vld [vmem:[#allocation128_spill] sm:$0xff] }
 0x1a0   : > { %3989 = vmatpush.xpose.msk.msra.mxu0 %vm9947_vm12, %v5170_v11  ;;  %4021 = vmatpush.xpose.msk.msra.mxu2 %vm9949_vm11, %v5170_v11  ;;  %vm9959_vm12 = vnez %v9958_v25  ;;  %vm9961_vm11 = vnez %v9960_v56  ;;  %v9982_v25 = vld [vmem:[#allocation130_spill] sm:$0xff]  ;;  %v9984_v56 = vld [vmem:[#allocation119_spill] sm:$0xff] }
 0x1a1   : > { %4005 = vmatpush.xpose.msk.msra.mxu1 %vm9951_vm10, %v5170_v11  ;;  %4037 = vmatpush.xpose.msk.msra.mxu3 %vm9953_vm9, %v5170_v11  ;;  %vm9962_vm10 = vnez %v9857_v29  ;;  %vm9964_vm9 = vnez %v9963_v22  ;;  %v9986_v22 = vld [vmem:[#allocation121_spill] sm:$0xff] }
 0x1a4   : > { %3990 = vmatpush.xpose.msk.msra.mxu0 %vm9955_vm7, %v5170_v11  ;;  %4022 = vmatpush.xpose.msk.msra.mxu2 %vm9957_vm8, %v5170_v11  ;;  %vm9966_vm7 = vnez %v9965_v21  ;;  %vm9967_vm8 = vnez %v9866_v33  ;;  %v9988_v21 = vld [vmem:[#allocation120_spill] sm:$0xff] }
 0x1a5   : > { %4006 = vmatpush.xpose.msk.msra.mxu1 %vm9959_vm12, %v5170_v11  ;;  %4038 = vmatpush.xpose.msk.msra.mxu3 %vm9961_vm11, %v5170_v11  ;;  %vm9969_vm12 = vnez %v9968_v15  ;;  %vm9971_vm11 = vnez %v9970_v23  ;;  %v9990_v15 = vld [vmem:[#allocation122_spill] sm:$0xff] }
 0x1a6   : > { %v9992_v23 = vld [vmem:[#allocation30_spill] sm:$0xff] }
 0x1a8   : > { %4039 = vmatpush.xpose.msk.msrb.mxu0 %vm6247_vm0, %v5170_v11  ;;  %4071 = vmatpush.xpose.msk.msrb.mxu2 %vm6257_vm3, %v5170_v11 }
 0x1a9   : > { %4055 = vmatpush.xpose.msk.msrb.mxu1 %vm6252_vm2, %v5170_v11  ;;  %4087 = vmatpush.xpose.msk.msrb.mxu3 %vm6262_vm4, %v5170_v11 }
 0x1ac   : > { %4040 = vmatpush.xpose.msk.msrb.mxu0 %vm9962_vm10, %v5170_v11  ;;  %4072 = vmatpush.xpose.msk.msrb.mxu2 %vm9964_vm9, %v5170_v11  ;;  %vm9973_vm10 = vnez %v9972_v12  ;;  %vm9975_vm9 = vnez %v9974_v17  ;;  %v1372_v12 = vperm.slane %v9992_v23, 2  ;;  %v9993_v17 = vld [vmem:[#allocation111_spill] sm:$0xff] }
 0x1ad   : > { %4056 = vmatpush.xpose.msk.msrb.mxu1 %vm9966_vm7, %v5170_v11  ;;  %4088 = vmatpush.xpose.msk.msrb.mxu3 %vm9967_vm8, %v5170_v11  ;;  %vm9977_vm7 = vnez %v9976_v18  ;;  %vm9979_vm8 = vnez %v9978_v38  ;;  %v9995_v18 = vld [vmem:[#allocation113_spill] sm:$0xff]  ;;  %v1370_v38 = vperm.slane %v9992_v23, 0 }
 0x1ae   : > { %1442 = vmatmul.f32.vlgmr.msra.gmra.mxu2 %v1372_v12  ;;  %v10005_v12 = vld [vmem:[#allocation104_spill] sm:$0xff] }
 0x1af   : > { %1402 = vmatmul.f32.vlgmr.msra.gmra.mxu0 %v1370_v38  ;;  %v10011_v38 = vld [vmem:[#allocation101_spill] sm:$0xff] }
 0x1b0   : > { %4041 = vmatpush.xpose.msk.msrb.mxu0 %vm9969_vm12, %v5170_v11  ;;  %4073 = vmatpush.xpose.msk.msrb.mxu2 %vm9971_vm11, %v5170_v11  ;;  %vm9981_vm12 = vnez %v9980_v20  ;;  %vm9983_vm11 = vnez %v9982_v25  ;;  %v1373_v20 = vperm.slane %v9992_v23, 3  ;;  %v9997_v25 = vld [vmem:[#allocation112_spill] sm:$0xff] }
 0x1b1   : > { %4057 = vmatpush.xpose.msk.msrb.mxu1 %vm9973_vm10, %v5170_v11  ;;  %4089 = vmatpush.xpose.msk.msrb.mxu3 %vm9975_vm9, %v5170_v11  ;;  %vm9985_vm10 = vnez %v9984_v56  ;;  %vm9987_vm9 = vnez %v9986_v22  ;;  %v9999_v56 = vld [vmem:[#allocation114_spill] sm:$0xff]  ;;  %v1371_v22 = vperm.slane %v9992_v23, 1 }
 0x1b2   : > { %1462 = vmatmul.f32.vlgmr.msra.gmra.mxu3 %v1373_v20  ;;  %v10013_v20 = vld [vmem:[#allocation100_spill] sm:$0xff] }
 0x1b3   : > { %1422 = vmatmul.f32.vlgmr.msra.gmra.mxu1 %v1371_v22  ;;  %v10019_v22 = vld [vmem:[#allocation93_spill] sm:$0xff] }
 0x1b4   : > { %4042 = vmatpush.xpose.msk.msrb.mxu0 %vm9977_vm7, %v5170_v11  ;;  %4074 = vmatpush.xpose.msk.msrb.mxu2 %vm9979_vm8, %v5170_v11  ;;  %vm9989_vm7 = vnez %v9988_v21  ;;  %vm9991_vm8 = vnez %v9990_v15  ;;  %v10001_v21 = vld [vmem:[#allocation103_spill] sm:$0xff]  ;;  %v10003_v15 = vld [vmem:[#allocation105_spill] sm:$0xff] }
 0x1b5   : > { %4058 = vmatpush.xpose.msk.msrb.mxu1 %vm9981_vm12, %v5170_v11  ;;  %4090 = vmatpush.xpose.msk.msrb.mxu3 %vm9983_vm11, %v5170_v11  ;;  %vm9994_vm12 = vnez %v9993_v17  ;;  %vm9996_vm11 = vnez %v9995_v18  ;;  %v10007_v17 = vld [vmem:[#allocation106_spill] sm:$0xff]  ;;  %v10009_v18 = vld [vmem:[#allocation99_spill] sm:$0xff] }
 0x1b8   : > { %4043 = vmatpush.xpose.msk.msrb.mxu0 %vm9985_vm10, %v5170_v11  ;;  %4075 = vmatpush.xpose.msk.msrb.mxu2 %vm9987_vm9, %v5170_v11  ;;  %vm9998_vm10 = vnez %v9997_v25  ;;  %vm10000_vm9 = vnez %v9999_v56  ;;  %v10015_v25 = vld [vmem:[#allocation102_spill] sm:$0xff]  ;;  %v10017_v56 = vld [vmem:[#allocation91_spill] sm:$0xff] }
 0x1b9   : > { %4059 = vmatpush.xpose.msk.msrb.mxu1 %vm9989_vm7, %v5170_v11  ;;  %4091 = vmatpush.xpose.msk.msrb.mxu3 %vm9991_vm8, %v5170_v11  ;;  %vm10002_vm7 = vnez %v10001_v21  ;;  %vm10004_vm8 = vnez %v10003_v15  ;;  %v10021_v21 = vld [vmem:[#allocation92_spill] sm:$0xff]  ;;  %v10023_v15 = vld [vmem:[#allocation94_spill] sm:$0xff] }
 0x1bc   : > { %4044 = vmatpush.xpose.msk.msrb.mxu0 %vm9994_vm12, %v5170_v11  ;;  %4076 = vmatpush.xpose.msk.msrb.mxu2 %vm9996_vm11, %v5170_v11  ;;  %vm10006_vm12 = vnez %v10005_v12  ;;  %vm10008_vm11 = vnez %v10007_v17  ;;  %v10025_v12 = vld [vmem:[#allocation83_spill] sm:$0xff]  ;;  %v10027_v17 = vld [vmem:[#allocation85_spill] sm:$0xff] }
 0x1bd   : > { %4060 = vmatpush.xpose.msk.msrb.mxu1 %vm9998_vm10, %v5170_v11  ;;  %4092 = vmatpush.xpose.msk.msrb.mxu3 %vm10000_vm9, %v5170_v11  ;;  %vm10010_vm10 = vnez %v10009_v18  ;;  %vm10012_vm9 = vnez %v10011_v38  ;;  %v10029_v18 = vld [vmem:[#allocation84_spill] sm:$0xff]  ;;  %v10031_v38 = vld [vmem:[#allocation86_spill] sm:$0xff] }
 0x1c0   : > { %4045 = vmatpush.xpose.msk.msrb.mxu0 %vm10002_vm7, %v5170_v11  ;;  %4077 = vmatpush.xpose.msk.msrb.mxu2 %vm10004_vm8, %v5170_v11  ;;  %vm10014_vm7 = vnez %v10013_v20  ;;  %vm10016_vm8 = vnez %v10015_v25  ;;  %v10033_v20 = vld [vmem:[#allocation75_spill] sm:$0xff]  ;;  %v10035_v25 = vld [vmem:[#allocation77_spill] sm:$0xff] }
 0x1c1   : > { %4061 = vmatpush.xpose.msk.msrb.mxu1 %vm10006_vm12, %v5170_v11  ;;  %4093 = vmatpush.xpose.msk.msrb.mxu3 %vm10008_vm11, %v5170_v11  ;;  %vm10018_vm12 = vnez %v10017_v56  ;;  %vm10020_vm11 = vnez %v10019_v22  ;;  %v10037_v56 = vld [vmem:[#allocation76_spill] sm:$0xff]  ;;  %v10039_v22 = vld [vmem:[#allocation78_spill] sm:$0xff] }
 0x1c4   : > { %4046 = vmatpush.xpose.msk.msrb.mxu0 %vm10010_vm10, %v5170_v11  ;;  %4078 = vmatpush.xpose.msk.msrb.mxu2 %vm10012_vm9, %v5170_v11  ;;  %vm10022_vm10 = vnez %v10021_v21  ;;  %vm10024_vm9 = vnez %v10023_v15  ;;  %v10041_v21 = vld [vmem:[#allocation67_spill] sm:$0xff]  ;;  %v10043_v15 = vld [vmem:[#allocation69_spill] sm:$0xff] }
 0x1c5   : > { %4062 = vmatpush.xpose.msk.msrb.mxu1 %vm10014_vm7, %v5170_v11  ;;  %4094 = vmatpush.xpose.msk.msrb.mxu3 %vm10016_vm8, %v5170_v11  ;;  %vm10026_vm7 = vnez %v10025_v12  ;;  %vm10028_vm8 = vnez %v10027_v17  ;;  %v10045_v12 = vld [vmem:[#allocation68_spill] sm:$0xff]  ;;  %v10047_v17 = vld [vmem:[#allocation70_spill] sm:$0xff] }
 0x1c8   : > { %4047 = vmatpush.xpose.msk.msrb.mxu0 %vm10018_vm12, %v5170_v11  ;;  %4079 = vmatpush.xpose.msk.msrb.mxu2 %vm10020_vm11, %v5170_v11  ;;  %vm10030_vm12 = vnez %v10029_v18  ;;  %vm10032_vm11 = vnez %v10031_v38  ;;  %v10049_v18 = vld [vmem:[#allocation59_spill] sm:$0xff]  ;;  %v10051_v38 = vld [vmem:[#allocation61_spill] sm:$0xff] }
 0x1c9   : > { %4063 = vmatpush.xpose.msk.msrb.mxu1 %vm10022_vm10, %v5170_v11  ;;  %4095 = vmatpush.xpose.msk.msrb.mxu3 %vm10024_vm9, %v5170_v11  ;;  %vm10034_vm10 = vnez %v10033_v20  ;;  %vm10036_vm9 = vnez %v10035_v25  ;;  %v10053_v20 = vld [vmem:[#allocation60_spill] sm:$0xff]  ;;  %v10055_v25 = vld [vmem:[#allocation62_spill] sm:$0xff] }
 0x1cc   : > { %4048 = vmatpush.xpose.msk.msrb.mxu0 %vm10026_vm7, %v5170_v11  ;;  %4080 = vmatpush.xpose.msk.msrb.mxu2 %vm10028_vm8, %v5170_v11  ;;  %vm10038_vm7 = vnez %v10037_v56  ;;  %vm10040_vm8 = vnez %v10039_v22  ;;  %v10057_v56 = vld [vmem:[#allocation51_spill] sm:$0xff]  ;;  %v10059_v22 = vld [vmem:[#allocation53_spill] sm:$0xff] }
 0x1cd   : > { %4064 = vmatpush.xpose.msk.msrb.mxu1 %vm10030_vm12, %v5170_v11  ;;  %4096 = vmatpush.xpose.msk.msrb.mxu3 %vm10032_vm11, %v5170_v11  ;;  %vm10042_vm12 = vnez %v10041_v21  ;;  %vm10044_vm11 = vnez %v10043_v15  ;;  %v10061_v21 = vld [vmem:[#allocation52_spill] sm:$0xff]  ;;  %v10063_v15 = vld [vmem:[#allocation54_spill] sm:$0xff] }
 0x1d0   : > { %4049 = vmatpush.xpose.msk.msrb.mxu0 %vm10034_vm10, %v5170_v11  ;;  %4081 = vmatpush.xpose.msk.msrb.mxu2 %vm10036_vm9, %v5170_v11  ;;  %vm10046_vm10 = vnez %v10045_v12  ;;  %vm10048_vm9 = vnez %v10047_v17  ;;  %v10065_v12 = vld [vmem:[#allocation43_spill] sm:$0xff]  ;;  %v10067_v17 = vld [vmem:[#allocation45_spill] sm:$0xff] }
 0x1d1   : > { %4065 = vmatpush.xpose.msk.msrb.mxu1 %vm10038_vm7, %v5170_v11  ;;  %4097 = vmatpush.xpose.msk.msrb.mxu3 %vm10040_vm8, %v5170_v11  ;;  %vm10050_vm7 = vnez %v10049_v18  ;;  %vm10052_vm8 = vnez %v10051_v38  ;;  %v10069_v18 = vld [vmem:[#allocation44_spill] sm:$0xff]  ;;  %v10071_v38 = vld [vmem:[#allocation46_spill] sm:$0xff] }
 0x1d4   : > { %4050 = vmatpush.xpose.msk.msrb.mxu0 %vm10042_vm12, %v5170_v11  ;;  %4082 = vmatpush.xpose.msk.msrb.mxu2 %vm10044_vm11, %v5170_v11  ;;  %vm10054_vm12 = vnez %v10053_v20  ;;  %vm10056_vm11 = vnez %v10055_v25  ;;  %v1374_v20 = vperm.slane %v9992_v23, 4  ;;  %v1376_v25 = vperm.slane %v9992_v23, 6 }
 0x1d5   : > { %4066 = vmatpush.xpose.msk.msrb.mxu1 %vm10046_vm10, %v5170_v11  ;;  %4098 = vmatpush.xpose.msk.msrb.mxu3 %vm10048_vm9, %v5170_v11  ;;  %vm10058_vm10 = vnez %v10057_v56  ;;  %vm10060_vm9 = vnez %v10059_v22  ;;  %v10073_v56 = vld [vmem:[#allocation35_spill] sm:$0xff]  ;;  %v10075_v22 = vld [vmem:[#allocation37_spill] sm:$0xff] }
 0x1d8   : > { %4051 = vmatpush.xpose.msk.msrb.mxu0 %vm10050_vm7, %v5170_v11  ;;  %4083 = vmatpush.xpose.msk.msrb.mxu2 %vm10052_vm8, %v5170_v11  ;;  %vm10062_vm7 = vnez %v10061_v21  ;;  %vm10064_vm8 = vnez %v10063_v15  ;;  %v1375_v21 = vperm.slane %v9992_v23, 5  ;;  %v1377_v15 = vperm.slane %v9992_v23, 7 }
 0x1d9   : > { %4067 = vmatpush.xpose.msk.msrb.mxu1 %vm10054_vm12, %v5170_v11  ;;  %4099 = vmatpush.xpose.msk.msrb.mxu3 %vm10056_vm11, %v5170_v11  ;;  %vm10066_vm12 = vnez %v10065_v12  ;;  %vm10068_vm11 = vnez %v10067_v17  ;;  %v10077_v12 = vld [vmem:[#allocation36_spill] sm:$0xff]  ;;  %v10079_v17 = vld [vmem:[#allocation38_spill] sm:$0xff] }
 0x1dc   : > { %4052 = vmatpush.xpose.msk.msrb.mxu0 %vm10058_vm10, %v5170_v11  ;;  %4084 = vmatpush.xpose.msk.msrb.mxu2 %vm10060_vm9, %v5170_v11  ;;  %vm10070_vm10 = vnez %v10069_v18  ;;  %vm10072_vm9 = vnez %v10071_v38 }
 0x1dd   : > { %4068 = vmatpush.xpose.msk.msrb.mxu1 %vm10062_vm7, %v5170_v11  ;;  %4100 = vmatpush.xpose.msk.msrb.mxu3 %vm10064_vm8, %v5170_v11  ;;  %vm10074_vm7 = vnez %v10073_v56  ;;  %vm10076_vm8 = vnez %v10075_v22 }
 0x1e0   : > { %4053 = vmatpush.xpose.msk.msrb.mxu0 %vm10066_vm12, %v5170_v11  ;;  %4085 = vmatpush.xpose.msk.msrb.mxu2 %vm10068_vm11, %v5170_v11  ;;  %vm10078_vm12 = vnez %v10077_v12  ;;  %vm10080_vm11 = vnez %v10079_v17  ;;  %v1546_v17 = vld [vmem:[#allocation2 + $0x8] sm:$0x1] }
 0x1e1   : > { %4069 = vmatpush.xpose.msk.msrb.mxu1 %vm10070_vm10, %v5170_v11  ;;  %4101 = vmatpush.xpose.msk.msrb.mxu3 %vm10072_vm9, %v5170_v11 }
 0x1e4   : > { %4054 = vmatpush.xpose.msk.msrb.mxu0 %vm10074_vm7, %v5170_v11  ;;  %4086 = vmatpush.xpose.msk.msrb.mxu2 %vm10076_vm8, %v5170_v11 }
 0x1e5   : > { %4070 = vmatpush.xpose.msk.msrb.mxu1 %vm10078_vm12, %v5170_v11  ;;  %4102 = vmatpush.xpose.msk.msrb.mxu3 %vm10080_vm11, %v5170_v11 }
 0x1e7   : > { %1482 = vmatmul.f32.vlgmr.msrb.gmra.mxu0 %v1374_v20  ;;  %1522 = vmatmul.f32.vlgmr.msrb.gmra.mxu2 %v1376_v25 }
 0x1e8   : > { %1502 = vmatmul.f32.vlgmr.msrb.gmra.mxu1 %v1375_v21  ;;  %1542 = vmatmul.f32.vlgmr.msrb.gmra.mxu3 %v1377_v15 }
 0x22c   : > { %v1403_v38 = vpop.f32.mrf.mxu0 }
 0x230   : > { %v1423_v18 = vpop.f32.mrf.mxu1 }
 0x231   : > { %v1424_v56 = vadd.f32 %v1423_v18, %v1403_v38  ;;  %v1443_v22 = vpop.f32.mrf.mxu2 }
 0x233   : > { %v1444_v33 = vadd.f32 %v1443_v22, %v1424_v56 }
 0x235   : > { %v1463_v29 = vpop.f32.mrf.mxu3 }
 0x236   : > { %v1464_v10 = vadd.f32 %v1463_v29, %v1444_v33 }
 0x264   : > { %v1483_v23 = vpop.f32.mrf.mxu0 }
 0x265   : > { %v1484_v5 = vadd.f32 %v1483_v23, %v1464_v10  ;;  %v1503_v4 = vpop.f32.mrf.mxu1 }
 0x267   : > { %v1504_v12 = vadd.f32 %v1503_v4, %v1484_v5 }
 0x26a   : > { %v1523_v3 = vpop.f32.mrf.mxu2 }
 0x26b   : > { %v1524_v37 = vadd.f32 %v1523_v3, %v1504_v12  ;;  %v1543_v31 = vpop.f32.mrf.mxu3 }
 0x26d   : > { %v1544_v11 = vadd.f32 %v1543_v31, %v1524_v37 }
 0x26f   : > { %v1547_v20 = vadd.f32 %v1546_v17, %v1544_v11 }
 0x271   : > { %1548 = vst [vmem:[#allocation2 + $0x8] sm:$0x1] %v1547_v20 }
 0x272 PF: > { %p4103_p0 = scmp.ne.s32.totalorder %s5153_s21, 1 }
 0x274   : > { %1552 = sbr.rel (%p4103_p0) target bundleno = 1582 (0x62e), region = 88 }
 0x279   : > { %v9334_v25 = vmov 1.0   ;;  %vm10081_vm10 = vnez %v9851_v7  ;;  %vm10082_vm9 = vnez %v9854_v39  ;;  %vm10083_vm7 = vnez %v9821_v42  ;;  %v10119_v31 = vld [vmem:[#allocation63_spill] sm:$0xff]  ;;  %v10121_v37 = vld [vmem:[#allocation64_spill] sm:$0xff]  ;;  %v10123_v29 = vld [vmem:[#allocation65_spill] sm:$0xff]  ;;  %s10283_s9 = sld [smem:[#allocation170_spill]] }
 0x27a   : > { %4232 = vmatpush.msk.msra.mxu0 %vm6227_vm13, %v9334_v25  ;;  %4248 = vmatpush.msk.msra.mxu1 %vm6232_vm14, %v9334_v25  ;;  %vm10084_vm8 = vnez %v9824_v57  ;;  %vm10085_vm12 = vnez %v9827_v8  ;;  %vm10086_vm11 = vnez %v9830_v49  ;;  %v10125_v33 = vld [vmem:[#allocation66_spill] sm:$0xff]  ;;  %v10127_v3 = vld [vmem:[#allocation55_spill] sm:$0xff]  ;;  %v10129_v4 = vld [vmem:[#allocation56_spill] sm:$0xff]  ;;  %s10285_s30 = sld [smem:[#allocation171_spill]] }
 0x27b   : > { %4264 = vmatpush.msk.msra.mxu2 %vm6237_vm1, %v9334_v25  ;;  %4280 = vmatpush.msk.msra.mxu3 %vm6242_vm15, %v9334_v25  ;;  %vm10089_vm15 = vnez %v9803_v50  ;;  %vm10090_vm1 = vnez %v9806_v40  ;;  %v10131_v5 = vld [vmem:[#allocation57_spill] sm:$0xff]  ;;  %v10133_v10 = vld [vmem:[#allocation58_spill] sm:$0xff]  ;;  %v10135_v21 = vld [vmem:[#allocation47_spill] sm:$0xff]  ;;  %s10286_s27 = sld [smem:[#allocation169_spill]] }
 0x27c   : > { %4233 = vmatpush.msk.msra.mxu0 %vm6187_vm5, %v9334_v25  ;;  %4249 = vmatpush.msk.msra.mxu1 %vm6192_vm6, %v9334_v25  ;;  %v10137_v15 = vld [vmem:[#allocation48_spill] sm:$0xff]  ;;  %v10139_v18 = vld [vmem:[#allocation49_spill] sm:$0xff]  ;;  %v10141_v38 = vld [vmem:[#allocation50_spill] sm:$0xff]  ;;  %s10287_s26 = sld [smem:[#allocation172_spill]] }
 0x27d   : > { %4265 = vmatpush.msk.msra.mxu2 %vm10081_vm10, %v9334_v25  ;;  %4281 = vmatpush.msk.msra.mxu3 %vm10082_vm9, %v9334_v25  ;;  %vm10087_vm10 = vnez %v9797_v30  ;;  %vm10088_vm9 = vnez %v9800_v60  ;;  %v10143_v56 = vld [vmem:[#allocation39_spill] sm:$0xff]  ;;  %v10145_v22 = vld [vmem:[#allocation40_spill] sm:$0xff]  ;;  %v10147_v23 = vld [vmem:[#allocation41_spill] sm:$0xff] }
 0x27e   : > { %4234 = vmatpush.msk.msra.mxu0 %vm10083_vm7, %v9334_v25  ;;  %4250 = vmatpush.msk.msra.mxu1 %vm10084_vm8, %v9334_v25  ;;  %v10149_v12 = vld [vmem:[#allocation42_spill] sm:$0xff]  ;;  %v10151_v17 = vld [vmem:[#allocation31_spill] sm:$0xff]  ;;  %v10153_v11 = vld [vmem:[#allocation32_spill] sm:$0xff] }
 0x27f   : > { %4266 = vmatpush.msk.msra.mxu2 %vm10085_vm12, %v9334_v25  ;;  %4282 = vmatpush.msk.msra.mxu3 %vm10086_vm11, %v9334_v25  ;;  %vm10091_vm12 = vnez %v9773_v43  ;;  %vm10092_vm11 = vnez %v9776_v58  ;;  %v10155_v20 = vld [vmem:[#allocation33_spill] sm:$0xff]  ;;  %v10378_v41 = vld [vmem:[#allocation144_spill] sm:$0xff]  ;;  %v10392_v42 = vld [vmem:[#allocation146_spill] sm:$0xff] }
 0x280   : > { %4235 = vmatpush.msk.msra.mxu0 %vm10087_vm10, %v9334_v25  ;;  %4251 = vmatpush.msk.msra.mxu1 %vm10088_vm9, %v9334_v25  ;;  %vm10093_vm10 = vnez %v9779_v51  ;;  %vm10094_vm9 = vnez %v9782_v44  ;;  %v10376_v61 = vld [vmem:[#allocation33_spill] sm:$0xff]  ;;  %v10440_v24 = vld [vmem:[#allocation102_spill] sm:$0xff] }
 0x281   : > { %4267 = vmatpush.msk.msra.mxu2 %vm10089_vm15, %v9334_v25  ;;  %4283 = vmatpush.msk.msra.mxu3 %vm10090_vm1, %v9334_v25  ;;  %vm10095_vm15 = vnez %v9749_v2  ;;  %vm10096_vm1 = vnez %v9752_v1  ;;  %v10388_v57 = vld [vmem:[#allocation145_spill] sm:$0xff] }
 0x282   : > { %4236 = vmatpush.msk.msra.mxu0 %vm10091_vm12, %v9334_v25  ;;  %4252 = vmatpush.msk.msra.mxu1 %vm10092_vm11, %v9334_v25  ;;  %vm10097_vm12 = vnez %v9755_v34  ;;  %vm10098_vm11 = vnez %v9758_v26 }
 0x283   : > { %4268 = vmatpush.msk.msra.mxu2 %vm10093_vm10, %v9334_v25  ;;  %4284 = vmatpush.msk.msra.mxu3 %vm10094_vm9, %v9334_v25  ;;  %vm10099_vm10 = vnez %v9729_v46  ;;  %vm10100_vm9 = vnez %v9731_v48 }
 0x284   : > { %4237 = vmatpush.msk.msra.mxu0 %vm10095_vm15, %v9334_v25  ;;  %4253 = vmatpush.msk.msra.mxu1 %vm10096_vm1, %v9334_v25  ;;  %vm10101_vm15 = vnez %v9733_v35  ;;  %vm10102_vm1 = vnez %v9735_v9 }
 0x285   : > { %4269 = vmatpush.msk.msra.mxu2 %vm10097_vm12, %v9334_v25  ;;  %4285 = vmatpush.msk.msra.mxu3 %vm10098_vm11, %v9334_v25  ;;  %vm10103_vm12 = vnez %v9705_v6  ;;  %vm10104_vm11 = vnez %v9708_v59 }
 0x286   : > { %4238 = vmatpush.msk.msra.mxu0 %vm10099_vm10, %v9334_v25  ;;  %4254 = vmatpush.msk.msra.mxu1 %vm10100_vm9, %v9334_v25  ;;  %vm10105_vm10 = vnez %v9711_v19  ;;  %vm10106_vm9 = vnez %v9714_v52 }
 0x287   : > { %4270 = vmatpush.msk.msra.mxu2 %vm10101_vm15, %v9334_v25  ;;  %4286 = vmatpush.msk.msra.mxu3 %vm10102_vm1, %v9334_v25  ;;  %vm10107_vm15 = vnez %v9681_v27  ;;  %vm10108_vm1 = vnez %v9684_v62 }
 0x288   : > { %4239 = vmatpush.msk.msra.mxu0 %vm10103_vm12, %v9334_v25  ;;  %4255 = vmatpush.msk.msra.mxu1 %vm10104_vm11, %v9334_v25  ;;  %vm10109_vm12 = vnez %v9687_v28  ;;  %vm10110_vm11 = vnez %v9690_v36 }
 0x289   : > { %4271 = vmatpush.msk.msra.mxu2 %vm10105_vm10, %v9334_v25  ;;  %4287 = vmatpush.msk.msra.mxu3 %vm10106_vm9, %v9334_v25  ;;  %vm10111_vm10 = vnez %v9657_v63  ;;  %vm10112_vm9 = vnez %v9660_v45 }
 0x28a   : > { %4240 = vmatpush.msk.msra.mxu0 %vm10107_vm15, %v9334_v25  ;;  %4256 = vmatpush.msk.msra.mxu1 %vm10108_vm1, %v9334_v25  ;;  %vm10113_vm15 = vnez %v9663_v13  ;;  %vm10114_vm1 = vnez %v9666_v14  ;;  %v1600_v14 = vld [vmem:[#allocation4 + $0x228] sm:$0xff] }
 0x28b   : > { %4272 = vmatpush.msk.msra.mxu2 %vm10109_vm12, %v9334_v25  ;;  %4288 = vmatpush.msk.msra.mxu3 %vm10110_vm11, %v9334_v25  ;;  %vm10115_vm12 = vnez %v9633_v47  ;;  %vm10116_vm11 = vnez %v9636_v0 }
 0x28c   : > { %4241 = vmatpush.msk.msra.mxu0 %vm10111_vm10, %v9334_v25  ;;  %4257 = vmatpush.msk.msra.mxu1 %vm10112_vm9, %v9334_v25  ;;  %vm10117_vm10 = vnez %v9639_v53  ;;  %vm10118_vm9 = vnez %v9642_v54  ;;  %v10275_v54 = vld [vmem:[#allocation35_spill] sm:$0xff] }
 0x28d   : > { %4273 = vmatpush.msk.msra.mxu2 %vm10113_vm15, %v9334_v25  ;;  %4289 = vmatpush.msk.msra.mxu3 %vm10114_vm1, %v9334_v25  ;;  %vm10120_vm15 = vnez %v10119_v31  ;;  %vm10122_vm1 = vnez %v10121_v37  ;;  %v1658_v53 = vld [vmem:[#allocation4 + $0x1f8] sm:$0xff] }
 0x28e   : > { %4242 = vmatpush.msk.msra.mxu0 %vm10115_vm12, %v9334_v25  ;;  %4258 = vmatpush.msk.msra.mxu1 %vm10116_vm11, %v9334_v25  ;;  %vm10124_vm12 = vnez %v10123_v29  ;;  %vm10126_vm11 = vnez %v10125_v33  ;;  %v10267_v33 = vld [vmem:[#allocation43_spill] sm:$0xff]  ;;  %v1676_v29 = vld [vmem:[#allocation4 + $0x390] sm:$0xff] }
 0x28f   : > { %4274 = vmatpush.msk.msra.mxu2 %vm10117_vm10, %v9334_v25  ;;  %4290 = vmatpush.msk.msra.mxu3 %vm10118_vm9, %v9334_v25  ;;  %vm10128_vm10 = vnez %v10127_v3  ;;  %vm10130_vm9 = vnez %v10129_v4  ;;  %v1668_v4 = vld [vmem:[#allocation4 + $0x198] sm:$0xff]  ;;  %v1652_v3 = vld [vmem:[#allocation4 + $0xc0] sm:$0xff] }
 0x290   : > { %4243 = vmatpush.msk.msra.mxu0 %vm10120_vm15, %v9334_v25  ;;  %4259 = vmatpush.msk.msra.mxu1 %vm10122_vm1, %v9334_v25  ;;  %vm10132_vm15 = vnez %v10131_v5  ;;  %vm10134_vm1 = vnez %v10133_v10  ;;  %v10259_v10 = vld [vmem:[#allocation51_spill] sm:$0xff]  ;;  %v1674_v5 = vld [vmem:[#allocation4 + $0x2b0] sm:$0xff] }
 0x291   : > { %4275 = vmatpush.msk.msra.mxu2 %vm10124_vm12, %v9334_v25  ;;  %4291 = vmatpush.msk.msra.mxu3 %vm10126_vm11, %v9334_v25  ;;  %vm10136_vm12 = vnez %v10135_v21  ;;  %vm10138_vm11 = vnez %v10137_v15  ;;  %v10269_v15 = vld [vmem:[#allocation44_spill] sm:$0xff]  ;;  %v10273_v21 = vld [vmem:[#allocation46_spill] sm:$0xff] }
 0x292   : > { %4244 = vmatpush.msk.msra.mxu0 %vm10128_vm10, %v9334_v25  ;;  %4260 = vmatpush.msk.msra.mxu1 %vm10130_vm9, %v9334_v25  ;;  %vm10140_vm10 = vnez %v10139_v18  ;;  %vm10142_vm9 = vnez %v10141_v38  ;;  %v10157_v38 = vld [vmem:[#allocation34_spill] sm:$0xff]  ;;  %v10171_v18 = vld [vmem:[#allocation135_spill] sm:$0xff] }
 0x293   : > { %4276 = vmatpush.msk.msra.mxu2 %vm10132_vm15, %v9334_v25  ;;  %4292 = vmatpush.msk.msra.mxu3 %vm10134_vm1, %v9334_v25  ;;  %vm10144_vm15 = vnez %v10143_v56  ;;  %vm10146_vm1 = vnez %v10145_v22  ;;  %v10261_v22 = vld [vmem:[#allocation52_spill] sm:$0xff] }
 0x294   : > { %4245 = vmatpush.msk.msra.mxu0 %vm10136_vm12, %v9334_v25  ;;  %4261 = vmatpush.msk.msra.mxu1 %vm10138_vm11, %v9334_v25  ;;  %vm10148_vm12 = vnez %v10147_v23  ;;  %vm10150_vm11 = vnez %v10149_v12  ;;  %v10167_v23 = vld [vmem:[#allocation145_spill] sm:$0xff]  ;;  %v10169_v12 = vld [vmem:[#allocation146_spill] sm:$0xff] }
 0x295   : > { %4277 = vmatpush.msk.msra.mxu2 %vm10140_vm10, %v9334_v25  ;;  %4293 = vmatpush.msk.msra.mxu3 %vm10142_vm9, %v9334_v25  ;;  %vm10152_vm10 = vnez %v10151_v17  ;;  %vm10154_vm9 = vnez %v10153_v11  ;;  %v10173_v11 = vld [vmem:[#allocation136_spill] sm:$0xff] }
 0x296   : > { %4246 = vmatpush.msk.msra.mxu0 %vm10144_vm15, %v9334_v25  ;;  %4262 = vmatpush.msk.msra.mxu1 %vm10146_vm1, %v9334_v25  ;;  %vm10156_vm15 = vnez %v10155_v20  ;;  %vm10158_vm1 = vnez %v10157_v38  ;;  %v10163_v20 = vld [vmem:[#allocation143_spill] sm:$0xff]  ;;  %v10165_v38 = vld [vmem:[#allocation144_spill] sm:$0xff] }
 0x297   : > { %4278 = vmatpush.msk.msra.mxu2 %vm10148_vm12, %v9334_v25  ;;  %4294 = vmatpush.msk.msra.mxu3 %vm10150_vm11, %v9334_v25  ;;  %vm10168_vm11 = vnez %v10167_v23  ;;  %v10179_v23 = vld [vmem:[#allocation127_spill] sm:$0xff]  ;;  %v10229_v17 = vld [vmem:[#allocation84_spill] sm:$0xff] }
 0x298   : > { %4247 = vmatpush.msk.msra.mxu0 %vm10152_vm10, %v9334_v25  ;;  %4263 = vmatpush.msk.msra.mxu1 %vm10154_vm9, %v9334_v25 }
 0x299   : > { %4279 = vmatpush.msk.msra.mxu2 %vm10156_vm15, %v9334_v25  ;;  %4295 = vmatpush.msk.msra.mxu3 %vm10158_vm1, %v9334_v25  ;;  %vm10164_vm15 = vnez %v10163_v20  ;;  %vm10166_vm1 = vnez %v10165_v38  ;;  %v10175_v20 = vld [vmem:[#allocation137_spill] sm:$0xff]  ;;  %v10177_v38 = vld [vmem:[#allocation138_spill] sm:$0xff] }
 0x29a   : > { %4296 = vmatpush.msk.msrb.mxu0 %vm6247_vm0, %v9334_v25  ;;  %4312 = vmatpush.msk.msrb.mxu1 %vm6252_vm2, %v9334_v25  ;;  %vm10170_vm2 = vnez %v10169_v12  ;;  %v10181_v12 = vld [vmem:[#allocation128_spill] sm:$0xff] }
 0x29b   : > { %4328 = vmatpush.msk.msrb.mxu2 %vm6257_vm3, %v9334_v25  ;;  %4344 = vmatpush.msk.msrb.mxu3 %vm6262_vm4, %v9334_v25  ;;  %vm10172_vm3 = vnez %v10171_v18  ;;  %vm10174_vm4 = vnez %v10173_v11  ;;  %v10183_v18 = vld [vmem:[#allocation129_spill] sm:$0xff]  ;;  %v10185_v11 = vld [vmem:[#allocation130_spill] sm:$0xff] }
 0x29c   : > { %4297 = vmatpush.msk.msrb.mxu0 %vm10164_vm15, %v9334_v25  ;;  %4313 = vmatpush.msk.msrb.mxu1 %vm10166_vm1, %v9334_v25  ;;  %vm10176_vm15 = vnez %v10175_v20  ;;  %vm10178_vm1 = vnez %v10177_v38  ;;  %v10187_v20 = vld [vmem:[#allocation119_spill] sm:$0xff]  ;;  %v10189_v38 = vld [vmem:[#allocation120_spill] sm:$0xff] }
 0x29d   : > { %4329 = vmatpush.msk.msrb.mxu2 %vm10168_vm11, %v9334_v25  ;;  %4345 = vmatpush.msk.msrb.mxu3 %vm10170_vm2, %v9334_v25  ;;  %vm10180_vm11 = vnez %v10179_v23  ;;  %vm10182_vm2 = vnez %v10181_v12  ;;  %v10191_v23 = vld [vmem:[#allocation121_spill] sm:$0xff]  ;;  %v10193_v12 = vld [vmem:[#allocation122_spill] sm:$0xff] }
 0x29e   : > { %4298 = vmatpush.msk.msrb.mxu0 %vm10172_vm3, %v9334_v25  ;;  %4314 = vmatpush.msk.msrb.mxu1 %vm10174_vm4, %v9334_v25  ;;  %vm10184_vm3 = vnez %v10183_v18  ;;  %vm10186_vm4 = vnez %v10185_v11  ;;  %v10195_v18 = vld [vmem:[#allocation111_spill] sm:$0xff]  ;;  %v10197_v11 = vld [vmem:[#allocation112_spill] sm:$0xff] }
 0x29f   : > { %4330 = vmatpush.msk.msrb.mxu2 %vm10176_vm15, %v9334_v25  ;;  %4346 = vmatpush.msk.msrb.mxu3 %vm10178_vm1, %v9334_v25  ;;  %vm10188_vm15 = vnez %v10187_v20  ;;  %vm10190_vm1 = vnez %v10189_v38  ;;  %v10199_v20 = vld [vmem:[#allocation113_spill] sm:$0xff]  ;;  %v10201_v38 = vld [vmem:[#allocation114_spill] sm:$0xff] }
 0x2a0   : > { %4299 = vmatpush.msk.msrb.mxu0 %vm10180_vm11, %v9334_v25  ;;  %4315 = vmatpush.msk.msrb.mxu1 %vm10182_vm2, %v9334_v25  ;;  %vm10192_vm11 = vnez %v10191_v23  ;;  %vm10194_vm2 = vnez %v10193_v12  ;;  %v10203_v23 = vld [vmem:[#allocation103_spill] sm:$0xff]  ;;  %v10205_v12 = vld [vmem:[#allocation104_spill] sm:$0xff] }
 0x2a1   : > { %4331 = vmatpush.msk.msrb.mxu2 %vm10184_vm3, %v9334_v25  ;;  %4347 = vmatpush.msk.msrb.mxu3 %vm10186_vm4, %v9334_v25  ;;  %vm10196_vm3 = vnez %v10195_v18  ;;  %vm10198_vm4 = vnez %v10197_v11  ;;  %v10207_v18 = vld [vmem:[#allocation105_spill] sm:$0xff]  ;;  %v10209_v11 = vld [vmem:[#allocation106_spill] sm:$0xff] }
 0x2a2   : > { %4300 = vmatpush.msk.msrb.mxu0 %vm10188_vm15, %v9334_v25  ;;  %4316 = vmatpush.msk.msrb.mxu1 %vm10190_vm1, %v9334_v25  ;;  %vm10200_vm15 = vnez %v10199_v20  ;;  %vm10202_vm1 = vnez %v10201_v38  ;;  %v6936_v20 = vld [vmem:[#allocation2] sm:$0xff]  ;;  %v10211_v38 = vld [vmem:[#allocation99_spill] sm:$0xff] }
 0x2a3   : > { %4332 = vmatpush.msk.msrb.mxu2 %vm10192_vm11, %v9334_v25  ;;  %4348 = vmatpush.msk.msrb.mxu3 %vm10194_vm2, %v9334_v25  ;;  %vm10204_vm11 = vnez %v10203_v23  ;;  %vm10206_vm2 = vnez %v10205_v12  ;;  %v10213_v23 = vld [vmem:[#allocation100_spill] sm:$0xff]  ;;  %v10215_v12 = vld [vmem:[#allocation101_spill] sm:$0xff] }
 0x2a4   : > { %4301 = vmatpush.msk.msrb.mxu0 %vm10196_vm3, %v9334_v25  ;;  %4317 = vmatpush.msk.msrb.mxu1 %vm10198_vm4, %v9334_v25  ;;  %vm10208_vm3 = vnez %v10207_v18  ;;  %vm10210_vm4 = vnez %v10209_v11  ;;  %v10217_v18 = vld [vmem:[#allocation102_spill] sm:$0xff]  ;;  %v10219_v11 = vld [vmem:[#allocation91_spill] sm:$0xff] }
 0x2a5   : > { %4333 = vmatpush.msk.msrb.mxu2 %vm10200_vm15, %v9334_v25  ;;  %4349 = vmatpush.msk.msrb.mxu3 %vm10202_vm1, %v9334_v25  ;;  %vm10212_vm1 = vnez %v10211_v38  ;;  %vm10214_vm15 = vnez %v10213_v23  ;;  %v10221_v38 = vld [vmem:[#allocation92_spill] sm:$0xff]  ;;  %v10223_v23 = vld [vmem:[#allocation93_spill] sm:$0xff] }
 0x2a6   : > { %4302 = vmatpush.msk.msrb.mxu0 %vm10204_vm11, %v9334_v25  ;;  %4318 = vmatpush.msk.msrb.mxu1 %vm10206_vm2, %v9334_v25  ;;  %vm10216_vm2 = vnez %v10215_v12  ;;  %v10225_v12 = vld [vmem:[#allocation94_spill] sm:$0xff]  ;;  %vm10230_vm11 = vnez %v10229_v17  ;;  %v10239_v17 = vld [vmem:[#allocation77_spill] sm:$0xff] }
 0x2a7   : > { %4334 = vmatpush.msk.msrb.mxu2 %vm10208_vm3, %v9334_v25  ;;  %4350 = vmatpush.msk.msrb.mxu3 %vm10210_vm4, %v9334_v25  ;;  %vm10218_vm3 = vnez %v10217_v18  ;;  %vm10220_vm4 = vnez %v10219_v11  ;;  %v10227_v18 = vld [vmem:[#allocation83_spill] sm:$0xff]  ;;  %v10231_v11 = vld [vmem:[#allocation85_spill] sm:$0xff] }
 0x2a8   : > { %4303 = vmatpush.msk.msrb.mxu0 %vm10212_vm1, %v9334_v25  ;;  %4319 = vmatpush.msk.msrb.mxu1 %vm10214_vm15, %v9334_v25  ;;  %vm10222_vm1 = vnez %v10221_v38  ;;  %vm10224_vm15 = vnez %v10223_v23  ;;  %v10233_v23 = vld [vmem:[#allocation86_spill] sm:$0xff]  ;;  %v7007_v38 = vld [vmem:[%s5373_s1] sm:$0xff] }
 0x2a9   : > { %4335 = vmatpush.msk.msrb.mxu2 %vm10216_vm2, %v9334_v25  ;;  %4351 = vmatpush.msk.msrb.mxu3 %vm10218_vm3, %v9334_v25  ;;  %vm10226_vm2 = vnez %v10225_v12  ;;  %vm10228_vm3 = vnez %v10227_v18  ;;  %v10235_v12 = vld [vmem:[#allocation75_spill] sm:$0xff]  ;;  %v10237_v18 = vld [vmem:[#allocation76_spill] sm:$0xff]  ;;  %v7040_v56 = vperm.slane %v7007_v38, 2 }
 0x2aa   : > { %2138 = vmatmul.f32.vlgmr.msra.gmra.mxu2 %v6936_v20  ;;  %2161 = vmatmul.f32.vlgmr.msra.gmra.mxu3 %v6936_v20 }
 0x2ab   : > { %4304 = vmatpush.msk.msrb.mxu0 %vm10220_vm4, %v9334_v25  ;;  %4320 = vmatpush.msk.msrb.mxu1 %vm10222_vm1, %v9334_v25  ;;  %vm10232_vm4 = vnez %v10231_v11  ;;  %v10241_v11 = vld [vmem:[#allocation78_spill] sm:$0xff] }
 0x2ac   : > { %4336 = vmatpush.msk.msrb.mxu2 %vm10224_vm15, %v9334_v25  ;;  %4352 = vmatpush.msk.msrb.mxu3 %vm10226_vm2, %v9334_v25  ;;  %vm10234_vm15 = vnez %v10233_v23  ;;  %vm10236_vm2 = vnez %v10235_v12  ;;  %vm10242_vm1 = vnez %v10241_v11  ;;  %v6990_v23 = vld [vmem:[#allocation2 + $0x8] sm:$0x1]  ;;  %v10243_v12 = vld [vmem:[#allocation67_spill] sm:$0xff]  ;;  %v10249_v11 = vld [vmem:[#allocation70_spill] sm:$0xff] }
 0x2ad   : > { %4305 = vmatpush.msk.msrb.mxu0 %vm10228_vm3, %v9334_v25  ;;  %4321 = vmatpush.msk.msrb.mxu1 %vm10230_vm11, %v9334_v25  ;;  %vm10238_vm3 = vnez %v10237_v18  ;;  %vm10240_vm11 = vnez %v10239_v17  ;;  %v10245_v18 = vld [vmem:[#allocation68_spill] sm:$0xff]  ;;  %v10247_v17 = vld [vmem:[#allocation69_spill] sm:$0xff] }
 0x2ae   : > { %4337 = vmatpush.msk.msrb.mxu2 %vm10232_vm4, %v9334_v25  ;;  %4353 = vmatpush.msk.msrb.mxu3 %vm10234_vm15, %v9334_v25  ;;  %vm10244_vm15 = vnez %v10243_v12  ;;  %v10251_v12 = vld [vmem:[#allocation59_spill] sm:$0xff]  ;;  %vm10260_vm4 = vnez %v10259_v10  ;;  %v1673_v10 = vld [vmem:[#allocation4 + $0x388] sm:$0xff] }
 0x2af   : > { %4306 = vmatpush.msk.msrb.mxu0 %vm10236_vm2, %v9334_v25  ;;  %4322 = vmatpush.msk.msrb.mxu1 %vm10238_vm3, %v9334_v25  ;;  %vm10246_vm3 = vnez %v10245_v18  ;;  %v10253_v18 = vld [vmem:[#allocation60_spill] sm:$0xff]  ;;  %vm10262_vm2 = vnez %v10261_v22  ;;  %v7043_v22 = vperm.slane %v7007_v38, 3 }
 0x2b0   : > { %4338 = vmatpush.msk.msrb.mxu2 %vm10240_vm11, %v9334_v25  ;;  %4354 = vmatpush.msk.msrb.mxu3 %vm10242_vm1, %v9334_v25  ;;  %vm10248_vm11 = vnez %v10247_v17  ;;  %vm10250_vm1 = vnez %v10249_v11  ;;  %v10255_v17 = vld [vmem:[#allocation61_spill] sm:$0xff]  ;;  %v10257_v11 = vld [vmem:[#allocation62_spill] sm:$0xff] }
 0x2b1   : > { %2092 = vmatmul.f32.vlgmr.msra.gmra.mxu0 %v6936_v20  ;;  %2115 = vmatmul.f32.vlgmr.msra.gmra.mxu1 %v6936_v20 }
 0x2b2   : > { %4307 = vmatpush.msk.msrb.mxu0 %vm10244_vm15, %v9334_v25  ;;  %4323 = vmatpush.msk.msrb.mxu1 %vm10246_vm3, %v9334_v25  ;;  %vm10252_vm15 = vnez %v10251_v12  ;;  %vm10254_vm3 = vnez %v10253_v18  ;;  %v7028_v12 = vperm.slane %v7007_v38, 0  ;;  %v7031_v18 = vperm.slane %v7007_v38, 1 }
 0x2b3   : > { %4339 = vmatpush.msk.msrb.mxu2 %vm10248_vm11, %v9334_v25  ;;  %4355 = vmatpush.msk.msrb.mxu3 %vm10250_vm1, %v9334_v25  ;;  %vm10256_vm11 = vnez %v10255_v17  ;;  %vm10258_vm1 = vnez %v10257_v11  ;;  %v10263_v17 = vld [vmem:[#allocation53_spill] sm:$0xff]  ;;  %v10265_v11 = vld [vmem:[#allocation54_spill] sm:$0xff] }
 0x2b4   : > { %2141 = vmatmul.f32.gmra.mxu2 %v6990_v23  ;;  %2164 = vmatmul.f32.gmra.mxu3 %v6990_v23 }
 0x2b5   : > { %4308 = vmatpush.msk.msrb.mxu0 %vm10252_vm15, %v9334_v25  ;;  %4324 = vmatpush.msk.msrb.mxu1 %vm10254_vm3, %v9334_v25  ;;  %vm1811_vm3 = vcmp.eq.s32.totalorder %v1674_v5, %v7031_v18  ;;  %vm1813_vm15 = vcmp.eq.s32.totalorder %v1676_v29, %v7043_v22  ;;  %v10281_v5 = vld [vmem:[#allocation38_spill] sm:$0xff]  ;;  %v1659_v29 = vld [vmem:[#allocation4 + $0x3c8] sm:$0xff] }
 0x2b6   : > { %4340 = vmatpush.msk.msrb.mxu2 %vm10256_vm11, %v9334_v25  ;;  %4356 = vmatpush.msk.msrb.mxu3 %vm10258_vm1, %v9334_v25  ;;  %vm10264_vm11 = vnez %v10263_v17  ;;  %vm10266_vm1 = vnez %v10265_v11  ;;  %v1675_v17 = vld [vmem:[#allocation4 + $0x2a8] sm:$0xff]  ;;  %vm10282_vm0 = vnez %v10281_v5 }
 0x2b7   : > { %4309 = vmatpush.msk.msrb.mxu0 %vm10260_vm4, %v9334_v25  ;;  %4325 = vmatpush.msk.msrb.mxu1 %vm10262_vm2, %v9334_v25  ;;  %vm10268_vm2 = vnez %v10267_v33  ;;  %vm10270_vm4 = vnez %v10269_v15  ;;  %v10271_v11 = vld [vmem:[#allocation45_spill] sm:$0xff]  ;;  %v1666_v33 = vld [vmem:[#allocation4 + $0x358] sm:$0xff] }
 0x2b8   : > { %4341 = vmatpush.msk.msrb.mxu2 %vm10264_vm11, %v9334_v25  ;;  %4357 = vmatpush.msk.msrb.mxu3 %vm10266_vm1, %v9334_v25  ;;  %vm10272_vm1 = vnez %v10271_v11  ;;  %vm10274_vm11 = vnez %v10273_v21  ;;  %v1665_v15 = vld [vmem:[#allocation4 + $0x70] sm:$0xff]  ;;  %v10277_v11 = vld [vmem:[#allocation36_spill] sm:$0xff] }
 0x2b9   : > { %4310 = vmatpush.msk.msrb.mxu0 %vm10268_vm2, %v9334_v25  ;;  %4326 = vmatpush.msk.msrb.mxu1 %vm10270_vm4, %v9334_v25  ;;  %vm1810_vm2 = vcmp.eq.s32.totalorder %v1673_v10, %v7028_v12  ;;  %vm10276_vm4 = vnez %v10275_v54  ;;  %v1667_v21 = vld [vmem:[#allocation4 + $0x268] sm:$0xff]  ;;  %v1657_v54 = vld [vmem:[#allocation4 + $0x3f8] sm:$0xff] }
 0x2ba   : > { %4342 = vmatpush.msk.msrb.mxu2 %vm10272_vm1, %v9334_v25  ;;  %4358 = vmatpush.msk.msrb.mxu3 %vm10274_vm11, %v9334_v25  ;;  %vm10278_vm1 = vnez %v10277_v11  ;;  %vm1812_vm11 = vcmp.eq.s32.totalorder %v1675_v17, %v7040_v56  ;;  %v10279_v10 = vld [vmem:[#allocation37_spill] sm:$0xff] }
 0x2bb   : > { %2095 = vmatmul.f32.gmra.mxu0 %v6990_v23  ;;  %2118 = vmatmul.f32.gmra.mxu1 %v6990_v23  ;;  %vm10280_vm12 = vnez %v10279_v10  ;;  %v1660_v17 = vld [vmem:[#allocation4 + $0x3b0] sm:$0xff]  ;;  %v1649_v5 = vld [vmem:[#allocation4 + $0x168] sm:$0xff]  ;;  %v1650_v10 = vld [vmem:[#allocation4 + $0xa0] sm:$0xff] }
 0x2bc   : > { %4311 = vmatpush.msk.msrb.mxu0 %vm10276_vm4, %v9334_v25  ;;  %4327 = vmatpush.msk.msrb.mxu1 %vm10278_vm1, %v9334_v25  ;;  %vm1802_vm1 = vcmp.eq.s32.totalorder %v1665_v15, %v7028_v12  ;;  %vm1803_vm4 = vcmp.eq.s32.totalorder %v1666_v33, %v7031_v18  ;;  %v1651_v11 = vld [vmem:[#allocation4 + $0xb0] sm:$0xff]  ;;  %vm1786_vm9 = vcmp.eq.s32.totalorder %v1649_v5, %v7028_v12  ;;  %v1643_v33 = vld [vmem:[#allocation4 + $0x1c8] sm:$0xff]  ;;  %v1634_v15 = vld [vmem:[#allocation4 + $0x258] sm:$0xff] }
 0x2bd   : > { %4343 = vmatpush.msk.msrb.mxu2 %vm10280_vm12, %v9334_v25  ;;  %4359 = vmatpush.msk.msrb.mxu3 %vm10282_vm0, %v9334_v25  ;;  %vm1804_vm12 = vcmp.eq.s32.totalorder %v1667_v21, %v7040_v56  ;;  %vm1805_vm0 = vcmp.eq.s32.totalorder %v1668_v4, %v7043_v22  ;;  %vm1787_vm10 = vcmp.eq.s32.totalorder %v1650_v10, %v7031_v18  ;;  %v1644_v4 = vld [vmem:[#allocation4 + $0x50] sm:$0xff]  ;;  %v1633_v21 = vld [vmem:[#allocation4 + $0x68] sm:$0xff] }
 0x2be   : > { %4360 = vmatpush.msk.msra.mxu0 %vm1810_vm2, %v9334_v25  ;;  %4376 = vmatpush.msk.msra.mxu1 %vm1811_vm3, %v9334_v25  ;;  %vm1794_vm2 = vcmp.eq.s32.totalorder %v1657_v54, %v7028_v12  ;;  %vm1795_vm3 = vcmp.eq.s32.totalorder %v1658_v53, %v7031_v18  ;;  %v1641_v53 = vld [vmem:[#allocation4 + $0x38] sm:$0xff]  ;;  %v1642_v54 = vld [vmem:[#allocation4 + $0x2c8] sm:$0xff]  ;;  %v1625_v10 = vld [vmem:[#allocation4 + $0x1f0] sm:$0xff] }
 0x2bf   : > { %4392 = vmatpush.msk.msra.mxu2 %vm1812_vm11, %v9334_v25  ;;  %4408 = vmatpush.msk.msra.mxu3 %vm1813_vm15, %v9334_v25  ;;  %vm1796_vm15 = vcmp.eq.s32.totalorder %v1659_v29, %v7040_v56  ;;  %vm1797_vm11 = vcmp.eq.s32.totalorder %v1660_v17, %v7043_v22  ;;  %v1626_v5 = vld [vmem:[#allocation4 + $0x230] sm:$0xff]  ;;  %v1627_v29 = vld [vmem:[#allocation4 + $0x368] sm:$0xff]  ;;  %v1628_v17 = vld [vmem:[#allocation4 + $0xd8] sm:$0xff] }
 0x2c0   : > { %2230 = vmatmul.f32.vlgmr.msrb.gmra.mxu2 %v6936_v20  ;;  %2253 = vmatmul.f32.vlgmr.msrb.gmra.mxu3 %v6936_v20 }
 0x2c1   : > { %4361 = vmatpush.msk.msra.mxu0 %vm1802_vm1, %v9334_v25  ;;  %4377 = vmatpush.msk.msra.mxu1 %vm1803_vm4, %v9334_v25  ;;  %vm1788_vm1 = vcmp.eq.s32.totalorder %v1651_v11, %v7040_v56  ;;  %vm1789_vm4 = vcmp.eq.s32.totalorder %v1652_v3, %v7043_v22  ;;  %v1635_v3 = vld [vmem:[#allocation4 + $0x118] sm:$0xff]  ;;  %v1636_v11 = vld [vmem:[#allocation4 + $0x2c0] sm:$0xff] }
 0x2c2   : > { %4393 = vmatpush.msk.msra.mxu2 %vm1804_vm12, %v9334_v25  ;;  %4409 = vmatpush.msk.msra.mxu3 %vm1805_vm0, %v9334_v25  ;;  %vm1778_vm0 = vcmp.eq.s32.totalorder %v1641_v53, %v7028_v12  ;;  %vm1779_vm12 = vcmp.eq.s32.totalorder %v1642_v54, %v7031_v18  ;;  %v1618_v53 = vld [vmem:[#allocation4 + $0x128] sm:$0xff]  ;;  %v1619_v54 = vld [vmem:[#allocation4 + $0x158] sm:$0xff] }
 0x2c3   : > { %4362 = vmatpush.msk.msra.mxu0 %vm1794_vm2, %v9334_v25  ;;  %4378 = vmatpush.msk.msra.mxu1 %vm1795_vm3, %v9334_v25  ;;  %vm1780_vm2 = vcmp.eq.s32.totalorder %v1643_v33, %v7040_v56  ;;  %vm1781_vm3 = vcmp.eq.s32.totalorder %v1644_v4, %v7043_v22  ;;  %v1620_v33 = vld [vmem:[#allocation4 + $0xe0] sm:$0xff] }
 0x2c4   : > { %4394 = vmatpush.msk.msra.mxu2 %vm1796_vm15, %v9334_v25  ;;  %4410 = vmatpush.msk.msra.mxu3 %vm1797_vm11, %v9334_v25  ;;  %vm1772_vm15 = vcmp.eq.s32.totalorder %v1635_v3, %v7040_v56  ;;  %vm1773_vm11 = vcmp.eq.s32.totalorder %v1636_v11, %v7043_v22  ;;  %v1609_v4 = vld [vmem:[#allocation4 + $0x260] sm:$0xff]  ;;  %v1610_v3 = vld [vmem:[#allocation4 + $0x348] sm:$0xff]  ;;  %v1601_v11 = vld [vmem:[#allocation4 + $0x238] sm:$0xff] }
 0x2c5   : > { %4363 = vmatpush.msk.msra.mxu0 %vm1786_vm9, %v9334_v25  ;;  %4379 = vmatpush.msk.msra.mxu1 %vm1787_vm10, %v9334_v25  ;;  %vm1770_vm10 = vcmp.eq.s32.totalorder %v1633_v21, %v7028_v12  ;;  %vm1771_vm9 = vcmp.eq.s32.totalorder %v1634_v15, %v7031_v18  ;;  %v1611_v21 = vld [vmem:[#allocation4 + $0x180] sm:$0xff]  ;;  %v1612_v15 = vld [vmem:[#allocation4 + $0x1d0] sm:$0xff] }
 0x2c6   : > { %4395 = vmatpush.msk.msra.mxu2 %vm1788_vm1, %v9334_v25  ;;  %4411 = vmatpush.msk.msra.mxu3 %vm1789_vm4, %v9334_v25  ;;  %vm1762_vm1 = vcmp.eq.s32.totalorder %v1625_v10, %v7028_v12  ;;  %vm1763_vm4 = vcmp.eq.s32.totalorder %v1626_v5, %v7031_v18  ;;  %v1602_v10 = vld [vmem:[#allocation4 + $0x88] sm:$0xff]  ;;  %v1603_v5 = vld [vmem:[#allocation4 + $0x398] sm:$0xff] }
 0x2c7   : > { %2184 = vmatmul.f32.vlgmr.msrb.gmra.mxu0 %v6936_v20  ;;  %2207 = vmatmul.f32.vlgmr.msrb.gmra.mxu1 %v6936_v20  ;;  %v1617_v20 = vld [vmem:[#allocation4 + $0x208] sm:$0xff] }
 0x2c8   : > { %4364 = vmatpush.msk.msra.mxu0 %vm1778_vm0, %v9334_v25  ;;  %4380 = vmatpush.msk.msra.mxu1 %vm1779_vm12, %v9334_v25  ;;  %vm1764_vm0 = vcmp.eq.s32.totalorder %v1627_v29, %v7040_v56  ;;  %vm1765_vm12 = vcmp.eq.s32.totalorder %v1628_v17, %v7043_v22  ;;  %v1604_v29 = vld [vmem:[#allocation4 + $0x200] sm:$0xff]  ;;  %v1593_v17 = vld [vmem:[#allocation4 + $0x3e8] sm:$0xff] }
 0x2c9   : > { %4396 = vmatpush.msk.msra.mxu2 %vm1780_vm2, %v9334_v25  ;;  %4412 = vmatpush.msk.msra.mxu3 %vm1781_vm3, %v9334_v25  ;;  %vm1754_vm2 = vcmp.eq.s32.totalorder %v1617_v20, %v7028_v12  ;;  %vm1755_vm3 = vcmp.eq.s32.totalorder %v1618_v53, %v7031_v18  ;;  %v1594_v20 = vld [vmem:[#allocation4 + $0x98] sm:$0xff] }
 0x2ca   : > { %2233 = vmatmul.f32.gmra.mxu2 %v6990_v23  ;;  %2256 = vmatmul.f32.gmra.mxu3 %v6990_v23  ;;  %v1595_v53 = vld [vmem:[#allocation4 + $0x2b8] sm:$0xff] }
 0x2cb   : > { %4365 = vmatpush.msk.msra.mxu0 %vm1770_vm10, %v9334_v25  ;;  %4381 = vmatpush.msk.msra.mxu1 %vm1771_vm9, %v9334_v25  ;;  %vm1756_vm10 = vcmp.eq.s32.totalorder %v1619_v54, %v7040_v56  ;;  %vm1757_vm9 = vcmp.eq.s32.totalorder %v1620_v33, %v7043_v22  ;;  %v1596_v54 = vld [vmem:[#allocation4 + $0xa8] sm:$0xff]  ;;  %v1585_v33 = vld [vmem:[#allocation4 + $0x3b8] sm:$0xff] }
 0x2cc   : > { %4397 = vmatpush.msk.msra.mxu2 %vm1772_vm15, %v9334_v25  ;;  %4413 = vmatpush.msk.msra.mxu3 %vm1773_vm11, %v9334_v25  ;;  %vm1746_vm15 = vcmp.eq.s32.totalorder %v1609_v4, %v7028_v12  ;;  %vm1747_vm11 = vcmp.eq.s32.totalorder %v1610_v3, %v7031_v18  ;;  %v1587_v4 = vld [vmem:[#allocation4 + $0x3d8] sm:$0xff]  ;;  %v1588_v3 = vld [vmem:[#allocation4 + $0x210] sm:$0xff] }
 0x2cd   : > { %4366 = vmatpush.msk.msra.mxu0 %vm1762_vm1, %v9334_v25  ;;  %4382 = vmatpush.msk.msra.mxu1 %vm1763_vm4, %v9334_v25  ;;  %vm1748_vm1 = vcmp.eq.s32.totalorder %v1611_v21, %v7040_v56  ;;  %vm1749_vm4 = vcmp.eq.s32.totalorder %v1612_v15, %v7043_v22  ;;  %v1577_v21 = vld [vmem:[#allocation4 + $0x2f0] sm:$0xff]  ;;  %v1578_v15 = vld [vmem:[#allocation4 + $0x288] sm:$0xff] }
 0x2ce   : > { %4398 = vmatpush.msk.msra.mxu2 %vm1764_vm0, %v9334_v25  ;;  %4414 = vmatpush.msk.msra.mxu3 %vm1765_vm12, %v9334_v25  ;;  %vm1738_vm0 = vcmp.eq.s32.totalorder %v1601_v11, %v7028_v12  ;;  %vm1739_vm12 = vcmp.eq.s32.totalorder %v1602_v10, %v7031_v18  ;;  %v1579_v11 = vld [vmem:[#allocation4 + $0x20] sm:$0xff]  ;;  %v1580_v10 = vld [vmem:[#allocation4 + $0x130] sm:$0xff] }
 0x2cf   : > { %4367 = vmatpush.msk.msra.mxu0 %vm1754_vm2, %v9334_v25  ;;  %4383 = vmatpush.msk.msra.mxu1 %vm1755_vm3, %v9334_v25  ;;  %vm1740_vm2 = vcmp.eq.s32.totalorder %v1603_v5, %v7040_v56  ;;  %vm1741_vm3 = vcmp.eq.s32.totalorder %v1604_v29, %v7043_v22  ;;  %v1569_v5 = vld [vmem:[#allocation4 + $0x380] sm:$0xff]  ;;  %v1570_v29 = vld [vmem:[#allocation4 + $0x330] sm:$0xff] }
 0x2d0   : > { %4399 = vmatpush.msk.msra.mxu2 %vm1756_vm10, %v9334_v25  ;;  %4415 = vmatpush.msk.msra.mxu3 %vm1757_vm9, %v9334_v25  ;;  %vm1730_vm10 = vcmp.eq.s32.totalorder %v1593_v17, %v7028_v12  ;;  %vm1731_vm9 = vcmp.eq.s32.totalorder %v1594_v20, %v7031_v18  ;;  %v1571_v17 = vld [vmem:[#allocation4 + $0x338] sm:$0xff] }
 0x2d1   : > { %2187 = vmatmul.f32.gmra.mxu0 %v6990_v23  ;;  %2210 = vmatmul.f32.gmra.mxu1 %v6990_v23  ;;  %v1586_v23 = vld [vmem:[#allocation4 + $0x150] sm:$0xff]  ;;  %v1572_v20 = vld [vmem:[#allocation4 + $0x78] sm:$0xff] }
 0x2d2   : > { %4368 = vmatpush.msk.msra.mxu0 %vm1746_vm15, %v9334_v25  ;;  %4384 = vmatpush.msk.msra.mxu1 %vm1747_vm11, %v9334_v25  ;;  %vm1732_vm15 = vcmp.eq.s32.totalorder %v1595_v53, %v7040_v56  ;;  %vm1733_vm11 = vcmp.eq.s32.totalorder %v1596_v54, %v7043_v22  ;;  %v1561_v53 = vld [vmem:[#allocation4 + $0x108] sm:$0xff]  ;;  %v1562_v54 = vld [vmem:[#allocation4 + $0x110] sm:$0xff] }
 0x2d3   : > { %4400 = vmatpush.msk.msra.mxu2 %vm1748_vm1, %v9334_v25  ;;  %4416 = vmatpush.msk.msra.mxu3 %vm1749_vm4, %v9334_v25  ;;  %vm1722_vm1 = vcmp.eq.s32.totalorder %v1585_v33, %v7028_v12  ;;  %vm1723_vm4 = vcmp.eq.s32.totalorder %v1586_v23, %v7031_v18  ;;  %v1563_v33 = vld [vmem:[#allocation4 + $0x90] sm:$0xff]  ;;  %v1564_v23 = vld [vmem:[#allocation4 + $0x318] sm:$0xff] }
 0x2d4   : > { %4369 = vmatpush.msk.msra.mxu0 %vm1738_vm0, %v9334_v25  ;;  %4385 = vmatpush.msk.msra.mxu1 %vm1739_vm12, %v9334_v25  ;;  %vm1724_vm0 = vcmp.eq.s32.totalorder %v1587_v4, %v7040_v56  ;;  %vm1725_vm12 = vcmp.eq.s32.totalorder %v1588_v3, %v7043_v22  ;;  %v1553_v4 = vld [vmem:[#allocation4 + $0x3a8] sm:$0xff]  ;;  %v1554_v3 = vld [vmem:[#allocation4 + $0xd0] sm:$0xff] }
 0x2d5   : > { %4401 = vmatpush.msk.msra.mxu2 %vm1740_vm2, %v9334_v25  ;;  %4417 = vmatpush.msk.msra.mxu3 %vm1741_vm3, %v9334_v25  ;;  %vm1714_vm2 = vcmp.eq.s32.totalorder %v1577_v21, %v7028_v12  ;;  %vm1715_vm3 = vcmp.eq.s32.totalorder %v1578_v15, %v7031_v18  ;;  %v1555_v21 = vld [vmem:[#allocation4 + $0x10] sm:$0xff]  ;;  %v1556_v15 = vld [vmem:[#allocation4 + $0x48] sm:$0xff] }
 0x2d6   : > { %4370 = vmatpush.msk.msra.mxu0 %vm1730_vm10, %v9334_v25  ;;  %4386 = vmatpush.msk.msra.mxu1 %vm1731_vm9, %v9334_v25  ;;  %vm1716_vm10 = vcmp.eq.s32.totalorder %v1579_v11, %v7040_v56  ;;  %vm1717_vm9 = vcmp.eq.s32.totalorder %v1580_v10, %v7043_v22  ;;  %v7250_v11 = vperm.slane %v7007_v38, 4  ;;  %v7253_v10 = vperm.slane %v7007_v38, 5 }
 0x2d7   : > { %4402 = vmatpush.msk.msra.mxu2 %vm1732_vm15, %v9334_v25  ;;  %4418 = vmatpush.msk.msra.mxu3 %vm1733_vm11, %v9334_v25  ;;  %vm1706_vm15 = vcmp.eq.s32.totalorder %v1569_v5, %v7028_v12  ;;  %vm1707_vm11 = vcmp.eq.s32.totalorder %v1570_v29, %v7031_v18  ;;  %v1677_v5 = vld [vmem:[#allocation4 + $0x170] sm:$0xff]  ;;  %v1678_v29 = vld [vmem:[#allocation4 + $0x218] sm:$0xff] }
 0x2d8   : > { %4371 = vmatpush.msk.msra.mxu0 %vm1722_vm1, %v9334_v25  ;;  %4387 = vmatpush.msk.msra.mxu1 %vm1723_vm4, %v9334_v25  ;;  %vm1708_vm1 = vcmp.eq.s32.totalorder %v1571_v17, %v7040_v56  ;;  %vm1709_vm4 = vcmp.eq.s32.totalorder %v1572_v20, %v7043_v22  ;;  %v7260_v17 = vperm.slane %v7007_v38, 6  ;;  %v7263_v20 = vperm.slane %v7007_v38, 7  ;;  %v1669_v38 = vld [vmem:[#allocation4 + $0x308] sm:$0xff] }
 0x2d9   : > { %4403 = vmatpush.msk.msra.mxu2 %vm1724_vm0, %v9334_v25  ;;  %4419 = vmatpush.msk.msra.mxu3 %vm1725_vm12, %v9334_v25  ;;  %vm1698_vm0 = vcmp.eq.s32.totalorder %v1561_v53, %v7028_v12  ;;  %vm1699_vm12 = vcmp.eq.s32.totalorder %v1562_v54, %v7031_v18  ;;  %v7271_v53 = vld [vmem:[#allocation3] sm:$0xff]  ;;  %v1679_v54 = vld [vmem:[#allocation4 + $0x290] sm:$0xff] }
 0x2da   : > { %4372 = vmatpush.msk.msra.mxu0 %vm1714_vm2, %v9334_v25  ;;  %4388 = vmatpush.msk.msra.mxu1 %vm1715_vm3, %v9334_v25  ;;  %vm1700_vm2 = vcmp.eq.s32.totalorder %v1563_v33, %v7040_v56  ;;  %vm1701_vm3 = vcmp.eq.s32.totalorder %v1564_v23, %v7043_v22  ;;  %v1663_v33 = vld [vmem:[#allocation4 + $0x2f8] sm:$0xff]  ;;  %v1664_v23 = vld [vmem:[#allocation4 + $0x188] sm:$0xff] }
 0x2db   : > { %4404 = vmatpush.msk.msra.mxu2 %vm1716_vm10, %v9334_v25  ;;  %4420 = vmatpush.msk.msra.mxu3 %vm1717_vm9, %v9334_v25  ;;  %vm1690_vm10 = vcmp.eq.s32.totalorder %v1553_v4, %v7028_v12  ;;  %vm1691_vm9 = vcmp.eq.s32.totalorder %v1554_v3, %v7031_v18  ;;  %v1661_v18 = vld [vmem:[#allocation4 + $0x370] sm:$0xff]  ;;  %v1662_v12 = vld [vmem:[#allocation4 + $0x3c0] sm:$0xff] }
 0x2dc   : > { %4373 = vmatpush.msk.msra.mxu0 %vm1706_vm15, %v9334_v25  ;;  %4389 = vmatpush.msk.msra.mxu1 %vm1707_vm11, %v9334_v25  ;;  %vm1692_vm15 = vcmp.eq.s32.totalorder %v1555_v21, %v7040_v56  ;;  %vm1693_vm11 = vcmp.eq.s32.totalorder %v1556_v15, %v7043_v22  ;;  %v1680_v21 = vld [vmem:[#allocation4 + $0x220] sm:$0xff]  ;;  %v1670_v15 = vld [vmem:[#allocation4 + $0x250] sm:$0xff] }
 0x2dd   : > { %4405 = vmatpush.msk.msra.mxu2 %vm1708_vm1, %v9334_v25  ;;  %4421 = vmatpush.msk.msra.mxu3 %vm1709_vm4, %v9334_v25  ;;  %vm1814_vm1 = vcmp.eq.s32.totalorder %v1677_v5, %v7250_v11  ;;  %vm1815_vm4 = vcmp.eq.s32.totalorder %v1678_v29, %v7253_v10  ;;  %v1671_v56 = vld [vmem:[#allocation4 + $0x240] sm:$0xff]  ;;  %v1655_v5 = vld [vmem:[#allocation4 + $0x2d0] sm:$0xff] }
 0x2de   : > { %4374 = vmatpush.msk.msra.mxu0 %vm1698_vm0, %v9334_v25  ;;  %4390 = vmatpush.msk.msra.mxu1 %vm1699_vm12, %v9334_v25  ;;  %v1672_v22 = vld [vmem:[#allocation4 + $0x60] sm:$0xff]  ;;  %vm1816_vm0 = vcmp.eq.s32.totalorder %v1679_v54, %v7260_v17  ;;  %vm1817_vm12 = vcmp.eq.s32.totalorder %v1680_v21, %v7263_v20  ;;  %v1646_v21 = vld [vmem:[#allocation4 + $0x270] sm:$0xff] }
 0x2df   : > { %4406 = vmatpush.msk.msra.mxu2 %vm1700_vm2, %v9334_v25  ;;  %4422 = vmatpush.msk.msra.mxu3 %vm1701_vm3, %v9334_v25  ;;  %vm1806_vm2 = vcmp.eq.s32.totalorder %v1669_v38, %v7250_v11  ;;  %vm1807_vm3 = vcmp.eq.s32.totalorder %v1670_v15, %v7253_v10  ;;  %v1653_v4 = vld [vmem:[#allocation4 + $0x320] sm:$0xff]  ;;  %v1648_v15 = vld [vmem:[#allocation4 + $0x30] sm:$0xff] }
 0x2e0   : > { %4375 = vmatpush.msk.msra.mxu0 %vm1690_vm10, %v9334_v25  ;;  %4391 = vmatpush.msk.msra.mxu1 %vm1691_vm9, %v9334_v25  ;;  %vm1808_vm10 = vcmp.eq.s32.totalorder %v1671_v56, %v7260_v17  ;;  %vm1809_vm9 = vcmp.eq.s32.totalorder %v1672_v22, %v7263_v20  ;;  %v1654_v3 = vld [vmem:[#allocation4 + $0x340] sm:$0xff]  ;;  %v1637_v56 = vld [vmem:[#allocation4 + $0x178] sm:$0xff] }
 0x2e1   : > { %4407 = vmatpush.msk.msra.mxu2 %vm1692_vm15, %v9334_v25  ;;  %4423 = vmatpush.msk.msra.mxu3 %vm1693_vm11, %v9334_v25  ;;  %vm1798_vm15 = vcmp.eq.s32.totalorder %v1661_v18, %v7250_v11  ;;  %vm1799_vm11 = vcmp.eq.s32.totalorder %v1662_v12, %v7253_v10  ;;  %v1656_v29 = vld [vmem:[#allocation4 + $0x140] sm:$0xff]  ;;  %v1640_v12 = vld [vmem:[#allocation4 + $0x1a8] sm:$0xff] }
 0x2e2   : > { %2277 = vmatmul.f32.vlgmr.msra.gmra.mxu0 %v7271_v53  ;;  %2297 = vmatmul.f32.vlgmr.msra.gmra.mxu1 %v7271_v53  ;;  %v1645_v54 = vld [vmem:[#allocation4 + $0x280] sm:$0xff] }
 0x2e3   : > { %2317 = vmatmul.f32.vlgmr.msra.gmra.mxu2 %v7271_v53  ;;  %2337 = vmatmul.f32.vlgmr.msra.gmra.mxu3 %v7271_v53  ;;  %v1647_v38 = vld [vmem:[#allocation4 + $0x2e0] sm:$0xff] }
 0x2e4   : > { %4424 = vmatpush.msk.msrb.mxu0 %vm1814_vm1, %v9334_v25  ;;  %4440 = vmatpush.msk.msrb.mxu1 %vm1815_vm4, %v9334_v25  ;;  %vm1800_vm1 = vcmp.eq.s32.totalorder %v1663_v33, %v7260_v17  ;;  %vm1801_vm4 = vcmp.eq.s32.totalorder %v1664_v23, %v7263_v20  ;;  %v1638_v22 = vld [vmem:[#allocation4 + $0x1c0] sm:$0xff]  ;;  %v1629_v33 = vld [vmem:[#allocation4 + $0x3d0] sm:$0xff]  ;;  %v1630_v23 = vld [vmem:[#allocation4 + $0x18] sm:$0xff] }
 0x2e5   : > { %4456 = vmatpush.msk.msrb.mxu2 %vm1816_vm0, %v9334_v25  ;;  %4472 = vmatpush.msk.msrb.mxu3 %vm1817_vm12, %v9334_v25  ;;  %vm1790_vm0 = vcmp.eq.s32.totalorder %v1653_v4, %v7250_v11  ;;  %vm1791_vm12 = vcmp.eq.s32.totalorder %v1654_v3, %v7253_v10  ;;  %v1639_v18 = vld [vmem:[#allocation4 + $0x1e0] sm:$0xff]  ;;  %v1631_v4 = vld [vmem:[#allocation4 + $0xf0] sm:$0xff] }
 0x2e6   : > { %4425 = vmatpush.msk.msrb.mxu0 %vm1806_vm2, %v9334_v25  ;;  %4441 = vmatpush.msk.msrb.mxu1 %vm1807_vm3, %v9334_v25  ;;  %vm1792_vm2 = vcmp.eq.s32.totalorder %v1655_v5, %v7260_v17  ;;  %vm1793_vm3 = vcmp.eq.s32.totalorder %v1656_v29, %v7263_v20  ;;  %v1632_v3 = vld [vmem:[#allocation4 + $0x190] sm:$0xff]  ;;  %v1621_v5 = vld [vmem:[#allocation4 + $0xe8] sm:$0xff] }
 0x2e7   : > { %4457 = vmatpush.msk.msrb.mxu2 %vm1808_vm10, %v9334_v25  ;;  %4473 = vmatpush.msk.msrb.mxu3 %vm1809_vm9, %v9334_v25  ;;  %vm1782_vm10 = vcmp.eq.s32.totalorder %v1645_v54, %v7250_v11  ;;  %vm1783_vm9 = vcmp.eq.s32.totalorder %v1646_v21, %v7253_v10  ;;  %v1622_v29 = vld [vmem:[#allocation4 + $0x310] sm:$0xff]  ;;  %v1623_v54 = vld [vmem:[#allocation4 + $0x248] sm:$0xff]  ;;  %v1624_v21 = vld [vmem:[#allocation4 + $0x3a0] sm:$0xff] }
 0x2e8   : > { %4426 = vmatpush.msk.msrb.mxu0 %vm1798_vm15, %v9334_v25  ;;  %4442 = vmatpush.msk.msrb.mxu1 %vm1799_vm11, %v9334_v25  ;;  %vm1784_vm15 = vcmp.eq.s32.totalorder %v1647_v38, %v7260_v17  ;;  %vm1785_vm11 = vcmp.eq.s32.totalorder %v1648_v15, %v7263_v20  ;;  %v1613_v38 = vld [vmem:[#allocation4 + $0x28] sm:$0xff]  ;;  %v1614_v15 = vld [vmem:[#allocation4 + $0x138] sm:$0xff] }
 0x2e9   : > { %4458 = vmatpush.msk.msrb.mxu2 %vm1800_vm1, %v9334_v25  ;;  %4474 = vmatpush.msk.msrb.mxu3 %vm1801_vm4, %v9334_v25  ;;  %vm1774_vm1 = vcmp.eq.s32.totalorder %v1637_v56, %v7250_v11  ;;  %vm1775_vm4 = vcmp.eq.s32.totalorder %v1638_v22, %v7253_v10  ;;  %v1615_v56 = vld [vmem:[#allocation4 + $0x2a0] sm:$0xff] }
 0x2ea   : > { %4427 = vmatpush.msk.msrb.mxu0 %vm1790_vm0, %v9334_v25  ;;  %4443 = vmatpush.msk.msrb.mxu1 %vm1791_vm12, %v9334_v25  ;;  %vm1776_vm0 = vcmp.eq.s32.totalorder %v1639_v18, %v7260_v17  ;;  %vm1777_vm12 = vcmp.eq.s32.totalorder %v1640_v12, %v7263_v20  ;;  %v1616_v22 = vld [vmem:[#allocation4 + $0x300] sm:$0xff]  ;;  %v2517_v18 = vld [vmem:[%s10283_s9 + $0x8] sm:$0x1]  ;;  %v1605_v12 = vld [vmem:[#allocation4 + $0xc8] sm:$0xff] }
 0x2eb   : > { %4459 = vmatpush.msk.msrb.mxu2 %vm1792_vm2, %v9334_v25  ;;  %4475 = vmatpush.msk.msrb.mxu3 %vm1793_vm3, %v9334_v25  ;;  %vm1766_vm2 = vcmp.eq.s32.totalorder %v1629_v33, %v7250_v11  ;;  %vm1767_vm3 = vcmp.eq.s32.totalorder %v1630_v23, %v7253_v10  ;;  %v1606_v33 = vld [vmem:[#allocation4 + $0x80] sm:$0xff]  ;;  %v9330_v23 = vmov 0  }
 0x2ec   : > { %4428 = vmatpush.msk.msrb.mxu0 %vm1782_vm10, %v9334_v25  ;;  %4444 = vmatpush.msk.msrb.mxu1 %vm1783_vm9, %v9334_v25  ;;  %vm1768_vm10 = vcmp.eq.s32.totalorder %v1631_v4, %v7260_v17  ;;  %vm1769_vm9 = vcmp.eq.s32.totalorder %v1632_v3, %v7263_v20  ;;  %v1607_v4 = vld [vmem:[#allocation4 + $0x2e8] sm:$0xff]  ;;  %v1608_v3 = vld [vmem:[#allocation4 + $0x350] sm:$0xff] }
 0x2ed   : > { %4460 = vmatpush.msk.msrb.mxu2 %vm1784_vm15, %v9334_v25  ;;  %4476 = vmatpush.msk.msrb.mxu3 %vm1785_vm11, %v9334_v25  ;;  %vm1758_vm15 = vcmp.eq.s32.totalorder %v1621_v5, %v7250_v11  ;;  %vm1759_vm11 = vcmp.eq.s32.totalorder %v1622_v29, %v7253_v10  ;;  %v1597_v5 = vld [vmem:[#allocation4 + $0x1d8] sm:$0xff]  ;;  %v1599_v29 = vld [vmem:[#allocation4 + $0x8] sm:$0xff] }
 0x2ee   : > { %4429 = vmatpush.msk.msrb.mxu0 %vm1774_vm1, %v9334_v25  ;;  %4445 = vmatpush.msk.msrb.mxu1 %vm1775_vm4, %v9334_v25  ;;  %vm1760_vm1 = vcmp.eq.s32.totalorder %v1623_v54, %v7260_v17  ;;  %vm1761_vm4 = vcmp.eq.s32.totalorder %v1624_v21, %v7263_v20  ;;  %v1589_v54 = vld [vmem:[#allocation4 + $0x3f0] sm:$0xff]  ;;  %v1590_v21 = vld [vmem:[#allocation4] sm:$0xff] }
 0x2ef   : > { %4461 = vmatpush.msk.msrb.mxu2 %vm1776_vm0, %v9334_v25  ;;  %4477 = vmatpush.msk.msrb.mxu3 %vm1777_vm12, %v9334_v25  ;;  %vm1750_vm0 = vcmp.eq.s32.totalorder %v1613_v38, %v7250_v11  ;;  %vm1751_vm12 = vcmp.eq.s32.totalorder %v1614_v15, %v7253_v10  ;;  %v1591_v38 = vld [vmem:[#allocation4 + $0x120] sm:$0xff]  ;;  %v1592_v15 = vld [vmem:[#allocation4 + $0x298] sm:$0xff] }
 0x2f0   : > { %4430 = vmatpush.msk.msrb.mxu0 %vm1766_vm2, %v9334_v25  ;;  %4446 = vmatpush.msk.msrb.mxu1 %vm1767_vm3, %v9334_v25  ;;  %vm1752_vm2 = vcmp.eq.s32.totalorder %v1615_v56, %v7260_v17  ;;  %vm1753_vm3 = vcmp.eq.s32.totalorder %v1616_v22, %v7263_v20  ;;  %v1581_v56 = vld [vmem:[#allocation4 + $0xb8] sm:$0xff] }
 0x2f1   : > { %4462 = vmatpush.msk.msrb.mxu2 %vm1768_vm10, %v9334_v25  ;;  %4478 = vmatpush.msk.msrb.mxu3 %vm1769_vm9, %v9334_v25  ;;  %vm1742_vm10 = vcmp.eq.s32.totalorder %v1605_v12, %v7250_v11  ;;  %vm1743_vm9 = vcmp.eq.s32.totalorder %v1606_v33, %v7253_v10  ;;  %v1582_v22 = vld [vmem:[#allocation4 + $0x1b8] sm:$0xff]  ;;  %v1573_v12 = vld [vmem:[#allocation4 + $0x1a0] sm:$0xff]  ;;  %v2516_v33 = vld [vmem:[%s10283_s9] sm:$0xff] }
 0x2f2   : > { %4896 = vset.pattern.permute.xlu0 %v9330_v23  ;;  %4431 = vmatpush.msk.msrb.mxu0 %vm1758_vm15, %v9334_v25  ;;  %v1598_v23 = vld [vmem:[#allocation4 + $0x1e8] sm:$0xff]  ;;  %vm1744_vm15 = vcmp.eq.s32.totalorder %v1607_v4, %v7260_v17  ;;  %v1575_v4 = vld [vmem:[#allocation4 + $0x160] sm:$0xff] }
 0x2f3   : > { %4447 = vmatpush.msk.msrb.mxu1 %vm1759_vm11, %v9334_v25  ;;  %4463 = vmatpush.msk.msrb.mxu2 %vm1760_vm1, %v9334_v25  ;;  %vm1745_vm11 = vcmp.eq.s32.totalorder %v1608_v3, %v7263_v20  ;;  %vm1734_vm1 = vcmp.eq.s32.totalorder %v1597_v5, %v7250_v11  ;;  %v1576_v3 = vld [vmem:[#allocation4 + $0x3e0] sm:$0xff]  ;;  %v1565_v5 = vld [vmem:[#allocation4 + $0x148] sm:$0xff] }
 0x2f4   : > { %4479 = vmatpush.msk.msrb.mxu3 %vm1761_vm4, %v9334_v25  ;;  %2525 = vperm.xlu0 %4896, %v2517_v18   ;;  %vm1735_vm4 = vcmp.eq.s32.totalorder %v1598_v23, %v7253_v10  ;;  %v1583_v18 = vld [vmem:[#allocation4 + $0x278] sm:$0xff]  ;;  %v1574_v23 = vld [vmem:[#allocation4 + $0x1b0] sm:$0xff] }
 0x2f5   : > { %4432 = vmatpush.msk.msrb.mxu0 %vm1750_vm0, %v9334_v25  ;;  %4448 = vmatpush.msk.msrb.mxu1 %vm1751_vm12, %v9334_v25  ;;  %vm1736_vm0 = vcmp.eq.s32.totalorder %v1599_v29, %v7260_v17  ;;  %vm1737_vm12 = vcmp.eq.s32.totalorder %v1600_v14, %v7263_v20  ;;  %v1584_v14 = vld [vmem:[#allocation4 + $0xf8] sm:$0xff]  ;;  %v1566_v29 = vld [vmem:[#allocation4 + $0x100] sm:$0xff] }
 0x2f6   : > { %4464 = vmatpush.msk.msrb.mxu2 %vm1752_vm2, %v9334_v25  ;;  %4480 = vmatpush.msk.msrb.mxu3 %vm1753_vm3, %v9334_v25  ;;  %vm1726_vm2 = vcmp.eq.s32.totalorder %v1589_v54, %v7250_v11  ;;  %vm1727_vm3 = vcmp.eq.s32.totalorder %v1590_v21, %v7253_v10  ;;  %v1567_v54 = vld [vmem:[#allocation4 + $0x58] sm:$0xff] }
 0x2f7   : > { %4433 = vmatpush.msk.msrb.mxu0 %vm1742_vm10, %v9334_v25  ;;  %4449 = vmatpush.msk.msrb.mxu1 %vm1743_vm9, %v9334_v25  ;;  %vm1728_vm10 = vcmp.eq.s32.totalorder %v1591_v38, %v7260_v17  ;;  %vm1729_vm9 = vcmp.eq.s32.totalorder %v1592_v15, %v7263_v20  ;;  %v1568_v21 = vld [vmem:[#allocation4 + $0x2d8] sm:$0xff]  ;;  %v1557_v38 = vld [vmem:[#allocation4 + $0x360] sm:$0xff]  ;;  %v1558_v15 = vld [vmem:[#allocation4 + $0x328] sm:$0xff] }
 0x2f8   : > { %4465 = vmatpush.msk.msrb.mxu2 %vm1744_vm15, %v9334_v25  ;;  %4481 = vmatpush.msk.msrb.mxu3 %vm1745_vm11, %v9334_v25  ;;  %vm1718_vm15 = vcmp.eq.s32.totalorder %v1581_v56, %v7250_v11  ;;  %vm1719_vm11 = vcmp.eq.s32.totalorder %v1582_v22, %v7253_v10  ;;  %v1559_v56 = vld [vmem:[#allocation4 + $0x40] sm:$0xff]  ;;  %v1560_v22 = vld [vmem:[#allocation4 + $0x378] sm:$0xff] }
 0x2f9   : > { %4434 = vmatpush.msk.msrb.mxu0 %vm1734_vm1, %v9334_v25  ;;  %4450 = vmatpush.msk.msrb.mxu1 %vm1735_vm4, %v9334_v25  ;;  %vm1720_vm1 = vcmp.eq.s32.totalorder %v1583_v18, %v7260_v17  ;;  %vm1721_vm4 = vcmp.eq.s32.totalorder %v1584_v14, %v7263_v20 }
 0x2fa   : > { %4466 = vmatpush.msk.msrb.mxu2 %vm1736_vm0, %v9334_v25  ;;  %4482 = vmatpush.msk.msrb.mxu3 %vm1737_vm12, %v9334_v25  ;;  %vm1710_vm0 = vcmp.eq.s32.totalorder %v1573_v12, %v7250_v11  ;;  %vm1711_vm12 = vcmp.eq.s32.totalorder %v1574_v23, %v7253_v10 }
 0x2fb   : > { %4435 = vmatpush.msk.msrb.mxu0 %vm1726_vm2, %v9334_v25  ;;  %4451 = vmatpush.msk.msrb.mxu1 %vm1727_vm3, %v9334_v25  ;;  %vm1712_vm2 = vcmp.eq.s32.totalorder %v1575_v4, %v7260_v17  ;;  %vm1713_vm3 = vcmp.eq.s32.totalorder %v1576_v3, %v7263_v20 }
 0x2fc   : > { %4467 = vmatpush.msk.msrb.mxu2 %vm1728_vm10, %v9334_v25  ;;  %4483 = vmatpush.msk.msrb.mxu3 %vm1729_vm9, %v9334_v25  ;;  %vm1702_vm10 = vcmp.eq.s32.totalorder %v1565_v5, %v7250_v11  ;;  %vm1703_vm9 = vcmp.eq.s32.totalorder %v1566_v29, %v7253_v10 }
 0x2fd   : > { %2520 = vperm.xlu0 %4896, %v2516_v33   ;;  %4436 = vmatpush.msk.msrb.mxu0 %vm1718_vm15, %v9334_v25  ;;  %vm1704_vm15 = vcmp.eq.s32.totalorder %v1567_v54, %v7260_v17 }
 0x2fe   : > { %4452 = vmatpush.msk.msrb.mxu1 %vm1719_vm11, %v9334_v25  ;;  %4468 = vmatpush.msk.msrb.mxu2 %vm1720_vm1, %v9334_v25  ;;  %vm1705_vm11 = vcmp.eq.s32.totalorder %v1568_v21, %v7263_v20  ;;  %vm1694_vm1 = vcmp.eq.s32.totalorder %v1557_v38, %v7250_v11  ;;  %v10284_v11 = vmov 0  }
 0x2ff   : > { %4484 = vmatpush.msk.msrb.mxu3 %vm1721_vm4, %v9334_v25  ;;  %4437 = vmatpush.msk.msrb.mxu0 %vm1710_vm0, %v9334_v25  ;;  %vm1695_vm4 = vcmp.eq.s32.totalorder %v1558_v15, %v7253_v10  ;;  %vm1696_vm0 = vcmp.eq.s32.totalorder %v1559_v56, %v7260_v17 }
 0x300   : > { %4453 = vmatpush.msk.msrb.mxu1 %vm1711_vm12, %v9334_v25  ;;  %4469 = vmatpush.msk.msrb.mxu2 %vm1712_vm2, %v9334_v25  ;;  %vm1697_vm12 = vcmp.eq.s32.totalorder %v1560_v22, %v7263_v20  ;;  %vm9346_vm2 = vcmask 1040384  }
 0x301   : > { %4485 = vmatpush.msk.msrb.mxu3 %vm1713_vm3, %v9334_v25  ;;  %4438 = vmatpush.msk.msrb.mxu0 %vm1702_vm10, %v9334_v25 }
 0x302   : > { %4454 = vmatpush.msk.msrb.mxu1 %vm1703_vm9, %v9334_v25  ;;  %4470 = vmatpush.msk.msrb.mxu2 %vm1704_vm15, %v9334_v25  ;;  %vm9345_vm9 = vcmask 1042434  }
 0x303   : > { %4486 = vmatpush.msk.msrb.mxu3 %vm1705_vm11, %v9334_v25  ;;  %4439 = vmatpush.msk.msrb.mxu0 %vm1694_vm1, %v9334_v25  ;;  %vm9338_vm1 = vcmask 1041408  }
 0x304   : > { %4455 = vmatpush.msk.msrb.mxu1 %vm1695_vm4, %v9334_v25  ;;  %4471 = vmatpush.msk.msrb.mxu2 %vm1696_vm0, %v9334_v25  ;;  %vm9344_vm4 = vcmask 1044484  }
 0x305   : > { %4487 = vmatpush.msk.msrb.mxu3 %vm1697_vm12, %v9334_v25  ;;  %2357 = vmatmul.f32.vlgmr.msrb.gmra.mxu0 %v7271_v53 }
 0x306   : > { %2377 = vmatmul.f32.vlgmr.msrb.gmra.mxu1 %v7271_v53  ;;  %2397 = vmatmul.f32.vlgmr.msrb.gmra.mxu2 %v7271_v53 }
 0x307   : > { %2417 = vmatmul.f32.vlgmr.msrb.gmra.mxu3 %v7271_v53  ;;  %4897 = vset.pattern.permute.xlu1 %v10284_v11 }
 0x308   : > { %4898 = vset.pattern.permute.xlu2 %v10284_v11 }
 0x32d   : > { %v7500_v10 = vpop.f32.mrf.mxu2  ;;  %v7502_v17 = vpop.f32.mrf.mxu3 }
 0x32e   : > { %v2093_v20 = vpop.f32.mrf.mxu0  ;;  %v2116_v18 = vpop.f32.mrf.mxu1 }
 0x337   : > { %v2142_v14 = vpop.f32.mrf.mxu2  ;;  %v2165_v12 = vpop.f32.mrf.mxu3 }
 0x338   : > { %v2096_v33 = vpop.f32.mrf.mxu0  ;;  %v2119_v23 = vpop.f32.mrf.mxu1  ;;  %vm2423_vm3 = vcmp.gt.f32.partialorder %v2142_v14, 0.0  ;;  %vm2424_vm10 = vcmp.gt.f32.partialorder %v2165_v12, 0.0 }
 0x339   : > { %vm2421_vm15 = vcmp.gt.f32.partialorder %v2096_v33, 0.0  ;;  %vm2422_vm11 = vcmp.gt.f32.partialorder %v2119_v23, 0.0  ;;  %v2431_v53 = vsel %vm2423_vm3, %v2142_v14, 1.0  ;;  %v2432_v4 = vsel %vm2424_vm10, %v2165_v12, 1.0  ;;  %v2753_v12 = vld [vmem:[%s10285_s30 + $0x8] sm:$0x1] }
 0x33a   : > { %v2429_v3 = vsel %vm2421_vm15, %v2096_v33, 1.0  ;;  %v2430_v5 = vsel %vm2422_vm11, %v2119_v23, 1.0  ;;  %v2446_v29 = vrot.slane %v2431_v53, 6  ;;  %v2447_v54 = vrot.slane %v2432_v4, 5  ;;  %2761 = vperm.xlu1 %4897, %v2753_v12  }
 0x33b   : > { %v2445_v21 = vrot.slane %v2430_v5, 7  ;;  %vm9343_vm3 = vcmask 1046534   ;;  %vm9342_vm11 = vcmask 1045508  }
 0x33c   : > { %v2455_v38 = vsel %vm9345_vm9, %v2446_v29, %v2447_v54  ;;  %vm10296_vm9 = vnez %v9827_v8  ;;  %v10380_v8 = vld [vmem:[#allocation34_spill] sm:$0xff] }
 0x33d   : > { %v2453_v15 = vsel %vm9346_vm2, %v2429_v3, %v2445_v21  ;;  %vm10297_vm2 = vnez %v9776_v58  ;;  %v10410_v58 = vld [vmem:[#allocation111_spill] sm:$0xff] }
 0x33e   : > { %v2457_v56 = vsel %vm9338_vm1, %v2453_v15, %v2455_v38  ;;  %v2752_v15 = vld [vmem:[%s10285_s30] sm:$0xff]  ;;  %vm9341_vm1 = vcmask 1043456  }
 0x342   : > { %2756 = vperm.xlu1 %4897, %v2752_v15   ;;  %v7541_v15 = vld [vmem:[%s10286_s27 + $0x8] sm:$0x1] }
 0x343   : > { %v7507_v22 = vpop.f32.mrf.mxu2  ;;  %v7509_v11 = vpop.f32.mrf.mxu3 }
 0x344   : > { %v7511_v25 = vpop.f32.mrf.mxu0  ;;  %v7513_v14 = vpop.f32.mrf.mxu1 }
 0x34d   : > { %v2234_v33 = vpop.f32.mrf.mxu2  ;;  %v2257_v23 = vpop.f32.mrf.mxu3 }
 0x34e   : > { %v2188_v53 = vpop.f32.mrf.mxu0  ;;  %v2211_v4 = vpop.f32.mrf.mxu1  ;;  %vm2427_vm0 = vcmp.gt.f32.partialorder %v2234_v33, 0.0  ;;  %vm2428_vm12 = vcmp.gt.f32.partialorder %v2257_v23, 0.0 }
 0x34f   : > { %vm2425_vm10 = vcmp.gt.f32.partialorder %v2188_v53, 0.0  ;;  %vm2426_vm15 = vcmp.gt.f32.partialorder %v2211_v4, 0.0  ;;  %v2435_v3 = vsel %vm2427_vm0, %v2234_v33, 1.0  ;;  %v2436_v5 = vsel %vm2428_vm12, %v2257_v23, 1.0 }
 0x350   : > { %v2433_v29 = vsel %vm2425_vm10, %v2188_v53, 1.0  ;;  %v2434_v54 = vsel %vm2426_vm15, %v2211_v4, 1.0  ;;  %v2450_v21 = vrot.slane %v2435_v3, 2  ;;  %v2451_v38 = vrot.slane %v2436_v5, 1 }
 0x351   : > { %v2448_v12 = vrot.slane %v2433_v29, 4  ;;  %v2449_v37 = vrot.slane %v2434_v54, 3  ;;  %v7530_v54 = vld [vmem:[%s10286_s27] sm:$0xff]  ;;  %vm9347_vm10 = vcmask 64512  }
 0x352   : > { %v2461_v13 = vsel %vm9343_vm3, %v2450_v21, %v2451_v38  ;;  %vm10294_vm3 = vnez %v9854_v39  ;;  %v10370_v39 = vld [vmem:[#allocation152_spill] sm:$0xff] }
 0x353   : > { %v2459_v31 = vsel %vm9344_vm4, %v2448_v12, %v2449_v37  ;;  %vm10295_vm4 = vnez %v9773_v43  ;;  %v10424_v43 = vld [vmem:[#allocation114_spill] sm:$0xff] }
 0x354   : > { %v2463_v33 = vsel %vm9342_vm11, %v2459_v31, %v2461_v13  ;;  %vm10293_vm11 = vnez %v9800_v60  ;;  %v10480_v60 = vld [vmem:[#allocation62_spill] sm:$0xff] }
 0x355   : > { %v7525_v23 = vsel %vm9341_vm1, %v2457_v56, %v2463_v33  ;;  %v2828_v33 = vld [vmem:[%s10287_s26] sm:$0xff] }
 0x356   : > { %4899 = vrcp.f32 %v7525_v23 }
 0x35c   : > { %v4900_v55 = vpop.eup %4899 }
 0x35f   : > { %v2278_v53 = vpop.f32.mrf.mxu0  ;;  %v2298_v4 = vpop.f32.mrf.mxu1 }
 0x360   : > { %v2482_v3 = vadd.f32 %v2278_v53, %v2093_v20  ;;  %v2483_v5 = vadd.f32 %v2298_v4, %v2116_v18 }
 0x362   : > { %vm2490_vm0 = vcmp.gt.f32.partialorder %v2482_v3, 0.0  ;;  %v2498_v36 = vmul.f32 0.1, %v2482_v3  ;;  %vm2491_vm12 = vcmp.gt.f32.partialorder %v2483_v5, 0.0  ;;  %v2499_v29 = vmul.f32 0.1, %v2483_v5 }
 0x364   : > { %v2506_v37 = vsel %vm2490_vm0, %v2482_v3, %v2498_v36  ;;  %v2507_v21 = vsel %vm2491_vm12, %v2483_v5, %v2499_v29 }
 0x365   : > { %2583 = vmatpush.msra.mxu0 %v2506_v37  ;;  %2606 = vmatpush.msra.mxu1 %v2507_v21 }
 0x366   : > { %v2318_v13 = vpop.f32.mrf.mxu2  ;;  %4488 = vmatmul.msk.f32.vlgmr.msra.gmra.mxu0 %vm9347_vm10, %v7530_v54  ;;  %4490 = vmatmul.msk.f32.vlgmr.msra.gmra.mxu1 %vm9347_vm10, %v7530_v54  ;;  %v2338_v20 = vpop.f32.mrf.mxu3 }
 0x367   : > { %v2484_v31 = vadd.f32 %v2318_v13, %v7500_v10  ;;  %v2485_v18 = vadd.f32 %v2338_v20, %v7502_v17  ;;  %v2829_v10 = vld [vmem:[%s10287_s26 + $0x8] sm:$0x1]  ;;  %v2920_v17 = vld [vmem:[#allocation6] sm:$0x1] }
 0x368   : > { %2837 = vperm.xlu2 %4898, %v2829_v10   ;;  %2923 = vperm.xlu0 %4896, %v2920_v17   ;;  %v10332_v10 = vld [vmem:[#allocation82_spill] sm:$0xff]  ;;  %v10334_v17 = vld [vmem:[#allocation55_spill] sm:$0xff] }
 0x369   : > { %vm2492_vm15 = vcmp.gt.f32.partialorder %v2484_v31, 0.0  ;;  %v2500_v56 = vmul.f32 0.1, %v2484_v31  ;;  %vm2493_vm1 = vcmp.gt.f32.partialorder %v2485_v18, 0.0  ;;  %v2501_v38 = vmul.f32 0.1, %v2485_v18 }
 0x36b   : > { %v2508_v36 = vsel %vm2492_vm15, %v2484_v31, %v2500_v56  ;;  %v2509_v12 = vsel %vm2493_vm1, %v2485_v18, %v2501_v38 }
 0x36c   : > { %2629 = vmatpush.msra.mxu2 %v2508_v36  ;;  %2652 = vmatpush.msra.mxu3 %v2509_v12  ;;  %v10326_v36 = vld [vmem:[#allocation63_spill] sm:$0xff]  ;;  %v10330_v12 = vld [vmem:[#allocation64_spill] sm:$0xff] }
 0x36d   : > { %4492 = vmatmul.msk.f32.vlgmr.msra.gmra.mxu2 %vm9347_vm10, %v7530_v54  ;;  %4494 = vmatmul.msk.f32.vlgmr.msra.gmra.mxu3 %vm9347_vm10, %v7530_v54 }
 0x36e   : > { %4489 = vmatmul.msk.f32.gmra.mxu0 %vm9347_vm10, %v7541_v15  ;;  %4491 = vmatmul.msk.f32.gmra.mxu1 %vm9347_vm10, %v7541_v15 }
 0x370   : > { %2832 = vperm.xlu2 %4898, %v2828_v33   ;;  %v10336_v33 = vld [vmem:[#allocation73_spill] sm:$0xff] }
 0x375   : > { %4493 = vmatmul.msk.f32.gmra.mxu2 %vm9347_vm10, %v7541_v15  ;;  %4495 = vmatmul.msk.f32.gmra.mxu3 %vm9347_vm10, %v7541_v15 }
 0x382   : > { %v2358_v53 = vpop.f32.mrf.mxu0 }
 0x383   : > { %v2486_v4 = vadd.f32 %v2358_v53, %v7511_v25  ;;  %v2378_v3 = vpop.f32.mrf.mxu1  ;;  %v10288_v25 = vmov 1.0   ;;  %v10338_v53 = vld [vmem:[#allocation56_spill] sm:$0xff] }
 0x384   : > { %v2487_v5 = vadd.f32 %v2378_v3, %v7513_v14  ;;  %v10342_v3 = vld [vmem:[#allocation47_spill] sm:$0xff] }
 0x385   : > { %vm2494_vm1 = vcmp.gt.f32.partialorder %v2486_v4, 0.0  ;;  %v2502_v29 = vmul.f32 0.1, %v2486_v4 }
 0x386   : > { %vm2495_vm0 = vcmp.gt.f32.partialorder %v2487_v5, 0.0  ;;  %v2503_v37 = vmul.f32 0.1, %v2487_v5 }
 0x387   : > { %v2510_v21 = vsel %vm2494_vm1, %v2486_v4, %v2502_v29  ;;  %vm10289_vm1 = vnez %v9875_v32  ;;  %v10340_v4 = vld [vmem:[#allocation74_spill] sm:$0xff]  ;;  %v10346_v29 = vld [vmem:[#allocation48_spill] sm:$0xff] }
 0x388   : > { %2675 = vmatpush.msrb.mxu0 %v2510_v21  ;;  %v2511_v13 = vsel %vm2495_vm0, %v2487_v5, %v2503_v37  ;;  %vm10290_vm0 = vnez %v9878_v16  ;;  %v10344_v5 = vld [vmem:[#allocation65_spill] sm:$0xff]  ;;  %v10348_v37 = vld [vmem:[#allocation66_spill] sm:$0xff]  ;;  %v10350_v21 = vld [vmem:[#allocation39_spill] sm:$0xff] }
 0x389   : > { %v2398_v31 = vpop.f32.mrf.mxu2  ;;  %2698 = vmatpush.msrb.mxu1 %v2511_v13  ;;  %4496 = vmatmul.msk.f32.vlgmr.msrb.gmra.mxu0 %vm9347_vm10, %v7530_v54  ;;  %v10352_v13 = vld [vmem:[#allocation57_spill] sm:$0xff]  ;;  %v10438_v32 = vld [vmem:[#allocation92_spill] sm:$0xff] }
 0x38a   : > { %v2488_v20 = vadd.f32 %v2398_v31, %v7507_v22  ;;  %v2418_v18 = vpop.f32.mrf.mxu3  ;;  %4498 = vmatmul.msk.f32.vlgmr.msrb.gmra.mxu1 %vm9347_vm10, %v7530_v54  ;;  %4504 = vmatpush.msk.msra.mxu0 %vm6227_vm13, %v10288_v25  ;;  %vm10316_vm13 = vnez %v9735_v9  ;;  %v10354_v31 = vld [vmem:[#allocation40_spill] sm:$0xff]  ;;  %v10420_v16 = vld [vmem:[#allocation113_spill] sm:$0xff] }
 0x38b   : > { %v2489_v14 = vadd.f32 %v2418_v18, %v7509_v11  ;;  %4520 = vmatpush.msk.msra.mxu1 %vm6232_vm14, %v10288_v25  ;;  %vm10315_vm14 = vnez %v9684_v62  ;;  %v10358_v18 = vld [vmem:[#allocation31_spill] sm:$0xff] }
 0x38c   : > { %vm2496_vm12 = vcmp.gt.f32.partialorder %v2488_v20, 0.0  ;;  %v2504_v56 = vmul.f32 0.1, %v2488_v20  ;;  %4505 = vmatpush.msk.msra.mxu0 %vm6187_vm5, %v10288_v25 }
 0x38d   : > { %vm2497_vm15 = vcmp.gt.f32.partialorder %v2489_v14, 0.0  ;;  %v2505_v22 = vmul.f32 0.1, %v2489_v14  ;;  %4521 = vmatpush.msk.msra.mxu1 %vm6192_vm6, %v10288_v25  ;;  %vm10301_vm6 = vnez %v9752_v1  ;;  %v2468_v1 = vmul.f32 %v4900_v55, %v7525_v23 }
 0x38e   : > { %v2512_v38 = vsel %vm2496_vm12, %v2488_v20, %v2504_v56  ;;  %4506 = vmatpush.msk.msra.mxu0 %vm10083_vm7, %v10288_v25  ;;  %vm10291_vm12 = vnez %v9797_v30  ;;  %vm10307_vm7 = vnez %v9731_v48  ;;  %v10356_v20 = vld [vmem:[#allocation58_spill] sm:$0xff]  ;;  %v10362_v56 = vld [vmem:[#allocation32_spill] sm:$0xff]  ;;  %v10484_v30 = vld [vmem:[#allocation53_spill] sm:$0xff] }
 0x38f   : > { %2721 = vmatpush.msrb.mxu2 %v2512_v38  ;;  %v2513_v11 = vsel %vm2497_vm15, %v2489_v14, %v2505_v22  ;;  %4522 = vmatpush.msk.msra.mxu1 %vm10084_vm8, %v10288_v25  ;;  %vm10292_vm15 = vnez %v9851_v7  ;;  %vm10305_vm8 = vnez %v9729_v46  ;;  %v10360_v14 = vld [vmem:[#allocation49_spill] sm:$0xff]  ;;  %v10364_v22 = vld [vmem:[#allocation50_spill] sm:$0xff]  ;;  %v10366_v38 = vld [vmem:[#allocation151_spill] sm:$0xff] }
 0x390   : > { %2744 = vmatpush.msrb.mxu3 %v2513_v11  ;;  %4500 = vmatmul.msk.f32.vlgmr.msrb.gmra.mxu2 %vm9347_vm10, %v7530_v54  ;;  %v10368_v11 = vld [vmem:[#allocation41_spill] sm:$0xff]  ;;  %v10374_v7 = vld [vmem:[#allocation143_spill] sm:$0xff] }
 0x391   : > { %4502 = vmatmul.msk.f32.vlgmr.msrb.gmra.mxu3 %vm9347_vm10, %v7530_v54  ;;  %4497 = vmatmul.msk.f32.gmra.mxu0 %vm9347_vm10, %v7541_v15  ;;  %v10324_v54 = vld [vmem:[#allocation90_spill] sm:$0xff] }
 0x392   : > { %4499 = vmatmul.msk.f32.gmra.mxu1 %vm9347_vm10, %v7541_v15  ;;  %4536 = vmatpush.msk.msra.mxu2 %vm10289_vm1, %v10288_v25  ;;  %vm10298_vm10 = vnez %v9830_v49  ;;  %vm10313_vm1 = vnez %v9681_v27  ;;  %v10372_v49 = vld [vmem:[#allocation42_spill] sm:$0xff] }
 0x393   : > { %4552 = vmatpush.msk.msra.mxu3 %vm10290_vm0, %v10288_v25  ;;  %4507 = vmatpush.msk.msra.mxu0 %vm10291_vm12, %v10288_v25  ;;  %vm10310_vm0 = vnez %v9755_v34  ;;  %vm10333_vm12 = vnez %v10332_v10  ;;  %v10444_v34 = vld [vmem:[#allocation93_spill] sm:$0xff]  ;;  %v10500_v27 = vld [vmem:[#allocation38_spill] sm:$0xff] }
 0x394   : > { %4537 = vmatpush.msk.msra.mxu2 %vm10292_vm15, %v10288_v25  ;;  %4523 = vmatpush.msk.msra.mxu1 %vm10293_vm11, %v10288_v25  ;;  %vm10299_vm15 = vnez %v9749_v2  ;;  %vm10331_vm11 = vnez %v10330_v12  ;;  %v10456_v2 = vld [vmem:[#allocation86_spill] sm:$0xff] }
 0x395   : > { %4553 = vmatpush.msk.msra.mxu3 %vm10294_vm3, %v10288_v25  ;;  %4508 = vmatpush.msk.msra.mxu0 %vm10295_vm4, %v10288_v25  ;;  %vm10300_vm3 = vcmask 64512   ;;  %vm10311_vm4 = vnez %v9708_v59  ;;  %v2469_v59 = vsub.f32 1.0, %v2468_v1  ;;  %v10482_v1 = vld [vmem:[#allocation43_spill] sm:$0xff] }
 0x396   : > { %4538 = vmatpush.msk.msra.mxu2 %vm10296_vm9, %v10288_v25  ;;  %4524 = vmatpush.msk.msra.mxu1 %vm10297_vm2, %v10288_v25  ;;  %vm10302_vm5 = vmmov %vm10300_vm3  ;;  %vm10303_vm9 = vnez %v9803_v50  ;;  %vm10309_vm2 = vnez %v9705_v6  ;;  %v10472_v6 = vld [vmem:[#allocation70_spill] sm:$0xff]  ;;  %v10478_v50 = vld [vmem:[#allocation52_spill] sm:$0xff] }
 0x397   : > { %4554 = vmatpush.msk.msra.mxu3 %vm10298_vm10, %v10288_v25  ;;  %4509 = vmatpush.msk.msra.mxu0 %vm10299_vm15, %v10288_v25  ;;  %vm10304_vm10 = vnez %v9806_v40  ;;  %vm10320_vm15 = vnez %v9714_v52  ;;  %v10452_v52 = vld [vmem:[#allocation85_spill] sm:$0xff]  ;;  %v10466_v40 = vld [vmem:[#allocation59_spill] sm:$0xff] }
 0x398   : > { %4501 = vmatmul.msk.f32.gmra.mxu2 %vm10300_vm3, %v7541_v15  ;;  %4525 = vmatpush.msk.msra.mxu1 %vm10301_vm6, %v10288_v25  ;;  %vm10306_vm3 = vnez %v9779_v51  ;;  %vm10319_vm6 = vnez %v9660_v45  ;;  %v10406_v51 = vld [vmem:[#allocation120_spill] sm:$0xff] }
 0x399   : > { %4503 = vmatmul.msk.f32.gmra.mxu3 %vm10302_vm5, %v7541_v15  ;;  %4539 = vmatpush.msk.msra.mxu2 %vm10303_vm9, %v10288_v25  ;;  %vm10308_vm5 = vnez %v9782_v44  ;;  %vm10327_vm9 = vnez %v10326_v36  ;;  %v10328_v15 = vld [vmem:[#allocation81_spill] sm:$0xff] }
 0x39a   : > { %4555 = vmatpush.msk.msra.mxu3 %vm10304_vm10, %v10288_v25  ;;  %4510 = vmatpush.msk.msra.mxu0 %vm10305_vm8, %v10288_v25  ;;  %vm10321_vm10 = vnez %v9633_v47  ;;  %vm10367_vm8 = vnez %v10366_v38  ;;  %v10382_v44 = vld [vmem:[#allocation153_spill] sm:$0xff]  ;;  %v10416_v38 = vld [vmem:[#allocation122_spill] sm:$0xff] }
 0x39b   : > { %4540 = vmatpush.msk.msra.mxu2 %vm10306_vm3, %v10288_v25  ;;  %4526 = vmatpush.msk.msra.mxu1 %vm10307_vm7, %v10288_v25  ;;  %vm10312_vm3 = vnez %v9758_v26  ;;  %vm10363_vm7 = vnez %v10362_v56  ;;  %v10434_v26 = vld [vmem:[#allocation91_spill] sm:$0xff] }
 0x39c   : > { %4556 = vmatpush.msk.msra.mxu3 %vm10308_vm5, %v10288_v25  ;;  %4511 = vmatpush.msk.msra.mxu0 %vm10309_vm2, %v10288_v25  ;;  %vm10314_vm5 = vnez %v9733_v35  ;;  %vm10323_vm2 = vnez %v9636_v0 }
 0x39d   : > { %4541 = vmatpush.msk.msra.mxu2 %vm10310_vm0, %v10288_v25  ;;  %4527 = vmatpush.msk.msra.mxu1 %vm10311_vm4, %v10288_v25  ;;  %vm10317_vm0 = vnez %v9657_v63  ;;  %vm10322_vm4 = vnez %v9687_v28  ;;  %v10498_v28 = vld [vmem:[#allocation37_spill] sm:$0xff] }
 0x39e   : > { %4557 = vmatpush.msk.msra.mxu3 %vm10312_vm3, %v10288_v25  ;;  %4512 = vmatpush.msk.msra.mxu0 %vm10313_vm1, %v10288_v25  ;;  %vm10318_vm3 = vnez %v9711_v19  ;;  %vm10341_vm1 = vnez %v10340_v4  ;;  %v10462_v19 = vld [vmem:[#allocation68_spill] sm:$0xff] }
 0x39f   : > { %4542 = vmatpush.msk.msra.mxu2 %vm10314_vm5, %v10288_v25  ;;  %4528 = vmatpush.msk.msra.mxu1 %vm10315_vm14, %v10288_v25  ;;  %vm10339_vm14 = vnez %v10338_v53  ;;  %vm10351_vm5 = vnez %v10350_v21 }
 0x3a0   : > { %4558 = vmatpush.msk.msra.mxu3 %vm10316_vm13, %v10288_v25  ;;  %4513 = vmatpush.msk.msra.mxu0 %vm10317_vm0, %v10288_v25  ;;  %vm10347_vm13 = vnez %v10346_v29 }
 0x3a1   : > { %4543 = vmatpush.msk.msra.mxu2 %vm10318_vm3, %v10288_v25  ;;  %4529 = vmatpush.msk.msra.mxu1 %vm10319_vm6, %v10288_v25  ;;  %vm10325_vm3 = vnez %v10324_v54  ;;  %v10486_v54 = vld [vmem:[#allocation44_spill] sm:$0xff] }
 0x3a2   : > { %4559 = vmatpush.msk.msra.mxu3 %vm10320_vm15, %v10288_v25  ;;  %4514 = vmatpush.msk.msra.mxu0 %vm10321_vm10, %v10288_v25  ;;  %vm10329_vm15 = vnez %v10328_v15  ;;  %vm10345_vm10 = vnez %v10344_v5 }
 0x3a3   : > { %4544 = vmatpush.msk.msra.mxu2 %vm10322_vm4, %v10288_v25  ;;  %4530 = vmatpush.msk.msra.mxu1 %vm10323_vm2, %v10288_v25  ;;  %vm10335_vm4 = vnez %v10334_v17  ;;  %vm10343_vm2 = vnez %v10342_v3 }
 0x3a4   : > { %4560 = vmatpush.msk.msra.mxu3 %vm10325_vm3, %v10288_v25  ;;  %4515 = vmatpush.msk.msra.mxu0 %vm10327_vm9, %v10288_v25  ;;  %vm10337_vm3 = vnez %v10336_v33  ;;  %vm10373_vm9 = vnez %v10372_v49 }
 0x3a5   : > { %4545 = vmatpush.msk.msra.mxu2 %vm10329_vm15, %v10288_v25  ;;  %4531 = vmatpush.msk.msra.mxu1 %vm10331_vm11, %v10288_v25  ;;  %vm10359_vm15 = vnez %v10358_v18  ;;  %vm10371_vm11 = vnez %v10370_v39  ;;  %v10384_v39 = vld [vmem:[#allocation154_spill] sm:$0xff] }
 0x3a6   : > { %4561 = vmatpush.msk.msra.mxu3 %vm10333_vm12, %v10288_v25  ;;  %4516 = vmatpush.msk.msra.mxu0 %vm10335_vm4, %v10288_v25  ;;  %vm10355_vm12 = vnez %v10354_v31 }
 0x3a7   : > { %4546 = vmatpush.msk.msra.mxu2 %vm10337_vm3, %v10288_v25  ;;  %4532 = vmatpush.msk.msra.mxu1 %vm10339_vm14, %v10288_v25  ;;  %vm10349_vm3 = vnez %v10348_v37 }
 0x3a8   : > { %4562 = vmatpush.msk.msra.mxu3 %vm10341_vm1, %v10288_v25  ;;  %4517 = vmatpush.msk.msra.mxu0 %vm10343_vm2, %v10288_v25  ;;  %vm10353_vm1 = vnez %v10352_v13 }
 0x3a9   : > { %4547 = vmatpush.msk.msra.mxu2 %vm10345_vm10, %v10288_v25  ;;  %4533 = vmatpush.msk.msra.mxu1 %vm10347_vm13, %v10288_v25  ;;  %vm10357_vm10 = vnez %v10356_v20 }
 0x3aa   : > { %4563 = vmatpush.msk.msra.mxu3 %vm10349_vm3, %v10288_v25  ;;  %4518 = vmatpush.msk.msra.mxu0 %vm10351_vm5, %v10288_v25  ;;  %vm10361_vm3 = vnez %v10360_v14 }
 0x3ab   : > { %4548 = vmatpush.msk.msra.mxu2 %vm10353_vm1, %v10288_v25  ;;  %4534 = vmatpush.msk.msra.mxu1 %vm10355_vm12, %v10288_v25  ;;  %vm10365_vm1 = vnez %v10364_v22 }
 0x3ac   : > { %4564 = vmatpush.msk.msra.mxu3 %vm10357_vm10, %v10288_v25  ;;  %4519 = vmatpush.msk.msra.mxu0 %vm10359_vm15, %v10288_v25  ;;  %vm10369_vm10 = vnez %v10368_v11 }
 0x3ad   : > { %4549 = vmatpush.msk.msra.mxu2 %vm10361_vm3, %v10288_v25  ;;  %4535 = vmatpush.msk.msra.mxu1 %vm10363_vm7, %v10288_v25  ;;  %vm10375_vm3 = vnez %v10374_v7  ;;  %v10386_v7 = vld [vmem:[#allocation135_spill] sm:$0xff] }
 0x3ae   : > { %4565 = vmatpush.msk.msra.mxu3 %vm10365_vm1, %v10288_v25  ;;  %4568 = vmatpush.msk.msrb.mxu0 %vm10367_vm8, %v10288_v25  ;;  %vm10377_vm1 = vnez %v10376_v61  ;;  %vm10379_vm8 = vnez %v10378_v41  ;;  %v10390_v41 = vld [vmem:[#allocation136_spill] sm:$0xff] }
 0x3af   : > { %4550 = vmatpush.msk.msra.mxu2 %vm10369_vm10, %v10288_v25  ;;  %4584 = vmatpush.msk.msrb.mxu1 %vm10371_vm11, %v10288_v25  ;;  %vm10381_vm10 = vnez %v10380_v8  ;;  %vm10383_vm11 = vnez %v10382_v44  ;;  %v10394_v44 = vld [vmem:[#allocation127_spill] sm:$0xff] }
 0x3b0   : > { %4566 = vmatpush.msk.msra.mxu3 %vm10373_vm9, %v10288_v25  ;;  %4569 = vmatpush.msk.msrb.mxu0 %vm10375_vm3, %v10288_v25  ;;  %vm10385_vm9 = vnez %v10384_v39  ;;  %vm10387_vm3 = vnez %v10386_v7  ;;  %v10396_v39 = vld [vmem:[#allocation137_spill] sm:$0xff]  ;;  %v10398_v7 = vld [vmem:[#allocation128_spill] sm:$0xff] }
 0x3b1   : > { %4551 = vmatpush.msk.msra.mxu2 %vm10377_vm1, %v10288_v25  ;;  %4585 = vmatpush.msk.msrb.mxu1 %vm10379_vm8, %v10288_v25  ;;  %vm10389_vm1 = vnez %v10388_v57  ;;  %vm10391_vm8 = vnez %v10390_v41  ;;  %v10400_v57 = vld [vmem:[#allocation138_spill] sm:$0xff]  ;;  %v10402_v41 = vld [vmem:[#allocation119_spill] sm:$0xff] }
 0x3b2   : > { %4567 = vmatpush.msk.msra.mxu3 %vm10381_vm10, %v10288_v25  ;;  %4570 = vmatpush.msk.msrb.mxu0 %vm10387_vm3, %v10288_v25  ;;  %vm10393_vm10 = vnez %v10392_v42  ;;  %vm10399_vm3 = vnez %v10398_v7  ;;  %v10404_v42 = vld [vmem:[#allocation129_spill] sm:$0xff] }
 0x3b3   : > { %4600 = vmatpush.msk.msrb.mxu2 %vm10383_vm11, %v10288_v25  ;;  %4586 = vmatpush.msk.msrb.mxu1 %vm10391_vm8, %v10288_v25  ;;  %vm10395_vm11 = vnez %v10394_v44  ;;  %vm10403_vm8 = vnez %v10402_v41  ;;  %v10414_v41 = vld [vmem:[#allocation112_spill] sm:$0xff]  ;;  %v10460_v7 = vld [vmem:[#allocation77_spill] sm:$0xff]  ;;  %v10464_v44 = vld [vmem:[#allocation78_spill] sm:$0xff] }
 0x3b4   : > { %4616 = vmatpush.msk.msrb.mxu3 %vm10385_vm9, %v10288_v25  ;;  %4571 = vmatpush.msk.msrb.mxu0 %vm10395_vm11, %v10288_v25  ;;  %vm10397_vm9 = vnez %v10396_v39  ;;  %vm10407_vm11 = vnez %v10406_v51  ;;  %v10408_v39 = vld [vmem:[#allocation130_spill] sm:$0xff]  ;;  %v10418_v51 = vld [vmem:[#allocation103_spill] sm:$0xff] }
 0x3b5   : > { %4601 = vmatpush.msk.msrb.mxu2 %vm10389_vm1, %v10288_v25  ;;  %4587 = vmatpush.msk.msrb.mxu1 %vm10399_vm3, %v10288_v25  ;;  %vm10401_vm1 = vnez %v10400_v57  ;;  %vm10411_vm3 = vnez %v10410_v58  ;;  %v10412_v57 = vld [vmem:[#allocation121_spill] sm:$0xff]  ;;  %v10430_v58 = vld [vmem:[#allocation100_spill] sm:$0xff] }
 0x3b6   : > { %4617 = vmatpush.msk.msrb.mxu3 %vm10393_vm10, %v10288_v25  ;;  %4572 = vmatpush.msk.msrb.mxu0 %vm10403_vm8, %v10288_v25  ;;  %vm10405_vm10 = vnez %v10404_v42  ;;  %vm10415_vm8 = vnez %v10414_v41  ;;  %v10428_v41 = vld [vmem:[#allocation105_spill] sm:$0xff]  ;;  %v10458_v42 = vld [vmem:[#allocation67_spill] sm:$0xff] }
 0x3b7   : > { %4602 = vmatpush.msk.msrb.mxu2 %vm10397_vm9, %v10288_v25  ;;  %4588 = vmatpush.msk.msrb.mxu1 %vm10407_vm11, %v10288_v25  ;;  %vm10409_vm9 = vnez %v10408_v39  ;;  %vm10419_vm11 = vnez %v10418_v51  ;;  %v10454_v39 = vld [vmem:[#allocation76_spill] sm:$0xff] }
 0x3b8   : > { %4618 = vmatpush.msk.msrb.mxu3 %vm10401_vm1, %v10288_v25  ;;  %4573 = vmatpush.msk.msrb.mxu0 %vm10411_vm3, %v10288_v25  ;;  %vm10413_vm1 = vnez %v10412_v57  ;;  %vm10421_vm3 = vnez %v10420_v16  ;;  %v10422_v57 = vld [vmem:[#allocation104_spill] sm:$0xff]  ;;  %v10432_v16 = vld [vmem:[#allocation106_spill] sm:$0xff] }
 0x3b9   : > { %4603 = vmatpush.msk.msrb.mxu2 %vm10405_vm10, %v10288_v25  ;;  %4589 = vmatpush.msk.msrb.mxu1 %vm10415_vm8, %v10288_v25  ;;  %vm10417_vm10 = vnez %v10416_v38  ;;  %vm10425_vm8 = vnez %v10424_v43  ;;  %v10426_v38 = vld [vmem:[#allocation99_spill] sm:$0xff]  ;;  %v10436_v43 = vld [vmem:[#allocation101_spill] sm:$0xff] }
 0x3ba   : > { %4619 = vmatpush.msk.msrb.mxu3 %vm10409_vm9, %v10288_v25  ;;  %4574 = vmatpush.msk.msrb.mxu0 %vm10419_vm11, %v10288_v25  ;;  %vm10429_vm9 = vnez %v10428_v41  ;;  %vm10431_vm11 = vnez %v10430_v58  ;;  %v10442_v58 = vld [vmem:[#allocation83_spill] sm:$0xff]  ;;  %v10492_v41 = vld [vmem:[#allocation45_spill] sm:$0xff] }
 0x3bb   : > { %4604 = vmatpush.msk.msrb.mxu2 %vm10413_vm1, %v10288_v25  ;;  %vm10423_vm1 = vnez %v10422_v57 }
 0x3bc   : > { %4620 = vmatpush.msk.msrb.mxu3 %vm10417_vm10, %v10288_v25  ;;  %4590 = vmatpush.msk.msrb.mxu1 %vm10423_vm1, %v10288_v25  ;;  %vm10427_vm10 = vnez %v10426_v38  ;;  %vm10435_vm1 = vnez %v10434_v26  ;;  %v10448_v38 = vld [vmem:[#allocation94_spill] sm:$0xff]  ;;  %v10476_v26 = vld [vmem:[#allocation61_spill] sm:$0xff] }
 0x3bd   : > { %4605 = vmatpush.msk.msrb.mxu2 %vm10421_vm3, %v10288_v25  ;;  %4575 = vmatpush.msk.msrb.mxu0 %vm10427_vm10, %v10288_v25  ;;  %vm10433_vm3 = vnez %v10432_v16  ;;  %vm10439_vm10 = vnez %v10438_v32  ;;  %v10474_v32 = vld [vmem:[#allocation51_spill] sm:$0xff] }
 0x3be   : > { %4621 = vmatpush.msk.msrb.mxu3 %vm10425_vm8, %v10288_v25  ;;  %4591 = vmatpush.msk.msrb.mxu1 %vm10431_vm11, %v10288_v25  ;;  %vm10437_vm8 = vnez %v10436_v43  ;;  %vm10443_vm11 = vnez %v10442_v58  ;;  %v10446_v43 = vld [vmem:[#allocation84_spill] sm:$0xff]  ;;  %v10490_v16 = vld [vmem:[#allocation35_spill] sm:$0xff] }
 0x3bf   : > { %4606 = vmatpush.msk.msrb.mxu2 %vm10429_vm9, %v10288_v25  ;;  %4576 = vmatpush.msk.msrb.mxu0 %vm10435_vm1, %v10288_v25  ;;  %vm10441_vm9 = vnez %v10440_v24  ;;  %vm10445_vm1 = vnez %v10444_v34  ;;  %v10450_v24 = vld [vmem:[#allocation75_spill] sm:$0xff]  ;;  %v10470_v34 = vld [vmem:[#allocation60_spill] sm:$0xff] }
 0x3c0   : > { %4622 = vmatpush.msk.msrb.mxu3 %vm10433_vm3, %v10288_v25  ;;  %4592 = vmatpush.msk.msrb.mxu1 %vm10439_vm10, %v10288_v25  ;;  %vm10449_vm10 = vnez %v10448_v38  ;;  %vm10453_vm3 = vnez %v10452_v52  ;;  %v10468_v38 = vld [vmem:[#allocation69_spill] sm:$0xff] }
 0x3c1   : > { %4607 = vmatpush.msk.msrb.mxu2 %vm10437_vm8, %v10288_v25  ;;  %4577 = vmatpush.msk.msrb.mxu0 %vm10443_vm11, %v10288_v25  ;;  %vm10447_vm8 = vnez %v10446_v43  ;;  %vm10455_vm11 = vnez %v10454_v39 }
 0x3c2   : > { %4623 = vmatpush.msk.msrb.mxu3 %vm10441_vm9, %v10288_v25  ;;  %4593 = vmatpush.msk.msrb.mxu1 %vm10447_vm8, %v10288_v25  ;;  %vm10451_vm9 = vnez %v10450_v24  ;;  %vm10467_vm8 = vnez %v10466_v40 }
 0x3c3   : > { %4608 = vmatpush.msk.msrb.mxu2 %vm10445_vm1, %v10288_v25  ;;  %4578 = vmatpush.msk.msrb.mxu0 %vm10451_vm9, %v10288_v25  ;;  %vm10457_vm1 = vnez %v10456_v2  ;;  %vm10461_vm9 = vnez %v10460_v7  ;;  %v10488_v7 = vld [vmem:[#allocation54_spill] sm:$0xff]  ;;  %v2476_v2 = vand.u32 2147483647, %v7525_v23 }
 0x3c4   : > { %4624 = vmatpush.msk.msrb.mxu3 %vm10449_vm10, %v10288_v25  ;;  %4594 = vmatpush.msk.msrb.mxu1 %vm10455_vm11, %v10288_v25  ;;  %vm10459_vm10 = vnez %v10458_v42  ;;  %vm10465_vm11 = vnez %v10464_v44  ;;  %v2470_v44 = vmul.f32 %v4900_v55, %v2469_v59  ;;  %v10496_v59 = vld [vmem:[#allocation46_spill] sm:$0xff] }
 0x3c5   : > { %4609 = vmatpush.msk.msrb.mxu2 %vm10453_vm3, %v10288_v25  ;;  %4579 = vmatpush.msk.msrb.mxu0 %vm10459_vm10, %v10288_v25  ;;  %vm10463_vm3 = vnez %v10462_v19  ;;  %vm10471_vm10 = vnez %v10470_v34  ;;  %vm10497_vm14 = vnez %v10496_v59  ;;  %v10502_v59 = vld [vmem:[#allocation30_spill] sm:$0xff] }
 0x3c6   : > { %4625 = vmatpush.msk.msrb.mxu3 %vm10457_vm1, %v10288_v25  ;;  %4595 = vmatpush.msk.msrb.mxu1 %vm10463_vm3, %v10288_v25  ;;  %vm10469_vm1 = vnez %v10468_v38  ;;  %vm10477_vm3 = vnez %v10476_v26  ;;  %v2471_v62 = vadd.f32 %v4900_v55, %v2470_v44  ;;  %v7970_v26 = vpop.permute.xlu0 %2525 }
 0x3c7   : > { %4610 = vmatpush.msk.msrb.mxu2 %vm10461_vm9, %v10288_v25  ;;  %4580 = vmatpush.msk.msrb.mxu0 %vm10467_vm8, %v10288_v25  ;;  %vm10473_vm9 = vnez %v10472_v6  ;;  %vm10483_vm8 = vnez %v10482_v1  ;;  %v10494_v6 = vld [vmem:[#allocation36_spill] sm:$0xff] }
 0x3c8   : > { %4626 = vmatpush.msk.msrb.mxu3 %vm10465_vm11, %v10288_v25  ;;  %4596 = vmatpush.msk.msrb.mxu1 %vm10471_vm10, %v10288_v25  ;;  %vm10475_vm11 = vnez %v10474_v32  ;;  %vm10481_vm10 = vnez %v10480_v60  ;;  %v2478_v60 = vand.u32 2147483648, %v7525_v23 }
 0x3c9   : > { %4611 = vmatpush.msk.msrb.mxu2 %vm10469_vm1, %v10288_v25  ;;  %4581 = vmatpush.msk.msrb.mxu0 %vm10475_vm11, %v10288_v25  ;;  %vm10479_vm1 = vnez %v10478_v50  ;;  %vm10487_vm11 = vnez %v10486_v54 }
 0x3ca   : > { %4627 = vmatpush.msk.msrb.mxu3 %vm10473_vm9, %v10288_v25  ;;  %4597 = vmatpush.msk.msrb.mxu1 %vm10479_vm1, %v10288_v25  ;;  %vm10485_vm9 = vnez %v10484_v30  ;;  %vm10493_vm1 = vnez %v10492_v41  ;;  %v2479_v39 = vor.u32 1.1754944e-38, %v2478_v60 }
 0x3cb   : > { %4612 = vmatpush.msk.msrb.mxu2 %vm10477_vm3, %v10288_v25  ;;  %4582 = vmatpush.msk.msrb.mxu0 %vm10483_vm8, %v10288_v25  ;;  %vm10489_vm3 = vnez %v10488_v7  ;;  %vm2472_vm8 = vweird.f32 %v7525_v23  ;;  %v7975_v7 = vpop.permute.xlu1 %2761 }
 0x3cc   : > { %4628 = vmatpush.msk.msrb.mxu3 %vm10481_vm10, %v10288_v25  ;;  %4598 = vmatpush.msk.msrb.mxu1 %vm10487_vm11, %v10288_v25  ;;  %vm10491_vm10 = vnez %v10490_v16  ;;  %vm2473_vm11 = vweird.f32 %v4900_v55 }
 0x3cd   : > { %4613 = vmatpush.msk.msrb.mxu2 %vm10485_vm9, %v10288_v25  ;;  %4583 = vmatpush.msk.msrb.mxu0 %vm10491_vm10, %v10288_v25  ;;  %vm10495_vm9 = vnez %v10494_v6  ;;  %vm2477_vm10 = vcmp.eq.f32.partialorder %v2476_v2, 8.507059e+37 }
 0x3ce   : > { %4629 = vmatpush.msk.msrb.mxu3 %vm10489_vm3, %v10288_v25  ;;  %4599 = vmatpush.msk.msrb.mxu1 %vm10495_vm9, %v10288_v25  ;;  %vm10499_vm3 = vnez %v10498_v28  ;;  %vm2474_vm9 = vmor %vm2472_vm8, %vm2473_vm11  ;;  %v7978_v28 = vpop.permute.xlu0 %2520 }
 0x3cf   : > { %4614 = vmatpush.msk.msrb.mxu2 %vm10493_vm1, %v10288_v25  ;;  %vm10501_vm1 = vnez %v10500_v27  ;;  %v2475_v38 = vsel %vm2474_vm9, %v4900_v55, %v2471_v62 }
 0x3d0   : > { %4630 = vmatpush.msk.msrb.mxu3 %vm10497_vm14, %v10288_v25  ;;  %v2480_v52 = vsel %vm2477_vm10, %v2479_v39, %v2475_v38 }
 0x3d1   : > { %4615 = vmatpush.msk.msrb.mxu2 %vm10499_vm3, %v10288_v25  ;;  %v7973_v24 = vmul.f32 %v2480_v52, %v10502_v59  ;;  %v7985_v52 = vpop.permute.xlu2 %2837 }
 0x3d2   : > { %4631 = vmatpush.msk.msrb.mxu3 %vm10501_vm1, %v10288_v25  ;;  %vm10503_vm1 = vcmask 1040384  }
 0x3d3   : > { %v2529_v44 = vperm.slane %v7973_v24, 0  ;;  %v2530_v23 = vperm.slane %v7973_v24, 1  ;;  %v7983_v39 = vpop.permute.xlu1 %2756  ;;  %v2531_v51 = vperm.slane %v7973_v24, 2 }
 0x3d5   : > { %v2545_v25 = vmul.f32 %v2529_v44, %v7978_v28  ;;  %v2546_v62 = vmul.f32 %v2530_v23, %v7978_v28  ;;  %v2553_v59 = vmul.f32 %v2529_v44, %v7970_v26  ;;  %v2554_v4 = vmul.f32 %v2530_v23, %v7970_v26 }
 0x3e3   : > { %v2585_v27 = vpop.f32.mrf.mxu0  ;;  %v2608_v60 = vpop.f32.mrf.mxu1 }
 0x3e4   : > { %v2586_v2 = vadd.f32 %v2585_v27, %v2545_v25  ;;  %v2609_v55 = vadd.f32 %v2608_v60, %v2546_v62  ;;  %v2532_v25 = vperm.slane %v7973_v24, 3 }
 0x3e6   : > { %v2764_v38 = vadd.f32 %v7983_v39, %v2586_v2  ;;  %v2765_v41 = vadd.f32 %v7983_v39, %v2609_v55  ;;  %v2547_v55 = vmul.f32 %v2531_v51, %v7978_v28 }
 0x3e8   : > { %v2796_v19 = vmul.f32 0.1, %v2764_v38  ;;  %vm2780_vm8 = vcmp.gt.f32.partialorder %v2764_v38, 0.0  ;;  %v2797_v62 = vmul.f32 0.1, %v2765_v41  ;;  %vm2781_vm9 = vcmp.gt.f32.partialorder %v2765_v41, 0.0 }
 0x3eb   : > { %v2588_v30 = vpop.f32.mrf.mxu0  ;;  %v2611_v57 = vpop.f32.mrf.mxu1 }
 0x3ec   : > { %v2589_v33 = vadd.f32 %v2588_v30, %v2553_v59  ;;  %v2612_v27 = vadd.f32 %v2611_v57, %v2554_v4  ;;  %v7996_v30 = vpop.permute.xlu2 %2832  ;;  %v2812_v59 = vsel %vm2780_vm8, %v2764_v38, %v2796_v19  ;;  %v2548_v57 = vmul.f32 %v2532_v25, %v7978_v28  ;;  %vm10504_vm8 = vmmov %vm10503_vm1 }
 0x3ed   : > { %v2840_v50 = vmul.f32 %v7996_v30, %v2812_v59 }
 0x3ee   : > { %v2772_v60 = vadd.f32 %v7975_v7, %v2589_v33  ;;  %v2773_v2 = vadd.f32 %v7975_v7, %v2612_v27  ;;  %v2813_v33 = vsel %vm2781_vm9, %v2765_v41, %v2797_v62 }
 0x3ef   : > { %v2841_v19 = vmul.f32 %v7996_v30, %v2813_v33 }
 0x3f0   : > { %vm2788_vm11 = vcmp.gt.f32.partialorder %v2772_v60, 0.0  ;;  %v2804_v44 = vmul.f32 0.1, %v2772_v60  ;;  %v2631_v23 = vpop.f32.mrf.mxu2  ;;  %vm2789_vm10 = vcmp.gt.f32.partialorder %v2773_v2, 0.0  ;;  %v2805_v34 = vmul.f32 0.1, %v2773_v2  ;;  %v2654_v4 = vpop.f32.mrf.mxu3 }
 0x3f1   : > { %v2632_v6 = vadd.f32 %v2631_v23, %v2547_v55  ;;  %v2655_v54 = vadd.f32 %v2654_v4, %v2548_v57  ;;  %v2924_v4 = vpop.permute.xlu0 %2923 }
 0x3f2   : > { %v2820_v43 = vsel %vm2788_vm11, %v2772_v60, %v2804_v44  ;;  %v2821_v27 = vsel %vm2789_vm10, %v2773_v2, %v2805_v34  ;;  %v2556_v2 = vmul.f32 %v2532_v25, %v7970_v26 }
 0x3f3   : > { %v2848_v42 = vmul.f32 %v7985_v52, %v2820_v43  ;;  %v2849_v0 = vmul.f32 %v7985_v52, %v2821_v27  ;;  %v2766_v47 = vadd.f32 %v7983_v39, %v2632_v6  ;;  %v2767_v41 = vadd.f32 %v7983_v39, %v2655_v54 }
 0x3f4   : > { %v2555_v43 = vmul.f32 %v2531_v51, %v7970_v26 }
 0x3f5   : > { %v2856_v40 = vsel %vm10503_vm1, %v2848_v42, 0.0  ;;  %v2864_v58 = vsel %vm10504_vm8, %v2849_v0, 0.0  ;;  %v2798_v59 = vmul.f32 0.1, %v2766_v47  ;;  %vm2782_vm1 = vcmp.gt.f32.partialorder %v2766_v47, 0.0 }
 0x3f6   : > { %v2857_v38 = vadd.f32 %v2856_v40, %v2840_v50  ;;  %v2865_v60 = vadd.f32 %v2864_v58, %v2841_v19  ;;  %v2799_v0 = vmul.f32 0.1, %v2767_v41  ;;  %vm2783_vm9 = vcmp.gt.f32.partialorder %v2767_v41, 0.0 }
 0x3f7   : > { %v2814_v33 = vsel %vm2782_vm1, %v2766_v47, %v2798_v59  ;;  %vm10505_vm1 = vmmov %vm10504_vm8 }
 0x3f8   : > { %v2858_v34 = vrot.slane %v2857_v38, 4  ;;  %v2634_v62 = vpop.f32.mrf.mxu2  ;;  %v2866_v44 = vrot.slane %v2865_v60, 4  ;;  %v2657_v23 = vpop.f32.mrf.mxu3 }
 0x3f9   : > { %v2635_v55 = vadd.f32 %v2634_v62, %v2555_v43  ;;  %v2658_v57 = vadd.f32 %v2657_v23, %v2556_v2  ;;  %v8012_v2 = vperm.slane %v2924_v4, 0 }
 0x3fa   : > { %v2859_v42 = vadd.f32 %v2858_v34, %v2857_v38  ;;  %v2867_v50 = vadd.f32 %v2866_v44, %v2865_v60  ;;  %v2815_v38 = vsel %vm2783_vm9, %v2767_v41, %v2799_v0  ;;  %v2534_v41 = vperm.slane %v7973_v24, 5 }
 0x3fb   : > { %v2774_v6 = vadd.f32 %v7975_v7, %v2635_v55  ;;  %v2775_v40 = vadd.f32 %v7975_v7, %v2658_v57  ;;  %v2842_v55 = vmul.f32 %v7996_v30, %v2814_v33  ;;  %v2533_v57 = vperm.slane %v7973_v24, 4 }
 0x3fc   : > { %v2860_v58 = vrot.slane %v2859_v42, 2  ;;  %v2868_v51 = vrot.slane %v2867_v50, 2  ;;  %v2843_v47 = vmul.f32 %v7996_v30, %v2815_v38  ;;  %v2550_v38 = vmul.f32 %v2534_v41, %v7978_v28 }
 0x3fd   : > { %vm2790_vm11 = vcmp.gt.f32.partialorder %v2774_v6, 0.0  ;;  %v2806_v54 = vmul.f32 0.1, %v2774_v6  ;;  %vm2791_vm10 = vcmp.gt.f32.partialorder %v2775_v40, 0.0  ;;  %v2807_v27 = vmul.f32 0.1, %v2775_v40 }
 0x3fe   : > { %v2861_v25 = vadd.f32 %v2860_v58, %v2859_v42  ;;  %v2869_v19 = vadd.f32 %v2868_v51, %v2867_v50  ;;  %v2535_v51 = vperm.slane %v7973_v24, 6 }
 0x3ff   : > { %v2822_v43 = vsel %vm2790_vm11, %v2774_v6, %v2806_v54  ;;  %v2823_v62 = vsel %vm2791_vm10, %v2775_v40, %v2807_v27  ;;  %vm10508_vm11 = vmmov %vm10505_vm1 }
 0x400   : > { %v2862_v60 = vrot.slane %v2861_v25, 1  ;;  %v2850_v34 = vmul.f32 %v7985_v52, %v2822_v43  ;;  %v2870_v44 = vrot.slane %v2869_v19, 1  ;;  %v2851_v23 = vmul.f32 %v7985_v52, %v2823_v62 }
 0x401   : > { %v2557_v62 = vmul.f32 %v2533_v57, %v7970_v26 }
 0x402   : > { %v2863_v42 = vadd.f32 %v2862_v60, %v2861_v25  ;;  %v2872_v59 = vsel %vm10504_vm8, %v2850_v34, 0.0  ;;  %v2871_v50 = vadd.f32 %v2870_v44, %v2869_v19  ;;  %v2880_v6 = vsel %vm10505_vm1, %v2851_v23, 0.0 }
 0x403   : > { %v2873_v0 = vadd.f32 %v2872_v59, %v2842_v55  ;;  %v2881_v58 = vadd.f32 %v2880_v6, %v2843_v47  ;;  %v2549_v25 = vmul.f32 %v2533_v57, %v7978_v28  ;;  %v2536_v19 = vperm.slane %v7973_v24, 7 }
 0x404   : > { %v8022_v40 = vadd.f32 %v8012_v2, %v2863_v42  ;;  %v8026_v4 = vadd.f32 %v8012_v2, %v2871_v50  ;;  %v2558_v44 = vmul.f32 %v2534_v41, %v7970_v26  ;;  %v8034_v42 = vmul.f32 %v2535_v51, %v7970_v26 }
 0x405   : > { %v2874_v54 = vrot.slane %v2873_v0, 4  ;;  %v2882_v33 = vrot.slane %v2881_v58, 4  ;;  %v2551_v6 = vmul.f32 %v2535_v51, %v7978_v28  ;;  %vm10511_vm1 = vnez %v10338_v53 }
 0x406   : > { %10506 = vst [vmem:[#allocation155_spill] sm:$0xff] %v8022_v40  ;;  %v2677_v27 = vpop.f32.mrf.mxu0  ;;  %v2975_v47 = vsel %vm10343_vm2, %v8022_v40, -1e+30  ;;  %v2943_v50 = vrot.slane %v8026_v4, 7  ;;  %v2976_v57 = vsel %vm10347_vm13, %v8026_v4, -1e+30  ;;  %vm10519_vm13 = vnez %v9731_v48 }
 0x407   : > { %10507 = vst [vmem:[#allocation156_spill] sm:$0xff] %v8026_v4  ;;  %v2875_v43 = vadd.f32 %v2874_v54, %v2873_v0  ;;  %v2678_v60 = vadd.f32 %v2677_v27, %v2549_v25  ;;  %v2700_v34 = vpop.f32.mrf.mxu1  ;;  %v2883_v55 = vadd.f32 %v2882_v33, %v2881_v58  ;;  %v8047_v58 = vmul.f32 %v2536_v19, %v7970_v26 }
 0x408   : > { %v2701_v23 = vadd.f32 %v2700_v34, %v2550_v38  ;;  %v2552_v33 = vmul.f32 %v2536_v19, %v7978_v28  ;;  %v3105_v38 = vmax.f32 %v2975_v47, %v2976_v57  ;;  %v2968_v34 = vsel %vm10355_vm12, %v8026_v4, -1e+30 }
 0x409   : > { %v2876_v59 = vrot.slane %v2875_v43, 2  ;;  %v2768_v24 = vadd.f32 %v7983_v39, %v2678_v60  ;;  %v2884_v0 = vrot.slane %v2883_v55, 2  ;;  %v2967_v60 = vsel %vm10351_vm5, %v8022_v40, -1e+30 }
 0x40a   : > { %v2769_v41 = vadd.f32 %v7983_v39, %v2701_v23  ;;  %v8058_v26 = vsel %vm10508_vm11, %v8022_v40, %v2943_v50  ;;  %v2959_v51 = vsel %vm10359_vm15, %v8022_v40, -1e+30  ;;  %v2960_v28 = vsel %vm10363_vm7, %v8026_v4, -1e+30 }
 0x40b   : > { %v2877_v54 = vadd.f32 %v2876_v59, %v2875_v43  ;;  %vm2784_vm9 = vcmp.gt.f32.partialorder %v2768_v24, 0.0  ;;  %v2800_v25 = vmul.f32 0.1, %v2768_v24  ;;  %v2885_v27 = vadd.f32 %v2884_v0, %v2883_v55 }
 0x40c   : > { %vm2785_vm10 = vcmp.gt.f32.partialorder %v2769_v41, 0.0  ;;  %v2801_v55 = vmul.f32 0.1, %v2769_v41  ;;  %v3007_v50 = vsel %vm10317_vm0, %v8022_v40, -1e+30  ;;  %v3096_v56 = vmax.f32 %v2967_v60, %v2968_v34 }
 0x40d   : > { %v2878_v23 = vrot.slane %v2877_v54, 1  ;;  %v2886_v19 = vrot.slane %v2885_v27, 1  ;;  %v2816_v43 = vsel %vm2784_vm9, %v2768_v24, %v2800_v25  ;;  %v3008_v18 = vsel %vm10319_vm6, %v8026_v4, -1e+30 }
 0x40e   : > { %v2680_v47 = vpop.f32.mrf.mxu0  ;;  %v8072_v29 = vmax.f32 %v2959_v51, %v2960_v28  ;;  %v2983_v25 = vsel %vm10335_vm4, %v8022_v40, -1e+30  ;;  %v8087_v60 = vmax.f32 %v3007_v50, %v3008_v18  ;;  %vm10512_vm11 = vnez %v10360_v14 }
 0x40f   : > { %v2879_v59 = vadd.f32 %v2878_v23, %v2877_v54  ;;  %v2681_v57 = vadd.f32 %v2680_v47, %v2557_v62  ;;  %v2703_v0 = vpop.f32.mrf.mxu1  ;;  %v2887_v31 = vadd.f32 %v2886_v19, %v2885_v27  ;;  %v2844_v54 = vmul.f32 %v7996_v30, %v2816_v43 }
 0x410   : > { %v2704_v21 = vadd.f32 %v2703_v0, %v2558_v44  ;;  %v2817_v27 = vsel %vm2785_vm10, %v2769_v41, %v2801_v55  ;;  %v2984_v19 = vsel %vm10511_vm1, %v8026_v4, -1e+30  ;;  %vm10513_vm10 = vnez %v10326_v36  ;;  %v10691_v36 = vld [vmem:[#allocation113_spill] sm:$0xff] }
 0x411   : > { %v8075_v24 = vadd.f32 %v8012_v2, %v2879_v59  ;;  %v2776_v62 = vadd.f32 %v7975_v7, %v2681_v57  ;;  %v8083_v23 = vadd.f32 %v8012_v2, %v2887_v31  ;;  %v2845_v41 = vmul.f32 %v7996_v30, %v2817_v27 }
 0x412   : > { %v2777_v44 = vadd.f32 %v7975_v7, %v2704_v21  ;;  %v3114_v3 = vmax.f32 %v2983_v25, %v2984_v19  ;;  %vm10515_vm7 = vcmask 1040384   ;;  %vm10516_vm15 = vcmask 1042434  }
 0x413   : > { %10509 = vst [vmem:[#allocation157_spill] sm:$0xff] %v8075_v24  ;;  %v2944_v34 = vrot.slane %v8075_v24, 6  ;;  %vm2792_vm8 = vcmp.gt.f32.partialorder %v2776_v62, 0.0  ;;  %v2808_v51 = vmul.f32 0.1, %v2776_v62  ;;  %v2723_v28 = vpop.f32.mrf.mxu2  ;;  %v2945_v43 = vrot.slane %v8083_v23, 5 }
 0x414   : > { %10510 = vst [vmem:[#allocation158_spill] sm:$0xff] %v8083_v23  ;;  %vm2793_vm9 = vcmp.gt.f32.partialorder %v2777_v44, 0.0  ;;  %v2809_v31 = vmul.f32 0.1, %v2777_v44  ;;  %v2724_v47 = vadd.f32 %v2723_v28, %v2551_v6  ;;  %v2746_v59 = vpop.f32.mrf.mxu3  ;;  %v2977_v55 = vsel %vm10512_vm11, %v8075_v24, -1e+30 }
 0x415   : > { %v2824_v21 = vsel %vm2792_vm8, %v2776_v62, %v2808_v51  ;;  %v2747_v18 = vadd.f32 %v2746_v59, %v2552_v33  ;;  %v2991_v6 = vsel %vm10513_vm10, %v8022_v40, -1e+30  ;;  %vm10514_vm8 = vnez %v10330_v12 }
 0x416   : > { %v2852_v57 = vmul.f32 %v7985_v52, %v2824_v21  ;;  %v2825_v0 = vsel %vm2793_vm9, %v2777_v44, %v2809_v31  ;;  %v2770_v50 = vadd.f32 %v7983_v39, %v2724_v47  ;;  %v2992_v33 = vsel %vm10514_vm8, %v8026_v4, -1e+30  ;;  %vm10517_vm9 = vmmov %vm10515_vm7 }
 0x417   : > { %v2853_v53 = vmul.f32 %v7985_v52, %v2825_v0  ;;  %v2771_v17 = vadd.f32 %v7983_v39, %v2747_v18  ;;  %v2951_v44 = vsel %vm10516_vm15, %v2944_v34, %v2945_v43  ;;  %v3106_v51 = vmax.f32 %v3105_v38, %v2977_v55 }
 0x418   : > { %v2888_v62 = vsel %vm10515_vm7, %v2852_v57, 0.0  ;;  %v2802_v27 = vmul.f32 0.1, %v2770_v50  ;;  %vm2786_vm12 = vcmp.gt.f32.partialorder %v2770_v50, 0.0  ;;  %vm10518_vm11 = vnez %v9729_v46 }
 0x419   : > { %v2889_v28 = vadd.f32 %v2888_v62, %v2844_v54  ;;  %v2896_v25 = vsel %vm10517_vm9, %v2853_v53, 0.0  ;;  %v2803_v19 = vmul.f32 0.1, %v2771_v17  ;;  %vm2787_vm5 = vcmp.gt.f32.partialorder %v2771_v17, 0.0 }
 0x41a   : > { %v2897_v39 = vadd.f32 %v2896_v25, %v2845_v41  ;;  %vm10520_vm7 = vnez %v10364_v22  ;;  %vm10521_vm15 = vnez %v10368_v11  ;;  %v3123_v54 = vmax.f32 %v2991_v6, %v2992_v33 }
 0x41b   : > { %v2890_v59 = vrot.slane %v2889_v28, 4  ;;  %v2726_v21 = vpop.f32.mrf.mxu2  ;;  %v2978_v38 = vsel %vm10520_vm7, %v8083_v23, -1e+30  ;;  %v2969_v53 = vsel %vm10521_vm15, %v8075_v24, -1e+30  ;;  %v2818_v43 = vsel %vm2786_vm12, %v2770_v50, %v2802_v27 }
 0x41c   : > { %v2898_v34 = vrot.slane %v2897_v39, 4  ;;  %v2727_v41 = vadd.f32 %v2726_v21, %v8034_v42  ;;  %v2749_v18 = vpop.f32.mrf.mxu3  ;;  %vm10522_vm9 = vcmask 1041408   ;;  %v2819_v0 = vsel %vm2787_vm5, %v2771_v17, %v2803_v19 }
 0x41d   : > { %v8126_v55 = vsel %vm10522_vm9, %v8058_v26, %v2951_v44  ;;  %v2891_v57 = vadd.f32 %v2890_v59, %v2889_v28  ;;  %v2750_v62 = vadd.f32 %v2749_v18, %v8047_v58  ;;  %v3107_v25 = vmax.f32 %v3106_v51, %v2978_v38 }
 0x41e   : > { %v2899_v31 = vadd.f32 %v2898_v34, %v2897_v39  ;;  %v2778_v47 = vadd.f32 %v7975_v7, %v2727_v41  ;;  %vm10523_vm15 = vnez %v10372_v49  ;;  %v3097_v50 = vmax.f32 %v3096_v56, %v2969_v53 }
 0x41f   : > { %v2970_v6 = vsel %vm10523_vm15, %v8083_v23, -1e+30  ;;  %v2892_v33 = vrot.slane %v2891_v57, 2  ;;  %v2846_v42 = vmul.f32 %v7996_v30, %v2818_v43  ;;  %v2779_v27 = vadd.f32 %v7975_v7, %v2750_v62 }
 0x420   : > { %vm10524_vm12 = vnez %v10376_v61  ;;  %v2900_v26 = vrot.slane %v2899_v31, 2  ;;  %v2847_v58 = vmul.f32 %v7996_v30, %v2819_v0  ;;  %vm2794_vm5 = vcmp.gt.f32.partialorder %v2778_v47, 0.0 }
 0x421   : > { %v2961_v17 = vsel %vm10524_vm12, %v8075_v24, -1e+30  ;;  %v2810_v44 = vmul.f32 0.1, %v2778_v47  ;;  %v2893_v51 = vadd.f32 %v2892_v33, %v2891_v57  ;;  %vm2795_vm9 = vcmp.gt.f32.partialorder %v2779_v27, 0.0 }
 0x422   : > { %v2811_v28 = vmul.f32 0.1, %v2779_v27  ;;  %vm10525_vm15 = vnez %v10328_v15  ;;  %v2901_v19 = vadd.f32 %v2900_v26, %v2899_v31  ;;  %v3098_v59 = vmax.f32 %v3097_v50, %v2970_v6 }
 0x423   : > { %v3009_v56 = vsel %vm10525_vm15, %v8075_v24, -1e+30  ;;  %v2826_v39 = vsel %vm2794_vm5, %v2778_v47, %v2810_v44  ;;  %vm10526_vm7 = vnez %v10352_v13  ;;  %v2894_v21 = vrot.slane %v2893_v51, 1 }
 0x424   : > { %v2985_v7 = vsel %vm10526_vm7, %v8075_v24, -1e+30  ;;  %v2854_v38 = vmul.f32 %v7985_v52, %v2826_v39  ;;  %v2827_v30 = vsel %vm2795_vm9, %v2779_v27, %v2811_v28  ;;  %v3088_v53 = vmax.f32 %v8072_v29, %v2961_v17 }
 0x425   : > { %v2902_v34 = vrot.slane %v2901_v19, 1  ;;  %v2855_v43 = vmul.f32 %v7985_v52, %v2827_v30  ;;  %v3142_v41 = vmax.f32 %v8087_v60, %v3009_v56  ;;  %vm10527_vm12 = vnez %v10344_v5  ;;  %v10685_v5 = vld [vmem:[#allocation151_spill] sm:$0xff] }
 0x426   : > { %v2993_v31 = vsel %vm10527_vm12, %v8075_v24, -1e+30  ;;  %v2895_v47 = vadd.f32 %v2894_v21, %v2893_v51  ;;  %vm10528_vm5 = vcmask 1040384   ;;  %vm10529_vm2 = vnez %v10380_v8 }
 0x427   : > { %v2904_v18 = vsel %vm10528_vm5, %v2854_v38, 0.0  ;;  %v2962_v57 = vsel %vm10529_vm2, %v8083_v23, -1e+30  ;;  %v3115_v0 = vmax.f32 %v3114_v3, %v2985_v7  ;;  %v2903_v62 = vadd.f32 %v2902_v34, %v2901_v19  ;;  %vm10530_vm9 = vmmov %vm10528_vm5 }
 0x428   : > { %v2905_v6 = vadd.f32 %v2904_v18, %v2846_v42  ;;  %v2912_v29 = vsel %vm10530_vm9, %v2855_v43, 0.0  ;;  %vm10531_vm7 = vnez %v10332_v10  ;;  %v8161_v60 = vadd.f32 %v8012_v2, %v2895_v47  ;;  %v10543_v47 = vld [vmem:[#allocation71_spill] sm:$0xff]  ;;  %v10715_v10 = vld [vmem:[#allocation140_spill] sm:$0xff] }
 0x429   : > { %v3010_v52 = vsel %vm10531_vm7, %v8083_v23, -1e+30  ;;  %v2913_v50 = vadd.f32 %v2912_v29, %v2847_v58  ;;  %v3089_v33 = vmax.f32 %v3088_v53, %v2962_v57  ;;  %v3124_v27 = vmax.f32 %v3123_v54, %v2993_v31 }
 0x42a   : > { %10532 = vst [vmem:[#allocation159_spill] sm:$0xff] %v8161_v60  ;;  %v8164_v17 = vadd.f32 %v8012_v2, %v2903_v62  ;;  %v2906_v26 = vrot.slane %v2905_v6, 4  ;;  %v3143_v44 = vmax.f32 %v3142_v41, %v3010_v52  ;;  %vm10534_vm5 = vnez %v10356_v20 }
 0x42b   : > { %v2986_v3 = vsel %vm10534_vm5, %v8083_v23, -1e+30  ;;  %v2914_v42 = vrot.slane %v2913_v50, 4  ;;  %vm10535_vm9 = vnez %v10348_v37  ;;  %vm10536_vm2 = vnez %v9733_v35 }
 0x42c   : > { %10533 = vst [vmem:[#allocation160_spill] sm:$0xff] %v8164_v17  ;;  %v3116_v51 = vmax.f32 %v3115_v0, %v2986_v3  ;;  %v2994_v28 = vsel %vm10535_vm9, %v8083_v23, -1e+30  ;;  %v3033_v58 = vsel %vm10536_vm2, %v8075_v24, -1e+30  ;;  %v2907_v54 = vadd.f32 %v2906_v26, %v2905_v6  ;;  %v10545_v6 = vld [vmem:[#allocation83_spill] sm:$0xff] }
 0x42d   : > { %vm10537_vm1 = vnez %v10474_v32  ;;  %vm10538_vm4 = vnez %v10482_v1  ;;  %vm10539_vm5 = vnez %v9735_v9  ;;  %v2915_v7 = vadd.f32 %v2914_v42, %v2913_v50  ;;  %v10549_v3 = vld [vmem:[#allocation72_spill] sm:$0xff] }
 0x42e   : > { %v2979_v56 = vsel %vm10537_vm1, %v8161_v60, -1e+30  ;;  %v2971_v19 = vsel %vm10538_vm4, %v8161_v60, -1e+30  ;;  %vm10540_vm9 = vnez %v10490_v16  ;;  %v3125_v38 = vmax.f32 %v3124_v27, %v2994_v28  ;;  %v10547_v27 = vld [vmem:[#allocation59_spill] sm:$0xff] }
 0x42f   : > { %v2963_v21 = vsel %vm10540_vm9, %v8161_v60, -1e+30  ;;  %v10541_v30 = vsel %vm10519_vm13, %v8026_v4, -1e+30  ;;  %v10542_v53 = vsel %vm10518_vm11, %v8022_v40, -1e+30  ;;  %vm10544_vm4 = vnez %v10543_v47 }
 0x430   : > { %v3168_v34 = vmax.f32 %v10542_v53, %v10541_v30  ;;  %v2946_v43 = vrot.slane %v8161_v60, 4  ;;  %v2947_v41 = vrot.slane %v8164_v17, 3  ;;  %v2908_v31 = vrot.slane %v2907_v54, 2  ;;  %v10551_v30 = vld [vmem:[#allocation52_spill] sm:$0xff]  ;;  %v10556_v53 = vld [vmem:[#allocation67_spill] sm:$0xff] }
 0x431   : > { %v2916_v57 = vrot.slane %v2915_v7, 2  ;;  %v3108_v0 = vmax.f32 %v3107_v25, %v2979_v56  ;;  %v3099_v62 = vmax.f32 %v3098_v59, %v2971_v19  ;;  %vm10546_vm9 = vnez %v10545_v6  ;;  %v10553_v59 = vld [vmem:[#allocation44_spill] sm:$0xff] }
 0x432   : > { %v3011_v29 = vsel %vm10546_vm9, %v8161_v60, -1e+30  ;;  %v2909_v52 = vadd.f32 %v2908_v31, %v2907_v54  ;;  %v3090_v50 = vmax.f32 %v3089_v33, %v2963_v21  ;;  %vm10548_vm1 = vnez %v10547_v27  ;;  %v10582_v27 = vld [vmem:[#allocation75_spill] sm:$0xff] }
 0x433   : > { %v2987_v26 = vsel %vm10548_vm1, %v8161_v60, -1e+30  ;;  %vm10550_vm12 = vnez %v10549_v3  ;;  %v2917_v28 = vadd.f32 %v2916_v57, %v2915_v7  ;;  %vm10552_vm8 = vnez %v10551_v30  ;;  %v10558_v57 = vld [vmem:[#allocation36_spill] sm:$0xff] }
 0x434   : > { %v3000_v42 = vsel %vm10550_vm12, %v8026_v4, -1e+30  ;;  %v2980_v25 = vsel %vm10552_vm8, %v8164_v17, -1e+30  ;;  %vm10554_vm10 = vnez %v10553_v59  ;;  %v3144_v19 = vmax.f32 %v3143_v44, %v3011_v29  ;;  %v10560_v59 = vld [vmem:[#allocation84_spill] sm:$0xff] }
 0x435   : > { %v2972_v56 = vsel %vm10554_vm10, %v8164_v17, -1e+30  ;;  %vm10555_vm9 = vcmask 1044484   ;;  %v2910_v54 = vrot.slane %v2909_v52, 1  ;;  %v3117_v21 = vmax.f32 %v3116_v51, %v2987_v26  ;;  %v10562_v29 = vld [vmem:[#allocation60_spill] sm:$0xff] }
 0x436   : > { %v2953_v33 = vsel %vm10555_vm9, %v2946_v43, %v2947_v41  ;;  %vm10557_vm1 = vnez %v10556_v53  ;;  %v2918_v18 = vrot.slane %v2917_v28, 1  ;;  %v3109_v39 = vmax.f32 %v3108_v0, %v2980_v25  ;;  %v10564_v0 = vld [vmem:[#allocation68_spill] sm:$0xff] }
 0x437   : > { %v2995_v31 = vsel %vm10557_vm1, %v8161_v60, -1e+30  ;;  %v3100_v7 = vmax.f32 %v3099_v62, %v2972_v56  ;;  %vm10559_vm12 = vnez %v10558_v57  ;;  %v2911_v1 = vadd.f32 %v2910_v54, %v2909_v52  ;;  %v10578_v57 = vld [vmem:[#allocation45_spill] sm:$0xff] }
 0x438   : > { %v2964_v16 = vsel %vm10559_vm12, %v8164_v17, -1e+30  ;;  %vm10561_vm10 = vnez %v10560_v59  ;;  %v3126_v43 = vmax.f32 %v3125_v38, %v2995_v31  ;;  %v2919_v41 = vadd.f32 %v2918_v18, %v2917_v28  ;;  %v10569_v38 = vld [vmem:[#allocation104_spill] sm:$0xff] }
 0x439   : > { %v3091_v30 = vmax.f32 %v3090_v50, %v2964_v16  ;;  %v3012_v44 = vsel %vm10561_vm10, %v8164_v17, -1e+30  ;;  %vm10563_vm9 = vnez %v10562_v29  ;;  %vm10565_vm8 = vnez %v10564_v0  ;;  %v10567_v16 = vld [vmem:[#allocation103_spill] sm:$0xff] }
 0x43a   : > { %v3145_v51 = vmax.f32 %v3144_v19, %v3012_v44  ;;  %v2988_v26 = vsel %vm10563_vm9, %v8164_v17, -1e+30  ;;  %v2996_v62 = vsel %vm10565_vm8, %v8164_v17, -1e+30  ;;  %v8232_v25 = vadd.f32 %v8012_v2, %v2911_v1  ;;  %v10572_v19 = vld [vmem:[#allocation73_spill] sm:$0xff]  ;;  %v10574_v1 = vld [vmem:[#allocation74_spill] sm:$0xff] }
 0x43b   : > { %v3118_v52 = vmax.f32 %v3117_v21, %v2988_v26  ;;  %vm10568_vm12 = vnez %v10567_v16  ;;  %vm10570_vm1 = vnez %v10569_v38  ;;  %v8241_v28 = vadd.f32 %v8012_v2, %v2919_v41  ;;  %v10576_v44 = vld [vmem:[#allocation53_spill] sm:$0xff] }
 0x43c   : > { %10566 = vst [vmem:[#allocation161_spill] sm:$0xff] %v8232_v25  ;;  %v3035_v50 = vsel %vm10568_vm12, %v8161_v60, -1e+30  ;;  %v3036_v18 = vsel %vm10570_vm1, %v8164_v17, -1e+30  ;;  %v3169_v56 = vmax.f32 %v3168_v34, %v3033_v58  ;;  %vm10573_vm9 = vnez %v10572_v19  ;;  %v10580_v34 = vld [vmem:[#allocation54_spill] sm:$0xff] }
 0x43d   : > { %10571 = vst [vmem:[#allocation162_spill] sm:$0xff] %v8241_v28  ;;  %v3001_v54 = vsel %vm10573_vm9, %v8075_v24, -1e+30  ;;  %vm10575_vm8 = vnez %v10574_v1  ;;  %v2948_v31 = vrot.slane %v8232_v25, 2  ;;  %vm10577_vm10 = vnez %v10576_v44  ;;  %v10693_v19 = vld [vmem:[#allocation114_spill] sm:$0xff] }
 0x43e   : > { %v3002_v21 = vsel %vm10575_vm8, %v8083_v23, -1e+30  ;;  %v2981_v26 = vsel %vm10577_vm10, %v8232_v25, -1e+30  ;;  %vm10579_vm1 = vnez %v10578_v57  ;;  %v3127_v41 = vmax.f32 %v3126_v43, %v2996_v62  ;;  %v10586_v62 = vld [vmem:[#allocation85_spill] sm:$0xff] }
 0x43f   : > { %v2973_v2 = vsel %vm10579_vm1, %v8232_v25, -1e+30  ;;  %v2949_v58 = vrot.slane %v8241_v28, 1  ;;  %vm10581_vm12 = vnez %v10580_v34  ;;  %v3110_v29 = vmax.f32 %v3109_v39, %v2981_v26  ;;  %v10592_v57 = vld [vmem:[#allocation61_spill] sm:$0xff] }
 0x440   : > { %v2982_v32 = vsel %vm10581_vm12, %v8241_v28, -1e+30  ;;  %vm10583_vm8 = vnez %v10582_v27  ;;  %v2974_v44 = vsel %vm10497_vm14, %v8241_v28, -1e+30  ;;  %v3101_v59 = vmax.f32 %v3100_v7, %v2973_v2  ;;  %v10589_v27 = vld [vmem:[#allocation38_spill] sm:$0xff] }
 0x441   : > { %v3003_v0 = vsel %vm10583_vm8, %v8161_v60, -1e+30  ;;  %v2965_v43 = vsel %vm10499_vm3, %v8232_v25, -1e+30  ;;  %vm10587_vm1 = vnez %v10586_v62  ;;  %vm10588_vm12 = vcmask 1046534  }
 0x442   : > { %v3013_v34 = vsel %vm10587_vm1, %v8232_v25, -1e+30  ;;  %v2954_v39 = vsel %vm10588_vm12, %v2948_v31, %v2949_v58  ;;  %v3111_v26 = vmax.f32 %v3110_v29, %v2982_v32  ;;  %vm10590_vm10 = vnez %v10589_v27  ;;  %v10615_v27 = vld [vmem:[#allocation106_spill] sm:$0xff] }
 0x443   : > { %v2966_v6 = vsel %vm10590_vm10, %v8241_v28, -1e+30  ;;  %v3092_v38 = vmax.f32 %v3091_v30, %v2965_v43  ;;  %vm10591_vm8 = vcmask 1045508   ;;  %v3102_v7 = vmax.f32 %v3101_v59, %v2974_v44  ;;  %v10596_v30 = vld [vmem:[#allocation69_spill] sm:$0xff]  ;;  %v10605_v44 = vld [vmem:[#allocation88_spill] sm:$0xff] }
 0x444   : > { %v2955_v53 = vsel %vm10591_vm8, %v2953_v33, %v2954_v39  ;;  %v3146_v2 = vmax.f32 %v3145_v51, %v3013_v34  ;;  %vm10593_vm14 = vnez %v10592_v57  ;;  %vm10594_vm3 = vcmask 1043456   ;;  %3112 = vmax.xlane.f32.xlu0 %v3111_v26  ;;  %v10598_v33 = vld [vmem:[#allocation76_spill] sm:$0xff]  ;;  %v10607_v34 = vld [vmem:[#allocation89_spill] sm:$0xff] }
 0x445   : > { %v2989_v16 = vsel %vm10593_vm14, %v8232_v25, -1e+30  ;;  %v2956_v62 = vsel %vm10594_vm3, %v8126_v55, %v2955_v53  ;;  %v3093_v8 = vmax.f32 %v3092_v38, %v2966_v6  ;;  %v10595_v32 = vsel %vm10539_vm5, %v8083_v23, -1e+30  ;;  %3103 = vmax.xlane.f32.xlu2 %v3102_v7  ;;  %v10601_v53 = vld [vmem:[#allocation87_spill] sm:$0xff] }
 0x446   : > { %v3119_v31 = vmax.f32 %v3118_v52, %v2989_v16  ;;  %v3170_v29 = vmax.f32 %v3169_v56, %v10595_v32  ;;  %2958 = vst [vmem:[%s545_s7] sm:$0xff] %v2956_v62  ;;  %vm10597_vm8 = vnez %v10596_v30  ;;  %vm10599_vm12 = vnez %v10598_v33  ;;  %v10603_v16 = vld [vmem:[#allocation86_spill] sm:$0xff]  ;;  %v10625_v33 = vld [vmem:[#allocation124_spill] sm:$0xff] }
 0x447   : > { %v2997_v59 = vsel %vm10597_vm8, %v8232_v25, -1e+30  ;;  %v3004_v51 = vsel %vm10599_vm12, %v8164_v17, -1e+30  ;;  %v10600_v55 = vsel %vm10544_vm4, %v8022_v40, -1e+30  ;;  %vm10602_vm3 = vnez %v10601_v53  ;;  %3094 = vmax.xlane.f32.xlu1 %v3093_v8 }
 0x448   : > { %v3132_v6 = vmax.f32 %v10600_v55, %v3000_v42  ;;  %v3015_v52 = vsel %vm10602_vm3, %v8022_v40, -1e+30  ;;  %vm10604_vm10 = vnez %v10603_v16  ;;  %v3171_v56 = vmax.f32 %v3170_v29, %v3035_v50  ;;  %v10609_v42 = vld [vmem:[#allocation62_spill] sm:$0xff]  ;;  %v10613_v29 = vld [vmem:[#allocation105_spill] sm:$0xff] }
 0x449   : > { %v3014_v38 = vsel %vm10604_vm10, %v8241_v28, -1e+30  ;;  %vm10606_vm14 = vnez %v10605_v44  ;;  %vm10608_vm8 = vnez %v10607_v34  ;;  %vm10610_vm12 = vnez %v10609_v42  ;;  %v10611_v32 = vld [vmem:[#allocation70_spill] sm:$0xff] }
 0x44a   : > { %v3016_v58 = vsel %vm10606_vm14, %v8026_v4, -1e+30  ;;  %v3017_v43 = vsel %vm10608_vm8, %v8075_v24, -1e+30  ;;  %v3147_v62 = vmax.f32 %v3146_v2, %v3014_v38  ;;  %v2990_v39 = vsel %vm10610_vm12, %v8241_v28, -1e+30 }
 0x44b   : > { %v3128_v26 = vmax.f32 %v3127_v41, %v2997_v59  ;;  %v3133_v8 = vmax.f32 %v3132_v6, %v3001_v54  ;;  %v3120_v7 = vmax.f32 %v3119_v31, %v2990_v39  ;;  %vm10612_vm10 = vnez %v10611_v32  ;;  %v10617_v2 = vld [vmem:[#allocation77_spill] sm:$0xff]  ;;  %v10619_v41 = vld [vmem:[#allocation78_spill] sm:$0xff]  ;;  %v10623_v32 = vld [vmem:[#allocation123_spill] sm:$0xff] }
 0x44c   : > { %v2998_v50 = vsel %vm10612_vm10, %v8241_v28, -1e+30  ;;  %vm10614_vm1 = vnez %v10613_v29  ;;  %vm10616_vm9 = vnez %v10615_v27  ;;  %vm10618_vm4 = vnez %v10617_v2  ;;  %v10621_v39 = vld [vmem:[#allocation90_spill] sm:$0xff]  ;;  %3148 = vmax.xlane.f32.xlu0 %v3147_v62 }
 0x44d   : > { %v3037_v55 = vsel %vm10614_vm1, %v8232_v25, -1e+30  ;;  %v3038_v57 = vsel %vm10616_vm9, %v8241_v28, -1e+30  ;;  %v3005_v38 = vsel %vm10618_vm4, %v8232_v25, -1e+30  ;;  %vm10620_vm12 = vnez %v10619_v41  ;;  %3121 = vmax.xlane.f32.xlu2 %v3120_v7 }
 0x44e   : > { %v3006_v54 = vsel %vm10620_vm12, %v8241_v28, -1e+30  ;;  %v3134_v31 = vmax.f32 %v3133_v8, %v3002_v21  ;;  %v3150_v59 = vmax.f32 %v3015_v52, %v3016_v58  ;;  %v3172_v6 = vmax.f32 %v3171_v56, %v3036_v18  ;;  %v10627_v41 = vld [vmem:[#allocation125_spill] sm:$0xff]  ;;  %v10629_v52 = vld [vmem:[#allocation91_spill] sm:$0xff]  ;;  %v10631_v58 = vld [vmem:[#allocation92_spill] sm:$0xff] }
 0x44f   : > { %vm10622_vm10 = vnez %v10621_v39  ;;  %vm10624_vm1 = vnez %v10623_v32  ;;  %vm10626_vm9 = vnez %v10625_v33  ;;  %v3129_v16 = vmax.f32 %v3128_v26, %v2998_v50  ;;  %v10635_v50 = vld [vmem:[#allocation96_spill] sm:$0xff] }
 0x450   : > { %v3018_v42 = vsel %vm10622_vm10, %v8083_v23, -1e+30  ;;  %v3055_v30 = vsel %vm10624_vm1, %v8022_v40, -1e+30  ;;  %v3056_v2 = vsel %vm10626_vm9, %v8026_v4, -1e+30  ;;  %v3135_v27 = vmax.f32 %v3134_v31, %v3003_v0 }
 0x451   : > { %v3151_v29 = vmax.f32 %v3150_v59, %v3017_v43  ;;  %vm10628_vm12 = vnez %v10627_v41  ;;  %v3173_v18 = vmax.f32 %v3172_v6, %v3037_v55  ;;  %vm10630_vm4 = vnez %v10629_v52  ;;  %v10633_v0 = vld [vmem:[#allocation95_spill] sm:$0xff]  ;;  %3130 = vmax.xlane.f32.xlu1 %v3129_v16  ;;  %v10637_v55 = vld [vmem:[#allocation93_spill] sm:$0xff]  ;;  %v10639_v59 = vld [vmem:[#allocation94_spill] sm:$0xff] }
 0x452   : > { %v3057_v21 = vsel %vm10628_vm12, %v8075_v24, -1e+30  ;;  %v3019_v56 = vsel %vm10630_vm4, %v8161_v60, -1e+30  ;;  %vm10632_vm7 = vnez %v10631_v58  ;;  %v3195_v61 = vmax.f32 %v3055_v30, %v3056_v2  ;;  %v10643_v2 = vld [vmem:[#allocation127_spill] sm:$0xff]  ;;  %v10645_v16 = vld [vmem:[#allocation97_spill] sm:$0xff] }
 0x453   : > { %v3020_v8 = vsel %vm10632_vm7, %v8164_v17, -1e+30  ;;  %v3136_v49 = vmax.f32 %v3135_v27, %v3004_v51  ;;  %v3152_v26 = vmax.f32 %v3151_v29, %v3018_v42  ;;  %vm10634_vm15 = vnez %v10633_v0  ;;  %v10641_v27 = vld [vmem:[#allocation126_spill] sm:$0xff]  ;;  %v10647_v52 = vld [vmem:[#allocation128_spill] sm:$0xff] }
 0x454   : > { %v3023_v43 = vsel %vm10634_vm15, %v8022_v40, -1e+30  ;;  %vm10636_vm6 = vnez %v10635_v50  ;;  %vm10638_vm4 = vnez %v10637_v55  ;;  %vm10640_vm7 = vnez %v10639_v59 }
 0x455   : > { %v3024_v62 = vsel %vm10636_vm6, %v8026_v4, -1e+30  ;;  %v3021_v31 = vsel %vm10638_vm4, %v8232_v25, -1e+30  ;;  %v3022_v30 = vsel %vm10640_vm7, %v8241_v28, -1e+30  ;;  %vm10642_vm0 = vnez %v10641_v27 }
 0x456   : > { %v3058_v51 = vsel %vm10642_vm0, %v8083_v23, -1e+30  ;;  %v3196_v42 = vmax.f32 %v3195_v61, %v3057_v21  ;;  %v3137_v7 = vmax.f32 %v3136_v49, %v3005_v38  ;;  %v3153_v29 = vmax.f32 %v3152_v26, %v3019_v56  ;;  %v10649_v61 = vld [vmem:[#allocation129_spill] sm:$0xff]  ;;  %v10651_v38 = vld [vmem:[#allocation107_spill] sm:$0xff]  ;;  %v10653_v56 = vld [vmem:[#allocation108_spill] sm:$0xff] }
 0x457   : > { %vm10644_vm10 = vnez %v10643_v2  ;;  %vm10646_vm8 = vnez %v10645_v16  ;;  %v3174_v58 = vmax.f32 %v3173_v18, %v3038_v57  ;;  %vm10648_vm4 = vnez %v10647_v52  ;;  %v10655_v57 = vld [vmem:[#allocation130_spill] sm:$0xff]  ;;  %v10661_v2 = vld [vmem:[#allocation109_spill] sm:$0xff] }
 0x458   : > { %v3059_v6 = vsel %vm10644_vm10, %v8161_v60, -1e+30  ;;  %v3025_v55 = vsel %vm10646_vm8, %v8075_v24, -1e+30  ;;  %v3060_v59 = vsel %vm10648_vm4, %v8164_v17, -1e+30  ;;  %v3197_v11 = vmax.f32 %v3196_v42, %v3058_v51 }
 0x459   : > { %v3159_v22 = vmax.f32 %v3023_v43, %v3024_v62  ;;  %v3154_v14 = vmax.f32 %v3153_v29, %v3020_v8  ;;  %vm10650_vm7 = vnez %v10649_v61  ;;  %vm10652_vm14 = vnez %v10651_v38  ;;  %v10657_v43 = vld [vmem:[#allocation98_spill] sm:$0xff]  ;;  %v10659_v29 = vld [vmem:[#allocation99_spill] sm:$0xff]  ;;  %3175 = vmax.xlane.f32.xlu0 %v3174_v58 }
 0x45a   : > { %v3061_v49 = vsel %vm10650_vm7, %v8232_v25, -1e+30  ;;  %v3039_v21 = vsel %vm10652_vm14, %v8022_v40, -1e+30  ;;  %vm10654_vm10 = vnez %v10653_v56  ;;  %vm10656_vm3 = vnez %v10655_v57 }
 0x45b   : > { %v3040_v26 = vsel %vm10654_vm10, %v8026_v4, -1e+30  ;;  %v3062_v18 = vsel %vm10656_vm3, %v8241_v28, -1e+30  ;;  %v3198_v52 = vmax.f32 %v3197_v11, %v3059_v6  ;;  %vm10658_vm4 = vnez %v10657_v43  ;;  %v10663_v11 = vld [vmem:[#allocation147_spill] sm:$0xff] }
 0x45c   : > { %v3026_v8 = vsel %vm10658_vm4, %v8083_v23, -1e+30  ;;  %v3160_v62 = vmax.f32 %v3159_v22, %v3025_v55  ;;  %v3138_v51 = vmax.f32 %v3137_v7, %v3006_v54  ;;  %v3155_v42 = vmax.f32 %v3154_v14, %v3021_v31  ;;  %v10665_v14 = vld [vmem:[#allocation100_spill] sm:$0xff]  ;;  %v10667_v55 = vld [vmem:[#allocation101_spill] sm:$0xff] }
 0x45d   : > { %vm10660_vm7 = vnez %v10659_v29  ;;  %vm10662_vm8 = vnez %v10661_v2  ;;  %v3199_v13 = vmax.f32 %v3198_v52, %v3060_v59  ;;  %v3177_v37 = vmax.f32 %v3039_v21, %v3040_v26  ;;  %v10669_v7 = vld [vmem:[#allocation148_spill] sm:$0xff]  ;;  %v10671_v26 = vld [vmem:[#allocation149_spill] sm:$0xff] }
 0x45e   : > { %v3027_v61 = vsel %vm10660_vm7, %v8161_v60, -1e+30  ;;  %v3041_v20 = vsel %vm10662_vm8, %v8075_v24, -1e+30  ;;  %v3161_v57 = vmax.f32 %v3160_v62, %v3026_v8  ;;  %vm10664_vm3 = vnez %v10663_v11  ;;  %3139 = vmax.xlane.f32.xlu2 %v3138_v51  ;;  %v10675_v51 = vld [vmem:[#allocation110_spill] sm:$0xff]  ;;  %v10808_v11 = vld [vmem:[#allocation39_spill] sm:$0xff] }
 0x45f   : > { %v3079_v6 = vsel %vm10664_vm3, %v8022_v40, -1e+30  ;;  %v3156_v22 = vmax.f32 %v3155_v42, %v3022_v30  ;;  %vm10666_vm4 = vnez %v10665_v14  ;;  %vm10668_vm7 = vnez %v10667_v55  ;;  %v10673_v30 = vld [vmem:[#allocation102_spill] sm:$0xff]  ;;  %v10677_v55 = vld [vmem:[#allocation111_spill] sm:$0xff] }
 0x460   : > { %v3028_v54 = vsel %vm10666_vm4, %v8164_v17, -1e+30  ;;  %v3029_v31 = vsel %vm10668_vm7, %v8232_v25, -1e+30  ;;  %vm10670_vm6 = vnez %v10669_v7  ;;  %v3200_v58 = vmax.f32 %v3199_v13, %v3061_v49  ;;  %v10810_v7 = vld [vmem:[#allocation40_spill] sm:$0xff] }
 0x461   : > { %v3080_v52 = vsel %vm10670_vm6, %v8026_v4, -1e+30  ;;  %v3162_v59 = vmax.f32 %v3161_v57, %v3027_v61  ;;  %v3178_v21 = vmax.f32 %v3177_v37, %v3041_v20  ;;  %vm10672_vm15 = vnez %v10671_v26  ;;  %3157 = vmax.xlane.f32.xlu1 %v3156_v22  ;;  %v10679_v37 = vld [vmem:[#allocation112_spill] sm:$0xff]  ;;  %v10681_v57 = vld [vmem:[#allocation115_spill] sm:$0xff]  ;;  %v10812_v26 = vld [vmem:[#allocation41_spill] sm:$0xff] }
 0x462   : > { %v3081_v8 = vsel %vm10672_vm15, %v8075_v24, -1e+30  ;;  %vm10674_vm5 = vnez %v10673_v30  ;;  %vm10676_vm4 = vnez %v10675_v51  ;;  %vm10678_vm7 = vnez %v10677_v55  ;;  %v10683_v30 = vld [vmem:[#allocation150_spill] sm:$0xff] }
 0x463   : > { %v3030_v62 = vsel %vm10674_vm5, %v8241_v28, -1e+30  ;;  %v3042_v42 = vsel %vm10676_vm4, %v8083_v23, -1e+30  ;;  %v3043_v14 = vsel %vm10678_vm7, %v8161_v60, -1e+30  ;;  %v3222_v13 = vmax.f32 %v3079_v6, %v3080_v52 }
 0x464   : > { %v3163_v61 = vmax.f32 %v3162_v59, %v3028_v54  ;;  %vm10680_vm2 = vnez %v10679_v37  ;;  %v3179_v49 = vmax.f32 %v3178_v21, %v3042_v42  ;;  %vm10682_vm13 = vnez %v10681_v57  ;;  %v10687_v6 = vld [vmem:[#allocation116_spill] sm:$0xff]  ;;  %v10689_v42 = vld [vmem:[#allocation117_spill] sm:$0xff] }
 0x465   : > { %v3044_v20 = vsel %vm10680_vm2, %v8164_v17, -1e+30  ;;  %v3047_v22 = vsel %vm10682_vm13, %v8022_v40, -1e+30  ;;  %vm10684_vm5 = vnez %v10683_v30  ;;  %vm10686_vm11 = vnez %v10685_v5  ;;  %v10814_v30 = vld [vmem:[#allocation42_spill] sm:$0xff] }
 0x466   : > { %v3082_v29 = vsel %vm10684_vm5, %v8083_v23, -1e+30  ;;  %v3083_v55 = vsel %vm10686_vm11, %v8161_v60, -1e+30  ;;  %v3223_v12 = vmax.f32 %v3222_v13, %v3081_v8  ;;  %vm10688_vm7 = vnez %v10687_v6 }
 0x467   : > { %v3048_v54 = vsel %vm10688_vm7, %v8026_v4, -1e+30  ;;  %v3201_v52 = vmax.f32 %v3200_v58, %v3062_v18  ;;  %v3164_v59 = vmax.f32 %v3163_v61, %v3029_v31  ;;  %v3180_v21 = vmax.f32 %v3179_v49, %v3043_v14  ;;  %v10695_v18 = vld [vmem:[#allocation131_spill] sm:$0xff]  ;;  %v10697_v31 = vld [vmem:[#allocation132_spill] sm:$0xff] }
 0x468   : > { %vm10690_vm2 = vnez %v10689_v42  ;;  %vm10692_vm4 = vnez %v10691_v36  ;;  %vm10694_vm8 = vnez %v10693_v19  ;;  %v3224_v8 = vmax.f32 %v3223_v12, %v3082_v29  ;;  %v10699_v61 = vld [vmem:[#allocation152_spill] sm:$0xff]  ;;  %v10701_v19 = vld [vmem:[#allocation153_spill] sm:$0xff] }
 0x469   : > { %v3049_v37 = vsel %vm10690_vm2, %v8075_v24, -1e+30  ;;  %v3045_v1 = vsel %vm10692_vm4, %v8232_v25, -1e+30  ;;  %v3046_v5 = vsel %vm10694_vm8, %v8241_v28, -1e+30  ;;  %v3186_v13 = vmax.f32 %v3047_v22, %v3048_v54  ;;  %3202 = vmax.xlane.f32.xlu0 %v3201_v52 }
 0x46a   : > { %v3165_v3 = vmax.f32 %v3164_v59, %v3030_v62  ;;  %v3181_v47 = vmax.f32 %v3180_v21, %v3044_v20  ;;  %vm10696_vm11 = vnez %v10695_v18  ;;  %vm10698_vm10 = vnez %v10697_v31  ;;  %v10703_v20 = vld [vmem:[#allocation118_spill] sm:$0xff]  ;;  %v10705_v52 = vld [vmem:[#allocation119_spill] sm:$0xff]  ;;  %v10707_v21 = vld [vmem:[#allocation133_spill] sm:$0xff] }
 0x46b   : > { %v3063_v14 = vsel %vm10696_vm11, %v8022_v40, -1e+30  ;;  %v3064_v58 = vsel %vm10698_vm10, %v8026_v4, -1e+30  ;;  %vm10700_vm4 = vnez %v10699_v61  ;;  %vm10702_vm8 = vnez %v10701_v19  ;;  %v10709_v61 = vld [vmem:[#allocation154_spill] sm:$0xff]  ;;  %v10824_v18 = vld [vmem:[#allocation33_spill] sm:$0xff] }
 0x46c   : > { %v3084_v49 = vsel %vm10700_vm4, %v8164_v17, -1e+30  ;;  %v3085_v12 = vsel %vm10702_vm8, %v8232_v25, -1e+30  ;;  %v3225_v29 = vmax.f32 %v3224_v8, %v3083_v55  ;;  %v3187_v22 = vmax.f32 %v3186_v13, %v3049_v37  ;;  %3166 = vmax.xlane.f32.xlu2 %v3165_v3  ;;  %v10713_v13 = vld [vmem:[#allocation139_spill] sm:$0xff]  ;;  %v10826_v31 = vld [vmem:[#allocation34_spill] sm:$0xff] }
 0x46d   : > { %v3182_v62 = vmax.f32 %v3181_v47, %v3045_v1  ;;  %vm10704_vm14 = vnez %v10703_v20  ;;  %vm10706_vm2 = vnez %v10705_v52  ;;  %vm10708_vm7 = vnez %v10707_v21  ;;  %v10711_v1 = vld [vmem:[#allocation120_spill] sm:$0xff]  ;;  %v10830_v21 = vld [vmem:[#allocation154_spill] sm:$0xff] }
 0x46e   : > { %v3050_v54 = vsel %vm10704_vm14, %v8083_v23, -1e+30  ;;  %v3051_v59 = vsel %vm10706_vm2, %v8161_v60, -1e+30  ;;  %v3065_v36 = vsel %vm10708_vm7, %v8075_v24, -1e+30  ;;  %vm10710_vm4 = vnez %v10709_v61 }
 0x46f   : > { %v3086_v19 = vsel %vm10710_vm4, %v8241_v28, -1e+30  ;;  %v3226_v55 = vmax.f32 %v3225_v29, %v3084_v49  ;;  %v3188_v37 = vmax.f32 %v3187_v22, %v3050_v54  ;;  %v3204_v3 = vmax.f32 %v3063_v14, %v3064_v58  ;;  %v10717_v49 = vld [vmem:[#allocation141_spill] sm:$0xff]  ;;  %v10721_v29 = vld [vmem:[#allocation134_spill] sm:$0xff] }
 0x470   : > { %v3183_v47 = vmax.f32 %v3182_v62, %v3046_v5  ;;  %vm10712_vm8 = vnez %v10711_v1  ;;  %vm10714_vm14 = vnez %v10713_v13  ;;  %vm10716_vm2 = vnez %v10715_v10  ;;  %v10719_v5 = vld [vmem:[#allocation121_spill] sm:$0xff]  ;;  %v10723_v62 = vld [vmem:[#allocation135_spill] sm:$0xff]  ;;  %v10729_v1 = vld [vmem:[#allocation122_spill] sm:$0xff] }
 0x471   : > { %v3052_v8 = vsel %vm10712_vm8, %v8164_v17, -1e+30  ;;  %v3071_v52 = vsel %vm10714_vm14, %v8022_v40, -1e+30  ;;  %v3072_v15 = vsel %vm10716_vm2, %v8026_v4, -1e+30  ;;  %v3227_v45 = vmax.f32 %v3226_v55, %v3085_v12 }
 0x472   : > { %v3189_v63 = vmax.f32 %v3188_v37, %v3051_v59  ;;  %v3205_v61 = vmax.f32 %v3204_v3, %v3065_v36  ;;  %vm10718_vm4 = vnez %v10717_v49  ;;  %3184 = vmax.xlane.f32.xlu1 %v3183_v47  ;;  %vm10720_vm13 = vnez %v10719_v5  ;;  %v10727_v40 = vld [vmem:[#allocation143_spill] sm:$0xff] }
 0x473   : > { %v3073_v14 = vsel %vm10718_vm4, %v8075_v24, -1e+30  ;;  %v3053_v58 = vsel %vm10720_vm13, %v8232_v25, -1e+30  ;;  %vm10722_vm8 = vnez %v10721_v29  ;;  %vm10724_vm0 = vnez %v10723_v62  ;;  %v10725_v24 = vld [vmem:[#allocation142_spill] sm:$0xff]  ;;  %v10835_v29 = vld [vmem:[#allocation135_spill] sm:$0xff] }
 0x474   : > { %v3066_v22 = vsel %vm10722_vm8, %v8083_v23, -1e+30  ;;  %v3067_v54 = vsel %vm10724_vm0, %v8161_v60, -1e+30  ;;  %v3213_v12 = vmax.f32 %v3071_v52, %v3072_v15  ;;  %v3228_v59 = vmax.f32 %v3227_v45, %v3086_v19  ;;  %v10731_v45 = vld [vmem:[#allocation136_spill] sm:$0xff]  ;;  %v10733_v15 = vld [vmem:[#allocation137_spill] sm:$0xff] }
 0x475   : > { %v3190_v36 = vmax.f32 %v3189_v63, %v3052_v8  ;;  %v3206_v55 = vmax.f32 %v3205_v61, %v3066_v22  ;;  %vm10726_vm12 = vnez %v10725_v24  ;;  %vm10728_vm13 = vnez %v10727_v40  ;;  %v10735_v22 = vld [vmem:[#allocation144_spill] sm:$0xff]  ;;  %v10776_v24 = vld [vmem:[#allocation71_spill] sm:$0xff] }
 0x476   : > { %v3214_v37 = vmax.f32 %v3213_v12, %v3073_v14  ;;  %3229 = vmax.xlane.f32.xlu0 %v3228_v59  ;;  %v3074_v4 = vsel %vm10726_vm12, %v8083_v23, -1e+30  ;;  %v3075_v5 = vsel %vm10728_vm13, %v8161_v60, -1e+30  ;;  %vm10730_vm9 = vnez %v10729_v1  ;;  %v10737_v12 = vld [vmem:[#allocation145_spill] sm:$0xff]  ;;  %v10946_v13 = vld [vmem:[#allocation155_spill] sm:$0xff] }
 0x477   : > { %v3191_v3 = vmax.f32 %v3190_v36, %v3053_v58  ;;  %v3207_v47 = vmax.f32 %v3206_v55, %v3067_v54  ;;  %v3054_v62 = vsel %vm10730_vm9, %v8241_v28, -1e+30  ;;  %vm10732_vm0 = vnez %v10731_v45  ;;  %v10739_v36 = vld [vmem:[#allocation138_spill] sm:$0xff] }
 0x478   : > { %v3068_v63 = vsel %vm10732_vm0, %v8164_v17, -1e+30  ;;  %vm10734_vm1 = vnez %v10733_v15  ;;  %v3215_v61 = vmax.f32 %v3214_v37, %v3074_v4  ;;  %vm10736_vm13 = vnez %v10735_v22  ;;  %v3237_v45 = vld [vmem:[#allocation5 + $0x10] sm:$0xff] }
 0x479   : > { %v3069_v19 = vsel %vm10734_vm1, %v8232_v25, -1e+30  ;;  %v3192_v52 = vmax.f32 %v3191_v3, %v3054_v62  ;;  %v3208_v8 = vmax.f32 %v3207_v47, %v3068_v63  ;;  %v3076_v54 = vsel %vm10736_vm13, %v8164_v17, -1e+30  ;;  %v3232_v3 = vld [vmem:[#allocation5 + $0x30] sm:$0xff]  ;;  %v3231_v63 = vld [vmem:[#allocation5 + $0x78] sm:$0xff] }
 0x47a   : > { %v3216_v14 = vmax.f32 %v3215_v61, %v3075_v5  ;;  %vm10738_vm9 = vnez %v10737_v12  ;;  %vm10740_vm0 = vnez %v10739_v36  ;;  %v10741_v5 = vld [vmem:[#allocation146_spill] sm:$0xff]  ;;  %v3234_v17 = vld [vmem:[#allocation5] sm:$0xff] }
 0x47b   : > { %3193 = vmax.xlane.f32.xlu2 %v3192_v52  ;;  %v3209_v58 = vmax.f32 %v3208_v8, %v3069_v19  ;;  %v3077_v59 = vsel %vm10738_vm9, %v8232_v25, -1e+30  ;;  %v3070_v55 = vsel %vm10740_vm0, %v8241_v28, -1e+30  ;;  %vm10742_vm1 = vnez %v10741_v5  ;;  %v3233_v25 = vld [vmem:[#allocation5 + $0x28] sm:$0xff] }
 0x47c   : > { %v3217_v60 = vmax.f32 %v3216_v14, %v3076_v54  ;;  %v3078_v62 = vsel %vm10742_vm1, %v8241_v28, -1e+30 }
 0x47d   : > { %v3210_v23 = vmax.f32 %v3209_v58, %v3070_v55 }
 0x47e   : > { %v3218_v4 = vmax.f32 %v3217_v60, %v3077_v59  ;;  %v3235_v59 = vld [vmem:[#allocation5 + $0x8] sm:$0xff] }
 0x47f   : > { %3211 = vmax.xlane.f32.xlu1 %v3210_v23 }
 0x480   : > { %v3219_v37 = vmax.f32 %v3218_v4, %v3078_v62  ;;  %v3236_v4 = vld [vmem:[#allocation5 + $0x18] sm:$0xff] }
 0x483   : > { %3220 = vmax.xlane.f32.xlu2 %v3219_v37 }
 0x4b7   : > { %v3113_v8 = vpop.xlane.xlu0 %3112 }
 0x4b8   : > { %v3104_v47 = vpop.xlane.xlu2 %3103  ;;  %v3249_v58 = vmul.f32 %v3233_v25, %v3113_v8 }
 0x4b9   : > { %v3248_v61 = vmul.f32 %v3232_v3, %v3104_v47 }
 0x4ba   : > { %v3095_v19 = vpop.xlane.xlu1 %3094 }
 0x4bb   : > { %v3247_v52 = vmul.f32 %v3231_v63, %v3095_v19  ;;  %v3238_v19 = vld [vmem:[#allocation5 + $0x70] sm:$0xff] }
 0x4bd   : > { %v3263_v1 = vadd.f32 %v3248_v61, %v3247_v52  ;;  %v3239_v61 = vld [vmem:[#allocation5 + $0x48] sm:$0xff] }
 0x4bf   : > { %v3264_v54 = vadd.f32 %v3263_v1, %v3249_v58  ;;  %v3149_v28 = vpop.xlane.xlu0 %3148 }
 0x4c0   : > { %v3122_v14 = vpop.xlane.xlu2 %3121  ;;  %v3253_v63 = vmul.f32 %v3237_v45, %v3149_v28 }
 0x4c1   : > { %v3250_v60 = vmul.f32 %v3234_v17, %v3122_v14  ;;  %v3240_v14 = vld [vmem:[#allocation5 + $0x60] sm:$0xff] }
 0x4c3   : > { %v3265_v55 = vadd.f32 %v3264_v54, %v3250_v60 }
 0x4c4   : > { %v3131_v23 = vpop.xlane.xlu1 %3130 }
 0x4c5   : > { %v3251_v62 = vmul.f32 %v3235_v59, %v3131_v23  ;;  %v3241_v23 = vld [vmem:[#allocation5 + $0x68] sm:$0xff] }
 0x4c7   : > { %v3266_v36 = vadd.f32 %v3265_v55, %v3251_v62 }
 0x4cc   : > { %v3176_v52 = vpop.xlane.xlu0 %3175 }
 0x4cd   : > { %v3256_v54 = vmul.f32 %v3240_v14, %v3176_v52 }
 0x4d1   : > { %v3140_v37 = vpop.xlane.xlu2 %3139 }
 0x4d2   : > { %v3252_v15 = vmul.f32 %v3236_v4, %v3140_v37  ;;  %v3242_v4 = vld [vmem:[#allocation5 + $0x40] sm:$0xff] }
 0x4d4   : > { %v3267_v3 = vadd.f32 %v3266_v36, %v3252_v15  ;;  %v3158_v47 = vpop.xlane.xlu1 %3157  ;;  %v3243_v15 = vld [vmem:[#allocation5 + $0x38] sm:$0xff] }
 0x4d5   : > { %v3254_v25 = vmul.f32 %v3238_v19, %v3158_v47 }
 0x4d6   : > { %v3268_v5 = vadd.f32 %v3267_v3, %v3253_v63  ;;  %v3244_v63 = vld [vmem:[#allocation5 + $0x58] sm:$0xff] }
 0x4d8   : > { %v3269_v1 = vadd.f32 %v3268_v5, %v3254_v25  ;;  %v3246_v25 = vld [vmem:[#allocation5 + $0x20] sm:$0xff] }
 0x4dc   : > { %v3203_v55 = vpop.xlane.xlu0 %3202 }
 0x4dd   : > { %v3259_v37 = vmul.f32 %v3243_v15, %v3203_v55  ;;  %v8511_v55 = vld [vmem:[#allocation13] sm:$0x1] }
 0x4df   : > { %v3167_v17 = vpop.xlane.xlu2 %3166 }
 0x4e0   : > { %v3255_v8 = vmul.f32 %v3239_v61, %v3167_v17  ;;  %v3245_v61 = vld [vmem:[#allocation5 + $0x50] sm:$0xff] }
 0x4e2   : > { %v3270_v58 = vadd.f32 %v3269_v1, %v3255_v8 }
 0x4e4   : > { %v3271_v59 = vadd.f32 %v3270_v58, %v3256_v54 }
 0x4e5   : > { %v3185_v60 = vpop.xlane.xlu1 %3184 }
 0x4e6   : > { %v3257_v62 = vmul.f32 %v3241_v23, %v3185_v60 }
 0x4e8   : > { %v3272_v28 = vadd.f32 %v3271_v59, %v3257_v62 }
 0x4e9   : > { %v3230_v17 = vpop.xlane.xlu0 %3229 }
 0x4ea   : > { %v3262_v14 = vmul.f32 %v3246_v25, %v3230_v17  ;;  %v10860_v25 = vld [vmem:[#allocation112_spill] sm:$0xff]  ;;  %v10862_v17 = vld [vmem:[#allocation113_spill] sm:$0xff] }
 0x4ee   : > { %v3194_v36 = vpop.xlane.xlu2 %3193 }
 0x4ef   : > { %v3258_v45 = vmul.f32 %v3242_v4, %v3194_v36  ;;  %v10743_v36 = vmov 1.0  }
 0x4f1   : > { %v3273_v3 = vadd.f32 %v3272_v28, %v3258_v45  ;;  %v10842_v28 = vld [vmem:[#allocation127_spill] sm:$0xff]  ;;  %v10844_v45 = vld [vmem:[#allocation128_spill] sm:$0xff] }
 0x4f2   : > { %v3212_v47 = vpop.xlane.xlu1 %3211 }
 0x4f3   : > { %v3274_v19 = vadd.f32 %v3273_v3, %v3259_v37  ;;  %v3260_v5 = vmul.f32 %v3244_v63, %v3212_v47  ;;  %v10846_v37 = vld [vmem:[#allocation129_spill] sm:$0xff]  ;;  %v10848_v3 = vld [vmem:[#allocation130_spill] sm:$0xff]  ;;  %v10850_v63 = vld [vmem:[#allocation119_spill] sm:$0xff] }
 0x4f4   : > { %v10852_v47 = vld [vmem:[#allocation120_spill] sm:$0xff] }
 0x4f5   : > { %v3275_v52 = vadd.f32 %v3274_v19, %v3260_v5  ;;  %v10854_v19 = vld [vmem:[#allocation121_spill] sm:$0xff]  ;;  %v10858_v5 = vld [vmem:[#allocation111_spill] sm:$0xff] }
 0x4f6   : > { %v3221_v8 = vpop.xlane.xlu2 %3220 }
 0x4f7   : > { %v3261_v1 = vmul.f32 %v3245_v61, %v3221_v8  ;;  %v10856_v61 = vld [vmem:[#allocation122_spill] sm:$0xff] }
 0x4f8   : > { %v10864_v8 = vld [vmem:[#allocation114_spill] sm:$0xff] }
 0x4f9   : > { %v3276_v58 = vadd.f32 %v3275_v52, %v3261_v1  ;;  %v10866_v52 = vld [vmem:[#allocation103_spill] sm:$0xff]  ;;  %v10868_v1 = vld [vmem:[#allocation104_spill] sm:$0xff] }
 0x4fb   : > { %v3277_v54 = vadd.f32 %v3276_v58, %v3262_v14  ;;  %v10870_v14 = vld [vmem:[#allocation105_spill] sm:$0xff]  ;;  %v10872_v58 = vld [vmem:[#allocation106_spill] sm:$0xff] }
 0x4fd   : > { %v3278_v60 = vrot.slane %v3277_v54, 4 }
 0x4ff   : > { %v3279_v23 = vadd.f32 %v3278_v60, %v3277_v54  ;;  %v10874_v54 = vld [vmem:[#allocation99_spill] sm:$0xff]  ;;  %v10876_v60 = vld [vmem:[#allocation100_spill] sm:$0xff] }
 0x501   : > { %v3280_v12 = vrot.slane %v3279_v23, 2 }
 0x503   : > { %v3281_v59 = vadd.f32 %v3280_v12, %v3279_v23  ;;  %v10837_v12 = vld [vmem:[#allocation136_spill] sm:$0xff]  ;;  %v10878_v23 = vld [vmem:[#allocation101_spill] sm:$0xff] }
 0x505   : > { %v3282_v4 = vrot.slane %v3281_v59, 1 }
 0x507   : > { %v3283_v62 = vadd.f32 %v3282_v4, %v3281_v59  ;;  %v10880_v59 = vld [vmem:[#allocation102_spill] sm:$0xff]  ;;  %v10882_v4 = vld [vmem:[#allocation91_spill] sm:$0xff] }
 0x509   : > { %v8514_v15 = vmax.f32 %v8511_v55, %v3283_v62  ;;  %v10884_v62 = vld [vmem:[#allocation92_spill] sm:$0xff] }
 0x50b   : > { %3637 = vst [vmem:[#allocation13] sm:$0x1] %v8514_v15  ;;  %3302 = vmatmul.f32.vlgmr.msra.gmra.mxu0 %v8514_v15  ;;  %3322 = vmatmul.f32.vlgmr.msra.gmra.mxu1 %v8514_v15  ;;  %v3631_v10 = vsub.f32 %v8511_v55, %v8514_v15 }
 0x50c   : > { %3342 = vmatmul.f32.vlgmr.msra.gmra.mxu2 %v8514_v15  ;;  %3362 = vmatmul.f32.vlgmr.msra.gmra.mxu3 %v8514_v15 }
 0x50d   : > { %4632 = vmatpush.xpose.msk.msra.mxu0 %vm10664_vm3, %v10743_v36  ;;  %4648 = vmatpush.xpose.msk.msra.mxu1 %vm10670_vm6, %v10743_v36  ;;  %vm10744_vm6 = vnez %v10623_v32  ;;  %vm10755_vm3 = vnez %v10675_v51  ;;  %v10786_v32 = vld [vmem:[#allocation64_spill] sm:$0xff]  ;;  %v10816_v51 = vld [vmem:[#allocation31_spill] sm:$0xff] }
 0x50e   : > { %4664 = vmatpush.xpose.msk.msra.mxu2 %vm10672_vm15, %v10743_v36  ;;  %4680 = vmatpush.xpose.msk.msra.mxu3 %vm10684_vm5, %v10743_v36  ;;  %vm10751_vm15 = vnez %v10703_v20  ;;  %vm10752_vm5 = vnez %v10651_v38  ;;  %v10802_v38 = vld [vmem:[#allocation48_spill] sm:$0xff]  ;;  %v10828_v20 = vld [vmem:[#allocation153_spill] sm:$0xff] }
 0x511   : > { %4633 = vmatpush.xpose.msk.msra.mxu0 %vm10714_vm14, %v10743_v36  ;;  %4649 = vmatpush.xpose.msk.msra.mxu1 %vm10716_vm2, %v10743_v36  ;;  %vm10745_vm14 = vnez %v10625_v33  ;;  %vm10746_vm2 = vnez %v10627_v41  ;;  %v10778_v33 = vld [vmem:[#allocation72_spill] sm:$0xff]  ;;  %v10788_v41 = vld [vmem:[#allocation65_spill] sm:$0xff] }
 0x512   : > { %4665 = vmatpush.xpose.msk.msra.mxu2 %vm10718_vm4, %v10743_v36  ;;  %4681 = vmatpush.xpose.msk.msra.mxu3 %vm10726_vm12, %v10743_v36  ;;  %vm10747_vm4 = vnez %v10641_v27  ;;  %vm10754_vm12 = vnez %v10661_v2  ;;  %v10796_v27 = vld [vmem:[#allocation57_spill] sm:$0xff]  ;;  %v10798_v2 = vld [vmem:[#allocation58_spill] sm:$0xff] }
 0x513   : > { %3382 = vmatmul.f32.vlgmr.msrb.gmra.mxu0 %v8514_v15  ;;  %3402 = vmatmul.f32.vlgmr.msrb.gmra.mxu1 %v8514_v15 }
 0x514   : > { %3422 = vmatmul.f32.vlgmr.msrb.gmra.mxu2 %v8514_v15  ;;  %3442 = vmatmul.f32.vlgmr.msrb.gmra.mxu3 %v8514_v15 }
 0x515   : > { %4634 = vmatpush.xpose.msk.msra.mxu0 %vm10696_vm11, %v10743_v36  ;;  %4650 = vmatpush.xpose.msk.msra.mxu1 %vm10698_vm10, %v10743_v36  ;;  %vm10748_vm11 = vnez %v10681_v57  ;;  %vm10749_vm10 = vnez %v10687_v6  ;;  %v10818_v57 = vld [vmem:[#allocation32_spill] sm:$0xff]  ;;  %v10820_v6 = vld [vmem:[#allocation151_spill] sm:$0xff] }
 0x516   : > { %4666 = vmatpush.xpose.msk.msra.mxu2 %vm10708_vm7, %v10743_v36  ;;  %4682 = vmatpush.xpose.msk.msra.mxu3 %vm10722_vm8, %v10743_v36  ;;  %vm10750_vm7 = vnez %v10689_v42  ;;  %vm10753_vm8 = vnez %v10653_v56  ;;  %v10804_v56 = vld [vmem:[#allocation49_spill] sm:$0xff]  ;;  %v10822_v42 = vld [vmem:[#allocation152_spill] sm:$0xff] }
 0x519   : > { %4635 = vmatpush.xpose.msk.msra.mxu0 %vm10744_vm6, %v10743_v36  ;;  %4651 = vmatpush.xpose.msk.msra.mxu1 %vm10745_vm14, %v10743_v36  ;;  %vm10756_vm6 = vnez %v9729_v46  ;;  %vm10757_vm14 = vnez %v9731_v48  ;;  %v10770_v46 = vld [vmem:[#allocation80_spill] sm:$0xff]  ;;  %v10772_v48 = vld [vmem:[#allocation81_spill] sm:$0xff] }
 0x51a   : > { %4667 = vmatpush.xpose.msk.msra.mxu2 %vm10746_vm2, %v10743_v36  ;;  %4683 = vmatpush.xpose.msk.msra.mxu3 %vm10747_vm4, %v10743_v36  ;;  %vm10758_vm2 = vnez %v9733_v35  ;;  %vm10759_vm4 = vnez %v9735_v9  ;;  %v10768_v35 = vld [vmem:[#allocation79_spill] sm:$0xff]  ;;  %v10774_v9 = vld [vmem:[#allocation82_spill] sm:$0xff] }
 0x51d   : > { %4636 = vmatpush.xpose.msk.msra.mxu0 %vm10748_vm11, %v10743_v36  ;;  %4652 = vmatpush.xpose.msk.msra.mxu1 %vm10749_vm10, %v10743_v36  ;;  %vm10760_vm11 = vnez %v10633_v0  ;;  %vm10761_vm10 = vnez %v10635_v50  ;;  %v10792_v0 = vld [vmem:[#allocation55_spill] sm:$0xff]  ;;  %v10794_v50 = vld [vmem:[#allocation56_spill] sm:$0xff] }
 0x51e   : > { %4668 = vmatpush.xpose.msk.msra.mxu2 %vm10750_vm7, %v10743_v36  ;;  %4684 = vmatpush.xpose.msk.msra.mxu3 %vm10751_vm15, %v10743_v36  ;;  %vm10762_vm7 = vnez %v10645_v16  ;;  %vm10763_vm15 = vnez %v10657_v43  ;;  %v10800_v16 = vld [vmem:[#allocation47_spill] sm:$0xff]  ;;  %v10806_v43 = vld [vmem:[#allocation50_spill] sm:$0xff] }
 0x521   : > { %4637 = vmatpush.xpose.msk.msra.mxu0 %vm10752_vm5, %v10743_v36  ;;  %4653 = vmatpush.xpose.msk.msra.mxu1 %vm10753_vm8, %v10743_v36  ;;  %vm10764_vm5 = vnez %v10601_v53  ;;  %vm10765_vm8 = vnez %v10605_v44  ;;  %v10780_v53 = vld [vmem:[#allocation73_spill] sm:$0xff]  ;;  %v10782_v44 = vld [vmem:[#allocation74_spill] sm:$0xff] }
 0x522   : > { %4669 = vmatpush.xpose.msk.msra.mxu2 %vm10754_vm12, %v10743_v36  ;;  %4685 = vmatpush.xpose.msk.msra.mxu3 %vm10755_vm3, %v10743_v36  ;;  %vm10766_vm12 = vnez %v10607_v34  ;;  %vm10767_vm3 = vnez %v10621_v39  ;;  %v10784_v34 = vld [vmem:[#allocation63_spill] sm:$0xff]  ;;  %v10790_v39 = vld [vmem:[#allocation66_spill] sm:$0xff] }
 0x525   : > { %4638 = vmatpush.xpose.msk.msra.mxu0 %vm10756_vm6, %v10743_v36  ;;  %4654 = vmatpush.xpose.msk.msra.mxu1 %vm10757_vm14, %v10743_v36  ;;  %vm10769_vm6 = vnez %v10768_v35  ;;  %vm10771_vm14 = vnez %v10770_v46  ;;  %v10886_v35 = vld [vmem:[#allocation93_spill] sm:$0xff]  ;;  %v10888_v46 = vld [vmem:[#allocation94_spill] sm:$0xff] }
 0x526   : > { %4670 = vmatpush.xpose.msk.msra.mxu2 %vm10758_vm2, %v10743_v36  ;;  %4686 = vmatpush.xpose.msk.msra.mxu3 %vm10759_vm4, %v10743_v36  ;;  %vm10773_vm2 = vnez %v10772_v48  ;;  %vm10775_vm4 = vnez %v10774_v9  ;;  %v10890_v48 = vld [vmem:[#allocation83_spill] sm:$0xff]  ;;  %v10892_v9 = vld [vmem:[#allocation84_spill] sm:$0xff] }
 0x529   : > { %4639 = vmatpush.xpose.msk.msra.mxu0 %vm10760_vm11, %v10743_v36  ;;  %4655 = vmatpush.xpose.msk.msra.mxu1 %vm10761_vm10, %v10743_v36  ;;  %vm10777_vm11 = vnez %v10776_v24  ;;  %vm10779_vm10 = vnez %v10778_v33  ;;  %v10894_v24 = vld [vmem:[#allocation85_spill] sm:$0xff]  ;;  %v10896_v33 = vld [vmem:[#allocation86_spill] sm:$0xff] }
 0x52a   : > { %4671 = vmatpush.xpose.msk.msra.mxu2 %vm10762_vm7, %v10743_v36  ;;  %4687 = vmatpush.xpose.msk.msra.mxu3 %vm10763_vm15, %v10743_v36  ;;  %vm10781_vm7 = vnez %v10780_v53  ;;  %vm10783_vm15 = vnez %v10782_v44  ;;  %v10898_v53 = vld [vmem:[#allocation75_spill] sm:$0xff]  ;;  %v10900_v44 = vld [vmem:[#allocation76_spill] sm:$0xff] }
 0x52d   : > { %4640 = vmatpush.xpose.msk.msra.mxu0 %vm10764_vm5, %v10743_v36  ;;  %4656 = vmatpush.xpose.msk.msra.mxu1 %vm10765_vm8, %v10743_v36  ;;  %vm10785_vm5 = vnez %v10784_v34  ;;  %vm10787_vm8 = vnez %v10786_v32  ;;  %v10902_v34 = vld [vmem:[#allocation77_spill] sm:$0xff]  ;;  %v10904_v32 = vld [vmem:[#allocation78_spill] sm:$0xff] }
 0x52e   : > { %4672 = vmatpush.xpose.msk.msra.mxu2 %vm10766_vm12, %v10743_v36  ;;  %4688 = vmatpush.xpose.msk.msra.mxu3 %vm10767_vm3, %v10743_v36  ;;  %vm10789_vm12 = vnez %v10788_v41  ;;  %vm10791_vm3 = vnez %v10790_v39  ;;  %v10906_v41 = vld [vmem:[#allocation67_spill] sm:$0xff]  ;;  %v10908_v39 = vld [vmem:[#allocation68_spill] sm:$0xff] }
 0x531   : > { %4641 = vmatpush.xpose.msk.msra.mxu0 %vm10769_vm6, %v10743_v36  ;;  %4657 = vmatpush.xpose.msk.msra.mxu1 %vm10771_vm14, %v10743_v36  ;;  %vm10793_vm6 = vnez %v10792_v0  ;;  %vm10795_vm14 = vnez %v10794_v50  ;;  %v10910_v0 = vld [vmem:[#allocation69_spill] sm:$0xff]  ;;  %v10912_v50 = vld [vmem:[#allocation70_spill] sm:$0xff] }
 0x532   : > { %4673 = vmatpush.xpose.msk.msra.mxu2 %vm10773_vm2, %v10743_v36  ;;  %4689 = vmatpush.xpose.msk.msra.mxu3 %vm10775_vm4, %v10743_v36  ;;  %vm10797_vm2 = vnez %v10796_v27  ;;  %vm10799_vm4 = vnez %v10798_v2  ;;  %v10914_v27 = vld [vmem:[#allocation59_spill] sm:$0xff]  ;;  %v10916_v2 = vld [vmem:[#allocation60_spill] sm:$0xff] }
 0x535   : > { %4642 = vmatpush.xpose.msk.msra.mxu0 %vm10777_vm11, %v10743_v36  ;;  %4658 = vmatpush.xpose.msk.msra.mxu1 %vm10779_vm10, %v10743_v36  ;;  %vm10801_vm11 = vnez %v10800_v16  ;;  %vm10803_vm10 = vnez %v10802_v38  ;;  %v10918_v16 = vld [vmem:[#allocation61_spill] sm:$0xff]  ;;  %v10920_v38 = vld [vmem:[#allocation62_spill] sm:$0xff] }
 0x536   : > { %4674 = vmatpush.xpose.msk.msra.mxu2 %vm10781_vm7, %v10743_v36  ;;  %4690 = vmatpush.xpose.msk.msra.mxu3 %vm10783_vm15, %v10743_v36  ;;  %vm10805_vm7 = vnez %v10804_v56  ;;  %vm10807_vm15 = vnez %v10806_v43  ;;  %v10922_v56 = vld [vmem:[#allocation51_spill] sm:$0xff]  ;;  %v10924_v43 = vld [vmem:[#allocation52_spill] sm:$0xff] }
 0x539   : > { %4643 = vmatpush.xpose.msk.msra.mxu0 %vm10785_vm5, %v10743_v36  ;;  %4659 = vmatpush.xpose.msk.msra.mxu1 %vm10787_vm8, %v10743_v36  ;;  %vm10809_vm5 = vnez %v10808_v11  ;;  %vm10811_vm8 = vnez %v10810_v7  ;;  %v10926_v11 = vld [vmem:[#allocation53_spill] sm:$0xff]  ;;  %v10928_v7 = vld [vmem:[#allocation54_spill] sm:$0xff] }
 0x53a   : > { %4675 = vmatpush.xpose.msk.msra.mxu2 %vm10789_vm12, %v10743_v36  ;;  %4691 = vmatpush.xpose.msk.msra.mxu3 %vm10791_vm3, %v10743_v36  ;;  %vm10813_vm12 = vnez %v10812_v26  ;;  %vm10815_vm3 = vnez %v10814_v30  ;;  %v10930_v26 = vld [vmem:[#allocation43_spill] sm:$0xff]  ;;  %v10932_v30 = vld [vmem:[#allocation44_spill] sm:$0xff] }
 0x53d   : > { %4644 = vmatpush.xpose.msk.msra.mxu0 %vm10793_vm6, %v10743_v36  ;;  %4660 = vmatpush.xpose.msk.msra.mxu1 %vm10795_vm14, %v10743_v36  ;;  %vm10817_vm6 = vnez %v10816_v51  ;;  %vm10819_vm14 = vnez %v10818_v57  ;;  %v10934_v51 = vld [vmem:[#allocation45_spill] sm:$0xff]  ;;  %v10936_v57 = vld [vmem:[#allocation46_spill] sm:$0xff] }
 0x53e   : > { %4676 = vmatpush.xpose.msk.msra.mxu2 %vm10797_vm2, %v10743_v36  ;;  %4692 = vmatpush.xpose.msk.msra.mxu3 %vm10799_vm4, %v10743_v36  ;;  %vm10821_vm2 = vnez %v10820_v6  ;;  %vm10823_vm4 = vnez %v10822_v42  ;;  %v10938_v6 = vld [vmem:[#allocation35_spill] sm:$0xff]  ;;  %v10940_v42 = vld [vmem:[#allocation36_spill] sm:$0xff] }
 0x541   : > { %4645 = vmatpush.xpose.msk.msra.mxu0 %vm10801_vm11, %v10743_v36  ;;  %4661 = vmatpush.xpose.msk.msra.mxu1 %vm10803_vm10, %v10743_v36  ;;  %vm10825_vm11 = vnez %v10824_v18  ;;  %vm10827_vm10 = vnez %v10826_v31 }
 0x542   : > { %4677 = vmatpush.xpose.msk.msra.mxu2 %vm10805_vm7, %v10743_v36  ;;  %4693 = vmatpush.xpose.msk.msra.mxu3 %vm10807_vm15, %v10743_v36  ;;  %vm10829_vm7 = vnez %v10828_v20  ;;  %vm10831_vm15 = vnez %v10830_v21  ;;  %v10942_v20 = vld [vmem:[#allocation37_spill] sm:$0xff]  ;;  %v10944_v21 = vld [vmem:[#allocation38_spill] sm:$0xff] }
 0x545   : > { %4646 = vmatpush.xpose.msk.msra.mxu0 %vm10809_vm5, %v10743_v36  ;;  %4662 = vmatpush.xpose.msk.msra.mxu1 %vm10811_vm8, %v10743_v36  ;;  %vm10832_vm5 = vnez %v10727_v40  ;;  %vm10836_vm8 = vnez %v10835_v29  ;;  %v10839_v40 = vld [vmem:[#allocation137_spill] sm:$0xff]  ;;  %v10947_v29 = vld [vmem:[#allocation156_spill] sm:$0xff] }
 0x546   : > { %4678 = vmatpush.xpose.msk.msra.mxu2 %vm10813_vm12, %v10743_v36  ;;  %4694 = vmatpush.xpose.msk.msra.mxu3 %vm10815_vm3, %v10743_v36  ;;  %vm10838_vm12 = vnez %v10837_v12  ;;  %vm10840_vm3 = vnez %v10839_v40 }
 0x549   : > { %4647 = vmatpush.xpose.msk.msra.mxu0 %vm10817_vm6, %v10743_v36  ;;  %4663 = vmatpush.xpose.msk.msra.mxu1 %vm10819_vm14, %v10743_v36  ;;  %vm10849_vm6 = vnez %v10848_v3  ;;  %vm10851_vm14 = vnez %v10850_v63  ;;  %v10949_v63 = vld [vmem:[#allocation158_spill] sm:$0xff] }
 0x54a   : > { %4679 = vmatpush.xpose.msk.msra.mxu2 %vm10825_vm11, %v10743_v36  ;;  %4695 = vmatpush.xpose.msk.msra.mxu3 %vm10827_vm10, %v10743_v36  ;;  %vm10859_vm11 = vnez %v10858_v5  ;;  %vm10861_vm10 = vnez %v10860_v25  ;;  %v10950_v5 = vld [vmem:[#allocation159_spill] sm:$0xff] }
 0x54d   : > { %4696 = vmatpush.xpose.msk.msrb.mxu0 %vm10821_vm2, %v10743_v36  ;;  %4712 = vmatpush.xpose.msk.msrb.mxu1 %vm10823_vm4, %v10743_v36  ;;  %vm10855_vm2 = vnez %v10854_v19  ;;  %vm10857_vm4 = vnez %v10856_v61 }
 0x54e   : > { %4728 = vmatpush.xpose.msk.msrb.mxu2 %vm10829_vm7, %v10743_v36  ;;  %4744 = vmatpush.xpose.msk.msrb.mxu3 %vm10831_vm15, %v10743_v36  ;;  %vm10863_vm7 = vnez %v10862_v17  ;;  %vm10865_vm15 = vnez %v10864_v8  ;;  %v10951_v17 = vld [vmem:[#allocation160_spill] sm:$0xff] }
 0x551   : > { %4697 = vmatpush.xpose.msk.msrb.mxu0 %vm10832_vm5, %v10743_v36  ;;  %4713 = vmatpush.xpose.msk.msrb.mxu1 %vm10736_vm13, %v10743_v36  ;;  %vm10843_vm13 = vnez %v10842_v28  ;;  %vm10867_vm5 = vnez %v10866_v52 }
 0x552   : > { %4729 = vmatpush.xpose.msk.msrb.mxu2 %vm10738_vm9, %v10743_v36  ;;  %4745 = vmatpush.xpose.msk.msrb.mxu3 %vm10742_vm1, %v10743_v36  ;;  %vm10845_vm1 = vnez %v10844_v45  ;;  %vm10847_vm9 = vnez %v10846_v37  ;;  %v10948_v37 = vld [vmem:[#allocation157_spill] sm:$0xff] }
 0x555   : > { %4698 = vmatpush.xpose.msk.msrb.mxu0 %vm10836_vm8, %v10743_v36  ;;  %4714 = vmatpush.xpose.msk.msrb.mxu1 %vm10838_vm12, %v10743_v36  ;;  %vm10869_vm8 = vnez %v10868_v1  ;;  %vm10871_vm12 = vnez %v10870_v14 }
 0x556   : > { %4730 = vmatpush.xpose.msk.msrb.mxu2 %vm10840_vm3, %v10743_v36  ;;  %4746 = vmatpush.xpose.msk.msrb.mxu3 %vm10740_vm0, %v10743_v36  ;;  %vm10853_vm0 = vnez %v10852_v47  ;;  %vm10873_vm3 = vnez %v10872_v58 }
 0x559   : > { %4699 = vmatpush.xpose.msk.msrb.mxu0 %vm10843_vm13, %v10743_v36  ;;  %4715 = vmatpush.xpose.msk.msrb.mxu1 %vm10845_vm1, %v10743_v36  ;;  %vm10875_vm13 = vnez %v10874_v54  ;;  %vm10877_vm1 = vnez %v10876_v60 }
 0x55a   : > { %4731 = vmatpush.xpose.msk.msrb.mxu2 %vm10847_vm9, %v10743_v36  ;;  %4747 = vmatpush.xpose.msk.msrb.mxu3 %vm10849_vm6, %v10743_v36  ;;  %vm10879_vm9 = vnez %v10878_v23  ;;  %vm10881_vm6 = vnez %v10880_v59  ;;  %v10952_v59 = vld [vmem:[#allocation161_spill] sm:$0xff] }
 0x55d   : > { %4700 = vmatpush.xpose.msk.msrb.mxu0 %vm10851_vm14, %v10743_v36  ;;  %4716 = vmatpush.xpose.msk.msrb.mxu1 %vm10853_vm0, %v10743_v36  ;;  %vm10883_vm14 = vnez %v10882_v4  ;;  %vm10885_vm0 = vnez %v10884_v62  ;;  %v10953_v62 = vld [vmem:[#allocation162_spill] sm:$0xff] }
 0x55e   : > { %4732 = vmatpush.xpose.msk.msrb.mxu2 %vm10855_vm2, %v10743_v36  ;;  %4748 = vmatpush.xpose.msk.msrb.mxu3 %vm10857_vm4, %v10743_v36  ;;  %vm10887_vm2 = vnez %v10886_v35  ;;  %vm10889_vm4 = vnez %v10888_v46 }
 0x561   : > { %4701 = vmatpush.xpose.msk.msrb.mxu0 %vm10859_vm11, %v10743_v36  ;;  %4717 = vmatpush.xpose.msk.msrb.mxu1 %vm10861_vm10, %v10743_v36  ;;  %vm10891_vm11 = vnez %v10890_v48  ;;  %vm10893_vm10 = vnez %v10892_v9 }
 0x562   : > { %4733 = vmatpush.xpose.msk.msrb.mxu2 %vm10863_vm7, %v10743_v36  ;;  %4749 = vmatpush.xpose.msk.msrb.mxu3 %vm10865_vm15, %v10743_v36  ;;  %vm10895_vm7 = vnez %v10894_v24  ;;  %vm10897_vm15 = vnez %v10896_v33 }
 0x565   : > { %4702 = vmatpush.xpose.msk.msrb.mxu0 %vm10867_vm5, %v10743_v36  ;;  %4718 = vmatpush.xpose.msk.msrb.mxu1 %vm10869_vm8, %v10743_v36  ;;  %vm10899_vm5 = vnez %v10898_v53  ;;  %vm10901_vm8 = vnez %v10900_v44 }
 0x566   : > { %4734 = vmatpush.xpose.msk.msrb.mxu2 %vm10871_vm12, %v10743_v36  ;;  %4750 = vmatpush.xpose.msk.msrb.mxu3 %vm10873_vm3, %v10743_v36  ;;  %vm10903_vm12 = vnez %v10902_v34  ;;  %vm10905_vm3 = vnez %v10904_v32 }
 0x569   : > { %4703 = vmatpush.xpose.msk.msrb.mxu0 %vm10875_vm13, %v10743_v36  ;;  %4719 = vmatpush.xpose.msk.msrb.mxu1 %vm10877_vm1, %v10743_v36  ;;  %vm10907_vm13 = vnez %v10906_v41  ;;  %vm10909_vm1 = vnez %v10908_v39  ;;  %v3632_v39 = vmul.f32 1.442695, %v3631_v10 }
 0x56a   : > { %4735 = vmatpush.xpose.msk.msrb.mxu2 %vm10879_vm9, %v10743_v36  ;;  %4751 = vmatpush.xpose.msk.msrb.mxu3 %vm10881_vm6, %v10743_v36  ;;  %vm10911_vm9 = vnez %v10910_v0  ;;  %vm10913_vm6 = vnez %v10912_v50 }
 0x56d   : > { %4704 = vmatpush.xpose.msk.msrb.mxu0 %vm10883_vm14, %v10743_v36  ;;  %4720 = vmatpush.xpose.msk.msrb.mxu1 %vm10885_vm0, %v10743_v36  ;;  %vm10915_vm14 = vnez %v10914_v27  ;;  %vm10917_vm0 = vnez %v10916_v2 }
 0x56e   : > { %4736 = vmatpush.xpose.msk.msrb.mxu2 %vm10887_vm2, %v10743_v36  ;;  %4752 = vmatpush.xpose.msk.msrb.mxu3 %vm10889_vm4, %v10743_v36  ;;  %vm10919_vm2 = vnez %v10918_v16  ;;  %vm10921_vm4 = vnez %v10920_v38 }
 0x571   : > { %4705 = vmatpush.xpose.msk.msrb.mxu0 %vm10891_vm11, %v10743_v36  ;;  %4721 = vmatpush.xpose.msk.msrb.mxu1 %vm10893_vm10, %v10743_v36  ;;  %vm10923_vm11 = vnez %v10922_v56  ;;  %vm10925_vm10 = vnez %v10924_v43 }
 0x572   : > { %4737 = vmatpush.xpose.msk.msrb.mxu2 %vm10895_vm7, %v10743_v36  ;;  %4753 = vmatpush.xpose.msk.msrb.mxu3 %vm10897_vm15, %v10743_v36  ;;  %vm10927_vm7 = vnez %v10926_v11  ;;  %vm10929_vm15 = vnez %v10928_v7 }
 0x575   : > { %4706 = vmatpush.xpose.msk.msrb.mxu0 %vm10899_vm5, %v10743_v36  ;;  %4722 = vmatpush.xpose.msk.msrb.mxu1 %vm10901_vm8, %v10743_v36  ;;  %vm10931_vm5 = vnez %v10930_v26  ;;  %vm10933_vm8 = vnez %v10932_v30  ;;  %v3630_v30 = vld [vmem:[#allocation15] sm:$0x1] }
 0x576   : > { %4738 = vmatpush.xpose.msk.msrb.mxu2 %vm10903_vm12, %v10743_v36  ;;  %4754 = vmatpush.xpose.msk.msrb.mxu3 %vm10905_vm3, %v10743_v36  ;;  %vm10935_vm12 = vnez %v10934_v51  ;;  %vm10937_vm3 = vnez %v10936_v57 }
 0x579   : > { %4707 = vmatpush.xpose.msk.msrb.mxu0 %vm10907_vm13, %v10743_v36  ;;  %4723 = vmatpush.xpose.msk.msrb.mxu1 %vm10909_vm1, %v10743_v36  ;;  %vm10939_vm13 = vnez %v10938_v6  ;;  %vm10941_vm1 = vnez %v10940_v42 }
 0x57a   : > { %4739 = vmatpush.xpose.msk.msrb.mxu2 %vm10911_vm9, %v10743_v36  ;;  %4755 = vmatpush.xpose.msk.msrb.mxu3 %vm10913_vm6, %v10743_v36  ;;  %vm10943_vm9 = vnez %v10942_v20  ;;  %vm10945_vm6 = vnez %v10944_v21 }
 0x57d   : > { %4708 = vmatpush.xpose.msk.msrb.mxu0 %vm10915_vm14, %v10743_v36  ;;  %4724 = vmatpush.xpose.msk.msrb.mxu1 %vm10917_vm0, %v10743_v36 }
 0x57e   : > { %4740 = vmatpush.xpose.msk.msrb.mxu2 %vm10919_vm2, %v10743_v36  ;;  %4756 = vmatpush.xpose.msk.msrb.mxu3 %vm10921_vm4, %v10743_v36 }
 0x581   : > { %4709 = vmatpush.xpose.msk.msrb.mxu0 %vm10923_vm11, %v10743_v36  ;;  %4725 = vmatpush.xpose.msk.msrb.mxu1 %vm10925_vm10, %v10743_v36 }
 0x582   : > { %4741 = vmatpush.xpose.msk.msrb.mxu2 %vm10927_vm7, %v10743_v36  ;;  %4757 = vmatpush.xpose.msk.msrb.mxu3 %vm10929_vm15, %v10743_v36 }
 0x585   : > { %4710 = vmatpush.xpose.msk.msrb.mxu0 %vm10931_vm5, %v10743_v36  ;;  %4726 = vmatpush.xpose.msk.msrb.mxu1 %vm10933_vm8, %v10743_v36 }
 0x586   : > { %4742 = vmatpush.xpose.msk.msrb.mxu2 %vm10935_vm12, %v10743_v36  ;;  %4758 = vmatpush.xpose.msk.msrb.mxu3 %vm10937_vm3, %v10743_v36 }
 0x588   : > { %v3303_v18 = vpop.f32.mrf.mxu0  ;;  %v3323_v31 = vpop.f32.mrf.mxu1 }
 0x589   : > { %4711 = vmatpush.xpose.msk.msrb.mxu0 %vm10939_vm13, %v10743_v36  ;;  %4727 = vmatpush.xpose.msk.msrb.mxu1 %vm10941_vm1, %v10743_v36  ;;  %v3446_v49 = vsub.f32 %v10946_v13, %v3303_v18  ;;  %v3447_v12 = vsub.f32 %v10947_v29, %v3323_v31 }
 0x58a   : > { %4743 = vmatpush.xpose.msk.msrb.mxu2 %vm10943_vm9, %v10743_v36  ;;  %4759 = vmatpush.xpose.msk.msrb.mxu3 %vm10945_vm6, %v10743_v36 }
 0x58b   : > { %v3454_v40 = vmul.f32 1.442695, %v3446_v49  ;;  %v3456_v22 = vmul.f32 1.442695, %v3447_v12 }
 0x58d   : > { %4901 = vpow2.f32 %v3454_v40 }
 0x58e   : > { %4903 = vpow2.f32 %v3456_v22 }
 0x58f   : > { %v3343_v28 = vpop.f32.mrf.mxu2  ;;  %v3363_v45 = vpop.f32.mrf.mxu3 }
 0x590   : > { %v3448_v3 = vsub.f32 %v10948_v37, %v3343_v28  ;;  %v3449_v47 = vsub.f32 %v10949_v63, %v3363_v45  ;;  %v3383_v19 = vpop.f32.mrf.mxu0  ;;  %v3403_v61 = vpop.f32.mrf.mxu1 }
 0x591   : > { %v3450_v25 = vsub.f32 %v10950_v5, %v3383_v19  ;;  %v3451_v36 = vsub.f32 %v10951_v17, %v3403_v61 }
 0x592   : > { %v3458_v8 = vmul.f32 1.442695, %v3448_v3  ;;  %v3460_v52 = vmul.f32 1.442695, %v3449_v47 }
 0x593   : > { %v4902_v1 = vpop.eup %4901  ;;  %v3462_v14 = vmul.f32 1.442695, %v3450_v25  ;;  %v3464_v58 = vmul.f32 1.442695, %v3451_v36 }
 0x594   : > { %v4904_v54 = vpop.eup %4903  ;;  %4905 = vpow2.f32 %v3458_v8  ;;  %3486 = vmatmul.f32.vlgmr.msra.gmra.mxu0 %v4902_v1 }
 0x595   : > { %4907 = vpow2.f32 %v3460_v52  ;;  %3506 = vmatmul.f32.vlgmr.msra.gmra.mxu1 %v4904_v54 }
 0x596   : > { %4909 = vpow2.f32 %v3462_v14 }
 0x597   : > { %4911 = vpow2.f32 %v3464_v58  ;;  %v3423_v60 = vpop.f32.mrf.mxu2  ;;  %v3443_v23 = vpop.f32.mrf.mxu3 }
 0x598   : > { %v3452_v4 = vsub.f32 %v10952_v59, %v3423_v60  ;;  %v3453_v35 = vsub.f32 %v10953_v62, %v3443_v23 }
 0x59a   : > { %v4906_v46 = vpop.eup %4905  ;;  %v3466_v48 = vmul.f32 1.442695, %v3452_v4  ;;  %v3468_v9 = vmul.f32 1.442695, %v3453_v35 }
 0x59b   : > { %v4908_v24 = vpop.eup %4907  ;;  %3526 = vmatmul.f32.vlgmr.msra.gmra.mxu2 %v4906_v46 }
 0x59c   : > { %v4910_v33 = vpop.eup %4909  ;;  %4913 = vpow2.f32 %v3466_v48  ;;  %3546 = vmatmul.f32.vlgmr.msra.gmra.mxu3 %v4908_v24 }
 0x59d   : > { %v4912_v53 = vpop.eup %4911  ;;  %4915 = vpow2.f32 %v3468_v9  ;;  %3566 = vmatmul.f32.vlgmr.msrb.gmra.mxu0 %v4910_v33 }
 0x59e   : > { %3586 = vmatmul.f32.vlgmr.msrb.gmra.mxu1 %v4912_v53  ;;  %4917 = vpow2.f32 %v3632_v39 }
 0x5a2   : > { %v4914_v44 = vpop.eup %4913 }
 0x5a3   : > { %v4916_v34 = vpop.eup %4915  ;;  %3606 = vmatmul.f32.vlgmr.msrb.gmra.mxu2 %v4914_v44 }
 0x5a4   : > { %3626 = vmatmul.f32.vlgmr.msrb.gmra.mxu3 %v4916_v34  ;;  %v4918_v7 = vpop.eup %4917 }
 0x5a5   : > { %v3634_v42 = vmul.f32 %v4918_v7, %v3630_v30 }
 0x611   : > { %v3487_v32 = vpop.f32.mrf.mxu0 }
 0x612   : > { %v3507_v41 = vpop.f32.mrf.mxu1 }
 0x613   : > { %v3508_v0 = vadd.f32 %v3507_v41, %v3487_v32 }
 0x61a   : > { %v3567_v38 = vpop.f32.mrf.mxu0 }
 0x61b   : > { %v3587_v43 = vpop.f32.mrf.mxu1 }
 0x61e   : > { %v3527_v50 = vpop.f32.mrf.mxu2 }
 0x61f   : > { %v3528_v27 = vadd.f32 %v3527_v50, %v3508_v0  ;;  %v3547_v2 = vpop.f32.mrf.mxu3 }
 0x621   : > { %v3548_v16 = vadd.f32 %v3547_v2, %v3528_v27 }
 0x623   : > { %v3568_v56 = vadd.f32 %v3567_v38, %v3548_v16 }
 0x625   : > { %v3588_v11 = vadd.f32 %v3587_v43, %v3568_v56 }
 0x626   : > { %v3607_v26 = vpop.f32.mrf.mxu2 }
 0x627   : > { %v3608_v51 = vadd.f32 %v3607_v26, %v3588_v11  ;;  %v3627_v57 = vpop.f32.mrf.mxu3 }
 0x629   : > { %v3628_v6 = vadd.f32 %v3627_v57, %v3608_v51 }
 0x62b   : > { %v3635_v18 = vadd.f32 %v3634_v42, %v3628_v6 }
 0x62d   : > { %3636 = vst [vmem:[#allocation15] sm:$0x1] %v3635_v18 }
 0x62e PF: > { %s5173_s14 = smov [#allocation13]   ;;  %s10955_s28 = sld [smem:[#allocation174_spill]] }
 0x62f   : > { %s3664_s8 = sshll.u32 %s5173_s14, 4  ;;  %s3646_s1 = smul.u32 %s5149_s11, %s5153_s21  ;;  %s3665_s8 = int_to_ptr.vmem [resolvable:$true] %s3664_s8 }
 0x630   : > { %s3652_s10 = sshll.u32 %s545_s7, 4  ;;  %s10956_s0 = sld [smem:[#allocation173_spill]]  ;;  %s3653_s10 = int_to_ptr.vmem [resolvable:$true] %s3652_s10 }
 0x631   : > { %s4761_s23 = sshll.u32 %s3646_s1, 3  ;;  %s5174_s14 = smov [#allocation15]  }
 0x632   : > { %s3676_s3 = sshll.u32 %s5174_s14, 4  ;;  %s3677_s3 = int_to_ptr.vmem [resolvable:$true] %s3676_s3 }
 0x634   : > { %s3666_s13 = sshll.u32 %s10955_s28, 4  ;;  %s10957_s28 = sld [smem:[#allocation175_spill]]  ;;  %s3667_s13 = int_to_ptr.hbm [resolvable:$true] %s3666_s13 }
 0x635   : > { %4774 = dma.vmem_to_hbm [thread:$0]  (%p5340_p10), %s3665_s8, 16, %s3667_s13, [#allocation14]  }
 0x636   : > { %s3650_s2 = scalar_lea.hbm %s10956_s0, %s4761_s23  ;;  %s10958_s8 = sand.u32 1, %s5129_s16  }
 0x637   : > { %s3654_s4 = sshll.u32 %s3650_s2, 4  ;;  %s3639_s11 = scalar_lea.sflag [#allocation9], %s10958_s8  ;;  %s3655_s4 = int_to_ptr.hbm [resolvable:$true] %s3654_s4 }
 0x638   : > { %s5021_s21 = sshra.s32 %s3655_s4, 4  ;;  %s5027_s13 = scalar_lea.hbm %s10956_s0, 24  ;;  %s5022_s21 = int_to_ptr.hbm [resolvable:$true] %s5021_s21 }
 0x639   : > { %s5023_s22 = scalar_lea.hbm %s5022_s21, 8  ;;  %p5028_p6 = scmp.lt.s32.totalorder %s5022_s21, %s10956_s0 }
 0x63a   : > { %s3678_s5 = sshll.u32 %s10957_s28, 4  ;;  %p5024_p2 = scmp.ne.s32.totalorder %s5022_s21, %s5023_s22  ;;  %s3679_s5 = int_to_ptr.hbm [resolvable:$true] %s3678_s5 }
 0x63b   : > { %p5029_p7 = scmp.lt.s32.totalorder %s5027_s13, %s5023_s22 }
 0x63c   : > { %p5025_p4 = pnand %p5024_p2, %p5348_p13 }
 0x63d   : > { %p5030_p3 = por %p5029_p7, %p5028_p6 }
 0x63e   : > { %p5026_p5 = pneg %p5025_p4 }
 0x640   : > { %p5031_p9 = pnand %p5030_p3, %p5026_p5 }
 0x642   : > { %5034 = shalt.err (!%p5031_p9)
}
 0x643   : > { %4772 = dma.vmem_to_hbm [thread:$0]  (%p5348_p13), %s3653_s10, 128, %s3655_s4, %s3639_s11  }
 0x644   : > { %4776 = dma.vmem_to_hbm [thread:$0]  (%p5340_p10), %s3677_s3, 16, %s3679_s5, [#allocation14]  }
 0x645   : > { %5116 = dma.done.wait (%p5340_p10), [#allocation14], 32  }
 0x646   : > { %5118 = vsyncadd (%p5340_p10), [#allocation14], 4294967264 }
 0x647 PF: > { %s10959_s23 = sld [smem:[#allocation20_spill]]  ;;  %p4798_p11 = scmp.ge.s32.totalorder %s5165_s24, 2 }
 0x649   : > { %p4790_p8 = pnand %p4798_p11, %p5355_p1 }
 0x64b   : > { %p4791_p12 = pneg %p4790_p8 }
 0x64d   : > { %s3700_s12 = sand.u32 1, %s10959_s23  }
 0x64e   : > { %s3701_s29 = scalar_lea.sflag [#allocation9], %s3700_s12 }
 0x64f   : > { %5120 = dma.done.wait (%p4791_p12), %s3701_s29, 128  }
 0x650   : > { %5122 = vsyncadd (%p4791_p12), %s3701_s29, 4294967168  ;;  %s37_s24 = sadd.s32 1, %s5165_s24   ;;  %s10960_s3 = sld [smem:[#allocation21_spill]] }
 0x651   : > { %p34_p13 = scmp.ge.s32.totalorder %s37_s24, 8   ;;  %s10961_s17 = sld [smem:[#allocation29_spill]] }
 0x652   : > { %s10962_s4 = sld [smem:[#allocation22_spill]]  ;;  %s10968_s15 = smov %s5129_s16 }
 0x653   : > { %s10963_s20 = sld [smem:[#allocation27_spill]]  ;;  %s10970_s18 = smov %s5141_s19 }
 0x654   : > { %s10964_s11 = sld [smem:[#allocation23_spill]]  ;;  %36 = sbr.rel (!%p34_p13) target bundleno = 26 (0x1a), region = 157 }
 0x655   : > { %s10965_s21 = sld [smem:[#allocation24_spill]] }
 0x656   : > { %s10966_s22 = sld [smem:[#allocation25_spill]]  ;;  %s10969_s16 = smov %s10960_s3 }
 0x657   : > { %s10967_s23 = sld [smem:[#allocation26_spill]] }
 0x658   : > { %s10971_s19 = smov %s10962_s4 }
 0x659   :  { %3707 = vsyncpa [#allocation8], 1 }
 0x65a   :  { %3709 = vsyncpa [#allocation8 + $0x1], 1 }
 0x65b   :  { %3710 = vsyncpa [#allocation11], 1 }
 0x65c   :  { %3712 = vsyncpa [#allocation11 + $0x1], 1 }
 0x65d   :  { %3713 = vsyncpa [#allocation9], 1 }
 0x65e   :  { %3715 = vsyncpa [#allocation9 + $0x1], 1 }
 0x65f   :  { %3716 = vsyncpa [#allocation14], 1 }

</bundles_post_ra>
